<compile_context>
chip_gen: v7x
topology: tpu7x:2x2x1
jax: 0.10.0
libtpu: 0.0.40
codegen_flags: <defaults>
</compile_context>

<pallas_src>
import jax
import jax.numpy as jnp
from jax.experimental import pallas as pl
from jax.experimental.pallas import tpu as pltpu

# Module-implied dimensions.
INPUT_DIM = 32 * 32      # 1024
HIDDEN = 512
LATENT = 8
PAD = 128                # lane-padded latent width
TILE_B = 256             # batch tile (multiple of 128; fills v6e/v7x MXU M)
BATCH = 8                # small batch for the example run


def vae_kernel(
    x_ref, eps_ref,
    # encoder params (VMEM-resident across the batch grid)
    w1_ref, b1_ref, w2_ref, b2_ref, w_head_ref, b_head_ref,
    # decoder params
    wd1_ref, bd1_ref, wd2_ref, bd2_ref,
    # outputs
    lat_ref, dec_mu_ref,
):
    def mm(a, w_ref):
        # bf16 MXU inputs, f32 accumulation.
        return jnp.dot(a.astype(jnp.bfloat16), w_ref[...],
                       preferred_element_type=jnp.float32)

    x = x_ref[...]                                   # (TILE_B, INPUT_DIM) bf16

    # ---- Encoder ----
    h1 = jnp.maximum(mm(x, w1_ref) + b1_ref[...], 0.0)
    h2 = jnp.maximum(mm(h1, w2_ref) + b2_ref[...], 0.0)

    # Fused, lane-padded latent heads: one (HIDDEN x 256) matmul.
    #   lanes [0:LATENT)        -> mu
    #   lanes [PAD:PAD+LATENT)  -> log_sigma
    # Padding columns of w_head / b_head are exactly zero.
    head = mm(h2, w_head_ref) + b_head_ref[...]      # (TILE_B, 2*PAD)
    mu_pad = head[:, :PAD]          # mu in [0:L), exact zeros elsewhere
    ls_pad = head[:, PAD:]          # log_sigma in [0:L), exact zeros elsewhere

    sigma_pad = jnp.exp(ls_pad)     # sigma in [0:L); exp(0)=1 in padding lanes
                                    # (padding lanes are never read downstream)

    # ---- rsample ----  eps is zero-padded, so z_pad is exactly 0 outside [0:L)
    z_pad = mu_pad + sigma_pad * eps_ref[...]

    # Lane-dense output slab [ mu | sigma | z ] -> single (TILE_B, 384) DMA.
    lat_ref[:, :PAD] = mu_pad
    lat_ref[:, PAD:2 * PAD] = sigma_pad
    lat_ref[:, 2 * PAD:] = z_pad

    # ---- Decoder ----  (wd1 stored as (PAD, H) with true weight in rows [0:L))
    d1 = jnp.maximum(mm(z_pad, wd1_ref) + bd1_ref[...], 0.0)
    dec_mu_ref[...] = jnp.tanh(mm(d1, wd2_ref) + bd2_ref[...]).astype(
        dec_mu_ref.dtype)


def vae_forward(x, eps, params, tile_b=TILE_B):
    """Full VAE forward, batched over a Pallas grid.

    Returns (dec_mu, enc_mu, enc_sigma, z). Decoder dist is Normal(dec_mu, 1);
    q_z is Normal(enc_mu, enc_sigma).
    """
    B = x.shape[0]
    n_tiles = max(1, pl.cdiv(B, tile_b))
    b_pad = n_tiles * tile_b

    # Streaming inputs: x in bf16 (halves the per-row HBM read), eps zero-padded
    # to the 128-lane latent layout used inside the kernel.
    x_pad = jnp.zeros((b_pad, INPUT_DIM), jnp.bfloat16)
    x_pad = x_pad.at[:B].set(x.astype(jnp.bfloat16))
    eps_pad = jnp.zeros((b_pad, PAD), jnp.float32)
    eps_pad = eps_pad.at[:B, :LATENT].set(eps)

    weight_keys = ("w1", "b1", "w2", "b2", "w_head", "b_head",
                   "wd1", "bd1", "wd2", "bd2")
    args = (x_pad, eps_pad) + tuple(params[k] for k in weight_keys)

    def tile_spec(cols):
        return pl.BlockSpec((tile_b, cols), lambda i: (i, 0))

    def resident_spec(arr):
        # Full-extent block, constant index map -> DMA'd once per core, then
        # stays resident in VMEM across all batch tiles.
        return pl.BlockSpec(arr.shape, lambda i: (0, 0))

    in_specs = [tile_spec(INPUT_DIM), tile_spec(PAD)] + [
        resident_spec(params[k]) for k in weight_keys
    ]
    out_specs = [tile_spec(3 * PAD), tile_spec(INPUT_DIM)]
    out_shapes = (
        jax.ShapeDtypeStruct((b_pad, 3 * PAD), jnp.float32),     # [mu|sigma|z]
        jax.ShapeDtypeStruct((b_pad, INPUT_DIM), jnp.bfloat16),  # dec_mu
    )

    flops = 2 * b_pad * (INPUT_DIM * HIDDEN + HIDDEN * HIDDEN
                         + HIDDEN * 2 * PAD + PAD * HIDDEN + HIDDEN * INPUT_DIM)
    transcendentals = b_pad * (PAD + INPUT_DIM)                  # exp + tanh
    bytes_accessed = (sum(int(a.size) * a.dtype.itemsize for a in args)
                      + b_pad * 3 * PAD * 4 + b_pad * INPUT_DIM * 2)

    lat, dec_mu = pl.pallas_call(
        vae_kernel,
        out_shape=out_shapes,
        grid_spec=pltpu.PrefetchScalarGridSpec(
            num_scalar_prefetch=0,
            grid=(n_tiles,),
            in_specs=in_specs,
            out_specs=out_specs,
        ),
        compiler_params=pltpu.CompilerParams(
            # Megacore on v7x: each TC takes half the batch tiles (its own
            # cheap ~3 MiB resident weight copy). No-op on v5e/v6e (1 TC).
            dimension_semantics=("parallel",),
            vmem_limit_bytes=32 * 1024 * 1024,
        ),
        cost_estimate=pl.CostEstimate(
            flops=flops,
            transcendentals=transcendentals,
            bytes_accessed=bytes_accessed,
        ),
    )(*args)

    enc_mu = lat[:B, :LATENT]
    enc_sigma = lat[:B, PAD:PAD + LATENT]
    z = lat[:B, 2 * PAD:2 * PAD + LATENT]
    dec_mu = dec_mu[:B].astype(jnp.float32)
    return dec_mu, enc_mu, enc_sigma, z


def init_params(key):
    """Deterministic init. Weights (in, out); matmul weights bf16, biases f32."""
    ks = jax.random.split(key, 12)
    scale = 0.02

    def w(k, shape):
        return (scale * jax.random.normal(k, shape)).astype(jnp.float32)

    def b(k, n):
        return (scale * jax.random.normal(k, (1, n))).astype(jnp.float32)

    # Fused, lane-padded latent heads.
    wmu, bmu = w(ks[4], (HIDDEN, LATENT)), b(ks[5], LATENT)
    wls, bls = w(ks[6], (HIDDEN, LATENT)), b(ks[7], LATENT)
    w_head = jnp.zeros((HIDDEN, 2 * PAD), jnp.float32)
    w_head = w_head.at[:, :LATENT].set(wmu)
    w_head = w_head.at[:, PAD:PAD + LATENT].set(wls)
    b_head = jnp.zeros((1, 2 * PAD), jnp.float32)
    b_head = b_head.at[:, :LATENT].set(bmu)
    b_head = b_head.at[:, PAD:PAD + LATENT].set(bls)

    # Decoder first layer, zero-padded on the latent (contraction) dim.
    wd1 = w(ks[8], (LATENT, HIDDEN))
    wd1_pad = jnp.zeros((PAD, HIDDEN), jnp.float32).at[:LATENT, :].set(wd1)

    # TODO(synk): optional further win — store w1/w2/wd2 as int8 (v5e/v6e) or
    # fp8-e4m3 (v7x) with per-channel scales folded into the bias add.
    bf = lambda a: a.astype(jnp.bfloat16)
    return {
        "w1": bf(w(ks[0], (INPUT_DIM, HIDDEN))), "b1": b(ks[1], HIDDEN),
        "w2": bf(w(ks[2], (HIDDEN, HIDDEN))),    "b2": b(ks[3], HIDDEN),
        "w_head": bf(w_head),                    "b_head": b_head,
        "wd1": bf(wd1_pad),                      "bd1": b(ks[9], HIDDEN),
        "wd2": bf(w(ks[10], (HIDDEN, INPUT_DIM))), "bd2": b(ks[11], INPUT_DIM),
    }


def vae_forward_ref(x, eps, p):
    """Plain-JAX reference with identical bf16-weight / bf16-output semantics."""
    def mm(a, w):
        return jnp.dot(a.astype(jnp.bfloat16), w,
                       preferred_element_type=jnp.float32)

    B = x.shape[0]
    h1 = jnp.maximum(mm(x, p["w1"]) + p["b1"], 0.0)
    h2 = jnp.maximum(mm(h1, p["w2"]) + p["b2"], 0.0)
    head = mm(h2, p["w_head"]) + p["b_head"]
    mu = head[:, :LATENT]
    sigma = jnp.exp(head[:, PAD:PAD + LATENT])
    z = mu + sigma * eps
    z_pad = jnp.zeros((B, PAD), jnp.float32).at[:, :LATENT].set(z)
    d1 = jnp.maximum(mm(z_pad, p["wd1"]) + p["bd1"], 0.0)
    dec_mu = jnp.tanh(mm(d1, p["wd2"]) + p["bd2"])
    dec_mu = dec_mu.astype(jnp.bfloat16).astype(jnp.float32)  # kernel emits bf16
    return dec_mu, mu, sigma, z


if __name__ == "__main__":
    key = jax.random.PRNGKey(0)
    k_param, k_x, k_eps = jax.random.split(key, 3)

    params = init_params(k_param)
    x = jax.random.normal(k_x, (BATCH, INPUT_DIM), dtype=jnp.float32)
    # deterministic noise for rsample's reparameterization
    eps = jax.random.normal(k_eps, (BATCH, LATENT), dtype=jnp.float32)

    dec_mu, enc_mu, enc_sigma, z = jax.block_until_ready(
        vae_forward(x, eps, params)
    )

    # correctness check vs. plain-JAX reference (same bf16 semantics)
    r_dec_mu, r_mu, r_sigma, r_z = vae_forward_ref(x, eps, params)
    assert jnp.allclose(enc_mu, r_mu, atol=1e-3, rtol=1e-3)
    assert jnp.allclose(enc_sigma, r_sigma, atol=1e-3, rtol=1e-3)
    assert jnp.allclose(z, r_z, atol=1e-3, rtol=1e-3)
    assert jnp.allclose(dec_mu, r_dec_mu, atol=5e-3, rtol=5e-3)

    print("KERNEL_OK")
</pallas_src>

<mosaic_0001>
module attributes {stable_mosaic.version = 11 : i64} {
  func.func @vae_kernel(%arg0: i32, %arg1: memref<256x1024xbf16, #tpu.memory_space<vmem>>, %arg2: memref<256x128xf32, #tpu.memory_space<vmem>>, %arg3: memref<1024x512xbf16, #tpu.memory_space<vmem>>, %arg4: memref<1x512xf32, #tpu.memory_space<vmem>>, %arg5: memref<512x512xbf16, #tpu.memory_space<vmem>>, %arg6: memref<1x512xf32, #tpu.memory_space<vmem>>, %arg7: memref<512x256xbf16, #tpu.memory_space<vmem>>, %arg8: memref<1x256xf32, #tpu.memory_space<vmem>>, %arg9: memref<128x512xbf16, #tpu.memory_space<vmem>>, %arg10: memref<1x512xf32, #tpu.memory_space<vmem>>, %arg11: memref<512x1024xbf16, #tpu.memory_space<vmem>>, %arg12: memref<1x1024xf32, #tpu.memory_space<vmem>>, %arg13: memref<256x384xf32, #tpu.memory_space<vmem>>, %arg14: memref<256x1024xbf16, #tpu.memory_space<vmem>>) attributes {dimension_semantics = [#tpu.dimension_semantics<parallel>], iteration_bounds = array<i64: 1>, scalar_prefetch = 0 : i64, scratch_operands = 0 : i64, tpu.core_type = #tpu.core_type<tc>, window_params = [{transform_indices = @transform_0, window_bounds = array<i64: 256, 1024>}, {transform_indices = @transform_1, window_bounds = array<i64: 256, 128>}, {pipeline_mode = #tpu.pipeline_mode<synchronous>, transform_indices = @transform_2, window_bounds = array<i64: 1024, 512>}, {pipeline_mode = #tpu.pipeline_mode<synchronous>, transform_indices = @transform_3, window_bounds = array<i64: 1, 512>}, {pipeline_mode = #tpu.pipeline_mode<synchronous>, transform_indices = @transform_4, window_bounds = array<i64: 512, 512>}, {pipeline_mode = #tpu.pipeline_mode<synchronous>, transform_indices = @transform_5, window_bounds = array<i64: 1, 512>}, {pipeline_mode = #tpu.pipeline_mode<synchronous>, transform_indices = @transform_6, window_bounds = array<i64: 512, 256>}, {pipeline_mode = #tpu.pipeline_mode<synchronous>, transform_indices = @transform_7, window_bounds = array<i64: 1, 256>}, {pipeline_mode = #tpu.pipeline_mode<synchronous>, transform_indices = @transform_8, window_bounds = array<i64: 128, 512>}, {pipeline_mode = #tpu.pipeline_mode<synchronous>, transform_indices = @transform_9, window_bounds = array<i64: 1, 512>}, {pipeline_mode = #tpu.pipeline_mode<synchronous>, transform_indices = @transform_10, window_bounds = array<i64: 512, 1024>}, {pipeline_mode = #tpu.pipeline_mode<synchronous>, transform_indices = @transform_11, window_bounds = array<i64: 1, 1024>}, {transform_indices = @transform_12, window_bounds = array<i64: 256, 384>}, {transform_indices = @transform_13, window_bounds = array<i64: 256, 1024>}]} {
    %c0 = arith.constant 0 : index
    %c0_0 = arith.constant 0 : index
    %0 = vector.load %arg1[%c0, %c0_0] : memref<256x1024xbf16, #tpu.memory_space<vmem>>, vector<256x1024xbf16>
    %c0_1 = arith.constant 0 : index
    %c0_2 = arith.constant 0 : index
    %1 = vector.load %arg3[%c0_1, %c0_2] : memref<1024x512xbf16, #tpu.memory_space<vmem>>, vector<1024x512xbf16>
    %cst = arith.constant dense<0.000000e+00> : vector<256x512xf32>
    %2 = tpu.matmul %0, %1, %cst {dimension_numbers = #tpu.dot_dimension_numbers<[1], [0], [0], [1], [0, 0, 1, 1], [], []>} : vector<256x1024xbf16>, vector<1024x512xbf16>, vector<256x512xf32> -> vector<256x512xf32>
    %c0_3 = arith.constant 0 : index
    %c0_4 = arith.constant 0 : index
    %3 = vector.load %arg4[%c0_3, %c0_4] : memref<1x512xf32, #tpu.memory_space<vmem>>, vector<1x512xf32>
    %4 = vector.broadcast %3 : vector<1x512xf32> to vector<256x512xf32>
    %5 = arith.addf %2, %4 : vector<256x512xf32>
    %cst_5 = arith.constant 0.000000e+00 : f32
    %6 = vector.broadcast %cst_5 : f32 to vector<256x512xf32>
    %7 = arith.maximumf %5, %6 : vector<256x512xf32>
    %8 = arith.truncf %7 : vector<256x512xf32> to vector<256x512xbf16>
    %c0_6 = arith.constant 0 : index
    %c0_7 = arith.constant 0 : index
    %9 = vector.load %arg5[%c0_6, %c0_7] : memref<512x512xbf16, #tpu.memory_space<vmem>>, vector<512x512xbf16>
    %cst_8 = arith.constant dense<0.000000e+00> : vector<256x512xf32>
    %10 = tpu.matmul %8, %9, %cst_8 {dimension_numbers = #tpu.dot_dimension_numbers<[1], [0], [0], [1], [0, 0, 1, 1], [], []>} : vector<256x512xbf16>, vector<512x512xbf16>, vector<256x512xf32> -> vector<256x512xf32>
    %c0_9 = arith.constant 0 : index
    %c0_10 = arith.constant 0 : index
    %11 = vector.load %arg6[%c0_9, %c0_10] : memref<1x512xf32, #tpu.memory_space<vmem>>, vector<1x512xf32>
    %12 = vector.broadcast %11 : vector<1x512xf32> to vector<256x512xf32>
    %13 = arith.addf %10, %12 : vector<256x512xf32>
    %cst_11 = arith.constant 0.000000e+00 : f32
    %14 = vector.broadcast %cst_11 : f32 to vector<256x512xf32>
    %15 = arith.maximumf %13, %14 : vector<256x512xf32>
    %16 = arith.truncf %15 : vector<256x512xf32> to vector<256x512xbf16>
    %c0_12 = arith.constant 0 : index
    %c0_13 = arith.constant 0 : index
    %17 = vector.load %arg7[%c0_12, %c0_13] : memref<512x256xbf16, #tpu.memory_space<vmem>>, vector<512x256xbf16>
    %cst_14 = arith.constant dense<0.000000e+00> : vector<256x256xf32>
    %18 = tpu.matmul %16, %17, %cst_14 {dimension_numbers = #tpu.dot_dimension_numbers<[1], [0], [0], [1], [0, 0, 1, 1], [], []>} : vector<256x512xbf16>, vector<512x256xbf16>, vector<256x256xf32> -> vector<256x256xf32>
    %c0_15 = arith.constant 0 : index
    %c0_16 = arith.constant 0 : index
    %19 = vector.load %arg8[%c0_15, %c0_16] : memref<1x256xf32, #tpu.memory_space<vmem>>, vector<1x256xf32>
    %20 = vector.broadcast %19 : vector<1x256xf32> to vector<256x256xf32>
    %21 = arith.addf %18, %20 : vector<256x256xf32>
    %22 = vector.extract_strided_slice %21 {offsets = [0, 0], sizes = [256, 128], strides = [1, 1]} : vector<256x256xf32> to vector<256x128xf32>
    %23 = vector.extract_strided_slice %21 {offsets = [0, 128], sizes = [256, 128], strides = [1, 1]} : vector<256x256xf32> to vector<256x128xf32>
    %24 = math.exp %23 : vector<256x128xf32>
    %c0_17 = arith.constant 0 : index
    %c0_18 = arith.constant 0 : index
    %25 = vector.load %arg2[%c0_17, %c0_18] : memref<256x128xf32, #tpu.memory_space<vmem>>, vector<256x128xf32>
    %26 = arith.mulf %24, %25 : vector<256x128xf32>
    %27 = arith.addf %22, %26 : vector<256x128xf32>
    %c0_19 = arith.constant 0 : index
    %c0_20 = arith.constant 0 : index
    %28 = vector.load %arg13[%c0_19, %c0_20] : memref<256x384xf32, #tpu.memory_space<vmem>>, vector<256x128xf32>
    tpu.vector_store %arg13[%c0_19, %c0_20], %22 {strides = array<i32>} : memref<256x384xf32, #tpu.memory_space<vmem>>, vector<256x128xf32>,
    %c0_21 = arith.constant 0 : index
    %c128 = arith.constant 128 : index
    %29 = vector.load %arg13[%c0_21, %c128] : memref<256x384xf32, #tpu.memory_space<vmem>>, vector<256x128xf32>
    tpu.vector_store %arg13[%c0_21, %c128], %24 {strides = array<i32>} : memref<256x384xf32, #tpu.memory_space<vmem>>, vector<256x128xf32>,
    %c0_22 = arith.constant 0 : index
    %c256 = arith.constant 256 : index
    %30 = vector.load %arg13[%c0_22, %c256] : memref<256x384xf32, #tpu.memory_space<vmem>>, vector<256x128xf32>
    tpu.vector_store %arg13[%c0_22, %c256], %27 {strides = array<i32>} : memref<256x384xf32, #tpu.memory_space<vmem>>, vector<256x128xf32>,
    %31 = arith.truncf %27 : vector<256x128xf32> to vector<256x128xbf16>
    %c0_23 = arith.constant 0 : index
    %c0_24 = arith.constant 0 : index
    %32 = vector.load %arg9[%c0_23, %c0_24] : memref<128x512xbf16, #tpu.memory_space<vmem>>, vector<128x512xbf16>
    %cst_25 = arith.constant dense<0.000000e+00> : vector<256x512xf32>
    %33 = tpu.matmul %31, %32, %cst_25 {dimension_numbers = #tpu.dot_dimension_numbers<[1], [0], [0], [1], [0, 0, 1, 1], [], []>} : vector<256x128xbf16>, vector<128x512xbf16>, vector<256x512xf32> -> vector<256x512xf32>
    %c0_26 = arith.constant 0 : index
    %c0_27 = arith.constant 0 : index
    %34 = vector.load %arg10[%c0_26, %c0_27] : memref<1x512xf32, #tpu.memory_space<vmem>>, vector<1x512xf32>
    %35 = vector.broadcast %34 : vector<1x512xf32> to vector<256x512xf32>
    %36 = arith.addf %33, %35 : vector<256x512xf32>
    %cst_28 = arith.constant 0.000000e+00 : f32
    %37 = vector.broadcast %cst_28 : f32 to vector<256x512xf32>
    %38 = arith.maximumf %36, %37 : vector<256x512xf32>
    %39 = arith.truncf %38 : vector<256x512xf32> to vector<256x512xbf16>
    %c0_29 = arith.constant 0 : index
    %c0_30 = arith.constant 0 : index
    %40 = vector.load %arg11[%c0_29, %c0_30] : memref<512x1024xbf16, #tpu.memory_space<vmem>>, vector<512x1024xbf16>
    %cst_31 = arith.constant dense<0.000000e+00> : vector<256x1024xf32>
    %41 = tpu.matmul %39, %40, %cst_31 {dimension_numbers = #tpu.dot_dimension_numbers<[1], [0], [0], [1], [0, 0, 1, 1], [], []>} : vector<256x512xbf16>, vector<512x1024xbf16>, vector<256x1024xf32> -> vector<256x1024xf32>
    %c0_32 = arith.constant 0 : index
    %c0_33 = arith.constant 0 : index
    %42 = vector.load %arg12[%c0_32, %c0_33] : memref<1x1024xf32, #tpu.memory_space<vmem>>, vector<1x1024xf32>
    %43 = vector.broadcast %42 : vector<1x1024xf32> to vector<256x1024xf32>
    %44 = arith.addf %41, %43 : vector<256x1024xf32>
    %45 = math.tanh %44 : vector<256x1024xf32>
    %46 = arith.truncf %45 : vector<256x1024xf32> to vector<256x1024xbf16>
    %c0_34 = arith.constant 0 : index
    %c0_35 = arith.constant 0 : index
    %47 = vector.load %arg14[%c0_34, %c0_35] : memref<256x1024xbf16, #tpu.memory_space<vmem>>, vector<256x1024xbf16>
    tpu.vector_store %arg14[%c0_34, %c0_35], %46 {strides = array<i32>} : memref<256x1024xbf16, #tpu.memory_space<vmem>>, vector<256x1024xbf16>,
    return
  }
  func.func @transform_0(%arg0: i32) -> (i32, i32) {
    %c0_i32 = arith.constant 0 : i32
    %c0_i32_0 = arith.constant 0 : i32
    return %arg0, %c0_i32 : i32, i32
  }
  func.func @transform_1(%arg0: i32) -> (i32, i32) {
    %c0_i32 = arith.constant 0 : i32
    %c0_i32_0 = arith.constant 0 : i32
    return %arg0, %c0_i32 : i32, i32
  }
  func.func @transform_2(%arg0: i32) -> (i32, i32) {
    %c0_i32 = arith.constant 0 : i32
    %c0_i32_0 = arith.constant 0 : i32
    %c0_i32_1 = arith.constant 0 : i32
    return %c0_i32, %c0_i32_0 : i32, i32
  }
  func.func @transform_3(%arg0: i32) -> (i32, i32) {
    %c0_i32 = arith.constant 0 : i32
    %c0_i32_0 = arith.constant 0 : i32
    %c0_i32_1 = arith.constant 0 : i32
    return %c0_i32, %c0_i32_0 : i32, i32
  }
  func.func @transform_4(%arg0: i32) -> (i32, i32) {
    %c0_i32 = arith.constant 0 : i32
    %c0_i32_0 = arith.constant 0 : i32
    %c0_i32_1 = arith.constant 0 : i32
    return %c0_i32, %c0_i32_0 : i32, i32
  }
  func.func @transform_5(%arg0: i32) -> (i32, i32) {
    %c0_i32 = arith.constant 0 : i32
    %c0_i32_0 = arith.constant 0 : i32
    %c0_i32_1 = arith.constant 0 : i32
    return %c0_i32, %c0_i32_0 : i32, i32
  }
  func.func @transform_6(%arg0: i32) -> (i32, i32) {
    %c0_i32 = arith.constant 0 : i32
    %c0_i32_0 = arith.constant 0 : i32
    %c0_i32_1 = arith.constant 0 : i32
    return %c0_i32, %c0_i32_0 : i32, i32
  }
  func.func @transform_7(%arg0: i32) -> (i32, i32) {
    %c0_i32 = arith.constant 0 : i32
    %c0_i32_0 = arith.constant 0 : i32
    %c0_i32_1 = arith.constant 0 : i32
    return %c0_i32, %c0_i32_0 : i32, i32
  }
  func.func @transform_8(%arg0: i32) -> (i32, i32) {
    %c0_i32 = arith.constant 0 : i32
    %c0_i32_0 = arith.constant 0 : i32
    %c0_i32_1 = arith.constant 0 : i32
    return %c0_i32, %c0_i32_0 : i32, i32
  }
  func.func @transform_9(%arg0: i32) -> (i32, i32) {
    %c0_i32 = arith.constant 0 : i32
    %c0_i32_0 = arith.constant 0 : i32
    %c0_i32_1 = arith.constant 0 : i32
    return %c0_i32, %c0_i32_0 : i32, i32
  }
  func.func @transform_10(%arg0: i32) -> (i32, i32) {
    %c0_i32 = arith.constant 0 : i32
    %c0_i32_0 = arith.constant 0 : i32
    %c0_i32_1 = arith.constant 0 : i32
    return %c0_i32, %c0_i32_0 : i32, i32
  }
  func.func @transform_11(%arg0: i32) -> (i32, i32) {
    %c0_i32 = arith.constant 0 : i32
    %c0_i32_0 = arith.constant 0 : i32
    %c0_i32_1 = arith.constant 0 : i32
    return %c0_i32, %c0_i32_0 : i32, i32
  }
  func.func @transform_12(%arg0: i32) -> (i32, i32) {
    %c0_i32 = arith.constant 0 : i32
    %c0_i32_0 = arith.constant 0 : i32
    return %arg0, %c0_i32 : i32, i32
  }
  func.func @transform_13(%arg0: i32) -> (i32, i32) {
    %c0_i32 = arith.constant 0 : i32
    %c0_i32_0 = arith.constant 0 : i32
    return %arg0, %c0_i32 : i32, i32
  }
}

</mosaic_0001>

<bundles_post_ra>
// kernel: tpu_custom_call.1
= control target key start
LH: loop header
LB: loop body
LE: loop exit
PB: predicated region body
PF: predicated region fallthrough
CT: control target
= control target key end

     0   :  { %19 = vsyncpa [#allocation3], 0  ;;  %s18099_s0 = inlined_call_operand.hbm [shape: bf16[256,1024], index: 0, kind: input, shape index: {}]   ;;  %s18100_s1 = inlined_call_operand.hbm [shape: f32[256,128], index: 1, kind: input, shape index: {}]   ;;  %s18101_s2 = inlined_call_operand.hbm [shape: bf16[1024,512], index: 2, kind: input, shape index: {}]   ;;  %s18102_s3 = inlined_call_operand.vmem [shape: f32[1,512], index: 3, kind: input, shape index: {}]   ;;  %s18103_s4 = inlined_call_operand.hbm [shape: bf16[512,512], index: 4, kind: input, shape index: {}]   ;;  %s18104_s5 = inlined_call_operand.vmem [shape: f32[1,512], index: 5, kind: input, shape index: {}]   ;;  %s18105_s6 = inlined_call_operand.hbm [shape: bf16[512,256], index: 6, kind: input, shape index: {}]   ;;  %s18106_s7 = inlined_call_operand.vmem [shape: f32[1,256], index: 7, kind: input, shape index: {}]   ;;  %s18107_s8 = inlined_call_operand.hbm [shape: bf16[128,512], index: 8, kind: input, shape index: {}]   ;;  %s18108_s9 = inlined_call_operand.vmem [shape: f32[1,512], index: 9, kind: input, shape index: {}]   ;;  %s18109_s10 = inlined_call_operand.hbm [shape: bf16[512,1024], index: 10, kind: input, shape index: {}]   ;;  %s18110_s11 = inlined_call_operand.vmem [shape: f32[1,1024], index: 11, kind: input, shape index: {}]   ;;  %s18111_s12 = inlined_call_operand.hbm [shape: f32[256,384], index: 12, kind: output, shape index: {0}]   ;;  %s18112_s13 = inlined_call_operand.hbm [shape: bf16[256,1024], index: 13, kind: output, shape index: {1}]  }
   0x1   :  { %20 = vsyncpa [#allocation6], 0 }
   0x2   :  { %21 = vsyncpa [#allocation9], 0 }
   0x3   :  { %22 = vsyncpa [#allocation12], 0 }
   0x4   :  { %23 = vsyncpa [#allocation4], 0 }
   0x5   :  { %24 = vsyncpa [#allocation16], 0  ;;  %s16166_s25 = smov [#allocation5]   ;;  %s15956_s29 = scalar_lea.hbm %s18100_s1, 4096 }
   0x6   :  { %s42_s26 = sshll.u32 %s16166_s25, 4  ;;  %p15957_p0 = scmp.ne.s32.totalorder %s18100_s1, %s15956_s29  ;;  %s43_s26 = int_to_ptr.vmem [resolvable:$true] %s42_s26 }
   0x7   :  { %p15960_p1 = scmp.lt.u32.totalorder %s15956_s29, %s18100_s1 }
   0x9   :  { %p15962_p2 = pnand %p15960_p1, %p15957_p0 }
   0xb   :  { %15965 = shalt.err (!%p15962_p2)
}
   0xc   :  { %s15966_s17 = scalar_lea.vmem %s43_s26, 4096  ;;  %p15971_p4 = scmp.lt.s32.totalorder %s43_s26, %s43_s26 }
   0xd   :  { %p15967_p3 = scmp.ne.s32.totalorder %s43_s26, %s15966_s17  ;;  %p15972_p5 = scmp.lt.s32.totalorder %s15966_s17, %s15966_s17 }
   0xf   :  { %p15973_p6 = por %p15972_p5, %p15971_p4 }
  0x11   :  { %p15974_p7 = pnand %p15973_p6, %p15967_p3 }
  0x13   :  { %15977 = shalt.err (!%p15974_p7)
}
  0x14   :  { %s16167_s18 = smov 128   ;;  %s16168_s19 = smov 8  }
  0x15   :  { %48 = dma.hbm_to_vmem [thread:$0]  %s18100_s1, 4096, %s43_s26, [#allocation6], %s16167_s18, %s16167_s18, %s16168_s19  }
  0x16   :  { %s16169_s22 = smov [#allocation8]   ;;  %s16170_s24 = smov [#allocation11]  }
  0x17   :  { %s68_s23 = sshll.u32 %s16169_s22, 4  ;;  %s96_s25 = sshll.u32 %s16170_s24, 4  ;;  %s69_s23 = int_to_ptr.vmem [resolvable:$true] %s68_s23  ;;  %s97_s25 = int_to_ptr.vmem [resolvable:$true] %s96_s25 }
  0x18   :  { %s15978_s29 = scalar_lea.hbm %s18103_s4, 16384 }
  0x19   :  { %p15979_p8 = scmp.ne.s32.totalorder %s18103_s4, %s15978_s29  ;;  %p15982_p9 = scmp.lt.u32.totalorder %s15978_s29, %s18103_s4 }
  0x1b   :  { %p15984_p10 = pnand %p15982_p9, %p15979_p8 }
  0x1d   :  { %15987 = shalt.err (!%p15984_p10)
}
  0x1e   :  { %s15988_s1 = scalar_lea.vmem %s69_s23, 16384  ;;  %p15993_p12 = scmp.lt.s32.totalorder %s69_s23, %s69_s23 }
  0x1f   :  { %p15989_p11 = scmp.ne.s32.totalorder %s69_s23, %s15988_s1  ;;  %p15994_p13 = scmp.lt.s32.totalorder %s15988_s1, %s15988_s1 }
  0x21   :  { %p15995_p0 = por %p15994_p13, %p15993_p12 }
  0x23   :  { %p15996_p1 = pnand %p15995_p0, %p15989_p11 }
  0x25   :  { %15999 = shalt.err (!%p15996_p1)
}
  0x26   :  { %s16171_s26 = smov 256   ;;  %s16172_s17 = smov 16  }
  0x27   :  { %74 = dma.hbm_to_vmem [thread:$0]  %s18103_s4, 16384, %s69_s23, [#allocation9], %s16171_s26, %s16171_s26, %s16172_s17  }
  0x28   :  { %s16000_s27 = scalar_lea.hbm %s18107_s8, 4096 }
  0x29   :  { %p16001_p2 = scmp.ne.s32.totalorder %s18107_s8, %s16000_s27  ;;  %p16004_p3 = scmp.lt.u32.totalorder %s16000_s27, %s18107_s8 }
  0x2b   :  { %p16006_p4 = pnand %p16004_p3, %p16001_p2 }
  0x2d   :  { %16009 = shalt.err (!%p16006_p4)
}
  0x2e   :  { %s16010_s15 = scalar_lea.vmem %s97_s25, 4096  ;;  %p16015_p6 = scmp.lt.s32.totalorder %s97_s25, %s97_s25 }
  0x2f   :  { %p16011_p5 = scmp.ne.s32.totalorder %s97_s25, %s16010_s15  ;;  %p16016_p7 = scmp.lt.s32.totalorder %s16010_s15, %s16010_s15 }
  0x31   :  { %p16017_p8 = por %p16016_p7, %p16015_p6 }
  0x33   :  { %p16018_p9 = pnand %p16017_p8, %p16011_p5 }
  0x35   :  { %16021 = shalt.err (!%p16018_p9)
}
  0x36   :  { %102 = dma.hbm_to_vmem [thread:$0]  %s18107_s8, 4096, %s97_s25, [#allocation12], %s16171_s26, %s16171_s26, %s16172_s17  }
  0x37   :  { %s16173_s16 = smov [#allocation2]   ;;  %s16022_s22 = scalar_lea.hbm %s18099_s0, 16384 }
  0x38   :  { %s30_s1 = sshll.u32 %s16173_s16, 4  ;;  %p16023_p10 = scmp.ne.s32.totalorder %s18099_s0, %s16022_s22  ;;  %s31_s1 = int_to_ptr.vmem [resolvable:$true] %s30_s1 }
  0x39   :  { %p16026_p11 = scmp.lt.u32.totalorder %s16022_s22, %s18099_s0 }
  0x3b   :  { %p16028_p12 = pnand %p16026_p11, %p16023_p10 }
  0x3d   :  { %16031 = shalt.err (!%p16028_p12)
}
  0x3e   :  { %s16032_s30 = scalar_lea.vmem %s31_s1, 16384  ;;  %p16037_p0 = scmp.lt.s32.totalorder %s31_s1, %s31_s1 }
  0x3f   :  { %p16033_p13 = scmp.ne.s32.totalorder %s31_s1, %s16032_s30  ;;  %p16038_p1 = scmp.lt.s32.totalorder %s16032_s30, %s16032_s30 }
  0x41   :  { %p16039_p2 = por %p16038_p1, %p16037_p0 }
  0x43   :  { %p16040_p3 = pnand %p16039_p2, %p16033_p13 }
  0x45   :  { %16043 = shalt.err (!%p16040_p3)
}
  0x46   :  { %s16174_s8 = smov 512   ;;  %s16175_s25 = smov 32  }
  0x47   :  { %36 = dma.hbm_to_vmem [thread:$0]  %s18099_s0, 16384, %s31_s1, [#allocation3], %s16174_s8, %s16174_s8, %s16175_s25  }
  0x48   :  { %s16176_s4 = smov [#allocation7]   ;;  %s16177_s16 = smov [#allocation10]  }
  0x49   :  { %s54_s23 = sshll.u32 %s16176_s4, 4  ;;  %s82_s20 = sshll.u32 %s16177_s16, 4  ;;  %s55_s23 = int_to_ptr.vmem [resolvable:$true] %s54_s23  ;;  %s16314_s20 = int_to_ptr.vmem [resolvable:$true] %s82_s20 }
  0x4a   :  { %s16044_s24 = scalar_lea.hbm %s18101_s2, 32768 }
  0x4b   :  { %p16045_p4 = scmp.ne.s32.totalorder %s18101_s2, %s16044_s24  ;;  %p16048_p5 = scmp.lt.u32.totalorder %s16044_s24, %s18101_s2 }
  0x4d   :  { %p16050_p6 = pnand %p16048_p5, %p16045_p4 }
  0x4f   :  { %16053 = shalt.err (!%p16050_p6)
}
  0x50   :  { %s16054_s0 = scalar_lea.vmem %s55_s23, 32768  ;;  %p16059_p8 = scmp.lt.s32.totalorder %s55_s23, %s55_s23 }
  0x51   :  { %p16055_p7 = scmp.ne.s32.totalorder %s55_s23, %s16054_s0  ;;  %p16060_p9 = scmp.lt.s32.totalorder %s16054_s0, %s16054_s0 }
  0x53   :  { %p16061_p10 = por %p16060_p9, %p16059_p8 }
  0x55   :  { %p16062_p11 = pnand %p16061_p10, %p16055_p7 }
  0x57   :  { %16065 = shalt.err (!%p16062_p11)
}
  0x58   :  { %60 = dma.hbm_to_vmem [thread:$0]  %s18101_s2, 32768, %s55_s23, [#allocation6], %s16171_s26, %s16171_s26, %s16172_s17  }
  0x59   :  { %s16066_s16 = scalar_lea.hbm %s18105_s6, 8192 }
  0x5a   :  { %p16067_p12 = scmp.ne.s32.totalorder %s18105_s6, %s16066_s16  ;;  %p16070_p13 = scmp.lt.u32.totalorder %s16066_s16, %s18105_s6 }
  0x5c   :  { %p16072_p0 = pnand %p16070_p13, %p16067_p12 }
  0x5e   :  { %16075 = shalt.err (!%p16072_p0)
}
  0x5f   :  { %s16076_s28 = scalar_lea.vmem %s16314_s20, 8192  ;;  %p16081_p2 = scmp.lt.s32.totalorder %s16314_s20, %s16314_s20 }
  0x60   :  { %p16077_p1 = scmp.ne.s32.totalorder %s16314_s20, %s16076_s28  ;;  %p16082_p3 = scmp.lt.s32.totalorder %s16076_s28, %s16076_s28 }
  0x62   :  { %p16083_p4 = por %p16082_p3, %p16081_p2 }
  0x64   :  { %p16084_p5 = pnand %p16083_p4, %p16077_p1 }
  0x66   :  { %16087 = shalt.err (!%p16084_p5)
}
  0x67   :  { %88 = dma.hbm_to_vmem [thread:$0]  %s18105_s6, 8192, %s16314_s20, [#allocation9], %s16167_s18, %s16167_s18, %s16168_s19  }
  0x68   :  { %s16178_s17 = smov [#allocation13]   ;;  %s16088_s0 = scalar_lea.hbm %s18109_s10, 32768 }
  0x69   :  { %s110_s23 = sshll.u32 %s16178_s17, 4  ;;  %p16089_p6 = scmp.ne.s32.totalorder %s18109_s10, %s16088_s0  ;;  %s111_s23 = int_to_ptr.vmem [resolvable:$true] %s110_s23 }
  0x6a   :  { %p16092_p7 = scmp.lt.u32.totalorder %s16088_s0, %s18109_s10 }
  0x6c   :  { %p16094_p8 = pnand %p16092_p7, %p16089_p6 }
  0x6e   :  { %16097 = shalt.err (!%p16094_p8)
}
  0x6f   :  { %s16098_s16 = scalar_lea.vmem %s111_s23, 32768  ;;  %p16103_p10 = scmp.lt.s32.totalorder %s111_s23, %s111_s23 }
  0x70   :  { %p16099_p9 = scmp.ne.s32.totalorder %s111_s23, %s16098_s16  ;;  %p16104_p11 = scmp.lt.s32.totalorder %s16098_s16, %s16098_s16 }
  0x72   :  { %p16105_p12 = por %p16104_p11, %p16103_p10 }
  0x74   :  { %p16106_p13 = pnand %p16105_p12, %p16099_p9 }
  0x76   :  { %16109 = shalt.err (!%p16106_p13)
}
  0x77   :  { %116 = dma.hbm_to_vmem [thread:$0]  %s18109_s10, 32768, %s111_s23, [#allocation12], %s16174_s8, %s16174_s8, %s16175_s25  }
  0x78   :  { %16154 = dma.done.wait [#allocation3], 16384  }
  0x79   :  { %16155 = vsyncadd [#allocation3], 4294950912 }
  0x7a   :  { %16156 = dma.done.wait [#allocation6], 36864  }
  0x7b   :  { %16157 = vsyncadd [#allocation6], 4294930432 }
  0x7c   :  { %16158 = dma.done.wait [#allocation9], 24576  }
  0x7d   :  { %16159 = vsyncadd [#allocation9], 4294942720 }
  0x7e   :  { %16160 = dma.done.wait [#allocation12], 36864  }
  0x7f   :  { %16161 = vsyncadd [#allocation12], 4294930432  ;;  %v14659_v0 = vld [vmem:[#allocation7 + $0x4] ss:$16 sps:$4 sm:$0xff]   ;;  %v14661_v1 = vld [vmem:[#allocation7 + $0xc] ss:$16 sps:$4 sm:$0xff]  }
  0x80   :  { %2467 = vmatprep.subr.bf16.mxu0 %v14659_v0  ;;  %v14663_v2 = vld [vmem:[#allocation7] ss:$16 sps:$4 sm:$0xff]   ;;  %v14664_v3 = vld [vmem:[#allocation7 + $0x8] ss:$16 sps:$4 sm:$0xff]   ;;  %3239 = vmatprep.subr.bf16.mxu1 %v14661_v1  ;;  %v14665_v4 = vld [vmem:[#allocation7 + $0x24] ss:$16 sps:$4 sm:$0xff]  }
  0x81   :  { %2468 = vmatpush1.bf16.msra.mxu0 %v14663_v2  ;;  %3240 = vmatpush1.bf16.msra.mxu1 %v14664_v3  ;;  %v14667_v5 = vld [vmem:[#allocation7 + $0x2c] ss:$16 sps:$4 sm:$0xff]   ;;  %v14669_v6 = vld [vmem:[#allocation7 + $0x20] ss:$16 sps:$4 sm:$0xff]   ;;  %v14670_v7 = vld [vmem:[#allocation7 + $0x28] ss:$16 sps:$4 sm:$0xff]  }
  0x82   :  { %2469 = vmatprep.subr.bf16.mxu0 %v14665_v4  ;;  %3241 = vmatprep.subr.bf16.mxu1 %v14667_v5  ;;  %v14671_v8 = vld [vmem:[#allocation7 + $0x44] ss:$16 sps:$4 sm:$0xff]   ;;  %v14673_v9 = vld [vmem:[#allocation7 + $0x4c] ss:$16 sps:$4 sm:$0xff]   ;;  %v14675_v10 = vld [vmem:[#allocation7 + $0x40] ss:$16 sps:$4 sm:$0xff]  }
  0x83   :  { %v14676_v11 = vld [vmem:[#allocation7 + $0x48] ss:$16 sps:$4 sm:$0xff]   ;;  %v14677_v12 = vld [vmem:[#allocation7 + $0x64] ss:$16 sps:$4 sm:$0xff]   ;;  %v14679_v13 = vld [vmem:[#allocation7 + $0x6c] ss:$16 sps:$4 sm:$0xff]  }
  0x84   :  { %v14681_v14 = vld [vmem:[#allocation7 + $0x60] ss:$16 sps:$4 sm:$0xff]   ;;  %v14682_v15 = vld [vmem:[#allocation7 + $0x68] ss:$16 sps:$4 sm:$0xff]   ;;  %v14683_v16 = vld [vmem:[#allocation7 + $0x84] ss:$16 sps:$4 sm:$0xff]  }
  0x85   :  { %2470 = vmatpush1.bf16.msra.mxu0 %v14669_v6  ;;  %3242 = vmatpush1.bf16.msra.mxu1 %v14670_v7  ;;  %v14685_v17 = vld [vmem:[#allocation7 + $0x8c] ss:$16 sps:$4 sm:$0xff]   ;;  %v14687_v18 = vld [vmem:[#allocation7 + $0x80] ss:$16 sps:$4 sm:$0xff]   ;;  %v14688_v19 = vld [vmem:[#allocation7 + $0x88] ss:$16 sps:$4 sm:$0xff]  }
  0x86   :  { %2471 = vmatprep.subr.bf16.mxu0 %v14671_v8  ;;  %3243 = vmatprep.subr.bf16.mxu1 %v14673_v9  ;;  %v14689_v20 = vld [vmem:[#allocation7 + $0xa4] ss:$16 sps:$4 sm:$0xff]   ;;  %v14691_v21 = vld [vmem:[#allocation7 + $0xac] ss:$16 sps:$4 sm:$0xff]   ;;  %v14693_v22 = vld [vmem:[#allocation7 + $0xa0] ss:$16 sps:$4 sm:$0xff]  }
  0x87   :  { %v14694_v23 = vld [vmem:[#allocation7 + $0xa8] ss:$16 sps:$4 sm:$0xff]   ;;  %v14695_v24 = vld [vmem:[#allocation7 + $0xc4] ss:$16 sps:$4 sm:$0xff]   ;;  %v14697_v25 = vld [vmem:[#allocation7 + $0xcc] ss:$16 sps:$4 sm:$0xff]  }
  0x88   :  { %v14699_v26 = vld [vmem:[#allocation7 + $0xc0] ss:$16 sps:$4 sm:$0xff]   ;;  %v14700_v27 = vld [vmem:[#allocation7 + $0xc8] ss:$16 sps:$4 sm:$0xff]   ;;  %v14701_v28 = vld [vmem:[#allocation7 + $0xe4] ss:$16 sps:$4 sm:$0xff]  }
  0x89   :  { %2472 = vmatpush1.bf16.msra.mxu0 %v14675_v10  ;;  %3244 = vmatpush1.bf16.msra.mxu1 %v14676_v11  ;;  %v14703_v29 = vld [vmem:[#allocation7 + $0xec] ss:$16 sps:$4 sm:$0xff]   ;;  %v14705_v30 = vld [vmem:[#allocation7 + $0xe0] ss:$16 sps:$4 sm:$0xff]   ;;  %v14706_v31 = vld [vmem:[#allocation7 + $0xe8] ss:$16 sps:$4 sm:$0xff]  }
  0x8a   :  { %2473 = vmatprep.subr.bf16.mxu0 %v14677_v12  ;;  %3245 = vmatprep.subr.bf16.mxu1 %v14679_v13  ;;  %v14707_v32 = vld [vmem:[#allocation7 + $0x104] ss:$16 sps:$4 sm:$0xff]   ;;  %v14709_v33 = vld [vmem:[#allocation7 + $0x10c] ss:$16 sps:$4 sm:$0xff]   ;;  %v14711_v34 = vld [vmem:[#allocation7 + $0x100] ss:$16 sps:$4 sm:$0xff]  }
  0x8b   :  { %v14712_v35 = vld [vmem:[#allocation7 + $0x108] ss:$16 sps:$4 sm:$0xff]   ;;  %v14713_v36 = vld [vmem:[#allocation7 + $0x124] ss:$16 sps:$4 sm:$0xff]   ;;  %v14715_v37 = vld [vmem:[#allocation7 + $0x12c] ss:$16 sps:$4 sm:$0xff]  }
  0x8c   :  { %v14717_v38 = vld [vmem:[#allocation7 + $0x120] ss:$16 sps:$4 sm:$0xff]   ;;  %v14718_v39 = vld [vmem:[#allocation7 + $0x128] ss:$16 sps:$4 sm:$0xff]   ;;  %v14719_v40 = vld [vmem:[#allocation7 + $0x144] ss:$16 sps:$4 sm:$0xff]  }
  0x8d   :  { %2474 = vmatpush1.bf16.msra.mxu0 %v14681_v14  ;;  %3246 = vmatpush1.bf16.msra.mxu1 %v14682_v15  ;;  %v14721_v41 = vld [vmem:[#allocation7 + $0x14c] ss:$16 sps:$4 sm:$0xff]   ;;  %v14723_v42 = vld [vmem:[#allocation7 + $0x140] ss:$16 sps:$4 sm:$0xff]   ;;  %v14724_v43 = vld [vmem:[#allocation7 + $0x148] ss:$16 sps:$4 sm:$0xff]  }
  0x8e   :  { %2475 = vmatprep.subr.bf16.mxu0 %v14683_v16  ;;  %3247 = vmatprep.subr.bf16.mxu1 %v14685_v17  ;;  %v14725_v44 = vld [vmem:[#allocation7 + $0x164] ss:$16 sps:$4 sm:$0xff]   ;;  %v14727_v45 = vld [vmem:[#allocation7 + $0x16c] ss:$16 sps:$4 sm:$0xff]   ;;  %v14729_v48 = vld [vmem:[#allocation7 + $0x160] ss:$16 sps:$4 sm:$0xff]  }
  0x8f   :  { %v141_v46 = vld [vmem:[#allocation2] sm:$0xff]  ;;  %v14730_v49 = vld [vmem:[#allocation7 + $0x168] ss:$16 sps:$4 sm:$0xff]   ;;  %v14733_v52 = vld [vmem:[#allocation7 + $0x18c] ss:$16 sps:$4 sm:$0xff]  }
  0x90   :  { %v145_v47 = vld [vmem:[#allocation2 + $0x20] sm:$0xff]  ;;  %v14736_v54 = vld [vmem:[#allocation7 + $0x188] ss:$16 sps:$4 sm:$0xff]   ;;  %v14739_v56 = vld [vmem:[#allocation7 + $0x1ac] ss:$16 sps:$4 sm:$0xff]  }
  0x91   :  { %2476 = vmatpush1.bf16.msra.mxu0 %v14687_v18  ;;  %3248 = vmatpush1.bf16.msra.mxu1 %v14688_v19  ;;  %v14731_v50 = vld [vmem:[#allocation7 + $0x184] ss:$16 sps:$4 sm:$0xff]   ;;  %v12114_v51 = vcombine.high %v141_v46, %v145_v47  ;;  %v14735_v53 = vld [vmem:[#allocation7 + $0x180] ss:$16 sps:$4 sm:$0xff]   ;;  %v14742_v58 = vld [vmem:[#allocation7 + $0x1a8] ss:$16 sps:$4 sm:$0xff]   ;;  %v12113_v7 = vcombine.low %v141_v46, %v145_v47 }
  0x92   :  { %2477 = vmatprep.subr.bf16.mxu0 %v14689_v20  ;;  %3249 = vmatprep.subr.bf16.mxu1 %v14691_v21  ;;  %v14737_v55 = vld [vmem:[#allocation7 + $0x1a4] ss:$16 sps:$4 sm:$0xff]   ;;  %v14741_v57 = vld [vmem:[#allocation7 + $0x1a0] ss:$16 sps:$4 sm:$0xff]   ;;  %v14745_v60 = vld [vmem:[#allocation7 + $0x1cc] ss:$16 sps:$4 sm:$0xff]  }
  0x93   :  { %2499 = vmatprep.mubr.bf16.mxu0 %v12114_v51  ;;  %3271 = vmatprep.mubr.bf16.mxu1 %v12114_v51  ;;  %v14743_v59 = vld [vmem:[#allocation7 + $0x1c4] ss:$16 sps:$4 sm:$0xff]   ;;  %v14747_v61 = vld [vmem:[#allocation7 + $0x1c0] ss:$16 sps:$4 sm:$0xff]   ;;  %v14748_v62 = vld [vmem:[#allocation7 + $0x1c8] ss:$16 sps:$4 sm:$0xff]  }
  0x94   :  { %v14749_v63 = vld [vmem:[#allocation7 + $0x1e4] ss:$16 sps:$4 sm:$0xff]   ;;  %v14751_v0 = vld [vmem:[#allocation7 + $0x1ec] ss:$16 sps:$4 sm:$0xff]   ;;  %v14753_v1 = vld [vmem:[#allocation7 + $0x1e0] ss:$16 sps:$4 sm:$0xff]  }
  0x95   :  { %2478 = vmatpush1.bf16.msra.mxu0 %v14693_v22  ;;  %3250 = vmatpush1.bf16.msra.mxu1 %v14694_v23  ;;  %v14754_v2 = vld [vmem:[#allocation7 + $0x1e8] ss:$16 sps:$4 sm:$0xff]   ;;  %v14757_v3 = vld [vmem:[#allocation7 + $0x204] ss:$16 sps:$4 sm:$0xff]   ;;  %v14784_v6 = vld [vmem:[#allocation7 + $0x20c] ss:$16 sps:$4 sm:$0xff]  }
  0x96   :  { %2479 = vmatprep.subr.bf16.mxu0 %v14695_v24  ;;  %3251 = vmatprep.subr.bf16.mxu1 %v14697_v25  ;;  %v149_v4 = vld [vmem:[#allocation2 + $0x40] sm:$0xff]  ;;  %v14782_v11 = vld [vmem:[#allocation7 + $0x208] ss:$16 sps:$4 sm:$0xff]   ;;  %v14787_v12 = vld [vmem:[#allocation7 + $0x22c] ss:$16 sps:$4 sm:$0xff]  }
  0x97   :  { %v153_v5 = vld [vmem:[#allocation2 + $0x60] sm:$0xff]  ;;  %v14785_v17 = vld [vmem:[#allocation7 + $0x228] ss:$16 sps:$4 sm:$0xff]   ;;  %v14793_v21 = vld [vmem:[#allocation7 + $0x24c] ss:$16 sps:$4 sm:$0xff]  }
  0x98   :  { %v14755_v8 = vld [vmem:[#allocation7 + $0x200] ss:$16 sps:$4 sm:$0xff]   ;;  %v12122_v9 = vcombine.high %v149_v4, %v153_v5  ;;  %v14760_v10 = vld [vmem:[#allocation7 + $0x224] ss:$16 sps:$4 sm:$0xff]   ;;  %v12121_v18 = vcombine.low %v149_v4, %v153_v5  ;;  %v14791_v23 = vld [vmem:[#allocation7 + $0x248] ss:$16 sps:$4 sm:$0xff]  }
  0x99   :  { %2480 = vmatpush1.bf16.msra.mxu0 %v14699_v26  ;;  %3252 = vmatpush1.bf16.msra.mxu1 %v14700_v27  ;;  %v14758_v13 = vld [vmem:[#allocation7 + $0x220] ss:$16 sps:$4 sm:$0xff]   ;;  %v14763_v16 = vld [vmem:[#allocation7 + $0x244] ss:$16 sps:$4 sm:$0xff]   ;;  %v14796_v24 = vld [vmem:[#allocation7 + $0x26c] ss:$16 sps:$4 sm:$0xff]  }
  0x9a   :  { %2481 = vmatprep.subr.bf16.mxu0 %v14701_v28  ;;  %3253 = vmatprep.subr.bf16.mxu1 %v14703_v29  ;;  %v157_v14 = vld [vmem:[#allocation2 + $0x80] sm:$0xff]  ;;  %v14794_v29 = vld [vmem:[#allocation7 + $0x268] ss:$16 sps:$4 sm:$0xff]   ;;  %v14811_v46 = vld [vmem:[#allocation7 + $0x2cc] ss:$16 sps:$4 sm:$0xff]  }
  0x9b   :  { %v161_v15 = vld [vmem:[#allocation2 + $0xa0] sm:$0xff]  ;;  %v14809_v47 = vld [vmem:[#allocation7 + $0x2c8] ss:$16 sps:$4 sm:$0xff]   ;;  %v14829_v5 = vld [vmem:[#allocation7 + $0x34c] ss:$16 sps:$4 sm:$0xff]  }
  0x9c   :  { %v12130_v19 = vcombine.high %v157_v14, %v161_v15  ;;  %v14761_v20 = vld [vmem:[#allocation7 + $0x240] ss:$16 sps:$4 sm:$0xff]   ;;  %v14766_v22 = vld [vmem:[#allocation7 + $0x264] ss:$16 sps:$4 sm:$0xff]  }
  0x9d   :  { %2482 = vmatpush1.bf16.msra.mxu0 %v14705_v30  ;;  %3254 = vmatpush1.bf16.msra.mxu1 %v14706_v31  ;;  %v165_v25 = vld [vmem:[#allocation2 + $0xc0] sm:$0xff]  ;;  %v12129_v30 = vcombine.low %v157_v14, %v161_v15 }
  0x9e   :  { %2483 = vmatprep.subr.bf16.mxu0 %v14707_v32  ;;  %3255 = vmatprep.subr.bf16.mxu1 %v14709_v33  ;;  %v169_v26 = vld [vmem:[#allocation2 + $0xe0] sm:$0xff]  ;;  %v14802_v33 = vld [vmem:[#allocation7 + $0x28c] ss:$16 sps:$4 sm:$0xff]  }
  0x9f   :  { %v14764_v27 = vld [vmem:[#allocation7 + $0x260] ss:$16 sps:$4 sm:$0xff]   ;;  %v14769_v28 = vld [vmem:[#allocation7 + $0x284] ss:$16 sps:$4 sm:$0xff]   ;;  %v12138_v31 = vcombine.high %v165_v25, %v169_v26 }
  0xa0   :  { %v14767_v32 = vld [vmem:[#allocation7 + $0x280] ss:$16 sps:$4 sm:$0xff]  }
  0xa1   :  { %2484 = vmatpush1.bf16.msra.mxu0 %v14711_v34  ;;  %3256 = vmatpush1.bf16.msra.mxu1 %v14712_v35  ;;  %v14772_v34 = vld [vmem:[#allocation7 + $0x2a4] ss:$16 sps:$4 sm:$0xff]   ;;  %v14800_v35 = vld [vmem:[#allocation7 + $0x288] ss:$16 sps:$4 sm:$0xff]   ;;  %v14776_v51 = vld [vmem:[#allocation7 + $0x2e0] ss:$16 sps:$4 sm:$0xff]  }
  0xa2   :  { %2485 = vmatprep.subr.bf16.mxu0 %v14713_v36  ;;  %3257 = vmatprep.subr.bf16.mxu1 %v14715_v37  ;;  %v173_v36 = vld [vmem:[#allocation2 + $0x100] sm:$0xff]  ;;  %v14805_v37 = vld [vmem:[#allocation7 + $0x2ac] ss:$16 sps:$4 sm:$0xff]  }
  0xa3   :  { %v14797_v4 = vld [vmem:[#allocation7 + $0x340] ss:$16 sps:$4 sm:$0xff]  }
  0xa4   :  { %v14815_v15 = vld [vmem:[#allocation7 + $0x380] ss:$16 sps:$4 sm:$0xff]  }
  0xa5   :  { %2486 = vmatpush1.bf16.msra.mxu0 %v14717_v38  ;;  %3258 = vmatpush1.bf16.msra.mxu1 %v14718_v39  ;;  %v177_v38 = vld [vmem:[#allocation2 + $0x120] sm:$0xff] }
  0xa6   :  { %2487 = vmatprep.subr.bf16.mxu0 %v14719_v40  ;;  %3259 = vmatprep.subr.bf16.mxu1 %v14721_v41  ;;  %v14770_v39 = vld [vmem:[#allocation7 + $0x2a0] ss:$16 sps:$4 sm:$0xff]   ;;  %v14775_v40 = vld [vmem:[#allocation7 + $0x2c4] ss:$16 sps:$4 sm:$0xff]   ;;  %v14803_v41 = vld [vmem:[#allocation7 + $0x2a8] ss:$16 sps:$4 sm:$0xff]  }
  0xa9   :  { %2488 = vmatpush1.bf16.msra.mxu0 %v14723_v42  ;;  %3260 = vmatpush1.bf16.msra.mxu1 %v14724_v43  ;;  %v12137_v42 = vcombine.low %v165_v25, %v169_v26  ;;  %v12146_v43 = vcombine.high %v173_v36, %v177_v38  ;;  %v14839_v25 = vld [vmem:[#allocation7 + $0x3a8] ss:$16 sps:$4 sm:$0xff]  }
  0xaa   :  { %2489 = vmatprep.subr.bf16.mxu0 %v14725_v44  ;;  %3261 = vmatprep.subr.bf16.mxu1 %v14727_v45  ;;  %v14773_v44 = vld [vmem:[#allocation7 + $0x2c0] ss:$16 sps:$4 sm:$0xff]   ;;  %v14778_v45 = vld [vmem:[#allocation7 + $0x2e4] ss:$16 sps:$4 sm:$0xff]  }
  0xad   :  { %2490 = vmatpush1.bf16.msra.mxu0 %v14729_v48  ;;  %3262 = vmatpush1.bf16.msra.mxu1 %v14730_v49  ;;  %v181_v48 = vld [vmem:[#allocation2 + $0x140] sm:$0xff]  ;;  %v14814_v49 = vld [vmem:[#allocation7 + $0x2ec] ss:$16 sps:$4 sm:$0xff]  }
  0xae   :  { %2491 = vmatprep.subr.bf16.mxu0 %v14731_v50  ;;  %3263 = vmatprep.subr.bf16.mxu1 %v14733_v52  ;;  %v185_v50 = vld [vmem:[#allocation2 + $0x160] sm:$0xff] }
  0xaf   :  { %v14781_v52 = vld [vmem:[#allocation7 + $0x304] ss:$16 sps:$4 sm:$0xff]  }
  0xb1   :  { %2492 = vmatpush1.bf16.msra.mxu0 %v14735_v53  ;;  %3264 = vmatpush1.bf16.msra.mxu1 %v14736_v54  ;;  %v14812_v53 = vld [vmem:[#allocation7 + $0x2e8] ss:$16 sps:$4 sm:$0xff]   ;;  %v12145_v54 = vcombine.low %v173_v36, %v177_v38 }
  0xb2   :  { %2493 = vmatprep.subr.bf16.mxu0 %v14737_v55  ;;  %3265 = vmatprep.subr.bf16.mxu1 %v14739_v56  ;;  %v12154_v55 = vcombine.high %v181_v48, %v185_v50  ;;  %v14779_v56 = vld [vmem:[#allocation7 + $0x300] ss:$16 sps:$4 sm:$0xff]   ;;  %v14848_v36 = vld [vmem:[#allocation7 + $0x3e8] ss:$16 sps:$4 sm:$0xff]  }
  0xb5   :  { %2494 = vmatpush1.bf16.msra.mxu0 %v14741_v57  ;;  %3266 = vmatpush1.bf16.msra.mxu1 %v14742_v58  ;;  %v14820_v57 = vld [vmem:[#allocation7 + $0x30c] ss:$16 sps:$4 sm:$0xff]   ;;  %v14790_v58 = vld [vmem:[#allocation7 + $0x324] ss:$16 sps:$4 sm:$0xff]  }
  0xb6   :  { %2495 = vmatprep.subr.bf16.mxu0 %v14743_v59  ;;  %3267 = vmatprep.subr.bf16.mxu1 %v14745_v60  ;;  %v14818_v59 = vld [vmem:[#allocation7 + $0x308] ss:$16 sps:$4 sm:$0xff]   ;;  %v14823_v60 = vld [vmem:[#allocation7 + $0x32c] ss:$16 sps:$4 sm:$0xff]  }
  0xb9   :  { %2496 = vmatpush1.bf16.msra.mxu0 %v14747_v61  ;;  %3268 = vmatpush1.bf16.msra.mxu1 %v14748_v62  ;;  %v189_v61 = vld [vmem:[#allocation2 + $0x180] sm:$0xff] }
  0xba   :  { %2497 = vmatprep.subr.bf16.mxu0 %v14749_v63  ;;  %3269 = vmatprep.subr.bf16.mxu1 %v14751_v0  ;;  %v193_v62 = vld [vmem:[#allocation2 + $0x1a0] sm:$0xff] }
  0xbb   :  { %v14788_v63 = vld [vmem:[#allocation7 + $0x320] ss:$16 sps:$4 sm:$0xff]   ;;  %v14799_v0 = vld [vmem:[#allocation7 + $0x344] ss:$16 sps:$4 sm:$0xff]   ;;  %v12161_v14 = vcombine.low %v189_v61, %v193_v62 }
  0xbd   :  { %2498 = vmatpush1.bf16.msra.mxu0 %v14753_v1  ;;  %3270 = vmatpush1.bf16.msra.mxu1 %v14754_v2  ;;  %v14821_v1 = vld [vmem:[#allocation7 + $0x328] ss:$16 sps:$4 sm:$0xff]   ;;  %v12153_v2 = vcombine.low %v181_v48, %v185_v50  ;;  %v241_v50 = vld [vmem:[#allocation2 + $0x320] sm:$0xff] }
  0xbe   :  { %2660 = vmatprep.subr.bf16.mxu0 %v14757_v3  ;;  %3432 = vmatprep.subr.bf16.mxu1 %v14784_v6  ;;  %v12162_v3 = vcombine.high %v189_v61, %v193_v62  ;;  %v14808_v6 = vld [vmem:[#allocation7 + $0x364] ss:$16 sps:$4 sm:$0xff]  }
  0xbf   :  { %v261_v61 = vld [vmem:[#allocation2 + $0x3c0] sm:$0xff] }
  0xc0   :  { %2500 = vmatmul.mubr.bf16.vlgmr.msra.gmra.mrb[0].mxu0 %v12113_v7  ;;  %3272 = vmatmul.mubr.bf16.vlgmr.msra.gmra.mrb[0].mxu1 %v12113_v7  ;;  %v14827_v7 = vld [vmem:[#allocation7 + $0x348] ss:$16 sps:$4 sm:$0xff]   ;;  %v265_v62 = vld [vmem:[#allocation2 + $0x3e0] sm:$0xff] }
  0xc1   :  { %2661 = vmatpush1.bf16.msra.mxu0 %v14755_v8  ;;  %2509 = vmatprep.mubr.bf16.mxu0 %v12122_v9  ;;  %v197_v8 = vld [vmem:[#allocation2 + $0x1c0] sm:$0xff] }
  0xc2   :  { %3281 = vmatprep.mubr.bf16.mxu1 %v12122_v9  ;;  %2662 = vmatprep.subr.bf16.mxu0 %v14760_v10  ;;  %v201_v9 = vld [vmem:[#allocation2 + $0x1e0] sm:$0xff] }
  0xc3   :  { %3433 = vmatpush1.bf16.msra.mxu1 %v14782_v11  ;;  %v14806_v10 = vld [vmem:[#allocation7 + $0x360] ss:$16 sps:$4 sm:$0xff]   ;;  %v14832_v11 = vld [vmem:[#allocation7 + $0x36c] ss:$16 sps:$4 sm:$0xff]   ;;  %v12169_v26 = vcombine.low %v197_v8, %v201_v9 }
  0xc4   :  { %3434 = vmatprep.subr.bf16.mxu1 %v14787_v12  ;;  %v14817_v12 = vld [vmem:[#allocation7 + $0x384] ss:$16 sps:$4 sm:$0xff]  }
  0xc5   :  { %2663 = vmatpush1.bf16.msra.mxu0 %v14758_v13  ;;  %v14830_v13 = vld [vmem:[#allocation7 + $0x368] ss:$16 sps:$4 sm:$0xff]  }
  0xc6   :  { %2664 = vmatprep.subr.bf16.mxu0 %v14763_v16  ;;  %v14838_v16 = vld [vmem:[#allocation7 + $0x38c] ss:$16 sps:$4 sm:$0xff]  }
  0xc7   :  { %3435 = vmatpush1.bf16.msra.mxu1 %v14785_v17  ;;  %v12170_v17 = vcombine.high %v197_v8, %v201_v9  ;;  %v14856_v9 = vld [vmem:[#allocation7 + $0x424] ss:$16 sps:$4 sm:$0xff]  }
  0xc8   :  { %2510 = vmatmul.mubr.bf16.gmra.mrb[4].mxu0 %v12121_v18  ;;  %3282 = vmatmul.mubr.bf16.gmra.mrb[4].mxu1 %v12121_v18  ;;  %v14826_v18 = vld [vmem:[#allocation7 + $0x3a4] ss:$16 sps:$4 sm:$0xff]  }
  0xc9   :  { %2519 = vmatprep.mubr.bf16.mxu0 %v12130_v19  ;;  %3291 = vmatprep.mubr.bf16.mxu1 %v12130_v19  ;;  %v14836_v19 = vld [vmem:[#allocation7 + $0x388] ss:$16 sps:$4 sm:$0xff]  }
  0xca   :  { %2665 = vmatpush1.bf16.msra.mxu0 %v14761_v20  ;;  %3436 = vmatprep.subr.bf16.mxu1 %v14793_v21  ;;  %v205_v20 = vld [vmem:[#allocation2 + $0x200] sm:$0xff] }
  0xcb   :  { %2666 = vmatprep.subr.bf16.mxu0 %v14766_v22  ;;  %3437 = vmatpush1.bf16.msra.mxu1 %v14791_v23  ;;  %v209_v21 = vld [vmem:[#allocation2 + $0x220] sm:$0xff]  ;;  %v14841_v23 = vld [vmem:[#allocation7 + $0x3ac] ss:$16 sps:$4 sm:$0xff]  }
  0xcc   :  { %3438 = vmatprep.subr.bf16.mxu1 %v14796_v24  ;;  %v14824_v22 = vld [vmem:[#allocation7 + $0x3a0] ss:$16 sps:$4 sm:$0xff]   ;;  %v14835_v24 = vld [vmem:[#allocation7 + $0x3c4] ss:$16 sps:$4 sm:$0xff]   ;;  %v12177_v38 = vcombine.low %v205_v20, %v209_v21 }
  0xce   :  { %2667 = vmatpush1.bf16.msra.mxu0 %v14764_v27  ;;  %v14833_v27 = vld [vmem:[#allocation7 + $0x3c0] ss:$16 sps:$4 sm:$0xff]  }
  0xcf   :  { %2668 = vmatprep.subr.bf16.mxu0 %v14769_v28  ;;  %3439 = vmatpush1.bf16.msra.mxu1 %v14794_v29  ;;  %v14847_v28 = vld [vmem:[#allocation7 + $0x3cc] ss:$16 sps:$4 sm:$0xff]   ;;  %v12178_v29 = vcombine.high %v205_v20, %v209_v21 }
  0xd0   :  { %2520 = vmatmul.mubr.bf16.gmra.mrb[8].mxu0 %v12129_v30  ;;  %3292 = vmatmul.mubr.bf16.gmra.mrb[8].mxu1 %v12129_v30  ;;  %v14844_v30 = vld [vmem:[#allocation7 + $0x3e4] ss:$16 sps:$4 sm:$0xff]   ;;  %v14889_v20 = vld [vmem:[#allocation7 + $0x44c] ss:$16 sps:$4 sm:$0xff]  }
  0xd1   :  { %2529 = vmatprep.mubr.bf16.mxu0 %v12138_v31  ;;  %3301 = vmatprep.mubr.bf16.mxu1 %v12138_v31  ;;  %v14845_v31 = vld [vmem:[#allocation7 + $0x3c8] ss:$16 sps:$4 sm:$0xff]  }
  0xd2   :  { %2669 = vmatpush1.bf16.msra.mxu0 %v14767_v32  ;;  %3440 = vmatprep.subr.bf16.mxu1 %v14802_v33  ;;  %v213_v32 = vld [vmem:[#allocation2 + $0x240] sm:$0xff] }
  0xd3   :  { %2670 = vmatprep.subr.bf16.mxu0 %v14772_v34  ;;  %3441 = vmatpush1.bf16.msra.mxu1 %v14800_v35  ;;  %v217_v33 = vld [vmem:[#allocation2 + $0x260] sm:$0xff]  ;;  %v14850_v35 = vld [vmem:[#allocation7 + $0x3ec] ss:$16 sps:$4 sm:$0xff]  }
  0xd4   :  { %3442 = vmatprep.subr.bf16.mxu1 %v14805_v37  ;;  %v14842_v34 = vld [vmem:[#allocation7 + $0x3e0] ss:$16 sps:$4 sm:$0xff]   ;;  %v14853_v37 = vld [vmem:[#allocation7 + $0x404] ss:$16 sps:$4 sm:$0xff]  }
  0xd6   :  { %2671 = vmatpush1.bf16.msra.mxu0 %v14770_v39  ;;  %v12186_v39 = vcombine.high %v213_v32, %v217_v33 }
  0xd7   :  { %2672 = vmatprep.subr.bf16.mxu0 %v14775_v40  ;;  %3443 = vmatpush1.bf16.msra.mxu1 %v14803_v41  ;;  %v14880_v40 = vld [vmem:[#allocation7 + $0x40c] ss:$16 sps:$4 sm:$0xff]   ;;  %v221_v41 = vld [vmem:[#allocation2 + $0x280] sm:$0xff] }
  0xd8   :  { %2530 = vmatmul.mubr.bf16.gmra.mrb[12].mxu0 %v12137_v42  ;;  %3302 = vmatmul.mubr.bf16.gmra.mrb[12].mxu1 %v12137_v42  ;;  %v225_v42 = vld [vmem:[#allocation2 + $0x2a0] sm:$0xff] }
  0xd9   :  { %2539 = vmatprep.mubr.bf16.mxu0 %v12146_v43  ;;  %3311 = vmatprep.mubr.bf16.mxu1 %v12146_v43  ;;  %v12185_v43 = vcombine.low %v213_v32, %v217_v33  ;;  %v14898_v32 = vld [vmem:[#allocation7 + $0x48c] ss:$16 sps:$4 sm:$0xff]  }
  0xda   :  { %2673 = vmatpush1.bf16.msra.mxu0 %v14773_v44  ;;  %3444 = vmatprep.subr.bf16.mxu1 %v14811_v46  ;;  %v12194_v44 = vcombine.high %v221_v41, %v225_v42  ;;  %v233_v46 = vld [vmem:[#allocation2 + $0x2e0] sm:$0xff] }
  0xdb   :  { %2674 = vmatprep.subr.bf16.mxu0 %v14778_v45  ;;  %3445 = vmatpush1.bf16.msra.mxu1 %v14809_v47  ;;  %v229_v45 = vld [vmem:[#allocation2 + $0x2c0] sm:$0xff]  ;;  %v12193_v47 = vcombine.low %v221_v41, %v225_v42  ;;  %v14899_v41 = vld [vmem:[#allocation7 + $0x4a8] ss:$16 sps:$4 sm:$0xff]  }
  0xdc   :  { %3446 = vmatprep.subr.bf16.mxu1 %v14814_v49  ;;  %v12202_v48 = vcombine.high %v229_v45, %v233_v46  ;;  %v237_v49 = vld [vmem:[#allocation2 + $0x300] sm:$0xff] }
  0xde   :  { %2675 = vmatpush1.bf16.msra.mxu0 %v14776_v51  ;;  %v12201_v51 = vcombine.low %v229_v45, %v233_v46  ;;  %v14874_v46 = vld [vmem:[#allocation7 + $0x4e4] ss:$16 sps:$4 sm:$0xff]  }
  0xdf   :  { %2676 = vmatprep.subr.bf16.mxu0 %v14781_v52  ;;  %3447 = vmatpush1.bf16.msra.mxu1 %v14812_v53  ;;  %v12210_v52 = vcombine.high %v237_v49, %v241_v50  ;;  %v245_v53 = vld [vmem:[#allocation2 + $0x340] sm:$0xff] }
  0xe0   :  { %2540 = vmatmul.mubr.bf16.gmra.mrb[16].mxu0 %v12145_v54  ;;  %3312 = vmatmul.mubr.bf16.gmra.mrb[16].mxu1 %v12145_v54  ;;  %v249_v54 = vld [vmem:[#allocation2 + $0x360] sm:$0xff] }
  0xe1   :  { %2549 = vmatprep.mubr.bf16.mxu0 %v12154_v55  ;;  %3321 = vmatprep.mubr.bf16.mxu1 %v12154_v55  ;;  %v12209_v55 = vcombine.low %v237_v49, %v241_v50  ;;  %v186_v49 = vld [vmem:[#allocation2 + $0x168] sm:$0xff]  ;;  %v14872_v50 = vld [vmem:[#allocation7 + $0x4e0] ss:$16 sps:$4 sm:$0xff]  }
  0xe2   :  { %2677 = vmatpush1.bf16.msra.mxu0 %v14779_v56  ;;  %3448 = vmatprep.subr.bf16.mxu1 %v14820_v57  ;;  %v12218_v56 = vcombine.high %v245_v53, %v249_v54  ;;  %v253_v57 = vld [vmem:[#allocation2 + $0x380] sm:$0xff] }
  0xe3   :  { %2678 = vmatprep.subr.bf16.mxu0 %v14790_v58  ;;  %3449 = vmatpush1.bf16.msra.mxu1 %v14818_v59  ;;  %v257_v58 = vld [vmem:[#allocation2 + $0x3a0] sm:$0xff]  ;;  %v12217_v59 = vcombine.low %v245_v53, %v249_v54  ;;  %v14908_v53 = vld [vmem:[#allocation7 + $0x4e8] ss:$16 sps:$4 sm:$0xff]  }
  0xe4   :  { %3450 = vmatprep.subr.bf16.mxu1 %v14823_v60  ;;  %v12226_v60 = vcombine.high %v253_v57, %v257_v58 }
  0xe6   :  { %2679 = vmatpush1.bf16.msra.mxu0 %v14788_v63  ;;  %v12225_v63 = vcombine.low %v253_v57, %v257_v58  ;;  %v14886_v58 = vld [vmem:[#allocation7 + $0x524] ss:$16 sps:$4 sm:$0xff]  }
  0xe7   :  { %2680 = vmatprep.subr.bf16.mxu0 %v14799_v0  ;;  %3451 = vmatpush1.bf16.msra.mxu1 %v14821_v1  ;;  %v12234_v0 = vcombine.high %v261_v61, %v265_v62  ;;  %v142_v1 = vld [vmem:[#allocation2 + $0x8] sm:$0xff] }
  0xe8   :  { %2550 = vmatmul.mubr.bf16.gmra.mrb[20].mxu0 %v12153_v2  ;;  %3322 = vmatmul.mubr.bf16.gmra.mrb[20].mxu1 %v12153_v2  ;;  %v146_v2 = vld [vmem:[#allocation2 + $0x28] sm:$0xff] }
  0xe9   :  { %2559 = vmatprep.mubr.bf16.mxu0 %v12162_v3  ;;  %3331 = vmatprep.mubr.bf16.mxu1 %v12162_v3  ;;  %v12233_v3 = vcombine.low %v261_v61, %v265_v62  ;;  %v12115_v8 = vcombine.low %v142_v1, %v146_v2  ;;  %v194_v61 = vld [vmem:[#allocation2 + $0x1a8] sm:$0xff]  ;;  %v14884_v62 = vld [vmem:[#allocation7 + $0x520] ss:$16 sps:$4 sm:$0xff]  }
  0xea   :  { %2681 = vmatpush1.bf16.msra.mxu0 %v14797_v4  ;;  %3452 = vmatprep.subr.bf16.mxu1 %v14829_v5  ;;  %v12116_v4 = vcombine.high %v142_v1, %v146_v2  ;;  %v150_v5 = vld [vmem:[#allocation2 + $0x48] sm:$0xff] }
  0xeb   :  { %2682 = vmatprep.subr.bf16.mxu0 %v14808_v6  ;;  %3453 = vmatpush1.bf16.msra.mxu1 %v14827_v7  ;;  %v154_v6 = vld [vmem:[#allocation2 + $0x68] sm:$0xff]  ;;  %v14851_v7 = vld [vmem:[#allocation7 + $0x400] ss:$16 sps:$4 sm:$0xff]  }
  0xec   :  { %3454 = vmatprep.subr.bf16.mxu1 %v14832_v11  ;;  %v14878_v11 = vld [vmem:[#allocation7 + $0x408] ss:$16 sps:$4 sm:$0xff]  }
  0xed   :  { %v14917_v1 = vld [vmem:[#allocation7 + $0x528] ss:$16 sps:$4 sm:$0xff]  }
  0xee   :  { %2683 = vmatpush1.bf16.msra.mxu0 %v14806_v10  ;;  %v12124_v10 = vcombine.high %v150_v5, %v154_v6 }
  0xef   :  { %2684 = vmatprep.subr.bf16.mxu0 %v14817_v12  ;;  %3455 = vmatpush1.bf16.msra.mxu1 %v14830_v13  ;;  %v14854_v12 = vld [vmem:[#allocation7 + $0x420] ss:$16 sps:$4 sm:$0xff]   ;;  %v158_v13 = vld [vmem:[#allocation2 + $0x88] sm:$0xff] }
  0xf0   :  { %2560 = vmatmul.mubr.bf16.gmra.mrb[24].mxu0 %v12161_v14  ;;  %3332 = vmatmul.mubr.bf16.gmra.mrb[24].mxu1 %v12161_v14  ;;  %v162_v14 = vld [vmem:[#allocation2 + $0xa8] sm:$0xff] }
  0xf1   :  { %2569 = vmatprep.mubr.bf16.mxu0 %v12170_v17  ;;  %3341 = vmatprep.mubr.bf16.mxu1 %v12170_v17  ;;  %v14881_v17 = vld [vmem:[#allocation7 + $0x428] ss:$16 sps:$4 sm:$0xff]   ;;  %v12132_v21 = vcombine.high %v158_v13, %v162_v14 }
  0xf2   :  { %2685 = vmatpush1.bf16.msra.mxu0 %v14815_v15  ;;  %3456 = vmatprep.subr.bf16.mxu1 %v14838_v16  ;;  %v14883_v15 = vld [vmem:[#allocation7 + $0x42c] ss:$16 sps:$4 sm:$0xff]   ;;  %v14859_v16 = vld [vmem:[#allocation7 + $0x444] ss:$16 sps:$4 sm:$0xff]  }
  0xf3   :  { %2686 = vmatprep.subr.bf16.mxu0 %v14826_v18  ;;  %3457 = vmatpush1.bf16.msra.mxu1 %v14836_v19  ;;  %v12123_v18 = vcombine.low %v150_v5, %v154_v6  ;;  %v14857_v19 = vld [vmem:[#allocation7 + $0x440] ss:$16 sps:$4 sm:$0xff]   ;;  %v14904_v6 = vld [vmem:[#allocation7 + $0x564] ss:$16 sps:$4 sm:$0xff]  }
  0xf4   :  { %3458 = vmatprep.subr.bf16.mxu1 %v14841_v23  ;;  %v14887_v23 = vld [vmem:[#allocation7 + $0x448] ss:$16 sps:$4 sm:$0xff]  }
  0xf6   :  { %2687 = vmatpush1.bf16.msra.mxu0 %v14824_v22  ;;  %v14862_v22 = vld [vmem:[#allocation7 + $0x464] ss:$16 sps:$4 sm:$0xff]  }
  0xf7   :  { %2688 = vmatprep.subr.bf16.mxu0 %v14835_v24  ;;  %3459 = vmatpush1.bf16.msra.mxu1 %v14839_v25  ;;  %v166_v24 = vld [vmem:[#allocation2 + $0xc8] sm:$0xff] }
  0xf8   :  { %2570 = vmatmul.mubr.bf16.gmra.mrb[28].mxu0 %v12169_v26  ;;  %3342 = vmatmul.mubr.bf16.gmra.mrb[28].mxu1 %v12169_v26  ;;  %v170_v25 = vld [vmem:[#allocation2 + $0xe8] sm:$0xff]  ;;  %v14860_v26 = vld [vmem:[#allocation7 + $0x460] ss:$16 sps:$4 sm:$0xff]  }
  0xf9   :  { %2579 = vmatprep.mubr.bf16.mxu0 %v12178_v29  ;;  %3351 = vmatprep.mubr.bf16.mxu1 %v12178_v29  ;;  %v14890_v29 = vld [vmem:[#allocation7 + $0x468] ss:$16 sps:$4 sm:$0xff]   ;;  %v12140_v33 = vcombine.high %v166_v24, %v170_v25  ;;  %v12139_v42 = vcombine.low %v166_v24, %v170_v25  ;;  %v14931_v24 = vld [vmem:[#allocation7 + $0x5c4] ss:$16 sps:$4 sm:$0xff]  }
  0xfa   :  { %2689 = vmatpush1.bf16.msra.mxu0 %v14833_v27  ;;  %3460 = vmatprep.subr.bf16.mxu1 %v14847_v28  ;;  %v14892_v27 = vld [vmem:[#allocation7 + $0x46c] ss:$16 sps:$4 sm:$0xff]   ;;  %v14865_v28 = vld [vmem:[#allocation7 + $0x484] ss:$16 sps:$4 sm:$0xff]   ;;  %v14935_v25 = vld [vmem:[#allocation7 + $0x5a8] ss:$16 sps:$4 sm:$0xff]  }
  0xfb   :  { %2690 = vmatprep.subr.bf16.mxu0 %v14844_v30  ;;  %3461 = vmatpush1.bf16.msra.mxu1 %v14845_v31  ;;  %v12131_v30 = vcombine.low %v158_v13, %v162_v14  ;;  %v14863_v31 = vld [vmem:[#allocation7 + $0x480] ss:$16 sps:$4 sm:$0xff]   ;;  %v14926_v13 = vld [vmem:[#allocation7 + $0x568] ss:$16 sps:$4 sm:$0xff]  }
  0xfc   :  { %3462 = vmatprep.subr.bf16.mxu1 %v14850_v35  ;;  %v14896_v35 = vld [vmem:[#allocation7 + $0x488] ss:$16 sps:$4 sm:$0xff]  }
  0xfe   :  { %2691 = vmatpush1.bf16.msra.mxu0 %v14842_v34  ;;  %v14868_v34 = vld [vmem:[#allocation7 + $0x4a4] ss:$16 sps:$4 sm:$0xff]  }
  0xff   :  { %3463 = vmatpush1.bf16.msra.mxu1 %v14848_v36  ;;  %2853 = vmatprep.subr.bf16.mxu0 %v14853_v37  ;;  %v174_v36 = vld [vmem:[#allocation2 + $0x108] sm:$0xff] }
 0x100   :  { %2580 = vmatmul.mubr.bf16.gmra.mrb[32].mxu0 %v12177_v38  ;;  %3352 = vmatmul.mubr.bf16.gmra.mrb[32].mxu1 %v12177_v38  ;;  %v178_v37 = vld [vmem:[#allocation2 + $0x128] sm:$0xff]  ;;  %v14866_v38 = vld [vmem:[#allocation7 + $0x4a0] ss:$16 sps:$4 sm:$0xff]  }
 0x101   :  { %2589 = vmatprep.mubr.bf16.mxu0 %v12186_v39  ;;  %3361 = vmatprep.mubr.bf16.mxu1 %v12186_v39  ;;  %v14901_v39 = vld [vmem:[#allocation7 + $0x4ac] ss:$16 sps:$4 sm:$0xff]   ;;  %v12148_v45 = vcombine.high %v174_v36, %v178_v37  ;;  %v12147_v54 = vcombine.low %v174_v36, %v178_v37  ;;  %v14944_v36 = vld [vmem:[#allocation7 + $0x5e8] ss:$16 sps:$4 sm:$0xff]   ;;  %v14949_v37 = vld [vmem:[#allocation7 + $0x604] ss:$16 sps:$4 sm:$0xff]  }
 0x102   :  { %3625 = vmatprep.subr.bf16.mxu1 %v14880_v40  ;;  %v14871_v40 = vld [vmem:[#allocation7 + $0x4c4] ss:$16 sps:$4 sm:$0xff]  }
 0x108   :  { %2590 = vmatmul.mubr.bf16.gmra.mrb[36].mxu0 %v12185_v43  ;;  %3362 = vmatmul.mubr.bf16.gmra.mrb[36].mxu1 %v12185_v43  ;;  %v14869_v43 = vld [vmem:[#allocation7 + $0x4c0] ss:$16 sps:$4 sm:$0xff]  }
 0x109   :  { %2599 = vmatprep.mubr.bf16.mxu0 %v12194_v44  ;;  %3371 = vmatprep.mubr.bf16.mxu1 %v12194_v44  ;;  %v14907_v44 = vld [vmem:[#allocation7 + $0x4cc] ss:$16 sps:$4 sm:$0xff]  }
 0x110   :  { %2600 = vmatmul.mubr.bf16.gmra.mrb[40].mxu0 %v12193_v47  ;;  %3372 = vmatmul.mubr.bf16.gmra.mrb[40].mxu1 %v12193_v47  ;;  %v14905_v47 = vld [vmem:[#allocation7 + $0x4c8] ss:$16 sps:$4 sm:$0xff]  }
 0x111   :  { %2609 = vmatprep.mubr.bf16.mxu0 %v12202_v48  ;;  %3381 = vmatprep.mubr.bf16.mxu1 %v12202_v48  ;;  %v182_v48 = vld [vmem:[#allocation2 + $0x148] sm:$0xff] }
 0x112   :  { %v12156_v57 = vcombine.high %v182_v48, %v186_v49  ;;  %v12155_v2 = vcombine.low %v182_v48, %v186_v49  ;;  %v238_v49 = vld [vmem:[#allocation2 + $0x308] sm:$0xff] }
 0x118   :  { %2610 = vmatmul.mubr.bf16.gmra.mrb[44].mxu0 %v12201_v51  ;;  %3382 = vmatmul.mubr.bf16.gmra.mrb[44].mxu1 %v12201_v51  ;;  %v14910_v51 = vld [vmem:[#allocation7 + $0x4ec] ss:$16 sps:$4 sm:$0xff]  }
 0x119   :  { %2619 = vmatprep.mubr.bf16.mxu0 %v12210_v52  ;;  %3391 = vmatprep.mubr.bf16.mxu1 %v12210_v52  ;;  %v14877_v52 = vld [vmem:[#allocation7 + $0x504] ss:$16 sps:$4 sm:$0xff]  }
 0x120   :  { %2620 = vmatmul.mubr.bf16.gmra.mrb[48].mxu0 %v12209_v55  ;;  %3392 = vmatmul.mubr.bf16.gmra.mrb[48].mxu1 %v12209_v55  ;;  %v14875_v55 = vld [vmem:[#allocation7 + $0x500] ss:$16 sps:$4 sm:$0xff]  }
 0x121   :  { %2629 = vmatprep.mubr.bf16.mxu0 %v12218_v56  ;;  %3401 = vmatprep.mubr.bf16.mxu1 %v12218_v56  ;;  %v14916_v56 = vld [vmem:[#allocation7 + $0x50c] ss:$16 sps:$4 sm:$0xff]  }
 0x128   :  { %2630 = vmatmul.mubr.bf16.gmra.mrb[52].mxu0 %v12217_v59  ;;  %3402 = vmatmul.mubr.bf16.gmra.mrb[52].mxu1 %v12217_v59  ;;  %v14914_v59 = vld [vmem:[#allocation7 + $0x508] ss:$16 sps:$4 sm:$0xff]  }
 0x129   :  { %2639 = vmatprep.mubr.bf16.mxu0 %v12226_v60  ;;  %3411 = vmatprep.mubr.bf16.mxu1 %v12226_v60  ;;  %v190_v60 = vld [vmem:[#allocation2 + $0x188] sm:$0xff] }
 0x12a   :  { %v12164_v5 = vcombine.high %v190_v60, %v194_v61  ;;  %v12163_v14 = vcombine.low %v190_v60, %v194_v61  ;;  %v262_v61 = vld [vmem:[#allocation2 + $0x3c8] sm:$0xff] }
 0x130   :  { %2640 = vmatmul.mubr.bf16.gmra.mrb[56].mxu0 %v12225_v63  ;;  %3412 = vmatmul.mubr.bf16.gmra.mrb[56].mxu1 %v12225_v63  ;;  %v14919_v63 = vld [vmem:[#allocation7 + $0x52c] ss:$16 sps:$4 sm:$0xff]  }
 0x131   :  { %2649 = vmatprep.mubr.bf16.mxu0 %v12234_v0  ;;  %3421 = vmatprep.mubr.bf16.mxu1 %v12234_v0  ;;  %v14895_v0 = vld [vmem:[#allocation7 + $0x544] ss:$16 sps:$4 sm:$0xff]  }
 0x138   :  { %2650 = vmatmul.mubr.bf16.gmra.mrb[60].mxu0 %v12233_v3  ;;  %3422 = vmatmul.mubr.bf16.gmra.mrb[60].mxu1 %v12233_v3  ;;  %v14893_v3 = vld [vmem:[#allocation7 + $0x540] ss:$16 sps:$4 sm:$0xff]  }
 0x139   :  { %2692 = vmatprep.mubr.bf16.mxu0 %v12116_v4  ;;  %3464 = vmatprep.mubr.bf16.mxu1 %v12116_v4  ;;  %v14925_v4 = vld [vmem:[#allocation7 + $0x54c] ss:$16 sps:$4 sm:$0xff]  }
 0x140   :  { %2693 = vmatmul.mubr.bf16.vlgmr.msra.gmra.mrb[0].mxu0 %v12115_v8  ;;  %3465 = vmatmul.mubr.bf16.vlgmr.msra.gmra.mrb[0].mxu1 %v12115_v8  ;;  %v198_v8 = vld [vmem:[#allocation2 + $0x1c8] sm:$0xff] }
 0x141   :  { %2854 = vmatpush1.bf16.msra.mxu0 %v14851_v7  ;;  %2702 = vmatprep.mubr.bf16.mxu0 %v12124_v10  ;;  %v14923_v7 = vld [vmem:[#allocation7 + $0x548] ss:$16 sps:$4 sm:$0xff]  }
 0x142   :  { %3474 = vmatprep.mubr.bf16.mxu1 %v12124_v10  ;;  %2855 = vmatprep.subr.bf16.mxu0 %v14856_v9  ;;  %v202_v9 = vld [vmem:[#allocation2 + $0x1e8] sm:$0xff]  ;;  %v14902_v10 = vld [vmem:[#allocation7 + $0x560] ss:$16 sps:$4 sm:$0xff]  }
 0x143   :  { %3626 = vmatpush1.bf16.msra.mxu1 %v14878_v11  ;;  %v14928_v11 = vld [vmem:[#allocation7 + $0x56c] ss:$16 sps:$4 sm:$0xff]  }
 0x144   :  { %3627 = vmatprep.subr.bf16.mxu1 %v14883_v15  ;;  %v14911_v15 = vld [vmem:[#allocation7 + $0x580] ss:$16 sps:$4 sm:$0xff]  }
 0x145   :  { %2856 = vmatpush1.bf16.msra.mxu0 %v14854_v12  ;;  %v14913_v12 = vld [vmem:[#allocation7 + $0x584] ss:$16 sps:$4 sm:$0xff]  }
 0x146   :  { %2857 = vmatprep.subr.bf16.mxu0 %v14859_v16  ;;  %v14934_v16 = vld [vmem:[#allocation7 + $0x58c] ss:$16 sps:$4 sm:$0xff]  }
 0x147   :  { %3628 = vmatpush1.bf16.msra.mxu1 %v14881_v17  ;;  %v12172_v17 = vcombine.high %v198_v8, %v202_v9 }
 0x148   :  { %2703 = vmatmul.mubr.bf16.gmra.mrb[4].mxu0 %v12123_v18  ;;  %3475 = vmatmul.mubr.bf16.gmra.mrb[4].mxu1 %v12123_v18  ;;  %v14922_v18 = vld [vmem:[#allocation7 + $0x5a4] ss:$16 sps:$4 sm:$0xff]  }
 0x149   :  { %2712 = vmatprep.mubr.bf16.mxu0 %v12132_v21  ;;  %3484 = vmatprep.mubr.bf16.mxu1 %v12132_v21  ;;  %v210_v21 = vld [vmem:[#allocation2 + $0x228] sm:$0xff] }
 0x14a   :  { %2858 = vmatpush1.bf16.msra.mxu0 %v14857_v19  ;;  %3629 = vmatprep.subr.bf16.mxu1 %v14889_v20  ;;  %v14932_v19 = vld [vmem:[#allocation7 + $0x588] ss:$16 sps:$4 sm:$0xff]  }
 0x14b   :  { %2859 = vmatprep.subr.bf16.mxu0 %v14862_v22  ;;  %3630 = vmatpush1.bf16.msra.mxu1 %v14887_v23  ;;  %v206_v20 = vld [vmem:[#allocation2 + $0x208] sm:$0xff]  ;;  %v14920_v22 = vld [vmem:[#allocation7 + $0x5a0] ss:$16 sps:$4 sm:$0xff]  }
 0x14c   :  { %3631 = vmatprep.subr.bf16.mxu1 %v14892_v27  ;;  %v14937_v23 = vld [vmem:[#allocation7 + $0x5ac] ss:$16 sps:$4 sm:$0xff]   ;;  %v14929_v27 = vld [vmem:[#allocation7 + $0x5c0] ss:$16 sps:$4 sm:$0xff]  }
 0x14e   :  { %2860 = vmatpush1.bf16.msra.mxu0 %v14860_v26  ;;  %v12171_v26 = vcombine.low %v198_v8, %v202_v9  ;;  %v14947_v8 = vld [vmem:[#allocation7 + $0x600] ss:$16 sps:$4 sm:$0xff]  }
 0x14f   :  { %2861 = vmatprep.subr.bf16.mxu0 %v14865_v28  ;;  %3632 = vmatpush1.bf16.msra.mxu1 %v14890_v29  ;;  %v14943_v28 = vld [vmem:[#allocation7 + $0x5cc] ss:$16 sps:$4 sm:$0xff]   ;;  %v12180_v29 = vcombine.high %v206_v20, %v210_v21 }
 0x150   :  { %2713 = vmatmul.mubr.bf16.gmra.mrb[8].mxu0 %v12131_v30  ;;  %3485 = vmatmul.mubr.bf16.gmra.mrb[8].mxu1 %v12131_v30  ;;  %v14940_v30 = vld [vmem:[#allocation7 + $0x5e4] ss:$16 sps:$4 sm:$0xff]  }
 0x151   :  { %2722 = vmatprep.mubr.bf16.mxu0 %v12140_v33  ;;  %3494 = vmatprep.mubr.bf16.mxu1 %v12140_v33  ;;  %v218_v33 = vld [vmem:[#allocation2 + $0x268] sm:$0xff] }
 0x152   :  { %2862 = vmatpush1.bf16.msra.mxu0 %v14863_v31  ;;  %3633 = vmatprep.subr.bf16.mxu1 %v14898_v32  ;;  %v14941_v31 = vld [vmem:[#allocation7 + $0x5c8] ss:$16 sps:$4 sm:$0xff]  }
 0x153   :  { %2863 = vmatprep.subr.bf16.mxu0 %v14868_v34  ;;  %3634 = vmatpush1.bf16.msra.mxu1 %v14896_v35  ;;  %v214_v32 = vld [vmem:[#allocation2 + $0x248] sm:$0xff]  ;;  %v14938_v34 = vld [vmem:[#allocation7 + $0x5e0] ss:$16 sps:$4 sm:$0xff]  }
 0x154   :  { %3635 = vmatprep.subr.bf16.mxu1 %v14901_v39  ;;  %v14946_v35 = vld [vmem:[#allocation7 + $0x5ec] ss:$16 sps:$4 sm:$0xff]   ;;  %v12188_v39 = vcombine.high %v214_v32, %v218_v33 }
 0x156   :  { %2864 = vmatpush1.bf16.msra.mxu0 %v14866_v38  ;;  %v12179_v38 = vcombine.low %v206_v20, %v210_v21  ;;  %v14953_v20 = vld [vmem:[#allocation7 + $0x640] ss:$16 sps:$4 sm:$0xff]   ;;  %v14985_v21 = vld [vmem:[#allocation7 + $0x64c] ss:$16 sps:$4 sm:$0xff]  }
 0x157   :  { %2865 = vmatprep.subr.bf16.mxu0 %v14871_v40  ;;  %3636 = vmatpush1.bf16.msra.mxu1 %v14899_v41  ;;  %v14976_v40 = vld [vmem:[#allocation7 + $0x60c] ss:$16 sps:$4 sm:$0xff]  }
 0x158   :  { %2723 = vmatmul.mubr.bf16.gmra.mrb[12].mxu0 %v12139_v42  ;;  %3495 = vmatmul.mubr.bf16.gmra.mrb[12].mxu1 %v12139_v42  ;;  %v222_v41 = vld [vmem:[#allocation2 + $0x288] sm:$0xff] }
 0x159   :  { %2732 = vmatprep.mubr.bf16.mxu0 %v12148_v45  ;;  %3504 = vmatprep.mubr.bf16.mxu1 %v12148_v45  ;;  %v226_v42 = vld [vmem:[#allocation2 + $0x2a8] sm:$0xff] }
 0x15a   :  { %2866 = vmatpush1.bf16.msra.mxu0 %v14869_v43  ;;  %3637 = vmatprep.subr.bf16.mxu1 %v14907_v44  ;;  %v12187_v43 = vcombine.low %v214_v32, %v218_v33  ;;  %v12196_v44 = vcombine.high %v222_v41, %v226_v42  ;;  %v230_v45 = vld [vmem:[#allocation2 + $0x2c8] sm:$0xff]  ;;  %v14959_v32 = vld [vmem:[#allocation7 + $0x680] ss:$16 sps:$4 sm:$0xff]  }
 0x15b   :  { %2867 = vmatprep.subr.bf16.mxu0 %v14874_v46  ;;  %3638 = vmatpush1.bf16.msra.mxu1 %v14905_v47  ;;  %v234_v46 = vld [vmem:[#allocation2 + $0x2e8] sm:$0xff]  ;;  %v12195_v47 = vcombine.low %v222_v41, %v226_v42 }
 0x15c   :  { %3639 = vmatprep.subr.bf16.mxu1 %v14910_v51  ;;  %v12204_v48 = vcombine.high %v230_v45, %v234_v46  ;;  %v12203_v51 = vcombine.low %v230_v45, %v234_v46  ;;  %v14994_v33 = vld [vmem:[#allocation7 + $0x68c] ss:$16 sps:$4 sm:$0xff]   ;;  %v14995_v41 = vld [vmem:[#allocation7 + $0x6a8] ss:$16 sps:$4 sm:$0xff]   ;;  %v14970_v46 = vld [vmem:[#allocation7 + $0x6e4] ss:$16 sps:$4 sm:$0xff]  }
 0x15d   :  { %v15003_v45 = vld [vmem:[#allocation7 + $0x6cc] ss:$16 sps:$4 sm:$0xff]  }
 0x15e   :  { %2868 = vmatpush1.bf16.msra.mxu0 %v14872_v50  ;;  %v242_v50 = vld [vmem:[#allocation2 + $0x328] sm:$0xff] }
 0x15f   :  { %2869 = vmatprep.subr.bf16.mxu0 %v14877_v52  ;;  %3640 = vmatpush1.bf16.msra.mxu1 %v14908_v53  ;;  %v12212_v52 = vcombine.high %v238_v49, %v242_v50  ;;  %v246_v53 = vld [vmem:[#allocation2 + $0x348] sm:$0xff] }
 0x160   :  { %2733 = vmatmul.mubr.bf16.gmra.mrb[16].mxu0 %v12147_v54  ;;  %3505 = vmatmul.mubr.bf16.gmra.mrb[16].mxu1 %v12147_v54  ;;  %v250_v54 = vld [vmem:[#allocation2 + $0x368] sm:$0xff] }
 0x161   :  { %2742 = vmatprep.mubr.bf16.mxu0 %v12156_v57  ;;  %3514 = vmatprep.mubr.bf16.mxu1 %v12156_v57  ;;  %v254_v57 = vld [vmem:[#allocation2 + $0x388] sm:$0xff] }
 0x162   :  { %2870 = vmatpush1.bf16.msra.mxu0 %v14875_v55  ;;  %3641 = vmatprep.subr.bf16.mxu1 %v14916_v56  ;;  %v12211_v55 = vcombine.low %v238_v49, %v242_v50  ;;  %v12220_v56 = vcombine.high %v246_v53, %v250_v54  ;;  %v183_v49 = vld [vmem:[#allocation2 + $0x150] sm:$0xff] }
 0x163   :  { %2871 = vmatprep.subr.bf16.mxu0 %v14886_v58  ;;  %3642 = vmatpush1.bf16.msra.mxu1 %v14914_v59  ;;  %v258_v58 = vld [vmem:[#allocation2 + $0x3a8] sm:$0xff]  ;;  %v12219_v59 = vcombine.low %v246_v53, %v250_v54  ;;  %v187_v50 = vld [vmem:[#allocation2 + $0x170] sm:$0xff] }
 0x164   :  { %3643 = vmatprep.subr.bf16.mxu1 %v14919_v63  ;;  %v12228_v60 = vcombine.high %v254_v57, %v258_v58  ;;  %v12227_v63 = vcombine.low %v254_v57, %v258_v58  ;;  %v15004_v53 = vld [vmem:[#allocation7 + $0x6e8] ss:$16 sps:$4 sm:$0xff]   ;;  %v15012_v57 = vld [vmem:[#allocation7 + $0x70c] ss:$16 sps:$4 sm:$0xff]   ;;  %v14982_v58 = vld [vmem:[#allocation7 + $0x724] ss:$16 sps:$4 sm:$0xff]  }
 0x166   :  { %2872 = vmatpush1.bf16.msra.mxu0 %v14884_v62  ;;  %v266_v62 = vld [vmem:[#allocation2 + $0x3e8] sm:$0xff] }
 0x167   :  { %2873 = vmatprep.subr.bf16.mxu0 %v14895_v0  ;;  %3644 = vmatpush1.bf16.msra.mxu1 %v14917_v1  ;;  %v12236_v0 = vcombine.high %v262_v61, %v266_v62  ;;  %v143_v1 = vld [vmem:[#allocation2 + $0x10] sm:$0xff] }
 0x168   :  { %2743 = vmatmul.mubr.bf16.gmra.mrb[20].mxu0 %v12155_v2  ;;  %3515 = vmatmul.mubr.bf16.gmra.mrb[20].mxu1 %v12155_v2  ;;  %v147_v2 = vld [vmem:[#allocation2 + $0x30] sm:$0xff] }
 0x169   :  { %2752 = vmatprep.mubr.bf16.mxu0 %v12164_v5  ;;  %3524 = vmatprep.mubr.bf16.mxu1 %v12164_v5  ;;  %v151_v5 = vld [vmem:[#allocation2 + $0x50] sm:$0xff] }
 0x16a   :  { %2874 = vmatpush1.bf16.msra.mxu0 %v14893_v3  ;;  %3645 = vmatprep.subr.bf16.mxu1 %v14925_v4  ;;  %v12235_v3 = vcombine.low %v262_v61, %v266_v62  ;;  %v12118_v4 = vcombine.high %v143_v1, %v147_v2  ;;  %v191_v61 = vld [vmem:[#allocation2 + $0x190] sm:$0xff] }
 0x16b   :  { %2875 = vmatprep.subr.bf16.mxu0 %v14904_v6  ;;  %3646 = vmatpush1.bf16.msra.mxu1 %v14923_v7  ;;  %v155_v6 = vld [vmem:[#allocation2 + $0x70] sm:$0xff]  ;;  %v12117_v7 = vcombine.low %v143_v1, %v147_v2  ;;  %v15013_v1 = vld [vmem:[#allocation7 + $0x728] ss:$16 sps:$4 sm:$0xff]   ;;  %v12157_v2 = vcombine.low %v183_v49, %v187_v50 }
 0x16c   :  { %3647 = vmatprep.subr.bf16.mxu1 %v14928_v11  ;;  %v12126_v9 = vcombine.high %v151_v5, %v155_v6  ;;  %v14974_v11 = vld [vmem:[#allocation7 + $0x608] ss:$16 sps:$4 sm:$0xff]   ;;  %v195_v62 = vld [vmem:[#allocation2 + $0x1b0] sm:$0xff] }
 0x16e   :  { %2876 = vmatpush1.bf16.msra.mxu0 %v14902_v10  ;;  %v14952_v10 = vld [vmem:[#allocation7 + $0x624] ss:$16 sps:$4 sm:$0xff]  }
 0x16f   :  { %2877 = vmatprep.subr.bf16.mxu0 %v14913_v12  ;;  %3648 = vmatpush1.bf16.msra.mxu1 %v14926_v13  ;;  %v14979_v12 = vld [vmem:[#allocation7 + $0x62c] ss:$16 sps:$4 sm:$0xff]   ;;  %v14950_v13 = vld [vmem:[#allocation7 + $0x620] ss:$16 sps:$4 sm:$0xff]  }
 0x170   :  { %2753 = vmatmul.mubr.bf16.gmra.mrb[24].mxu0 %v12163_v14  ;;  %3525 = vmatmul.mubr.bf16.gmra.mrb[24].mxu1 %v12163_v14  ;;  %v159_v14 = vld [vmem:[#allocation2 + $0x90] sm:$0xff] }
 0x171   :  { %2762 = vmatprep.mubr.bf16.mxu0 %v12172_v17  ;;  %3534 = vmatprep.mubr.bf16.mxu1 %v12172_v17  ;;  %v14977_v17 = vld [vmem:[#allocation7 + $0x628] ss:$16 sps:$4 sm:$0xff]  }
 0x172   :  { %2878 = vmatpush1.bf16.msra.mxu0 %v14911_v15  ;;  %3649 = vmatprep.subr.bf16.mxu1 %v14934_v16  ;;  %v163_v15 = vld [vmem:[#allocation2 + $0xb0] sm:$0xff] }
 0x173   :  { %2879 = vmatprep.subr.bf16.mxu0 %v14922_v18  ;;  %3650 = vmatpush1.bf16.msra.mxu1 %v14932_v19  ;;  %v14955_v16 = vld [vmem:[#allocation7 + $0x644] ss:$16 sps:$4 sm:$0xff]   ;;  %v12125_v18 = vcombine.low %v151_v5, %v155_v6  ;;  %v12134_v19 = vcombine.high %v159_v14, %v163_v15  ;;  %v15021_v5 = vld [vmem:[#allocation7 + $0x74c] ss:$16 sps:$4 sm:$0xff]  }
 0x174   :  { %3651 = vmatprep.subr.bf16.mxu1 %v14937_v23  ;;  %v14983_v23 = vld [vmem:[#allocation7 + $0x648] ss:$16 sps:$4 sm:$0xff]   ;;  %v15000_v6 = vld [vmem:[#allocation7 + $0x764] ss:$16 sps:$4 sm:$0xff]  }
 0x176   :  { %2880 = vmatpush1.bf16.msra.mxu0 %v14920_v22  ;;  %v14958_v22 = vld [vmem:[#allocation7 + $0x664] ss:$16 sps:$4 sm:$0xff]  }
 0x177   :  { %2881 = vmatprep.subr.bf16.mxu0 %v14931_v24  ;;  %3652 = vmatpush1.bf16.msra.mxu1 %v14935_v25  ;;  %v14988_v24 = vld [vmem:[#allocation7 + $0x66c] ss:$16 sps:$4 sm:$0xff]   ;;  %v167_v25 = vld [vmem:[#allocation2 + $0xd0] sm:$0xff] }
 0x178   :  { %2763 = vmatmul.mubr.bf16.gmra.mrb[28].mxu0 %v12171_v26  ;;  %3535 = vmatmul.mubr.bf16.gmra.mrb[28].mxu1 %v12171_v26  ;;  %v171_v26 = vld [vmem:[#allocation2 + $0xf0] sm:$0xff] }
 0x179   :  { %2772 = vmatprep.mubr.bf16.mxu0 %v12180_v29  ;;  %3544 = vmatprep.mubr.bf16.mxu1 %v12180_v29  ;;  %v14986_v29 = vld [vmem:[#allocation7 + $0x668] ss:$16 sps:$4 sm:$0xff]   ;;  %v12141_v42 = vcombine.low %v167_v25, %v171_v26 }
 0x17a   :  { %2882 = vmatpush1.bf16.msra.mxu0 %v14929_v27  ;;  %3653 = vmatprep.subr.bf16.mxu1 %v14943_v28  ;;  %v14956_v27 = vld [vmem:[#allocation7 + $0x660] ss:$16 sps:$4 sm:$0xff]   ;;  %v14961_v28 = vld [vmem:[#allocation7 + $0x684] ss:$16 sps:$4 sm:$0xff]  }
 0x17b   :  { %2883 = vmatprep.subr.bf16.mxu0 %v14940_v30  ;;  %3654 = vmatpush1.bf16.msra.mxu1 %v14941_v31  ;;  %v12133_v30 = vcombine.low %v159_v14, %v163_v15  ;;  %v12142_v31 = vcombine.high %v167_v25, %v171_v26  ;;  %v12165_v14 = vcombine.low %v191_v61, %v195_v62  ;;  %v15031_v25 = vld [vmem:[#allocation7 + $0x7a8] ss:$16 sps:$4 sm:$0xff]  }
 0x17c   :  { %3655 = vmatprep.subr.bf16.mxu1 %v14946_v35  ;;  %v14992_v35 = vld [vmem:[#allocation7 + $0x688] ss:$16 sps:$4 sm:$0xff]  }
 0x17e   :  { %2884 = vmatpush1.bf16.msra.mxu0 %v14938_v34  ;;  %v14964_v34 = vld [vmem:[#allocation7 + $0x6a4] ss:$16 sps:$4 sm:$0xff]  }
 0x17f   :  { %3656 = vmatpush1.bf16.msra.mxu1 %v14944_v36  ;;  %3046 = vmatprep.subr.bf16.mxu0 %v14949_v37  ;;  %v14997_v36 = vld [vmem:[#allocation7 + $0x6ac] ss:$16 sps:$4 sm:$0xff]   ;;  %v175_v37 = vld [vmem:[#allocation2 + $0x110] sm:$0xff] }
 0x180   :  { %2773 = vmatmul.mubr.bf16.gmra.mrb[32].mxu0 %v12179_v38  ;;  %3545 = vmatmul.mubr.bf16.gmra.mrb[32].mxu1 %v12179_v38  ;;  %v179_v38 = vld [vmem:[#allocation2 + $0x130] sm:$0xff] }
 0x181   :  { %2782 = vmatprep.mubr.bf16.mxu0 %v12188_v39  ;;  %3554 = vmatprep.mubr.bf16.mxu1 %v12188_v39  ;;  %v14962_v39 = vld [vmem:[#allocation7 + $0x6a0] ss:$16 sps:$4 sm:$0xff]   ;;  %v12149_v54 = vcombine.low %v175_v37, %v179_v38 }
 0x182   :  { %3818 = vmatprep.subr.bf16.mxu1 %v14976_v40  ;;  %v14967_v40 = vld [vmem:[#allocation7 + $0x6c4] ss:$16 sps:$4 sm:$0xff]  }
 0x188   :  { %2783 = vmatmul.mubr.bf16.gmra.mrb[36].mxu0 %v12187_v43  ;;  %3555 = vmatmul.mubr.bf16.gmra.mrb[36].mxu1 %v12187_v43  ;;  %v12150_v43 = vcombine.high %v175_v37, %v179_v38 }
 0x189   :  { %2792 = vmatprep.mubr.bf16.mxu0 %v12196_v44  ;;  %3564 = vmatprep.mubr.bf16.mxu1 %v12196_v44  ;;  %v14965_v44 = vld [vmem:[#allocation7 + $0x6c0] ss:$16 sps:$4 sm:$0xff]  }
 0x190   :  { %2793 = vmatmul.mubr.bf16.gmra.mrb[40].mxu0 %v12195_v47  ;;  %3565 = vmatmul.mubr.bf16.gmra.mrb[40].mxu1 %v12195_v47  ;;  %v15001_v47 = vld [vmem:[#allocation7 + $0x6c8] ss:$16 sps:$4 sm:$0xff]  }
 0x191   :  { %2802 = vmatprep.mubr.bf16.mxu0 %v12204_v48  ;;  %3574 = vmatprep.mubr.bf16.mxu1 %v12204_v48  ;;  %v15006_v48 = vld [vmem:[#allocation7 + $0x6ec] ss:$16 sps:$4 sm:$0xff]  }
 0x198   :  { %2803 = vmatmul.mubr.bf16.gmra.mrb[44].mxu0 %v12203_v51  ;;  %3575 = vmatmul.mubr.bf16.gmra.mrb[44].mxu1 %v12203_v51  ;;  %v14968_v51 = vld [vmem:[#allocation7 + $0x6e0] ss:$16 sps:$4 sm:$0xff]  }
 0x199   :  { %2812 = vmatprep.mubr.bf16.mxu0 %v12212_v52  ;;  %3584 = vmatprep.mubr.bf16.mxu1 %v12212_v52  ;;  %v14973_v52 = vld [vmem:[#allocation7 + $0x704] ss:$16 sps:$4 sm:$0xff]  }
 0x1a0   :  { %2813 = vmatmul.mubr.bf16.gmra.mrb[48].mxu0 %v12211_v55  ;;  %3585 = vmatmul.mubr.bf16.gmra.mrb[48].mxu1 %v12211_v55  ;;  %v12158_v55 = vcombine.high %v183_v49, %v187_v50 }
 0x1a1   :  { %2822 = vmatprep.mubr.bf16.mxu0 %v12220_v56  ;;  %3594 = vmatprep.mubr.bf16.mxu1 %v12220_v56  ;;  %v14971_v56 = vld [vmem:[#allocation7 + $0x700] ss:$16 sps:$4 sm:$0xff]  }
 0x1a8   :  { %2823 = vmatmul.mubr.bf16.gmra.mrb[52].mxu0 %v12219_v59  ;;  %3595 = vmatmul.mubr.bf16.gmra.mrb[52].mxu1 %v12219_v59  ;;  %v15010_v59 = vld [vmem:[#allocation7 + $0x708] ss:$16 sps:$4 sm:$0xff]  }
 0x1a9   :  { %2832 = vmatprep.mubr.bf16.mxu0 %v12228_v60  ;;  %3604 = vmatprep.mubr.bf16.mxu1 %v12228_v60  ;;  %v15015_v60 = vld [vmem:[#allocation7 + $0x72c] ss:$16 sps:$4 sm:$0xff]  }
 0x1b0   :  { %2833 = vmatmul.mubr.bf16.gmra.mrb[56].mxu0 %v12227_v63  ;;  %3605 = vmatmul.mubr.bf16.gmra.mrb[56].mxu1 %v12227_v63  ;;  %v14980_v63 = vld [vmem:[#allocation7 + $0x720] ss:$16 sps:$4 sm:$0xff]  }
 0x1b1   :  { %2842 = vmatprep.mubr.bf16.mxu0 %v12236_v0  ;;  %3614 = vmatprep.mubr.bf16.mxu1 %v12236_v0  ;;  %v14991_v0 = vld [vmem:[#allocation7 + $0x744] ss:$16 sps:$4 sm:$0xff]  }
 0x1b8   :  { %2843 = vmatmul.mubr.bf16.gmra.mrb[60].mxu0 %v12235_v3  ;;  %3615 = vmatmul.mubr.bf16.gmra.mrb[60].mxu1 %v12235_v3  ;;  %v12166_v3 = vcombine.high %v191_v61, %v195_v62  ;;  %v267_v61 = vld [vmem:[#allocation2 + $0x3f0] sm:$0xff] }
 0x1b9   :  { %2885 = vmatprep.mubr.bf16.mxu0 %v12118_v4  ;;  %3657 = vmatprep.mubr.bf16.mxu1 %v12118_v4  ;;  %v14989_v4 = vld [vmem:[#allocation7 + $0x740] ss:$16 sps:$4 sm:$0xff]  }
 0x1c0   :  { %2886 = vmatmul.mubr.bf16.vlgmr.msra.gmra.mrb[0].mxu0 %v12117_v7  ;;  %3658 = vmatmul.mubr.bf16.vlgmr.msra.gmra.mrb[0].mxu1 %v12117_v7  ;;  %v15019_v7 = vld [vmem:[#allocation7 + $0x748] ss:$16 sps:$4 sm:$0xff]  }
 0x1c1   :  { %3047 = vmatpush1.bf16.msra.mxu0 %v14947_v8  ;;  %2895 = vmatprep.mubr.bf16.mxu0 %v12126_v9  ;;  %v15024_v8 = vld [vmem:[#allocation7 + $0x76c] ss:$16 sps:$4 sm:$0xff]  }
 0x1c2   :  { %3667 = vmatprep.mubr.bf16.mxu1 %v12126_v9  ;;  %3048 = vmatprep.subr.bf16.mxu0 %v14952_v10  ;;  %v199_v9 = vld [vmem:[#allocation2 + $0x1d0] sm:$0xff] }
 0x1c3   :  { %3819 = vmatpush1.bf16.msra.mxu1 %v14974_v11  ;;  %v203_v10 = vld [vmem:[#allocation2 + $0x1f0] sm:$0xff] }
 0x1c4   :  { %3820 = vmatprep.subr.bf16.mxu1 %v14979_v12  ;;  %v14998_v11 = vld [vmem:[#allocation7 + $0x760] ss:$16 sps:$4 sm:$0xff]   ;;  %v15009_v12 = vld [vmem:[#allocation7 + $0x784] ss:$16 sps:$4 sm:$0xff]   ;;  %v12174_v15 = vcombine.high %v199_v9, %v203_v10  ;;  %v12173_v26 = vcombine.low %v199_v9, %v203_v10  ;;  %v15070_v10 = vld [vmem:[#allocation8 + $0x8] ss:$16 sps:$4 sm:$0xff]  }
 0x1c5   :  { %3049 = vmatpush1.bf16.msra.mxu0 %v14950_v13  ;;  %v15022_v13 = vld [vmem:[#allocation7 + $0x768] ss:$16 sps:$4 sm:$0xff]   ;;  %v15043_v9 = vld [vmem:[#allocation8] ss:$16 sps:$4 sm:$0xff]  }
 0x1c6   :  { %3050 = vmatprep.subr.bf16.mxu0 %v14955_v16  ;;  %v15007_v16 = vld [vmem:[#allocation7 + $0x780] ss:$16 sps:$4 sm:$0xff]  }
 0x1c7   :  { %3821 = vmatpush1.bf16.msra.mxu1 %v14977_v17  ;;  %v15030_v17 = vld [vmem:[#allocation7 + $0x78c] ss:$16 sps:$4 sm:$0xff]  }
 0x1c8   :  { %2896 = vmatmul.mubr.bf16.gmra.mrb[4].mxu0 %v12125_v18  ;;  %3668 = vmatmul.mubr.bf16.gmra.mrb[4].mxu1 %v12125_v18  ;;  %v15018_v18 = vld [vmem:[#allocation7 + $0x7a4] ss:$16 sps:$4 sm:$0xff]  }
 0x1c9   :  { %2905 = vmatprep.mubr.bf16.mxu0 %v12134_v19  ;;  %3677 = vmatprep.mubr.bf16.mxu1 %v12134_v19  ;;  %v15028_v19 = vld [vmem:[#allocation7 + $0x788] ss:$16 sps:$4 sm:$0xff]  }
 0x1ca   :  { %3051 = vmatpush1.bf16.msra.mxu0 %v14953_v20  ;;  %3822 = vmatprep.subr.bf16.mxu1 %v14985_v21  ;;  %v15033_v20 = vld [vmem:[#allocation7 + $0x7ac] ss:$16 sps:$4 sm:$0xff]   ;;  %v207_v21 = vld [vmem:[#allocation2 + $0x210] sm:$0xff] }
 0x1cb   :  { %3052 = vmatprep.subr.bf16.mxu0 %v14958_v22  ;;  %3823 = vmatpush1.bf16.msra.mxu1 %v14983_v23  ;;  %v211_v22 = vld [vmem:[#allocation2 + $0x230] sm:$0xff] }
 0x1cc   :  { %3824 = vmatprep.subr.bf16.mxu1 %v14988_v24  ;;  %v15016_v23 = vld [vmem:[#allocation7 + $0x7a0] ss:$16 sps:$4 sm:$0xff]   ;;  %v15027_v24 = vld [vmem:[#allocation7 + $0x7c4] ss:$16 sps:$4 sm:$0xff]   ;;  %v12181_v37 = vcombine.low %v207_v21, %v211_v22 }
 0x1ce   :  { %3053 = vmatpush1.bf16.msra.mxu0 %v14956_v27  ;;  %v12182_v27 = vcombine.high %v207_v21, %v211_v22  ;;  %v15049_v21 = vld [vmem:[#allocation8 + $0x40] ss:$16 sps:$4 sm:$0xff]   ;;  %v15079_v22 = vld [vmem:[#allocation8 + $0x48] ss:$16 sps:$4 sm:$0xff]  }
 0x1cf   :  { %3054 = vmatprep.subr.bf16.mxu0 %v14961_v28  ;;  %3825 = vmatpush1.bf16.msra.mxu1 %v14986_v29  ;;  %v15025_v28 = vld [vmem:[#allocation7 + $0x7c0] ss:$16 sps:$4 sm:$0xff]   ;;  %v15039_v29 = vld [vmem:[#allocation7 + $0x7cc] ss:$16 sps:$4 sm:$0xff]  }
 0x1d0   :  { %2906 = vmatmul.mubr.bf16.gmra.mrb[8].mxu0 %v12133_v30  ;;  %3678 = vmatmul.mubr.bf16.gmra.mrb[8].mxu1 %v12133_v30  ;;  %v15036_v30 = vld [vmem:[#allocation7 + $0x7e4] ss:$16 sps:$4 sm:$0xff]  }
 0x1d1   :  { %2915 = vmatprep.mubr.bf16.mxu0 %v12142_v31  ;;  %3687 = vmatprep.mubr.bf16.mxu1 %v12142_v31  ;;  %v15037_v31 = vld [vmem:[#allocation7 + $0x7c8] ss:$16 sps:$4 sm:$0xff]  }
 0x1d2   :  { %3055 = vmatpush1.bf16.msra.mxu0 %v14959_v32  ;;  %3826 = vmatprep.subr.bf16.mxu1 %v14994_v33  ;;  %v15042_v32 = vld [vmem:[#allocation7 + $0x7ec] ss:$16 sps:$4 sm:$0xff]   ;;  %v215_v33 = vld [vmem:[#allocation2 + $0x250] sm:$0xff] }
 0x1d3   :  { %3056 = vmatprep.subr.bf16.mxu0 %v14964_v34  ;;  %3827 = vmatpush1.bf16.msra.mxu1 %v14992_v35  ;;  %v219_v34 = vld [vmem:[#allocation2 + $0x270] sm:$0xff] }
 0x1d4   :  { %3828 = vmatprep.subr.bf16.mxu1 %v14997_v36  ;;  %v15034_v35 = vld [vmem:[#allocation7 + $0x7e0] ss:$16 sps:$4 sm:$0xff]   ;;  %v15040_v36 = vld [vmem:[#allocation7 + $0x7e8] ss:$16 sps:$4 sm:$0xff]   ;;  %v12190_v38 = vcombine.high %v215_v33, %v219_v34 }
 0x1d6   :  { %3057 = vmatpush1.bf16.msra.mxu0 %v14962_v39  ;;  %v223_v39 = vld [vmem:[#allocation2 + $0x290] sm:$0xff] }
 0x1d7   :  { %3058 = vmatprep.subr.bf16.mxu0 %v14967_v40  ;;  %3829 = vmatpush1.bf16.msra.mxu1 %v14995_v41  ;;  %v227_v40 = vld [vmem:[#allocation2 + $0x2b0] sm:$0xff]  ;;  %v12189_v41 = vcombine.low %v215_v33, %v219_v34  ;;  %v15088_v34 = vld [vmem:[#allocation8 + $0x88] ss:$16 sps:$4 sm:$0xff]  }
 0x1d8   :  { %2916 = vmatmul.mubr.bf16.gmra.mrb[12].mxu0 %v12141_v42  ;;  %3688 = vmatmul.mubr.bf16.gmra.mrb[12].mxu1 %v12141_v42  ;;  %v12198_v42 = vcombine.high %v223_v39, %v227_v40  ;;  %v15055_v33 = vld [vmem:[#allocation8 + $0x80] ss:$16 sps:$4 sm:$0xff]  }
 0x1d9   :  { %2925 = vmatprep.mubr.bf16.mxu0 %v12150_v43  ;;  %3697 = vmatprep.mubr.bf16.mxu1 %v12150_v43  ;;  %v231_v43 = vld [vmem:[#allocation2 + $0x2d0] sm:$0xff] }
 0x1da   :  { %3059 = vmatpush1.bf16.msra.mxu0 %v14965_v44  ;;  %3830 = vmatprep.subr.bf16.mxu1 %v15003_v45  ;;  %v235_v44 = vld [vmem:[#allocation2 + $0x2f0] sm:$0xff]  ;;  %v12197_v45 = vcombine.low %v223_v39, %v227_v40  ;;  %v15091_v40 = vld [vmem:[#allocation8 + $0xa8] ss:$16 sps:$4 sm:$0xff]  }
 0x1db   :  { %3060 = vmatprep.subr.bf16.mxu0 %v14970_v46  ;;  %3831 = vmatpush1.bf16.msra.mxu1 %v15001_v47  ;;  %v12206_v46 = vcombine.high %v231_v43, %v235_v44  ;;  %v239_v47 = vld [vmem:[#allocation2 + $0x310] sm:$0xff]  ;;  %v12205_v49 = vcombine.low %v231_v43, %v235_v44 }
 0x1dc   :  { %3832 = vmatprep.subr.bf16.mxu1 %v15006_v48  ;;  %v243_v48 = vld [vmem:[#allocation2 + $0x330] sm:$0xff] }
 0x1dd   :  { %v12214_v50 = vcombine.high %v239_v47, %v243_v48  ;;  %v15058_v39 = vld [vmem:[#allocation8 + $0xa0] ss:$16 sps:$4 sm:$0xff]  }
 0x1de   :  { %3061 = vmatpush1.bf16.msra.mxu0 %v14968_v51  ;;  %v15045_v51 = vld [vmem:[#allocation8 + $0x4] ss:$16 sps:$4 sm:$0xff]  }
 0x1df   :  { %3062 = vmatprep.subr.bf16.mxu0 %v14973_v52  ;;  %3833 = vmatpush1.bf16.msra.mxu1 %v15004_v53  ;;  %v247_v52 = vld [vmem:[#allocation2 + $0x350] sm:$0xff] }
 0x1e0   :  { %2926 = vmatmul.mubr.bf16.gmra.mrb[16].mxu0 %v12149_v54  ;;  %3698 = vmatmul.mubr.bf16.gmra.mrb[16].mxu1 %v12149_v54  ;;  %v251_v53 = vld [vmem:[#allocation2 + $0x370] sm:$0xff]  ;;  %v12213_v54 = vcombine.low %v239_v47, %v243_v48  ;;  %v15102_v48 = vld [vmem:[#allocation8 + $0xec] ss:$16 sps:$4 sm:$0xff]  }
 0x1e1   :  { %2935 = vmatprep.mubr.bf16.mxu0 %v12158_v55  ;;  %3707 = vmatprep.mubr.bf16.mxu1 %v12158_v55  ;;  %v12222_v55 = vcombine.high %v247_v52, %v251_v53  ;;  %v15066_v47 = vld [vmem:[#allocation8 + $0xe4] ss:$16 sps:$4 sm:$0xff]  }
 0x1e2   :  { %3063 = vmatpush1.bf16.msra.mxu0 %v14971_v56  ;;  %3834 = vmatprep.subr.bf16.mxu1 %v15012_v57  ;;  %v255_v56 = vld [vmem:[#allocation2 + $0x390] sm:$0xff] }
 0x1e3   :  { %3064 = vmatprep.subr.bf16.mxu0 %v14982_v58  ;;  %3835 = vmatpush1.bf16.msra.mxu1 %v15010_v59  ;;  %v259_v57 = vld [vmem:[#allocation2 + $0x3b0] sm:$0xff]  ;;  %v12221_v58 = vcombine.low %v247_v52, %v251_v53  ;;  %v15100_v52 = vld [vmem:[#allocation8 + $0xe8] ss:$16 sps:$4 sm:$0xff]  }
 0x1e4   :  { %3836 = vmatprep.subr.bf16.mxu1 %v15015_v60  ;;  %v12230_v59 = vcombine.high %v255_v56, %v259_v57  ;;  %v263_v60 = vld [vmem:[#allocation2 + $0x3d0] sm:$0xff]  ;;  %v12229_v62 = vcombine.low %v255_v56, %v259_v57 }
 0x1e5   :  { %v15069_v53 = vld [vmem:[#allocation8 + $0x104] ss:$16 sps:$4 sm:$0xff]   ;;  %v15067_v57 = vld [vmem:[#allocation8 + $0x100] ss:$16 sps:$4 sm:$0xff]  }
 0x1e6   :  { %3065 = vmatpush1.bf16.msra.mxu0 %v14980_v63  ;;  %v12238_v63 = vcombine.high %v263_v60, %v267_v61 }
 0x1e7   :  { %3066 = vmatprep.subr.bf16.mxu0 %v14991_v0  ;;  %3837 = vmatpush1.bf16.msra.mxu1 %v15013_v1  ;;  %v144_v0 = vld [vmem:[#allocation2 + $0x18] sm:$0xff] }
 0x1e8   :  { %2936 = vmatmul.mubr.bf16.gmra.mrb[20].mxu0 %v12157_v2  ;;  %3708 = vmatmul.mubr.bf16.gmra.mrb[20].mxu1 %v12157_v2  ;;  %v148_v1 = vld [vmem:[#allocation2 + $0x38] sm:$0xff]  ;;  %v12237_v2 = vcombine.low %v263_v60, %v267_v61 }
 0x1e9   :  { %2945 = vmatprep.mubr.bf16.mxu0 %v12166_v3  ;;  %3717 = vmatprep.mubr.bf16.mxu1 %v12166_v3  ;;  %v12120_v3 = vcombine.high %v144_v0, %v148_v1  ;;  %v15111_v60 = vld [vmem:[#allocation8 + $0x12c] ss:$16 sps:$4 sm:$0xff]  }
 0x1ea   :  { %3067 = vmatpush1.bf16.msra.mxu0 %v14989_v4  ;;  %3838 = vmatprep.subr.bf16.mxu1 %v15021_v5  ;;  %v152_v4 = vld [vmem:[#allocation2 + $0x58] sm:$0xff] }
 0x1eb   :  { %3068 = vmatprep.subr.bf16.mxu0 %v15000_v6  ;;  %3839 = vmatpush1.bf16.msra.mxu1 %v15019_v7  ;;  %v156_v5 = vld [vmem:[#allocation2 + $0x78] sm:$0xff]  ;;  %v12119_v7 = vcombine.low %v144_v0, %v148_v1  ;;  %v15087_v1 = vld [vmem:[#allocation8 + $0x144] ss:$16 sps:$4 sm:$0xff]  }
 0x1ec   :  { %3840 = vmatprep.subr.bf16.mxu1 %v15024_v8  ;;  %v15072_v6 = vld [vmem:[#allocation8 + $0xc] ss:$16 sps:$4 sm:$0xff]   ;;  %v12128_v8 = vcombine.high %v152_v4, %v156_v5  ;;  %v15109_v0 = vld [vmem:[#allocation8 + $0x128] ss:$16 sps:$4 sm:$0xff]  }
 0x1ed   :  { %v192_v61 = vld [vmem:[#allocation2 + $0x198] sm:$0xff] }
 0x1ee   :  { %3069 = vmatpush1.bf16.msra.mxu0 %v14998_v11  ;;  %v15048_v11 = vld [vmem:[#allocation8 + $0x24] ss:$16 sps:$4 sm:$0xff]  }
 0x1ef   :  { %3070 = vmatprep.subr.bf16.mxu0 %v15009_v12  ;;  %3841 = vmatpush1.bf16.msra.mxu1 %v15022_v13  ;;  %v15075_v12 = vld [vmem:[#allocation8 + $0x2c] ss:$16 sps:$4 sm:$0xff]  }
 0x1f0   :  { %2946 = vmatmul.mubr.bf16.gmra.mrb[24].mxu0 %v12165_v14  ;;  %3718 = vmatmul.mubr.bf16.gmra.mrb[24].mxu1 %v12165_v14  ;;  %v160_v13 = vld [vmem:[#allocation2 + $0x98] sm:$0xff] }
 0x1f1   :  { %2955 = vmatprep.mubr.bf16.mxu0 %v12174_v15  ;;  %3727 = vmatprep.mubr.bf16.mxu1 %v12174_v15  ;;  %v164_v14 = vld [vmem:[#allocation2 + $0xb8] sm:$0xff]  ;;  %v15046_v15 = vld [vmem:[#allocation8 + $0x20] ss:$16 sps:$4 sm:$0xff]  }
 0x1f2   :  { %3071 = vmatpush1.bf16.msra.mxu0 %v15007_v16  ;;  %3842 = vmatprep.subr.bf16.mxu1 %v15030_v17  ;;  %v15073_v16 = vld [vmem:[#allocation8 + $0x28] ss:$16 sps:$4 sm:$0xff]   ;;  %v15051_v17 = vld [vmem:[#allocation8 + $0x44] ss:$16 sps:$4 sm:$0xff]  }
 0x1f3   :  { %3072 = vmatprep.subr.bf16.mxu0 %v15018_v18  ;;  %3843 = vmatpush1.bf16.msra.mxu1 %v15028_v19  ;;  %v15081_v18 = vld [vmem:[#allocation8 + $0x4c] ss:$16 sps:$4 sm:$0xff]   ;;  %v12127_v19 = vcombine.low %v152_v4, %v156_v5  ;;  %v15085_v5 = vld [vmem:[#allocation8 + $0x140] ss:$16 sps:$4 sm:$0xff]  }
 0x1f4   :  { %3844 = vmatprep.subr.bf16.mxu1 %v15033_v20  ;;  %v12136_v20 = vcombine.high %v160_v13, %v164_v14 }
 0x1f6   :  { %3073 = vmatpush1.bf16.msra.mxu0 %v15016_v23  ;;  %v15054_v23 = vld [vmem:[#allocation8 + $0x64] ss:$16 sps:$4 sm:$0xff]  }
 0x1f7   :  { %3074 = vmatprep.subr.bf16.mxu0 %v15027_v24  ;;  %3845 = vmatpush1.bf16.msra.mxu1 %v15031_v25  ;;  %v15084_v24 = vld [vmem:[#allocation8 + $0x6c] ss:$16 sps:$4 sm:$0xff]  }
 0x1f8   :  { %2956 = vmatmul.mubr.bf16.gmra.mrb[28].mxu0 %v12173_v26  ;;  %3728 = vmatmul.mubr.bf16.gmra.mrb[28].mxu1 %v12173_v26  ;;  %v168_v25 = vld [vmem:[#allocation2 + $0xd8] sm:$0xff] }
 0x1f9   :  { %2965 = vmatprep.mubr.bf16.mxu0 %v12182_v27  ;;  %3737 = vmatprep.mubr.bf16.mxu1 %v12182_v27  ;;  %v172_v26 = vld [vmem:[#allocation2 + $0xf8] sm:$0xff]  ;;  %v15052_v27 = vld [vmem:[#allocation8 + $0x60] ss:$16 sps:$4 sm:$0xff]  }
 0x1fa   :  { %3075 = vmatpush1.bf16.msra.mxu0 %v15025_v28  ;;  %3846 = vmatprep.subr.bf16.mxu1 %v15039_v29  ;;  %v15082_v28 = vld [vmem:[#allocation8 + $0x68] ss:$16 sps:$4 sm:$0xff]   ;;  %v15057_v29 = vld [vmem:[#allocation8 + $0x84] ss:$16 sps:$4 sm:$0xff]   ;;  %v12143_v43 = vcombine.low %v168_v25, %v172_v26 }
 0x1fb   :  { %3076 = vmatprep.subr.bf16.mxu0 %v15036_v30  ;;  %3847 = vmatpush1.bf16.msra.mxu1 %v15037_v31  ;;  %v15090_v30 = vld [vmem:[#allocation8 + $0x8c] ss:$16 sps:$4 sm:$0xff]   ;;  %v12135_v31 = vcombine.low %v160_v13, %v164_v14  ;;  %v15105_v13 = vld [vmem:[#allocation8 + $0x184] ss:$16 sps:$4 sm:$0xff]  }
 0x1fc   :  { %3848 = vmatprep.subr.bf16.mxu1 %v15042_v32  ;;  %v12144_v32 = vcombine.high %v168_v25, %v172_v26  ;;  %v15126_v14 = vld [vmem:[#allocation8 + $0x18c] ss:$16 sps:$4 sm:$0xff]   ;;  %v15123_v25 = vld [vmem:[#allocation8 + $0x1c4] ss:$16 sps:$4 sm:$0xff]  }
 0x1fe   :  { %3077 = vmatpush1.bf16.msra.mxu0 %v15034_v35  ;;  %v15060_v35 = vld [vmem:[#allocation8 + $0xa4] ss:$16 sps:$4 sm:$0xff]  }
 0x1ff   :  { %3849 = vmatpush1.bf16.msra.mxu1 %v15040_v36  ;;  %4993 = vmatprep.subr.bf16.mxu0 %v15045_v51  ;;  %v15093_v36 = vld [vmem:[#allocation8 + $0xac] ss:$16 sps:$4 sm:$0xff]   ;;  %v15064_v51 = vld [vmem:[#allocation8 + $0xe0] ss:$16 sps:$4 sm:$0xff]  }
 0x200   :  { %2966 = vmatmul.mubr.bf16.gmra.mrb[32].mxu0 %v12181_v37  ;;  %3738 = vmatmul.mubr.bf16.gmra.mrb[32].mxu1 %v12181_v37  ;;  %v176_v37 = vld [vmem:[#allocation2 + $0x118] sm:$0xff] }
 0x201   :  { %2975 = vmatprep.mubr.bf16.mxu0 %v12190_v38  ;;  %3747 = vmatprep.mubr.bf16.mxu1 %v12190_v38  ;;  %v180_v38 = vld [vmem:[#allocation2 + $0x138] sm:$0xff] }
 0x202   :  { %5379 = vmatprep.subr.bf16.mxu1 %v15072_v6  ;;  %v12152_v44 = vcombine.high %v176_v37, %v180_v38  ;;  %v15115_v6 = vld [vmem:[#allocation8 + $0x148] ss:$16 sps:$4 sm:$0xff]  }
 0x208   :  { %2976 = vmatmul.mubr.bf16.gmra.mrb[36].mxu0 %v12189_v41  ;;  %3748 = vmatmul.mubr.bf16.gmra.mrb[36].mxu1 %v12189_v41  ;;  %v15063_v41 = vld [vmem:[#allocation8 + $0xc4] ss:$16 sps:$4 sm:$0xff]  }
 0x209   :  { %2985 = vmatprep.mubr.bf16.mxu0 %v12198_v42  ;;  %3757 = vmatprep.mubr.bf16.mxu1 %v12198_v42  ;;  %v15099_v42 = vld [vmem:[#allocation8 + $0xcc] ss:$16 sps:$4 sm:$0xff]  }
 0x210   :  { %2986 = vmatmul.mubr.bf16.gmra.mrb[40].mxu0 %v12197_v45  ;;  %3758 = vmatmul.mubr.bf16.gmra.mrb[40].mxu1 %v12197_v45  ;;  %v15061_v45 = vld [vmem:[#allocation8 + $0xc0] ss:$16 sps:$4 sm:$0xff]  }
 0x211   :  { %2995 = vmatprep.mubr.bf16.mxu0 %v12206_v46  ;;  %3767 = vmatprep.mubr.bf16.mxu1 %v12206_v46  ;;  %v15097_v46 = vld [vmem:[#allocation8 + $0xc8] ss:$16 sps:$4 sm:$0xff]  }
 0x218   :  { %2996 = vmatmul.mubr.bf16.gmra.mrb[44].mxu0 %v12205_v49  ;;  %3768 = vmatmul.mubr.bf16.gmra.mrb[44].mxu1 %v12205_v49  ;;  %v184_v49 = vld [vmem:[#allocation2 + $0x158] sm:$0xff] }
 0x219   :  { %3005 = vmatprep.mubr.bf16.mxu0 %v12214_v50  ;;  %3777 = vmatprep.mubr.bf16.mxu1 %v12214_v50  ;;  %v188_v50 = vld [vmem:[#allocation2 + $0x178] sm:$0xff] }
 0x21a   :  { %v12160_v56 = vcombine.high %v184_v49, %v188_v50 }
 0x220   :  { %3006 = vmatmul.mubr.bf16.gmra.mrb[48].mxu0 %v12213_v54  ;;  %3778 = vmatmul.mubr.bf16.gmra.mrb[48].mxu1 %v12213_v54  ;;  %v15108_v54 = vld [vmem:[#allocation8 + $0x10c] ss:$16 sps:$4 sm:$0xff]  }
 0x221   :  { %3015 = vmatprep.mubr.bf16.mxu0 %v12222_v55  ;;  %3787 = vmatprep.mubr.bf16.mxu1 %v12222_v55  ;;  %v12151_v55 = vcombine.low %v176_v37, %v180_v38  ;;  %v232_v37 = vld [vmem:[#allocation2 + $0x2d8] sm:$0xff] }
 0x222   :  { %v236_v38 = vld [vmem:[#allocation2 + $0x2f8] sm:$0xff] }
 0x228   :  { %3016 = vmatmul.mubr.bf16.gmra.mrb[52].mxu0 %v12221_v58  ;;  %3788 = vmatmul.mubr.bf16.gmra.mrb[52].mxu1 %v12221_v58  ;;  %v15106_v58 = vld [vmem:[#allocation8 + $0x108] ss:$16 sps:$4 sm:$0xff]  }
 0x229   :  { %3025 = vmatprep.mubr.bf16.mxu0 %v12230_v59  ;;  %3797 = vmatprep.mubr.bf16.mxu1 %v12230_v59  ;;  %v15078_v59 = vld [vmem:[#allocation8 + $0x124] ss:$16 sps:$4 sm:$0xff]  }
 0x230   :  { %3026 = vmatmul.mubr.bf16.gmra.mrb[56].mxu0 %v12229_v62  ;;  %3798 = vmatmul.mubr.bf16.gmra.mrb[56].mxu1 %v12229_v62  ;;  %v196_v62 = vld [vmem:[#allocation2 + $0x1b8] sm:$0xff] }
 0x231   :  { %3035 = vmatprep.mubr.bf16.mxu0 %v12238_v63  ;;  %3807 = vmatprep.mubr.bf16.mxu1 %v12238_v63  ;;  %v15076_v63 = vld [vmem:[#allocation8 + $0x120] ss:$16 sps:$4 sm:$0xff]   ;;  %v12168_v4 = vcombine.high %v192_v61, %v196_v62 }
 0x238   :  { %3036 = vmatmul.mubr.bf16.gmra.mrb[60].mxu0 %v12237_v2  ;;  %3808 = vmatmul.mubr.bf16.gmra.mrb[60].mxu1 %v12237_v2  ;;  %v15117_v2 = vld [vmem:[#allocation8 + $0x14c] ss:$16 sps:$4 sm:$0xff]  }
 0x239   :  { %3078 = vmatprep.mubr.bf16.mxu0 %v12120_v3  ;;  %3850 = vmatprep.mubr.bf16.mxu1 %v12120_v3  ;;  %v12159_v3 = vcombine.low %v184_v49, %v188_v50  ;;  %v15130_v49 = vld [vmem:[#allocation8 + $0x1e0] ss:$16 sps:$4 sm:$0xff]   ;;  %v15136_v50 = vld [vmem:[#allocation8 + $0x1e8] ss:$16 sps:$4 sm:$0xff]  }
 0x240   :  { %3079 = vmatmul.mubr.bf16.vlgmr.msra.gmra.mrb[0].mxu0 %v12119_v7  ;;  %3851 = vmatmul.mubr.bf16.vlgmr.msra.gmra.mrb[0].mxu1 %v12119_v7  ;;  %v15096_v7 = vld [vmem:[#allocation8 + $0x164] ss:$16 sps:$4 sm:$0xff]  }
 0x241   :  { %3088 = vmatprep.mubr.bf16.mxu0 %v12128_v8  ;;  %3860 = vmatprep.mubr.bf16.mxu1 %v12128_v8  ;;  %v15120_v8 = vld [vmem:[#allocation8 + $0x16c] ss:$16 sps:$4 sm:$0xff]  }
 0x242   :  { %4994 = vmatpush1.bf16.msra.mxu0 %v15043_v9  ;;  %5380 = vmatpush1.bf16.msra.mxu1 %v15070_v10  ;;  %v200_v9 = vld [vmem:[#allocation2 + $0x1d8] sm:$0xff] }
 0x243   :  { %4995 = vmatprep.subr.bf16.mxu0 %v15048_v11  ;;  %5381 = vmatprep.subr.bf16.mxu1 %v15075_v12  ;;  %v204_v10 = vld [vmem:[#allocation2 + $0x1f8] sm:$0xff]  ;;  %v15094_v11 = vld [vmem:[#allocation8 + $0x160] ss:$16 sps:$4 sm:$0xff]  }
 0x244   :  { %v15118_v12 = vld [vmem:[#allocation8 + $0x168] ss:$16 sps:$4 sm:$0xff]   ;;  %v12175_v26 = vcombine.low %v200_v9, %v204_v10 }
 0x246   :  { %4996 = vmatpush1.bf16.msra.mxu0 %v15046_v15  ;;  %5382 = vmatpush1.bf16.msra.mxu1 %v15073_v16  ;;  %v12167_v15 = vcombine.low %v192_v61, %v196_v62  ;;  %v12176_v16 = vcombine.high %v200_v9, %v204_v10  ;;  %v268_v61 = vld [vmem:[#allocation2 + $0x3f8] sm:$0xff] }
 0x247   :  { %4997 = vmatprep.subr.bf16.mxu0 %v15051_v17  ;;  %5383 = vmatprep.subr.bf16.mxu1 %v15081_v18  ;;  %v15103_v17 = vld [vmem:[#allocation8 + $0x180] ss:$16 sps:$4 sm:$0xff]   ;;  %v15124_v18 = vld [vmem:[#allocation8 + $0x188] ss:$16 sps:$4 sm:$0xff]  }
 0x248   :  { %3089 = vmatmul.mubr.bf16.gmra.mrb[4].mxu0 %v12127_v19  ;;  %3861 = vmatmul.mubr.bf16.gmra.mrb[4].mxu1 %v12127_v19  ;;  %v15114_v19 = vld [vmem:[#allocation8 + $0x1a4] ss:$16 sps:$4 sm:$0xff]  }
 0x249   :  { %3098 = vmatprep.mubr.bf16.mxu0 %v12136_v20  ;;  %3870 = vmatprep.mubr.bf16.mxu1 %v12136_v20  ;;  %v15129_v20 = vld [vmem:[#allocation8 + $0x1ac] ss:$16 sps:$4 sm:$0xff]  }
 0x24a   :  { %4998 = vmatpush1.bf16.msra.mxu0 %v15049_v21  ;;  %5384 = vmatpush1.bf16.msra.mxu1 %v15079_v22  ;;  %v208_v21 = vld [vmem:[#allocation2 + $0x218] sm:$0xff] }
 0x24b   :  { %4999 = vmatprep.subr.bf16.mxu0 %v15054_v23  ;;  %5385 = vmatprep.subr.bf16.mxu1 %v15084_v24  ;;  %v212_v22 = vld [vmem:[#allocation2 + $0x238] sm:$0xff]  ;;  %v15112_v23 = vld [vmem:[#allocation8 + $0x1a0] ss:$16 sps:$4 sm:$0xff]  }
 0x24c   :  { %v15127_v24 = vld [vmem:[#allocation8 + $0x1a8] ss:$16 sps:$4 sm:$0xff]  }
 0x24e   :  { %5000 = vmatpush1.bf16.msra.mxu0 %v15052_v27  ;;  %5386 = vmatpush1.bf16.msra.mxu1 %v15082_v28  ;;  %v12184_v27 = vcombine.high %v208_v21, %v212_v22  ;;  %v15121_v28 = vld [vmem:[#allocation8 + $0x1c0] ss:$16 sps:$4 sm:$0xff]  }
 0x24f   :  { %5001 = vmatprep.subr.bf16.mxu0 %v15057_v29  ;;  %5387 = vmatprep.subr.bf16.mxu1 %v15090_v30  ;;  %v216_v29 = vld [vmem:[#allocation2 + $0x258] sm:$0xff] }
 0x250   :  { %3099 = vmatmul.mubr.bf16.gmra.mrb[8].mxu0 %v12135_v31  ;;  %3871 = vmatmul.mubr.bf16.gmra.mrb[8].mxu1 %v12135_v31  ;;  %v220_v30 = vld [vmem:[#allocation2 + $0x278] sm:$0xff]  ;;  %v12183_v31 = vcombine.low %v208_v21, %v212_v22 }
 0x251   :  { %3108 = vmatprep.mubr.bf16.mxu0 %v12144_v32  ;;  %3880 = vmatprep.mubr.bf16.mxu1 %v12144_v32  ;;  %v12192_v32 = vcombine.high %v216_v29, %v220_v30 }
 0x252   :  { %5002 = vmatpush1.bf16.msra.mxu0 %v15055_v33  ;;  %5388 = vmatpush1.bf16.msra.mxu1 %v15088_v34  ;;  %v224_v33 = vld [vmem:[#allocation2 + $0x298] sm:$0xff] }
 0x253   :  { %5003 = vmatprep.subr.bf16.mxu0 %v15060_v35  ;;  %5389 = vmatprep.subr.bf16.mxu1 %v15093_v36  ;;  %v228_v34 = vld [vmem:[#allocation2 + $0x2b8] sm:$0xff]  ;;  %v12191_v35 = vcombine.low %v216_v29, %v220_v30 }
 0x254   :  { %v12200_v36 = vcombine.high %v224_v33, %v228_v34 }
 0x256   :  { %5004 = vmatpush1.bf16.msra.mxu0 %v15058_v39  ;;  %5390 = vmatpush1.bf16.msra.mxu1 %v15091_v40  ;;  %v12199_v39 = vcombine.low %v224_v33, %v228_v34  ;;  %v12208_v40 = vcombine.high %v232_v37, %v236_v38 }
 0x257   :  { %5005 = vmatprep.subr.bf16.mxu0 %v15063_v41  ;;  %5391 = vmatprep.subr.bf16.mxu1 %v15099_v42  ;;  %v240_v41 = vld [vmem:[#allocation2 + $0x318] sm:$0xff] }
 0x258   :  { %3109 = vmatmul.mubr.bf16.gmra.mrb[12].mxu0 %v12143_v43  ;;  %3881 = vmatmul.mubr.bf16.gmra.mrb[12].mxu1 %v12143_v43  ;;  %v244_v42 = vld [vmem:[#allocation2 + $0x338] sm:$0xff]  ;;  %v12207_v43 = vcombine.low %v232_v37, %v236_v38 }
 0x259   :  { %3118 = vmatprep.mubr.bf16.mxu0 %v12152_v44  ;;  %3890 = vmatprep.mubr.bf16.mxu1 %v12152_v44  ;;  %v15135_v44 = vld [vmem:[#allocation8 + $0x1cc] ss:$16 sps:$4 sm:$0xff]  }
 0x25a   :  { %5006 = vmatpush1.bf16.msra.mxu0 %v15061_v45  ;;  %5392 = vmatpush1.bf16.msra.mxu1 %v15097_v46  ;;  %v12216_v45 = vcombine.high %v240_v41, %v244_v42  ;;  %v15133_v46 = vld [vmem:[#allocation8 + $0x1c8] ss:$16 sps:$4 sm:$0xff]  }
 0x25b   :  { %5007 = vmatprep.subr.bf16.mxu0 %v15066_v47  ;;  %5393 = vmatprep.subr.bf16.mxu1 %v15102_v48  ;;  %v15132_v47 = vld [vmem:[#allocation8 + $0x1e4] ss:$16 sps:$4 sm:$0xff]   ;;  %v15138_v48 = vld [vmem:[#allocation8 + $0x1ec] ss:$16 sps:$4 sm:$0xff]  }
 0x25e   :  { %5008 = vmatpush1.bf16.msra.mxu0 %v15064_v51  ;;  %5394 = vmatpush1.bf16.msra.mxu1 %v15100_v52  ;;  %v248_v51 = vld [vmem:[#allocation2 + $0x358] sm:$0xff] }
 0x25f   :  { %5009 = vmatprep.subr.bf16.mxu0 %v15069_v53  ;;  %5395 = vmatprep.subr.bf16.mxu1 %v15108_v54  ;;  %v252_v52 = vld [vmem:[#allocation2 + $0x378] sm:$0xff]  ;;  %v12215_v53 = vcombine.low %v240_v41, %v244_v42  ;;  %v15139_v42 = vld [vmem:[#allocation8 + $0x200] ss:$16 sps:$4 sm:$0xff]  }
 0x260   :  { %3119 = vmatmul.mubr.bf16.gmra.mrb[16].mxu0 %v12151_v55  ;;  %3891 = vmatmul.mubr.bf16.gmra.mrb[16].mxu1 %v12151_v55  ;;  %v12224_v54 = vcombine.high %v248_v51, %v252_v52  ;;  %v15141_v55 = vld [vmem:[#allocation8 + $0x204] ss:$16 sps:$4 sm:$0xff]  }
 0x261   :  { %3128 = vmatprep.mubr.bf16.mxu0 %v12160_v56  ;;  %3900 = vmatprep.mubr.bf16.mxu1 %v12160_v56  ;;  %v256_v56 = vld [vmem:[#allocation2 + $0x398] sm:$0xff] }
 0x262   :  { %5010 = vmatpush1.bf16.msra.mxu0 %v15067_v57  ;;  %5396 = vmatpush1.bf16.msra.mxu1 %v15106_v58  ;;  %v260_v57 = vld [vmem:[#allocation2 + $0x3b8] sm:$0xff]  ;;  %v12223_v58 = vcombine.low %v248_v51, %v252_v52 }
 0x263   :  { %5011 = vmatprep.subr.bf16.mxu0 %v15078_v59  ;;  %5397 = vmatprep.subr.bf16.mxu1 %v15111_v60  ;;  %v12232_v59 = vcombine.high %v256_v56, %v260_v57  ;;  %v264_v60 = vld [vmem:[#allocation2 + $0x3d8] sm:$0xff]  ;;  %v12231_v62 = vcombine.low %v256_v56, %v260_v57 }
 0x266   :  { %5012 = vmatpush1.bf16.msra.mxu0 %v15076_v63  ;;  %5398 = vmatpush1.bf16.msra.mxu1 %v15109_v0  ;;  %v12240_v63 = vcombine.high %v264_v60, %v268_v61  ;;  %v12239_v0 = vcombine.low %v264_v60, %v268_v61  ;;  %v15142_v61 = vld [vmem:[#allocation8 + $0x220] ss:$16 sps:$4 sm:$0xff]  }
 0x267   :  { %5013 = vmatprep.subr.bf16.mxu0 %v15087_v1  ;;  %5399 = vmatprep.subr.bf16.mxu1 %v15117_v2  ;;  %v15168_v1 = vld [vmem:[#allocation8 + $0x20c] ss:$16 sps:$4 sm:$0xff]   ;;  %v527_v2 = vlaneseq }
 0x268   :  { %3129 = vmatmul.mubr.bf16.gmra.mrb[20].mxu0 %v12159_v3  ;;  %3901 = vmatmul.mubr.bf16.gmra.mrb[20].mxu1 %v12159_v3 }
 0x269   :  { %3138 = vmatprep.mubr.bf16.mxu0 %v12168_v4  ;;  %3910 = vmatprep.mubr.bf16.mxu1 %v12168_v4  ;;  %v16366_v3 = vshrl.u32 %v527_v2, 7  ;;  %v15177_v2 = vld [vmem:[#allocation8 + $0x24c] ss:$16 sps:$4 sm:$0xff]  }
 0x26a   :  { %5014 = vmatpush1.bf16.msra.mxu0 %v15085_v5  ;;  %5400 = vmatpush1.bf16.msra.mxu1 %v15115_v6  ;;  %v525_v6 = vld [vmem:[%s18102_s3] sm:$0xf] }
 0x26b   :  { %5015 = vmatprep.subr.bf16.mxu0 %v15096_v7  ;;  %5401 = vmatprep.subr.bf16.mxu1 %v15120_v8  ;;  %18161 = vst [vmem:[#allocation23_spill] sm:$0xff] %v16366_v3  ;;  %v16369_v4 = vsub.s32 0, %v16366_v3  ;;  %v16372_v5 = vsub.s32 2, %v16366_v3  ;;  %v16378_v7 = vsub.s32 1, %v16366_v3  ;;  %v16381_v8 = vsub.s32 3, %v16366_v3 }
 0x26d   :  { %18162 = vst [vmem:[#allocation24_spill] sm:$0xff] %v16369_v4  ;;  %18163 = vst [vmem:[#allocation25_spill] sm:$0xff] %v16372_v5  ;;  %v16384_v9 = vrot.slane %v525_v6, %v16369_v4  ;;  %v16387_v10 = vrot.slane %v525_v6, %v16372_v5 }
 0x26e   :  { %5016 = vmatpush1.bf16.msra.mxu0 %v15094_v11  ;;  %5402 = vmatpush1.bf16.msra.mxu1 %v15118_v12  ;;  %18164 = vst [vmem:[#allocation26_spill] sm:$0xff] %v16378_v7  ;;  %18165 = vst [vmem:[#allocation27_spill] sm:$0xff] %v16381_v8  ;;  %v16390_v11 = vrot.slane %v525_v6, %v16378_v7  ;;  %v16393_v12 = vrot.slane %v525_v6, %v16381_v8 }
 0x26f   :  { %5017 = vmatprep.subr.bf16.mxu0 %v15105_v13  ;;  %5403 = vmatprep.subr.bf16.mxu1 %v15126_v14 }
 0x270   :  { %3139 = vmatmul.mubr.bf16.gmra.mrb[24].mxu0 %v12167_v15  ;;  %3911 = vmatmul.mubr.bf16.gmra.mrb[24].mxu1 %v12167_v15 }
 0x271   :  { %3148 = vmatprep.mubr.bf16.mxu0 %v12176_v16  ;;  %3920 = vmatprep.mubr.bf16.mxu1 %v12176_v16 }
 0x272   :  { %5018 = vmatpush1.bf16.msra.mxu0 %v15103_v17  ;;  %5404 = vmatpush1.bf16.msra.mxu1 %v15124_v18 }
 0x273   :  { %5019 = vmatprep.subr.bf16.mxu0 %v15114_v19  ;;  %5405 = vmatprep.subr.bf16.mxu1 %v15129_v20 }
 0x276   :  { %5020 = vmatpush1.bf16.msra.mxu0 %v15112_v23  ;;  %5406 = vmatpush1.bf16.msra.mxu1 %v15127_v24 }
 0x277   :  { %5021 = vmatprep.subr.bf16.mxu0 %v15123_v25  ;;  %5407 = vmatprep.subr.bf16.mxu1 %v15135_v44 }
 0x278   :  { %3149 = vmatmul.mubr.bf16.gmra.mrb[28].mxu0 %v12175_v26  ;;  %3921 = vmatmul.mubr.bf16.gmra.mrb[28].mxu1 %v12175_v26 }
 0x279   :  { %3158 = vmatprep.mubr.bf16.mxu0 %v12184_v27  ;;  %3930 = vmatprep.mubr.bf16.mxu1 %v12184_v27 }
 0x27a   :  { %5022 = vmatpush1.bf16.msra.mxu0 %v15121_v28  ;;  %5408 = vmatpush1.bf16.msra.mxu1 %v15133_v46 }
 0x27b   :  { %5023 = vmatprep.subr.bf16.mxu0 %v15132_v47  ;;  %5409 = vmatprep.subr.bf16.mxu1 %v15138_v48 }
 0x27e   :  { %5024 = vmatpush1.bf16.msra.mxu0 %v15130_v49  ;;  %5410 = vmatpush1.bf16.msra.mxu1 %v15136_v50  ;;  %v15144_v49 = vld [vmem:[#allocation8 + $0x224] ss:$16 sps:$4 sm:$0xff]   ;;  %v15171_v50 = vld [vmem:[#allocation8 + $0x22c] ss:$16 sps:$4 sm:$0xff]  }
 0x27f   :  { %5186 = vmatprep.subr.bf16.mxu0 %v15141_v55  ;;  %5572 = vmatprep.subr.bf16.mxu1 %v15168_v1 }
 0x280   :  { %3159 = vmatmul.mubr.bf16.gmra.mrb[32].mxu0 %v12183_v31  ;;  %3931 = vmatmul.mubr.bf16.gmra.mrb[32].mxu1 %v12183_v31 }
 0x281   :  { %3168 = vmatprep.mubr.bf16.mxu0 %v12192_v32  ;;  %3940 = vmatprep.mubr.bf16.mxu1 %v12192_v32 }
 0x288   :  { %3169 = vmatmul.mubr.bf16.gmra.mrb[36].mxu0 %v12191_v35  ;;  %3941 = vmatmul.mubr.bf16.gmra.mrb[36].mxu1 %v12191_v35 }
 0x289   :  { %3178 = vmatprep.mubr.bf16.mxu0 %v12200_v36  ;;  %3950 = vmatprep.mubr.bf16.mxu1 %v12200_v36 }
 0x290   :  { %3179 = vmatmul.mubr.bf16.gmra.mrb[40].mxu0 %v12199_v39  ;;  %3951 = vmatmul.mubr.bf16.gmra.mrb[40].mxu1 %v12199_v39 }
 0x291   :  { %3188 = vmatprep.mubr.bf16.mxu0 %v12208_v40  ;;  %3960 = vmatprep.mubr.bf16.mxu1 %v12208_v40 }
 0x298   :  { %3189 = vmatmul.mubr.bf16.gmra.mrb[44].mxu0 %v12207_v43  ;;  %3961 = vmatmul.mubr.bf16.gmra.mrb[44].mxu1 %v12207_v43  ;;  %v15166_v43 = vld [vmem:[#allocation8 + $0x208] ss:$16 sps:$4 sm:$0xff]  }
 0x299   :  { %3198 = vmatprep.mubr.bf16.mxu0 %v12216_v45  ;;  %3970 = vmatprep.mubr.bf16.mxu1 %v12216_v45 }
 0x2a0   :  { %3199 = vmatmul.mubr.bf16.gmra.mrb[48].mxu0 %v12215_v53  ;;  %3971 = vmatmul.mubr.bf16.gmra.mrb[48].mxu1 %v12215_v53 }
 0x2a1   :  { %3208 = vmatprep.mubr.bf16.mxu0 %v12224_v54  ;;  %3980 = vmatprep.mubr.bf16.mxu1 %v12224_v54 }
 0x2a8   :  { %3209 = vmatmul.mubr.bf16.gmra.mrb[52].mxu0 %v12223_v58  ;;  %3981 = vmatmul.mubr.bf16.gmra.mrb[52].mxu1 %v12223_v58 }
 0x2a9   :  { %3218 = vmatprep.mubr.bf16.mxu0 %v12232_v59  ;;  %3990 = vmatprep.mubr.bf16.mxu1 %v12232_v59 }
 0x2b0   :  { %3219 = vmatmul.mubr.bf16.gmra.mrb[56].mxu0 %v12231_v62  ;;  %3991 = vmatmul.mubr.bf16.gmra.mrb[56].mxu1 %v12231_v62  ;;  %v15147_v62 = vld [vmem:[#allocation8 + $0x244] ss:$16 sps:$4 sm:$0xff]  }
 0x2b1   :  { %3228 = vmatprep.mubr.bf16.mxu0 %v12240_v63  ;;  %4000 = vmatprep.mubr.bf16.mxu1 %v12240_v63  ;;  %v15169_v63 = vld [vmem:[#allocation8 + $0x228] ss:$16 sps:$4 sm:$0xff]  }
 0x2b8   :  { %3229 = vmatmul.mubr.bf16.gmra.mrb[60].mxu0 %v12239_v0  ;;  %4001 = vmatmul.mubr.bf16.gmra.mrb[60].mxu1 %v12239_v0 }
 0x313   :  { %v3080_v13 = vpop.f32.mrb[0].mxu0  ;;  %v3852_v14 = vpop.f32.mrb[0].mxu1 }
 0x314   :  { %v13233_v15 = vadd.f32 %v3080_v13, %v16384_v9  ;;  %v13297_v16 = vadd.f32 %v3852_v14, %v16387_v10  ;;  %v3082_v17 = vpop.f32.mrb[1].mxu0  ;;  %v3854_v18 = vpop.f32.mrb[1].mxu1 }
 0x315   :  { %v13234_v19 = vadd.f32 %v3082_v17, %v16390_v11  ;;  %v13298_v20 = vadd.f32 %v3854_v18, %v16393_v12  ;;  %v3084_v21 = vpop.f32.mrb[2].mxu0  ;;  %v3856_v22 = vpop.f32.mrb[2].mxu1 }
 0x316   :  { %v13235_v23 = vadd.f32 %v3084_v21, %v16384_v9  ;;  %v13299_v24 = vadd.f32 %v3856_v22, %v16387_v10  ;;  %v3086_v25 = vpop.f32.mrb[3].mxu0  ;;  %v3858_v26 = vpop.f32.mrb[3].mxu1  ;;  %v4011_v29 = vmax.f32 %v13233_v15, 0.0  ;;  %v4013_v30 = vmax.f32 %v13297_v16, 0.0 }
 0x317   :  { %v13236_v27 = vadd.f32 %v3086_v25, %v16390_v11  ;;  %v13300_v28 = vadd.f32 %v3858_v26, %v16393_v12  ;;  %v4012_v33 = vmax.f32 %v13234_v19, 0.0  ;;  %v4014_v35 = vmax.f32 %v13298_v20, 0.0 }
 0x318   :  { %v4015_v31 = vmax.f32 %v13235_v23, 0.0  ;;  %v4017_v32 = vmax.f32 %v13299_v24, 0.0  ;;  %v15145_v23 = vld [vmem:[#allocation8 + $0x240] ss:$16 sps:$4 sm:$0xff]   ;;  %v15175_v24 = vld [vmem:[#allocation8 + $0x248] ss:$16 sps:$4 sm:$0xff]  }
 0x319   :  { %v4016_v34 = vmax.f32 %v13236_v27, 0.0  ;;  %v4018_v36 = vmax.f32 %v13300_v28, 0.0 }
 0x31a   :  { %v4139_v37 = vpack.c.bf16 %v4015_v31, %v4011_v29  ;;  %v16403_v38 = vpack.c.bf16 %v4017_v32, %v4013_v30  ;;  %v15150_v30 = vld [vmem:[#allocation8 + $0x264] ss:$16 sps:$4 sm:$0xff]   ;;  %v15180_v31 = vld [vmem:[#allocation8 + $0x26c] ss:$16 sps:$4 sm:$0xff]  }
 0x31b   :  { %v3090_v39 = vpop.f32.mrb[4].mxu0  ;;  %v3862_v40 = vpop.f32.mrb[4].mxu1  ;;  %v4140_v41 = vpack.c.bf16 %v4016_v34, %v4012_v33  ;;  %v16405_v44 = vpack.c.bf16 %v4018_v36, %v4014_v35 }
 0x31c   :  { %v13237_v45 = vadd.f32 %v3090_v39, %v16384_v9  ;;  %v13301_v46 = vadd.f32 %v3862_v40, %v16387_v10  ;;  %v3092_v47 = vpop.f32.mrb[5].mxu0  ;;  %v3864_v48 = vpop.f32.mrb[5].mxu1 }
 0x31d   :  { %v13238_v51 = vadd.f32 %v3092_v47, %v16390_v11  ;;  %v13302_v52 = vadd.f32 %v3864_v48, %v16393_v12  ;;  %v3094_v53 = vpop.f32.mrb[6].mxu0  ;;  %v3866_v54 = vpop.f32.mrb[6].mxu1  ;;  %5025 = vmatprep.mubr.bf16.mxu0 %v4140_v41  ;;  %5411 = vmatprep.mubr.bf16.mxu1 %v4140_v41 }
 0x31e   :  { %v13239_v55 = vadd.f32 %v3094_v53, %v16384_v9  ;;  %v13303_v56 = vadd.f32 %v3866_v54, %v16387_v10  ;;  %v3096_v57 = vpop.f32.mrb[7].mxu0  ;;  %v3868_v58 = vpop.f32.mrb[7].mxu1  ;;  %5026 = vmatmul.mubr.bf16.vlgmr.msra.gmra.mrb[64].mxu0 %v4139_v37  ;;  %5412 = vmatmul.mubr.bf16.vlgmr.msra.gmra.mrb[64].mxu1 %v4139_v37  ;;  %v4019_v0 = vmax.f32 %v13237_v45, 0.0  ;;  %v4021_v6 = vmax.f32 %v13301_v46, 0.0  ;;  %v15153_v45 = vld [vmem:[#allocation8 + $0x284] ss:$16 sps:$4 sm:$0xff]  }
 0x31f   :  { %v13240_v59 = vadd.f32 %v3096_v57, %v16390_v11  ;;  %v13304_v60 = vadd.f32 %v3868_v58, %v16393_v12  ;;  %5187 = vmatpush1.bf16.msra.mxu0 %v15139_v42  ;;  %5573 = vmatpush1.bf16.msra.mxu1 %v15166_v43  ;;  %v4020_v14 = vmax.f32 %v13238_v51, 0.0  ;;  %v4022_v16 = vmax.f32 %v13302_v52, 0.0  ;;  %v15148_v43 = vld [vmem:[#allocation8 + $0x260] ss:$16 sps:$4 sm:$0xff]   ;;  %v15178_v46 = vld [vmem:[#allocation8 + $0x268] ss:$16 sps:$4 sm:$0xff]  }
 0x320   :  { %v4023_v1 = vmax.f32 %v13239_v55, 0.0  ;;  %5188 = vmatprep.subr.bf16.mxu0 %v15144_v49  ;;  %5574 = vmatprep.subr.bf16.mxu1 %v15171_v50  ;;  %v4025_v13 = vmax.f32 %v13303_v56, 0.0  ;;  %v15186_v49 = vld [vmem:[#allocation8 + $0x28c] ss:$16 sps:$4 sm:$0xff]  }
 0x321   :  { %v4024_v15 = vmax.f32 %v13240_v59, 0.0  ;;  %v4026_v17 = vmax.f32 %v13304_v60, 0.0 }
 0x322   :  { %v4143_v18 = vpack.c.bf16 %v4023_v1, %v4019_v0  ;;  %v16415_v19 = vpack.c.bf16 %v4025_v13, %v4021_v6  ;;  %v15156_v13 = vld [vmem:[#allocation8 + $0x2a4] ss:$16 sps:$4 sm:$0xff]  }
 0x323   :  { %v3100_v20 = vpop.f32.mrb[8].mxu0  ;;  %v3872_v21 = vpop.f32.mrb[8].mxu1  ;;  %v4144_v22 = vpack.c.bf16 %v4024_v15, %v4020_v14  ;;  %5189 = vmatpush1.bf16.msra.mxu0 %v15142_v61  ;;  %5575 = vmatpush1.bf16.msra.mxu1 %v15169_v63  ;;  %v16417_v25 = vpack.c.bf16 %v4026_v17, %v4022_v16  ;;  %v15151_v61 = vld [vmem:[#allocation8 + $0x280] ss:$16 sps:$4 sm:$0xff]   ;;  %v15189_v14 = vld [vmem:[#allocation8 + $0x2ac] ss:$16 sps:$4 sm:$0xff]  }
 0x324   :  { %v13241_v26 = vadd.f32 %v3100_v20, %v16384_v9  ;;  %v13305_v27 = vadd.f32 %v3872_v21, %v16387_v10  ;;  %v3102_v28 = vpop.f32.mrb[9].mxu0  ;;  %v3874_v29 = vpop.f32.mrb[9].mxu1  ;;  %5190 = vmatprep.subr.bf16.mxu0 %v15147_v62  ;;  %5576 = vmatprep.subr.bf16.mxu1 %v15177_v2  ;;  %v15184_v62 = vld [vmem:[#allocation8 + $0x288] ss:$16 sps:$4 sm:$0xff]  }
 0x325   :  { %v13242_v32 = vadd.f32 %v3102_v28, %v16390_v11  ;;  %v13306_v33 = vadd.f32 %v3874_v29, %v16393_v12  ;;  %v3104_v34 = vpop.f32.mrb[10].mxu0  ;;  %v3876_v35 = vpop.f32.mrb[10].mxu1  ;;  %5035 = vmatprep.mubr.bf16.mxu0 %v4144_v22  ;;  %5421 = vmatprep.mubr.bf16.mxu1 %v4144_v22  ;;  %v15159_v28 = vld [vmem:[#allocation8 + $0x2c4] ss:$16 sps:$4 sm:$0xff]   ;;  %v15187_v29 = vld [vmem:[#allocation8 + $0x2a8] ss:$16 sps:$4 sm:$0xff]  }
 0x326   :  { %v13243_v36 = vadd.f32 %v3104_v34, %v16384_v9  ;;  %v13307_v37 = vadd.f32 %v3876_v35, %v16387_v10  ;;  %v3106_v39 = vpop.f32.mrb[11].mxu0  ;;  %v3878_v40 = vpop.f32.mrb[11].mxu1  ;;  %5036 = vmatmul.mubr.bf16.gmra.mrb[68].mxu0 %v4143_v18  ;;  %5422 = vmatmul.mubr.bf16.gmra.mrb[68].mxu1 %v4143_v18  ;;  %v4027_v47 = vmax.f32 %v13241_v26, 0.0  ;;  %v4029_v50 = vmax.f32 %v13305_v27, 0.0  ;;  %v15154_v27 = vld [vmem:[#allocation8 + $0x2a0] ss:$16 sps:$4 sm:$0xff]  }
 0x327   :  { %v13244_v41 = vadd.f32 %v3106_v39, %v16390_v11  ;;  %v13308_v42 = vadd.f32 %v3878_v40, %v16393_v12  ;;  %5191 = vmatpush1.bf16.msra.mxu0 %v15145_v23  ;;  %5577 = vmatpush1.bf16.msra.mxu1 %v15175_v24  ;;  %v4028_v52 = vmax.f32 %v13242_v32, 0.0  ;;  %v4030_v54 = vmax.f32 %v13306_v33, 0.0  ;;  %v15195_v32 = vld [vmem:[#allocation8 + $0x2cc] ss:$16 sps:$4 sm:$0xff]  }
 0x328   :  { %v4031_v48 = vmax.f32 %v13243_v36, 0.0  ;;  %5192 = vmatprep.subr.bf16.mxu0 %v15150_v30  ;;  %5578 = vmatprep.subr.bf16.mxu1 %v15180_v31  ;;  %v4033_v51 = vmax.f32 %v13307_v37, 0.0 }
 0x329   :  { %v4032_v53 = vmax.f32 %v13244_v41, 0.0  ;;  %v4034_v55 = vmax.f32 %v13308_v42, 0.0 }
 0x32a   :  { %v4147_v56 = vpack.c.bf16 %v4031_v48, %v4027_v47  ;;  %v16427_v57 = vpack.c.bf16 %v4033_v51, %v4029_v50  ;;  %v15193_v47 = vld [vmem:[#allocation8 + $0x2c8] ss:$16 sps:$4 sm:$0xff]  }
 0x32b   :  { %v3110_v58 = vpop.f32.mrb[12].mxu0  ;;  %v3882_v59 = vpop.f32.mrb[12].mxu1  ;;  %v4148_v60 = vpack.c.bf16 %v4032_v53, %v4028_v52  ;;  %5193 = vmatpush1.bf16.msra.mxu0 %v15148_v43  ;;  %5579 = vmatpush1.bf16.msra.mxu1 %v15178_v46  ;;  %v16429_v63 = vpack.c.bf16 %v4034_v55, %v4030_v54  ;;  %v15157_v46 = vld [vmem:[#allocation8 + $0x2c0] ss:$16 sps:$4 sm:$0xff]   ;;  %v15162_v53 = vld [vmem:[#allocation8 + $0x2e4] ss:$16 sps:$4 sm:$0xff]  }
 0x32c   :  { %v13245_v0 = vadd.f32 %v3110_v58, %v16384_v9  ;;  %v13309_v1 = vadd.f32 %v3882_v59, %v16387_v10  ;;  %v3112_v2 = vpop.f32.mrb[13].mxu0  ;;  %v3884_v6 = vpop.f32.mrb[13].mxu1  ;;  %5194 = vmatprep.subr.bf16.mxu0 %v15153_v45  ;;  %5580 = vmatprep.subr.bf16.mxu1 %v15186_v49  ;;  %v15198_v54 = vld [vmem:[#allocation8 + $0x2ec] ss:$16 sps:$4 sm:$0xff]  }
 0x32d   :  { %v13246_v15 = vadd.f32 %v3112_v2, %v16390_v11  ;;  %v13310_v16 = vadd.f32 %v3884_v6, %v16393_v12  ;;  %v3114_v17 = vpop.f32.mrb[14].mxu0  ;;  %v3886_v18 = vpop.f32.mrb[14].mxu1  ;;  %5045 = vmatprep.mubr.bf16.mxu0 %v4148_v60  ;;  %5431 = vmatprep.mubr.bf16.mxu1 %v4148_v60  ;;  %v15160_v6 = vld [vmem:[#allocation8 + $0x2e0] ss:$16 sps:$4 sm:$0xff]  }
 0x32e   :  { %v13247_v20 = vadd.f32 %v3114_v17, %v16384_v9  ;;  %v13311_v21 = vadd.f32 %v3886_v18, %v16387_v10  ;;  %v3116_v22 = vpop.f32.mrb[15].mxu0  ;;  %v3888_v23 = vpop.f32.mrb[15].mxu1  ;;  %5046 = vmatmul.mubr.bf16.gmra.mrb[72].mxu0 %v4147_v56  ;;  %5432 = vmatmul.mubr.bf16.gmra.mrb[72].mxu1 %v4147_v56  ;;  %v4035_v30 = vmax.f32 %v13245_v0, 0.0  ;;  %v4037_v33 = vmax.f32 %v13309_v1, 0.0  ;;  %v15204_v17 = vld [vmem:[#allocation8 + $0x30c] ss:$16 sps:$4 sm:$0xff]  }
 0x32f   :  { %v13248_v24 = vadd.f32 %v3116_v22, %v16390_v11  ;;  %v13312_v26 = vadd.f32 %v3888_v23, %v16393_v12  ;;  %5195 = vmatpush1.bf16.msra.mxu0 %v15151_v61  ;;  %5581 = vmatpush1.bf16.msra.mxu1 %v15184_v62  ;;  %v4036_v35 = vmax.f32 %v13246_v15, 0.0  ;;  %v4038_v37 = vmax.f32 %v13310_v16, 0.0 }
 0x330   :  { %v4039_v31 = vmax.f32 %v13247_v20, 0.0  ;;  %5196 = vmatprep.subr.bf16.mxu0 %v15156_v13  ;;  %5582 = vmatprep.subr.bf16.mxu1 %v15189_v14  ;;  %v4041_v34 = vmax.f32 %v13311_v21, 0.0  ;;  %v15165_v13 = vld [vmem:[#allocation8 + $0x304] ss:$16 sps:$4 sm:$0xff]   ;;  %v15196_v14 = vld [vmem:[#allocation8 + $0x2e8] ss:$16 sps:$4 sm:$0xff]  }
 0x331   :  { %v4040_v36 = vmax.f32 %v13248_v24, 0.0  ;;  %v4042_v39 = vmax.f32 %v13312_v26, 0.0 }
 0x332   :  { %v4151_v40 = vpack.c.bf16 %v4039_v31, %v4035_v30  ;;  %v16439_v41 = vpack.c.bf16 %v4041_v34, %v4037_v33  ;;  %v15163_v31 = vld [vmem:[#allocation8 + $0x300] ss:$16 sps:$4 sm:$0xff]  }
 0x333   :  { %v3120_v42 = vpop.f32.mrb[16].mxu0  ;;  %v3892_v43 = vpop.f32.mrb[16].mxu1  ;;  %v4152_v45 = vpack.c.bf16 %v4040_v36, %v4036_v35  ;;  %5197 = vmatpush1.bf16.msra.mxu0 %v15154_v27  ;;  %5583 = vmatpush1.bf16.msra.mxu1 %v15187_v29  ;;  %v16441_v48 = vpack.c.bf16 %v4042_v39, %v4038_v37  ;;  %v15174_v39 = vld [vmem:[#allocation8 + $0x324] ss:$16 sps:$4 sm:$0xff]  }
 0x334   :  { %v13249_v49 = vadd.f32 %v3120_v42, %v16384_v9  ;;  %v13313_v50 = vadd.f32 %v3892_v43, %v16387_v10  ;;  %v3122_v51 = vpop.f32.mrb[17].mxu0  ;;  %v3894_v52 = vpop.f32.mrb[17].mxu1  ;;  %5198 = vmatprep.subr.bf16.mxu0 %v15159_v28  ;;  %5584 = vmatprep.subr.bf16.mxu1 %v15195_v32  ;;  %v15202_v32 = vld [vmem:[#allocation8 + $0x308] ss:$16 sps:$4 sm:$0xff]  }
 0x335   :  { %v13250_v55 = vadd.f32 %v3122_v51, %v16390_v11  ;;  %v13314_v56 = vadd.f32 %v3894_v52, %v16393_v12  ;;  %v3124_v58 = vpop.f32.mrb[18].mxu0  ;;  %v3896_v59 = vpop.f32.mrb[18].mxu1  ;;  %5055 = vmatprep.mubr.bf16.mxu0 %v4152_v45  ;;  %5441 = vmatprep.mubr.bf16.mxu1 %v4152_v45 }
 0x336   :  { %v13251_v60 = vadd.f32 %v3124_v58, %v16384_v9  ;;  %v13315_v61 = vadd.f32 %v3896_v59, %v16387_v10  ;;  %v3126_v62 = vpop.f32.mrb[19].mxu0  ;;  %v3898_v0 = vpop.f32.mrb[19].mxu1  ;;  %5056 = vmatmul.mubr.bf16.gmra.mrb[76].mxu0 %v4151_v40  ;;  %5442 = vmatmul.mubr.bf16.gmra.mrb[76].mxu1 %v4151_v40  ;;  %v4043_v15 = vmax.f32 %v13249_v49, 0.0  ;;  %v4045_v18 = vmax.f32 %v13313_v50, 0.0  ;;  %v15207_v40 = vld [vmem:[#allocation8 + $0x32c] ss:$16 sps:$4 sm:$0xff]  }
 0x337   :  { %v13252_v1 = vadd.f32 %v3126_v62, %v16390_v11  ;;  %v13316_v2 = vadd.f32 %v3898_v0, %v16393_v12  ;;  %5199 = vmatpush1.bf16.msra.mxu0 %v15157_v46  ;;  %5585 = vmatpush1.bf16.msra.mxu1 %v15193_v47  ;;  %v4044_v21 = vmax.f32 %v13250_v55, 0.0  ;;  %v4046_v23 = vmax.f32 %v13314_v56, 0.0  ;;  %v15183_v55 = vld [vmem:[#allocation8 + $0x344] ss:$16 sps:$4 sm:$0xff]   ;;  %v15205_v56 = vld [vmem:[#allocation8 + $0x328] ss:$16 sps:$4 sm:$0xff]  }
 0x338   :  { %v4047_v16 = vmax.f32 %v13251_v60, 0.0  ;;  %5200 = vmatprep.subr.bf16.mxu0 %v15162_v53  ;;  %5586 = vmatprep.subr.bf16.mxu1 %v15198_v54  ;;  %v4049_v20 = vmax.f32 %v13315_v61, 0.0  ;;  %v15172_v54 = vld [vmem:[#allocation8 + $0x320] ss:$16 sps:$4 sm:$0xff]   ;;  %v15213_v60 = vld [vmem:[#allocation8 + $0x34c] ss:$16 sps:$4 sm:$0xff]  }
 0x339   :  { %v4048_v22 = vmax.f32 %v13252_v1, 0.0  ;;  %v4050_v24 = vmax.f32 %v13316_v2, 0.0 }
 0x33a   :  { %v4155_v26 = vpack.c.bf16 %v4047_v16, %v4043_v15  ;;  %v16451_v27 = vpack.c.bf16 %v4049_v20, %v4045_v18  ;;  %v15181_v18 = vld [vmem:[#allocation8 + $0x340] ss:$16 sps:$4 sm:$0xff]   ;;  %v15211_v20 = vld [vmem:[#allocation8 + $0x348] ss:$16 sps:$4 sm:$0xff]  }
 0x33b   :  { %v3130_v28 = vpop.f32.mrb[20].mxu0  ;;  %v3902_v29 = vpop.f32.mrb[20].mxu1  ;;  %v4156_v30 = vpack.c.bf16 %v4048_v22, %v4044_v21  ;;  %5201 = vmatpush1.bf16.msra.mxu0 %v15160_v6  ;;  %5587 = vmatpush1.bf16.msra.mxu1 %v15196_v14  ;;  %v16453_v33 = vpack.c.bf16 %v4050_v24, %v4046_v23 }
 0x33c   :  { %v13253_v34 = vadd.f32 %v3130_v28, %v16384_v9  ;;  %v13317_v35 = vadd.f32 %v3902_v29, %v16387_v10  ;;  %v3132_v36 = vpop.f32.mrb[21].mxu0  ;;  %v3904_v37 = vpop.f32.mrb[21].mxu1  ;;  %5202 = vmatprep.subr.bf16.mxu0 %v15165_v13  ;;  %5588 = vmatprep.subr.bf16.mxu1 %v15204_v17  ;;  %v15192_v28 = vld [vmem:[#allocation8 + $0x364] ss:$16 sps:$4 sm:$0xff]   ;;  %v15216_v29 = vld [vmem:[#allocation8 + $0x36c] ss:$16 sps:$4 sm:$0xff]  }
 0x33d   :  { %v13254_v42 = vadd.f32 %v3132_v36, %v16390_v11  ;;  %v13318_v43 = vadd.f32 %v3904_v37, %v16393_v12  ;;  %v3134_v45 = vpop.f32.mrb[22].mxu0  ;;  %v3906_v46 = vpop.f32.mrb[22].mxu1  ;;  %5065 = vmatprep.mubr.bf16.mxu0 %v4156_v30  ;;  %5451 = vmatprep.mubr.bf16.mxu1 %v4156_v30 }
 0x33e   :  { %v13255_v47 = vadd.f32 %v3134_v45, %v16384_v9  ;;  %v13319_v49 = vadd.f32 %v3906_v46, %v16387_v10  ;;  %v3136_v50 = vpop.f32.mrb[23].mxu0  ;;  %v3908_v51 = vpop.f32.mrb[23].mxu1  ;;  %5066 = vmatmul.mubr.bf16.gmra.mrb[80].mxu0 %v4155_v26  ;;  %5452 = vmatmul.mubr.bf16.gmra.mrb[80].mxu1 %v4155_v26  ;;  %v4051_v58 = vmax.f32 %v13253_v34, 0.0  ;;  %v4053_v61 = vmax.f32 %v13317_v35, 0.0  ;;  %v15201_v45 = vld [vmem:[#allocation8 + $0x384] ss:$16 sps:$4 sm:$0xff]  }
 0x33f   :  { %v13256_v52 = vadd.f32 %v3136_v50, %v16390_v11  ;;  %v13320_v53 = vadd.f32 %v3908_v51, %v16393_v12  ;;  %5203 = vmatpush1.bf16.msra.mxu0 %v15163_v31  ;;  %5589 = vmatpush1.bf16.msra.mxu1 %v15202_v32  ;;  %v4052_v0 = vmax.f32 %v13254_v42, 0.0  ;;  %v4054_v2 = vmax.f32 %v13318_v43, 0.0  ;;  %v15190_v43 = vld [vmem:[#allocation8 + $0x360] ss:$16 sps:$4 sm:$0xff]   ;;  %v15214_v46 = vld [vmem:[#allocation8 + $0x368] ss:$16 sps:$4 sm:$0xff]  }
 0x340   :  { %v4055_v59 = vmax.f32 %v13255_v47, 0.0  ;;  %5204 = vmatprep.subr.bf16.mxu0 %v15174_v39  ;;  %5590 = vmatprep.subr.bf16.mxu1 %v15207_v40  ;;  %v4057_v62 = vmax.f32 %v13319_v49, 0.0  ;;  %v15222_v50 = vld [vmem:[#allocation8 + $0x38c] ss:$16 sps:$4 sm:$0xff]  }
 0x341   :  { %v4056_v1 = vmax.f32 %v13256_v52, 0.0  ;;  %v4058_v6 = vmax.f32 %v13320_v53, 0.0 }
 0x342   :  { %v4159_v13 = vpack.c.bf16 %v4055_v59, %v4051_v58  ;;  %v16463_v14 = vpack.c.bf16 %v4057_v62, %v4053_v61 }
 0x343   :  { %v3140_v15 = vpop.f32.mrb[24].mxu0  ;;  %v3912_v16 = vpop.f32.mrb[24].mxu1  ;;  %v4160_v17 = vpack.c.bf16 %v4056_v1, %v4052_v0  ;;  %5205 = vmatpush1.bf16.msra.mxu0 %v15172_v54  ;;  %5591 = vmatpush1.bf16.msra.mxu1 %v15205_v56  ;;  %v16465_v21 = vpack.c.bf16 %v4058_v6, %v4054_v2  ;;  %v15199_v0 = vld [vmem:[#allocation8 + $0x380] ss:$16 sps:$4 sm:$0xff]   ;;  %v15220_v1 = vld [vmem:[#allocation8 + $0x388] ss:$16 sps:$4 sm:$0xff]  }
 0x344   :  { %v13257_v22 = vadd.f32 %v3140_v15, %v16384_v9  ;;  %v13321_v23 = vadd.f32 %v3912_v16, %v16387_v10  ;;  %v3142_v24 = vpop.f32.mrb[25].mxu0  ;;  %v3914_v26 = vpop.f32.mrb[25].mxu1  ;;  %5206 = vmatprep.subr.bf16.mxu0 %v15183_v55  ;;  %5592 = vmatprep.subr.bf16.mxu1 %v15213_v60 }
 0x345   :  { %v13258_v30 = vadd.f32 %v3142_v24, %v16390_v11  ;;  %v13322_v31 = vadd.f32 %v3914_v26, %v16393_v12  ;;  %v3144_v32 = vpop.f32.mrb[26].mxu0  ;;  %v3916_v34 = vpop.f32.mrb[26].mxu1  ;;  %5075 = vmatprep.mubr.bf16.mxu0 %v4160_v17  ;;  %5461 = vmatprep.mubr.bf16.mxu1 %v4160_v17  ;;  %v15210_v17 = vld [vmem:[#allocation8 + $0x3a4] ss:$16 sps:$4 sm:$0xff]  }
 0x346   :  { %v13259_v35 = vadd.f32 %v3144_v32, %v16384_v9  ;;  %v13323_v36 = vadd.f32 %v3916_v34, %v16387_v10  ;;  %v3146_v37 = vpop.f32.mrb[27].mxu0  ;;  %v3918_v39 = vpop.f32.mrb[27].mxu1  ;;  %5076 = vmatmul.mubr.bf16.gmra.mrb[84].mxu0 %v4159_v13  ;;  %5462 = vmatmul.mubr.bf16.gmra.mrb[84].mxu1 %v4159_v13  ;;  %v4059_v47 = vmax.f32 %v13257_v22, 0.0  ;;  %v4061_v51 = vmax.f32 %v13321_v23, 0.0  ;;  %v15208_v34 = vld [vmem:[#allocation8 + $0x3a0] ss:$16 sps:$4 sm:$0xff]  }
 0x347   :  { %v13260_v40 = vadd.f32 %v3146_v37, %v16390_v11  ;;  %v13324_v42 = vadd.f32 %v3918_v39, %v16393_v12  ;;  %5207 = vmatpush1.bf16.msra.mxu0 %v15181_v18  ;;  %5593 = vmatpush1.bf16.msra.mxu1 %v15211_v20  ;;  %v4060_v53 = vmax.f32 %v13258_v30, 0.0  ;;  %v4062_v55 = vmax.f32 %v13322_v31, 0.0  ;;  %v15225_v18 = vld [vmem:[#allocation8 + $0x3ac] ss:$16 sps:$4 sm:$0xff]  }
 0x348   :  { %v4063_v49 = vmax.f32 %v13259_v35, 0.0  ;;  %5208 = vmatprep.subr.bf16.mxu0 %v15192_v28  ;;  %5594 = vmatprep.subr.bf16.mxu1 %v15216_v29  ;;  %v4065_v52 = vmax.f32 %v13323_v36, 0.0  ;;  %v15219_v35 = vld [vmem:[#allocation8 + $0x3c4] ss:$16 sps:$4 sm:$0xff]   ;;  %v15223_v36 = vld [vmem:[#allocation8 + $0x3a8] ss:$16 sps:$4 sm:$0xff]  }
 0x349   :  { %v4064_v54 = vmax.f32 %v13260_v40, 0.0  ;;  %v4066_v56 = vmax.f32 %v13324_v42, 0.0  ;;  %v15231_v40 = vld [vmem:[#allocation8 + $0x3cc] ss:$16 sps:$4 sm:$0xff]  }
 0x34a   :  { %v4163_v58 = vpack.c.bf16 %v4063_v49, %v4059_v47  ;;  %v16475_v59 = vpack.c.bf16 %v4065_v52, %v4061_v51 }
 0x34b   :  { %v3150_v60 = vpop.f32.mrb[28].mxu0  ;;  %v3922_v61 = vpop.f32.mrb[28].mxu1  ;;  %v4164_v62 = vpack.c.bf16 %v4064_v54, %v4060_v53  ;;  %5209 = vmatpush1.bf16.msra.mxu0 %v15190_v43  ;;  %5595 = vmatpush1.bf16.msra.mxu1 %v15214_v46  ;;  %v16477_v2 = vpack.c.bf16 %v4066_v56, %v4062_v55  ;;  %v15217_v55 = vld [vmem:[#allocation8 + $0x3c0] ss:$16 sps:$4 sm:$0xff]   ;;  %v15229_v56 = vld [vmem:[#allocation8 + $0x3c8] ss:$16 sps:$4 sm:$0xff]  }
 0x34c   :  { %v13261_v6 = vadd.f32 %v3150_v60, %v16384_v9  ;;  %v13325_v13 = vadd.f32 %v3922_v61, %v16387_v10  ;;  %v3152_v15 = vpop.f32.mrb[29].mxu0  ;;  %v3924_v16 = vpop.f32.mrb[29].mxu1  ;;  %5210 = vmatprep.subr.bf16.mxu0 %v15201_v45  ;;  %5596 = vmatprep.subr.bf16.mxu1 %v15222_v50 }
 0x34d   :  { %v13262_v20 = vadd.f32 %v3152_v15, %v16390_v11  ;;  %v13326_v22 = vadd.f32 %v3924_v16, %v16393_v12  ;;  %v3154_v23 = vpop.f32.mrb[30].mxu0  ;;  %v3926_v24 = vpop.f32.mrb[30].mxu1  ;;  %5085 = vmatprep.mubr.bf16.mxu0 %v4164_v62  ;;  %5471 = vmatprep.mubr.bf16.mxu1 %v4164_v62 }
 0x34e   :  { %v13263_v26 = vadd.f32 %v3154_v23, %v16384_v9  ;;  %v13327_v28 = vadd.f32 %v3926_v24, %v16387_v10  ;;  %v3156_v29 = vpop.f32.mrb[31].mxu0  ;;  %v3928_v30 = vpop.f32.mrb[31].mxu1  ;;  %5086 = vmatmul.mubr.bf16.gmra.mrb[88].mxu0 %v4163_v58  ;;  %5472 = vmatmul.mubr.bf16.gmra.mrb[88].mxu1 %v4163_v58  ;;  %v4067_v37 = vmax.f32 %v13261_v6, 0.0  ;;  %v4069_v42 = vmax.f32 %v13325_v13, 0.0  ;;  %v15234_v6 = vld [vmem:[#allocation8 + $0x3ec] ss:$16 sps:$4 sm:$0xff]  }
 0x34f   :  { %v13264_v31 = vadd.f32 %v3156_v29, %v16390_v11  ;;  %v13328_v32 = vadd.f32 %v3928_v30, %v16393_v12  ;;  %5211 = vmatpush1.bf16.msra.mxu0 %v15199_v0  ;;  %5597 = vmatpush1.bf16.msra.mxu1 %v15220_v1  ;;  %v4068_v45 = vmax.f32 %v13262_v20, 0.0  ;;  %v4070_v47 = vmax.f32 %v13326_v22, 0.0  ;;  %v15228_v1 = vld [vmem:[#allocation8 + $0x3e4] ss:$16 sps:$4 sm:$0xff]   ;;  %v15232_v29 = vld [vmem:[#allocation8 + $0x3e8] ss:$16 sps:$4 sm:$0xff]  }
 0x350   :  { %v4071_v39 = vmax.f32 %v13263_v26, 0.0  ;;  %5212 = vmatprep.subr.bf16.mxu0 %v15210_v17  ;;  %5598 = vmatprep.subr.bf16.mxu1 %v15225_v18  ;;  %v4073_v43 = vmax.f32 %v13327_v28, 0.0  ;;  %v15226_v28 = vld [vmem:[#allocation8 + $0x3e0] ss:$16 sps:$4 sm:$0xff]  }
 0x351   :  { %v4072_v46 = vmax.f32 %v13264_v31, 0.0  ;;  %v4074_v49 = vmax.f32 %v13328_v32, 0.0 }
 0x352   :  { %v4167_v50 = vpack.c.bf16 %v4071_v39, %v4067_v37  ;;  %v16487_v51 = vpack.c.bf16 %v4073_v43, %v4069_v42 }
 0x353   :  { %v3160_v52 = vpop.f32.mrb[32].mxu0  ;;  %v3932_v53 = vpop.f32.mrb[32].mxu1  ;;  %v4168_v54 = vpack.c.bf16 %v4072_v46, %v4068_v45  ;;  %5213 = vmatpush1.bf16.msra.mxu0 %v15208_v34  ;;  %5599 = vmatpush1.bf16.msra.mxu1 %v15223_v36  ;;  %v16489_v58 = vpack.c.bf16 %v4074_v49, %v4070_v47 }
 0x354   :  { %v13265_v60 = vadd.f32 %v3160_v52, %v16384_v9  ;;  %v13329_v61 = vadd.f32 %v3932_v53, %v16387_v10  ;;  %v3162_v62 = vpop.f32.mrb[33].mxu0  ;;  %v3934_v0 = vpop.f32.mrb[33].mxu1  ;;  %5214 = vmatprep.subr.bf16.mxu0 %v15219_v35  ;;  %5600 = vmatprep.subr.bf16.mxu1 %v15231_v40 }
 0x355   :  { %v13266_v13 = vadd.f32 %v3162_v62, %v16390_v11  ;;  %v13330_v15 = vadd.f32 %v3934_v0, %v16393_v12  ;;  %v3164_v16 = vpop.f32.mrb[34].mxu0  ;;  %v3936_v17 = vpop.f32.mrb[34].mxu1  ;;  %5095 = vmatprep.mubr.bf16.mxu0 %v4168_v54  ;;  %5481 = vmatprep.mubr.bf16.mxu1 %v4168_v54 }
 0x356   :  { %v13267_v18 = vadd.f32 %v3164_v16, %v16384_v9  ;;  %v13331_v20 = vadd.f32 %v3936_v17, %v16387_v10  ;;  %v3166_v22 = vpop.f32.mrb[35].mxu0  ;;  %v3938_v23 = vpop.f32.mrb[35].mxu1  ;;  %5096 = vmatmul.mubr.bf16.gmra.mrb[92].mxu0 %v4167_v50  ;;  %5482 = vmatmul.mubr.bf16.gmra.mrb[92].mxu1 %v4167_v50  ;;  %v4075_v30 = vmax.f32 %v13265_v60, 0.0  ;;  %v4077_v32 = vmax.f32 %v13329_v61, 0.0 }
 0x357   :  { %v13268_v24 = vadd.f32 %v3166_v22, %v16390_v11  ;;  %v13332_v26 = vadd.f32 %v3938_v23, %v16393_v12  ;;  %5215 = vmatpush1.bf16.msra.mxu0 %v15217_v55  ;;  %5601 = vmatpush1.bf16.msra.mxu1 %v15229_v56  ;;  %v4076_v35 = vmax.f32 %v13266_v13, 0.0  ;;  %v4078_v37 = vmax.f32 %v13330_v15, 0.0 }
 0x358   :  { %v4079_v31 = vmax.f32 %v13267_v18, 0.0  ;;  %5216 = vmatprep.subr.bf16.mxu0 %v15228_v1  ;;  %5602 = vmatprep.subr.bf16.mxu1 %v15234_v6  ;;  %v4081_v34 = vmax.f32 %v13331_v20, 0.0 }
 0x359   :  { %v4080_v36 = vmax.f32 %v13268_v24, 0.0  ;;  %v4082_v39 = vmax.f32 %v13332_v26, 0.0 }
 0x35a   :  { %v4171_v40 = vpack.c.bf16 %v4079_v31, %v4075_v30  ;;  %v16499_v42 = vpack.c.bf16 %v4081_v34, %v4077_v32 }
 0x35b   :  { %v3170_v43 = vpop.f32.mrb[36].mxu0  ;;  %v3942_v45 = vpop.f32.mrb[36].mxu1  ;;  %v4172_v46 = vpack.c.bf16 %v4080_v36, %v4076_v35  ;;  %5217 = vmatpush1.bf16.msra.mxu0 %v15226_v28  ;;  %5603 = vmatpush1.bf16.msra.mxu1 %v15232_v29  ;;  %v16501_v47 = vpack.c.bf16 %v4082_v39, %v4078_v37 }
 0x35c   :  { %v13269_v49 = vadd.f32 %v3170_v43, %v16384_v9  ;;  %v13333_v50 = vadd.f32 %v3942_v45, %v16387_v10  ;;  %v3172_v52 = vpop.f32.mrb[37].mxu0  ;;  %v3944_v53 = vpop.f32.mrb[37].mxu1 }
 0x35d   :  { %v13270_v54 = vadd.f32 %v3172_v52, %v16390_v11  ;;  %v13334_v55 = vadd.f32 %v3944_v53, %v16393_v12  ;;  %v3174_v56 = vpop.f32.mrb[38].mxu0  ;;  %v3946_v60 = vpop.f32.mrb[38].mxu1  ;;  %5105 = vmatprep.mubr.bf16.mxu0 %v4172_v46  ;;  %5491 = vmatprep.mubr.bf16.mxu1 %v4172_v46 }
 0x35e   :  { %v13271_v61 = vadd.f32 %v3174_v56, %v16384_v9  ;;  %v13335_v62 = vadd.f32 %v3946_v60, %v16387_v10  ;;  %v3176_v0 = vpop.f32.mrb[39].mxu0  ;;  %v3948_v1 = vpop.f32.mrb[39].mxu1  ;;  %5106 = vmatmul.mubr.bf16.gmra.mrb[96].mxu0 %v4171_v40  ;;  %5492 = vmatmul.mubr.bf16.gmra.mrb[96].mxu1 %v4171_v40  ;;  %v4083_v15 = vmax.f32 %v13269_v49, 0.0  ;;  %v4085_v17 = vmax.f32 %v13333_v50, 0.0 }
 0x35f   :  { %v13272_v6 = vadd.f32 %v3176_v0, %v16390_v11  ;;  %v13336_v13 = vadd.f32 %v3948_v1, %v16393_v12  ;;  %v4084_v20 = vmax.f32 %v13270_v54, 0.0  ;;  %v4086_v23 = vmax.f32 %v13334_v55, 0.0 }
 0x360   :  { %v4087_v16 = vmax.f32 %v13271_v61, 0.0  ;;  %v4089_v18 = vmax.f32 %v13335_v62, 0.0 }
 0x361   :  { %v4088_v22 = vmax.f32 %v13272_v6, 0.0  ;;  %v4090_v24 = vmax.f32 %v13336_v13, 0.0 }
 0x362   :  { %v4175_v26 = vpack.c.bf16 %v4087_v16, %v4083_v15  ;;  %v16511_v28 = vpack.c.bf16 %v4089_v18, %v4085_v17 }
 0x363   :  { %v3180_v29 = vpop.f32.mrb[40].mxu0  ;;  %v3952_v30 = vpop.f32.mrb[40].mxu1  ;;  %v4176_v31 = vpack.c.bf16 %v4088_v22, %v4084_v20  ;;  %v16513_v32 = vpack.c.bf16 %v4090_v24, %v4086_v23 }
 0x364   :  { %v13273_v34 = vadd.f32 %v3180_v29, %v16384_v9  ;;  %v13337_v35 = vadd.f32 %v3952_v30, %v16387_v10  ;;  %v3182_v36 = vpop.f32.mrb[41].mxu0  ;;  %v3954_v37 = vpop.f32.mrb[41].mxu1 }
 0x365   :  { %v13274_v39 = vadd.f32 %v3182_v36, %v16390_v11  ;;  %v13338_v40 = vadd.f32 %v3954_v37, %v16393_v12  ;;  %v3184_v43 = vpop.f32.mrb[42].mxu0  ;;  %v3956_v45 = vpop.f32.mrb[42].mxu1  ;;  %5115 = vmatprep.mubr.bf16.mxu0 %v4176_v31  ;;  %5501 = vmatprep.mubr.bf16.mxu1 %v4176_v31 }
 0x366   :  { %v13275_v46 = vadd.f32 %v3184_v43, %v16384_v9  ;;  %v13339_v49 = vadd.f32 %v3956_v45, %v16387_v10  ;;  %v3186_v50 = vpop.f32.mrb[43].mxu0  ;;  %v3958_v52 = vpop.f32.mrb[43].mxu1  ;;  %5116 = vmatmul.mubr.bf16.gmra.mrb[100].mxu0 %v4175_v26  ;;  %5502 = vmatmul.mubr.bf16.gmra.mrb[100].mxu1 %v4175_v26  ;;  %v4091_v55 = vmax.f32 %v13273_v34, 0.0  ;;  %v4093_v60 = vmax.f32 %v13337_v35, 0.0 }
 0x367   :  { %v13276_v53 = vadd.f32 %v3186_v50, %v16390_v11  ;;  %v13340_v54 = vadd.f32 %v3958_v52, %v16393_v12  ;;  %v4092_v62 = vmax.f32 %v13274_v39, 0.0  ;;  %v4094_v1 = vmax.f32 %v13338_v40, 0.0 }
 0x368   :  { %v4095_v56 = vmax.f32 %v13275_v46, 0.0  ;;  %v4097_v61 = vmax.f32 %v13339_v49, 0.0 }
 0x369   :  { %v4096_v0 = vmax.f32 %v13276_v53, 0.0  ;;  %v4098_v6 = vmax.f32 %v13340_v54, 0.0 }
 0x36a   :  { %v4179_v13 = vpack.c.bf16 %v4095_v56, %v4091_v55  ;;  %v16523_v15 = vpack.c.bf16 %v4097_v61, %v4093_v60 }
 0x36b   :  { %v3190_v16 = vpop.f32.mrb[44].mxu0  ;;  %v3962_v17 = vpop.f32.mrb[44].mxu1  ;;  %v4180_v18 = vpack.c.bf16 %v4096_v0, %v4092_v62  ;;  %v16525_v20 = vpack.c.bf16 %v4098_v6, %v4094_v1 }
 0x36c   :  { %v13277_v22 = vadd.f32 %v3190_v16, %v16384_v9  ;;  %v13341_v23 = vadd.f32 %v3962_v17, %v16387_v10  ;;  %v3192_v24 = vpop.f32.mrb[45].mxu0  ;;  %v3964_v26 = vpop.f32.mrb[45].mxu1 }
 0x36d   :  { %v13278_v29 = vadd.f32 %v3192_v24, %v16390_v11  ;;  %v13342_v30 = vadd.f32 %v3964_v26, %v16393_v12  ;;  %v3194_v31 = vpop.f32.mrb[46].mxu0  ;;  %v3966_v34 = vpop.f32.mrb[46].mxu1  ;;  %5125 = vmatprep.mubr.bf16.mxu0 %v4180_v18  ;;  %5511 = vmatprep.mubr.bf16.mxu1 %v4180_v18 }
 0x36e   :  { %v13279_v35 = vadd.f32 %v3194_v31, %v16384_v9  ;;  %v13343_v36 = vadd.f32 %v3966_v34, %v16387_v10  ;;  %v3196_v37 = vpop.f32.mrb[47].mxu0  ;;  %v3968_v39 = vpop.f32.mrb[47].mxu1  ;;  %5126 = vmatmul.mubr.bf16.gmra.mrb[104].mxu0 %v4179_v13  ;;  %5512 = vmatmul.mubr.bf16.gmra.mrb[104].mxu1 %v4179_v13  ;;  %v4099_v45 = vmax.f32 %v13277_v22, 0.0  ;;  %v4101_v49 = vmax.f32 %v13341_v23, 0.0 }
 0x36f   :  { %v13280_v40 = vadd.f32 %v3196_v37, %v16390_v11  ;;  %v13344_v43 = vadd.f32 %v3968_v39, %v16393_v12  ;;  %v4100_v52 = vmax.f32 %v13278_v29, 0.0  ;;  %v4102_v54 = vmax.f32 %v13342_v30, 0.0 }
 0x370   :  { %v4103_v46 = vmax.f32 %v13279_v35, 0.0  ;;  %v4105_v50 = vmax.f32 %v13343_v36, 0.0  ;;  %v15237_v36 = vld [vmem:[#allocation10 + $0x4] ss:$8 sps:$4 sm:$0xff]  }
 0x371   :  { %v4104_v53 = vmax.f32 %v13280_v40, 0.0  ;;  %v4106_v55 = vmax.f32 %v13344_v43, 0.0  ;;  %6353 = vmatprep.subr.bf16.mxu0 %v15237_v36 }
 0x372   :  { %v4183_v56 = vpack.c.bf16 %v4103_v46, %v4099_v45  ;;  %v16535_v60 = vpack.c.bf16 %v4105_v50, %v4101_v49 }
 0x373   :  { %v3200_v61 = vpop.f32.mrb[48].mxu0  ;;  %v3972_v62 = vpop.f32.mrb[48].mxu1  ;;  %v4184_v0 = vpack.c.bf16 %v4104_v53, %v4100_v52  ;;  %v16537_v1 = vpack.c.bf16 %v4106_v55, %v4102_v54 }
 0x374   :  { %v13281_v6 = vadd.f32 %v3200_v61, %v16384_v9  ;;  %v13345_v13 = vadd.f32 %v3972_v62, %v16387_v10  ;;  %v3202_v16 = vpop.f32.mrb[49].mxu0  ;;  %v3974_v17 = vpop.f32.mrb[49].mxu1 }
 0x375   :  { %v13282_v18 = vadd.f32 %v3202_v16, %v16390_v11  ;;  %v13346_v22 = vadd.f32 %v3974_v17, %v16393_v12  ;;  %v3204_v23 = vpop.f32.mrb[50].mxu0  ;;  %v3976_v24 = vpop.f32.mrb[50].mxu1  ;;  %5135 = vmatprep.mubr.bf16.mxu0 %v4184_v0  ;;  %5521 = vmatprep.mubr.bf16.mxu1 %v4184_v0 }
 0x376   :  { %v13283_v26 = vadd.f32 %v3204_v23, %v16384_v9  ;;  %v13347_v29 = vadd.f32 %v3976_v24, %v16387_v10  ;;  %v3206_v30 = vpop.f32.mrb[51].mxu0  ;;  %v3978_v31 = vpop.f32.mrb[51].mxu1  ;;  %5136 = vmatmul.mubr.bf16.gmra.mrb[108].mxu0 %v4183_v56  ;;  %5522 = vmatmul.mubr.bf16.gmra.mrb[108].mxu1 %v4183_v56  ;;  %v4107_v37 = vmax.f32 %v13281_v6, 0.0  ;;  %v4109_v40 = vmax.f32 %v13345_v13, 0.0 }
 0x377   :  { %v13284_v34 = vadd.f32 %v3206_v30, %v16390_v11  ;;  %v13348_v35 = vadd.f32 %v3978_v31, %v16393_v12  ;;  %v4108_v45 = vmax.f32 %v13282_v18, 0.0  ;;  %v4110_v49 = vmax.f32 %v13346_v22, 0.0 }
 0x378   :  { %v4111_v39 = vmax.f32 %v13283_v26, 0.0  ;;  %v4113_v43 = vmax.f32 %v13347_v29, 0.0 }
 0x379   :  { %v4112_v46 = vmax.f32 %v13284_v34, 0.0  ;;  %v4114_v50 = vmax.f32 %v13348_v35, 0.0 }
 0x37a   :  { %v4187_v52 = vpack.c.bf16 %v4111_v39, %v4107_v37  ;;  %v16547_v53 = vpack.c.bf16 %v4113_v43, %v4109_v40 }
 0x37b   :  { %v3210_v54 = vpop.f32.mrb[52].mxu0  ;;  %v3982_v55 = vpop.f32.mrb[52].mxu1  ;;  %v4188_v56 = vpack.c.bf16 %v4112_v46, %v4108_v45  ;;  %v16549_v61 = vpack.c.bf16 %v4114_v50, %v4110_v49 }
 0x37c   :  { %v13285_v62 = vadd.f32 %v3210_v54, %v16384_v9  ;;  %v13349_v0 = vadd.f32 %v3982_v55, %v16387_v10  ;;  %v3212_v6 = vpop.f32.mrb[53].mxu0  ;;  %v3984_v13 = vpop.f32.mrb[53].mxu1 }
 0x37d   :  { %v13286_v16 = vadd.f32 %v3212_v6, %v16390_v11  ;;  %v13350_v17 = vadd.f32 %v3984_v13, %v16393_v12  ;;  %v3214_v18 = vpop.f32.mrb[54].mxu0  ;;  %v3986_v22 = vpop.f32.mrb[54].mxu1  ;;  %5145 = vmatprep.mubr.bf16.mxu0 %v4188_v56  ;;  %5531 = vmatprep.mubr.bf16.mxu1 %v4188_v56 }
 0x37e   :  { %v13287_v23 = vadd.f32 %v3214_v18, %v16384_v9  ;;  %v13351_v24 = vadd.f32 %v3986_v22, %v16387_v10  ;;  %v3216_v26 = vpop.f32.mrb[55].mxu0  ;;  %v3988_v29 = vpop.f32.mrb[55].mxu1  ;;  %5146 = vmatmul.mubr.bf16.gmra.mrb[112].mxu0 %v4187_v52  ;;  %5532 = vmatmul.mubr.bf16.gmra.mrb[112].mxu1 %v4187_v52  ;;  %v4115_v34 = vmax.f32 %v13285_v62, 0.0  ;;  %v4117_v36 = vmax.f32 %v13349_v0, 0.0 }
 0x37f   :  { %v13288_v30 = vadd.f32 %v3216_v26, %v16390_v11  ;;  %v13352_v31 = vadd.f32 %v3988_v29, %v16393_v12  ;;  %v4116_v39 = vmax.f32 %v13286_v16, 0.0  ;;  %v4118_v43 = vmax.f32 %v13350_v17, 0.0 }
 0x380   :  { %v4119_v35 = vmax.f32 %v13287_v23, 0.0  ;;  %v4121_v37 = vmax.f32 %v13351_v24, 0.0 }
 0x381   :  { %v4120_v40 = vmax.f32 %v13288_v30, 0.0  ;;  %v4122_v45 = vmax.f32 %v13352_v31, 0.0 }
 0x382   :  { %v4191_v46 = vpack.c.bf16 %v4119_v35, %v4115_v34  ;;  %v16559_v49 = vpack.c.bf16 %v4121_v37, %v4117_v36 }
 0x383   :  { %v3220_v50 = vpop.f32.mrb[56].mxu0  ;;  %v3992_v54 = vpop.f32.mrb[56].mxu1  ;;  %v4192_v55 = vpack.c.bf16 %v4120_v40, %v4116_v39  ;;  %v16561_v56 = vpack.c.bf16 %v4122_v45, %v4118_v43 }
 0x384   :  { %v13289_v52 = vadd.f32 %v3220_v50, %v16384_v9  ;;  %v13353_v6 = vadd.f32 %v3992_v54, %v16387_v10  ;;  %v3222_v62 = vpop.f32.mrb[57].mxu0  ;;  %v3994_v13 = vpop.f32.mrb[57].mxu1 }
 0x385   :  { %v13290_v0 = vadd.f32 %v3222_v62, %v16390_v11  ;;  %v13354_v16 = vadd.f32 %v3994_v13, %v16393_v12  ;;  %v3224_v17 = vpop.f32.mrb[58].mxu0  ;;  %v3996_v18 = vpop.f32.mrb[58].mxu1  ;;  %5155 = vmatprep.mubr.bf16.mxu0 %v4192_v55  ;;  %5541 = vmatprep.mubr.bf16.mxu1 %v4192_v55 }
 0x386   :  { %v13291_v22 = vadd.f32 %v3224_v17, %v16384_v9  ;;  %v13355_v23 = vadd.f32 %v3996_v18, %v16387_v10  ;;  %v3226_v24 = vpop.f32.mrb[59].mxu0  ;;  %v3998_v26 = vpop.f32.mrb[59].mxu1  ;;  %5156 = vmatmul.mubr.bf16.gmra.mrb[116].mxu0 %v4191_v46  ;;  %5542 = vmatmul.mubr.bf16.gmra.mrb[116].mxu1 %v4191_v46  ;;  %v4123_v31 = vmax.f32 %v13289_v52, 0.0  ;;  %v4125_v35 = vmax.f32 %v13353_v6, 0.0 }
 0x387   :  { %v13292_v29 = vadd.f32 %v3226_v24, %v16390_v11  ;;  %v13356_v30 = vadd.f32 %v3998_v26, %v16393_v12  ;;  %v4124_v37 = vmax.f32 %v13290_v0, 0.0  ;;  %v4126_v40 = vmax.f32 %v13354_v16, 0.0 }
 0x388   :  { %v4127_v34 = vmax.f32 %v13291_v22, 0.0  ;;  %v4129_v36 = vmax.f32 %v13355_v23, 0.0 }
 0x389   :  { %v4128_v39 = vmax.f32 %v13292_v29, 0.0  ;;  %v4130_v43 = vmax.f32 %v13356_v30, 0.0 }
 0x38a   :  { %v4195_v45 = vpack.c.bf16 %v4127_v34, %v4123_v31  ;;  %v16571_v50 = vpack.c.bf16 %v4129_v36, %v4125_v35 }
 0x38b   :  { %v3230_v54 = vpop.f32.mrb[60].mxu0  ;;  %v4002_v55 = vpop.f32.mrb[60].mxu1  ;;  %v4196_v62 = vpack.c.bf16 %v4128_v39, %v4124_v37  ;;  %v16573_v13 = vpack.c.bf16 %v4130_v43, %v4126_v40 }
 0x38c   :  { %v13293_v46 = vadd.f32 %v3230_v54, %v16384_v9  ;;  %v13357_v17 = vadd.f32 %v4002_v55, %v16387_v10  ;;  %v3232_v52 = vpop.f32.mrb[61].mxu0  ;;  %v4004_v18 = vpop.f32.mrb[61].mxu1 }
 0x38d   :  { %v13294_v6 = vadd.f32 %v3232_v52, %v16390_v11  ;;  %v13358_v0 = vadd.f32 %v4004_v18, %v16393_v12  ;;  %v3234_v16 = vpop.f32.mrb[62].mxu0  ;;  %v4006_v22 = vpop.f32.mrb[62].mxu1  ;;  %5165 = vmatprep.mubr.bf16.mxu0 %v4196_v62  ;;  %5551 = vmatprep.mubr.bf16.mxu1 %v4196_v62  ;;  %v15246_v52 = vld [vmem:[#allocation10 + $0x34] ss:$8 sps:$4 sm:$0xff]  }
 0x38e   :  { %v13295_v23 = vadd.f32 %v3234_v16, %v16384_v9  ;;  %v13359_v24 = vadd.f32 %v4006_v22, %v16387_v10  ;;  %v3236_v26 = vpop.f32.mrb[63].mxu0  ;;  %v4008_v29 = vpop.f32.mrb[63].mxu1  ;;  %5166 = vmatmul.mubr.bf16.gmra.mrb[120].mxu0 %v4195_v45  ;;  %5552 = vmatmul.mubr.bf16.gmra.mrb[120].mxu1 %v4195_v45  ;;  %v4131_v34 = vmax.f32 %v13293_v46, 0.0  ;;  %v4133_v36 = vmax.f32 %v13357_v17, 0.0  ;;  %v15238_v45 = vld [vmem:[#allocation10 + $0x10] ss:$8 sps:$4 sm:$0xff]  }
 0x38f   :  { %v13296_v30 = vadd.f32 %v3236_v26, %v16390_v11  ;;  %v13360_v31 = vadd.f32 %v4008_v29, %v16393_v12  ;;  %v4132_v39 = vmax.f32 %v13294_v6, 0.0  ;;  %v4134_v43 = vmax.f32 %v13358_v0, 0.0  ;;  %v15235_v11 = vld [vmem:[#allocation10] ss:$8 sps:$4 sm:$0xff]   ;;  %v15240_v12 = vld [vmem:[#allocation10 + $0x14] ss:$8 sps:$4 sm:$0xff]  }
 0x390   :  { %v4135_v35 = vmax.f32 %v13295_v23, 0.0  ;;  %v4137_v37 = vmax.f32 %v13359_v24, 0.0  ;;  %v15243_v46 = vld [vmem:[#allocation10 + $0x24] ss:$8 sps:$4 sm:$0xff]   ;;  %v15241_v17 = vld [vmem:[#allocation10 + $0x20] ss:$8 sps:$4 sm:$0xff]  }
 0x391   :  { %v4136_v40 = vmax.f32 %v13296_v30, 0.0  ;;  %v4138_v54 = vmax.f32 %v13360_v31, 0.0  ;;  %v15252_v18 = vld [vmem:[#allocation10 + $0x54] ss:$8 sps:$4 sm:$0xff]   ;;  %v15253_v6 = vld [vmem:[#allocation10 + $0x60] ss:$8 sps:$4 sm:$0xff]  }
 0x392   :  { %v4199_v55 = vpack.c.bf16 %v4135_v35, %v4131_v34  ;;  %v16583_v9 = vpack.c.bf16 %v4137_v37, %v4133_v36  ;;  %v15258_v0 = vld [vmem:[#allocation10 + $0x74] ss:$8 sps:$4 sm:$0xff]   ;;  %v15259_v16 = vld [vmem:[#allocation10 + $0x80] ss:$8 sps:$4 sm:$0xff]  }
 0x393   :  { %v4200_v10 = vpack.c.bf16 %v4136_v40, %v4132_v39  ;;  %v16585_v62 = vpack.c.bf16 %v4138_v54, %v4134_v43  ;;  %v15264_v22 = vld [vmem:[#allocation10 + $0x94] ss:$8 sps:$4 sm:$0xff]   ;;  %v15265_v23 = vld [vmem:[#allocation10 + $0xa0] ss:$8 sps:$4 sm:$0xff]  }
 0x394   :  { %v15270_v24 = vld [vmem:[#allocation10 + $0xb4] ss:$8 sps:$4 sm:$0xff]   ;;  %v15271_v26 = vld [vmem:[#allocation10 + $0xc0] ss:$8 sps:$4 sm:$0xff]  }
 0x395   :  { %5175 = vmatprep.mubr.bf16.mxu0 %v4200_v10  ;;  %5561 = vmatprep.mubr.bf16.mxu1 %v4200_v10  ;;  %v15276_v29 = vld [vmem:[#allocation10 + $0xd4] ss:$8 sps:$4 sm:$0xff]   ;;  %v15277_v30 = vld [vmem:[#allocation10 + $0xe0] ss:$8 sps:$4 sm:$0xff]  }
 0x396   :  { %5176 = vmatmul.mubr.bf16.gmra.mrb[124].mxu0 %v4199_v55  ;;  %5562 = vmatmul.mubr.bf16.gmra.mrb[124].mxu1 %v4199_v55 }
 0x397   :  { %5218 = vmatprep.mubr.bf16.mxu0 %v16405_v44  ;;  %5604 = vmatprep.mubr.bf16.mxu1 %v16405_v44  ;;  %v15249_v44 = vld [vmem:[#allocation10 + $0x44] ss:$8 sps:$4 sm:$0xff]  }
 0x39e   :  { %5219 = vmatmul.mubr.bf16.vlgmr.msra.gmra.mrb[64].mxu0 %v16403_v38  ;;  %5605 = vmatmul.mubr.bf16.vlgmr.msra.gmra.mrb[64].mxu1 %v16403_v38  ;;  %v15244_v38 = vld [vmem:[#allocation10 + $0x30] ss:$8 sps:$4 sm:$0xff]  }
 0x39f   :  { %5228 = vmatprep.mubr.bf16.mxu0 %v16417_v25  ;;  %5614 = vmatprep.mubr.bf16.mxu1 %v16417_v25  ;;  %v15247_v25 = vld [vmem:[#allocation10 + $0x40] ss:$8 sps:$4 sm:$0xff]  }
 0x3a0   :  { %6354 = vmatpush1.bf16.msra.mxu0 %v15235_v11 }
 0x3a1   :  { %6355 = vmatprep.subr.bf16.mxu0 %v15240_v12 }
 0x3a4   :  { %6356 = vmatpush1.bf16.msra.mxu0 %v15238_v45 }
 0x3a5   :  { %6357 = vmatprep.subr.bf16.mxu0 %v15243_v46 }
 0x3a6   :  { %5229 = vmatmul.mubr.bf16.gmra.mrb[68].mxu0 %v16415_v19  ;;  %5615 = vmatmul.mubr.bf16.gmra.mrb[68].mxu1 %v16415_v19  ;;  %v15250_v19 = vld [vmem:[#allocation10 + $0x50] ss:$8 sps:$4 sm:$0xff]  }
 0x3a7   :  { %5238 = vmatprep.mubr.bf16.mxu0 %v16429_v63  ;;  %5624 = vmatprep.mubr.bf16.mxu1 %v16429_v63  ;;  %v15255_v63 = vld [vmem:[#allocation10 + $0x64] ss:$8 sps:$4 sm:$0xff]  }
 0x3a8   :  { %6358 = vmatpush1.bf16.msra.mxu0 %v15241_v17 }
 0x3a9   :  { %6359 = vmatprep.subr.bf16.mxu0 %v15246_v52 }
 0x3ac   :  { %6360 = vmatpush1.bf16.msra.mxu0 %v15244_v38 }
 0x3ad   :  { %6361 = vmatprep.subr.bf16.mxu0 %v15249_v44  ;;  %v15283_v44 = vld [vmem:[#allocation10 + $0x100] ss:$8 sps:$4 sm:$0xff]  }
 0x3ae   :  { %5239 = vmatmul.mubr.bf16.gmra.mrb[72].mxu0 %v16427_v57  ;;  %5625 = vmatmul.mubr.bf16.gmra.mrb[72].mxu1 %v16427_v57  ;;  %v15256_v57 = vld [vmem:[#allocation10 + $0x70] ss:$8 sps:$4 sm:$0xff]  }
 0x3af   :  { %5248 = vmatprep.mubr.bf16.mxu0 %v16441_v48  ;;  %5634 = vmatprep.mubr.bf16.mxu1 %v16441_v48  ;;  %v15261_v48 = vld [vmem:[#allocation10 + $0x84] ss:$8 sps:$4 sm:$0xff]  }
 0x3b0   :  { %6362 = vmatpush1.bf16.msra.mxu0 %v15247_v25 }
 0x3b1   :  { %6363 = vmatprep.subr.bf16.mxu0 %v15252_v18 }
 0x3b4   :  { %6364 = vmatpush1.bf16.msra.mxu0 %v15250_v19 }
 0x3b5   :  { %6365 = vmatprep.subr.bf16.mxu0 %v15255_v63 }
 0x3b6   :  { %5249 = vmatmul.mubr.bf16.gmra.mrb[76].mxu0 %v16439_v41  ;;  %5635 = vmatmul.mubr.bf16.gmra.mrb[76].mxu1 %v16439_v41  ;;  %v15262_v41 = vld [vmem:[#allocation10 + $0x90] ss:$8 sps:$4 sm:$0xff]  }
 0x3b7   :  { %5258 = vmatprep.mubr.bf16.mxu0 %v16453_v33  ;;  %5644 = vmatprep.mubr.bf16.mxu1 %v16453_v33  ;;  %v15267_v33 = vld [vmem:[#allocation10 + $0xa4] ss:$8 sps:$4 sm:$0xff]  }
 0x3b8   :  { %6366 = vmatpush1.bf16.msra.mxu0 %v15253_v6 }
 0x3b9   :  { %6367 = vmatprep.subr.bf16.mxu0 %v15258_v0  ;;  %v15288_v0 = vld [vmem:[#allocation10 + $0x114] ss:$8 sps:$4 sm:$0xff]  }
 0x3bc   :  { %6368 = vmatpush1.bf16.msra.mxu0 %v15256_v57 }
 0x3bd   :  { %6369 = vmatprep.subr.bf16.mxu0 %v15261_v48 }
 0x3be   :  { %5259 = vmatmul.mubr.bf16.gmra.mrb[80].mxu0 %v16451_v27  ;;  %5645 = vmatmul.mubr.bf16.gmra.mrb[80].mxu1 %v16451_v27  ;;  %v15268_v27 = vld [vmem:[#allocation10 + $0xb0] ss:$8 sps:$4 sm:$0xff]  }
 0x3bf   :  { %5268 = vmatprep.mubr.bf16.mxu0 %v16465_v21  ;;  %5654 = vmatprep.mubr.bf16.mxu1 %v16465_v21  ;;  %v15273_v21 = vld [vmem:[#allocation10 + $0xc4] ss:$8 sps:$4 sm:$0xff]  }
 0x3c0   :  { %6370 = vmatpush1.bf16.msra.mxu0 %v15259_v16 }
 0x3c1   :  { %6371 = vmatprep.subr.bf16.mxu0 %v15264_v22 }
 0x3c4   :  { %6372 = vmatpush1.bf16.msra.mxu0 %v15262_v41 }
 0x3c5   :  { %6373 = vmatprep.subr.bf16.mxu0 %v15267_v33 }
 0x3c6   :  { %5269 = vmatmul.mubr.bf16.gmra.mrb[84].mxu0 %v16463_v14  ;;  %5655 = vmatmul.mubr.bf16.gmra.mrb[84].mxu1 %v16463_v14  ;;  %v15274_v14 = vld [vmem:[#allocation10 + $0xd0] ss:$8 sps:$4 sm:$0xff]  }
 0x3c7   :  { %5278 = vmatprep.mubr.bf16.mxu0 %v16477_v2  ;;  %5664 = vmatprep.mubr.bf16.mxu1 %v16477_v2  ;;  %v15279_v2 = vld [vmem:[#allocation10 + $0xe4] ss:$8 sps:$4 sm:$0xff]  }
 0x3c8   :  { %6374 = vmatpush1.bf16.msra.mxu0 %v15265_v23 }
 0x3c9   :  { %6375 = vmatprep.subr.bf16.mxu0 %v15270_v24 }
 0x3cc   :  { %6376 = vmatpush1.bf16.msra.mxu0 %v15268_v27 }
 0x3cd   :  { %6377 = vmatprep.subr.bf16.mxu0 %v15273_v21 }
 0x3ce   :  { %5279 = vmatmul.mubr.bf16.gmra.mrb[88].mxu0 %v16475_v59  ;;  %5665 = vmatmul.mubr.bf16.gmra.mrb[88].mxu1 %v16475_v59  ;;  %v15282_v59 = vld [vmem:[#allocation10 + $0xf4] ss:$8 sps:$4 sm:$0xff]  }
 0x3cf   :  { %5288 = vmatprep.mubr.bf16.mxu0 %v16489_v58  ;;  %5674 = vmatprep.mubr.bf16.mxu1 %v16489_v58  ;;  %v15285_v58 = vld [vmem:[#allocation10 + $0x104] ss:$8 sps:$4 sm:$0xff]  }
 0x3d0   :  { %6378 = vmatpush1.bf16.msra.mxu0 %v15271_v26  ;;  %v15286_v26 = vld [vmem:[#allocation10 + $0x110] ss:$8 sps:$4 sm:$0xff]  }
 0x3d1   :  { %6379 = vmatprep.subr.bf16.mxu0 %v15276_v29 }
 0x3d4   :  { %6380 = vmatpush1.bf16.msra.mxu0 %v15274_v14 }
 0x3d5   :  { %6381 = vmatprep.subr.bf16.mxu0 %v15279_v2  ;;  %v15291_v2 = vld [vmem:[#allocation10 + $0x124] ss:$8 sps:$4 sm:$0xff]  }
 0x3d6   :  { %5289 = vmatmul.mubr.bf16.gmra.mrb[92].mxu0 %v16487_v51  ;;  %5675 = vmatmul.mubr.bf16.gmra.mrb[92].mxu1 %v16487_v51  ;;  %v15280_v51 = vld [vmem:[#allocation10 + $0xf0] ss:$8 sps:$4 sm:$0xff]  }
 0x3d7   :  { %5298 = vmatprep.mubr.bf16.mxu0 %v16501_v47  ;;  %5684 = vmatprep.mubr.bf16.mxu1 %v16501_v47 }
 0x3d8   :  { %6382 = vmatpush1.bf16.msra.mxu0 %v15277_v30 }
 0x3d9   :  { %6383 = vmatprep.subr.bf16.mxu0 %v15282_v59 }
 0x3dc   :  { %6384 = vmatpush1.bf16.msra.mxu0 %v15280_v51 }
 0x3dd   :  { %6546 = vmatprep.subr.bf16.mxu0 %v15285_v58 }
 0x3de   :  { %5299 = vmatmul.mubr.bf16.gmra.mrb[96].mxu0 %v16499_v42  ;;  %5685 = vmatmul.mubr.bf16.gmra.mrb[96].mxu1 %v16499_v42  ;;  %v4331_v42 = vld [vmem:[%s18104_s5] sm:$0xf] }
 0x3df   :  { %5308 = vmatprep.mubr.bf16.mxu0 %v16513_v32  ;;  %5694 = vmatprep.mubr.bf16.mxu1 %v16513_v32  ;;  %v16655_v47 = vrot.slane %v4331_v42, %v16369_v4  ;;  %v16661_v32 = vrot.slane %v4331_v42, %v16378_v7 }
 0x3e6   :  { %5309 = vmatmul.mubr.bf16.gmra.mrb[100].mxu0 %v16511_v28  ;;  %5695 = vmatmul.mubr.bf16.gmra.mrb[100].mxu1 %v16511_v28  ;;  %v16658_v28 = vrot.slane %v4331_v42, %v16372_v5 }
 0x3e7   :  { %5318 = vmatprep.mubr.bf16.mxu0 %v16525_v20  ;;  %5704 = vmatprep.mubr.bf16.mxu1 %v16525_v20 }
 0x3ee   :  { %5319 = vmatmul.mubr.bf16.gmra.mrb[104].mxu0 %v16523_v15  ;;  %5705 = vmatmul.mubr.bf16.gmra.mrb[104].mxu1 %v16523_v15  ;;  %v16664_v15 = vrot.slane %v4331_v42, %v16381_v8 }
 0x3ef   :  { %5328 = vmatprep.mubr.bf16.mxu0 %v16537_v1  ;;  %5714 = vmatprep.mubr.bf16.mxu1 %v16537_v1 }
 0x3f6   :  { %5329 = vmatmul.mubr.bf16.gmra.mrb[108].mxu0 %v16535_v60  ;;  %5715 = vmatmul.mubr.bf16.gmra.mrb[108].mxu1 %v16535_v60 }
 0x3f7   :  { %5338 = vmatprep.mubr.bf16.mxu0 %v16549_v61  ;;  %5724 = vmatprep.mubr.bf16.mxu1 %v16549_v61 }
 0x3fe   :  { %5339 = vmatmul.mubr.bf16.gmra.mrb[112].mxu0 %v16547_v53  ;;  %5725 = vmatmul.mubr.bf16.gmra.mrb[112].mxu1 %v16547_v53 }
 0x3ff   :  { %5348 = vmatprep.mubr.bf16.mxu0 %v16561_v56  ;;  %5734 = vmatprep.mubr.bf16.mxu1 %v16561_v56 }
 0x406   :  { %5349 = vmatmul.mubr.bf16.gmra.mrb[116].mxu0 %v16559_v49  ;;  %5735 = vmatmul.mubr.bf16.gmra.mrb[116].mxu1 %v16559_v49 }
 0x407   :  { %5358 = vmatprep.mubr.bf16.mxu0 %v16573_v13  ;;  %5744 = vmatprep.mubr.bf16.mxu1 %v16573_v13 }
 0x40e   :  { %5359 = vmatmul.mubr.bf16.gmra.mrb[120].mxu0 %v16571_v50  ;;  %5745 = vmatmul.mubr.bf16.gmra.mrb[120].mxu1 %v16571_v50 }
 0x40f   :  { %5368 = vmatprep.mubr.bf16.mxu0 %v16585_v62  ;;  %5754 = vmatprep.mubr.bf16.mxu1 %v16585_v62 }
 0x416   :  { %5369 = vmatmul.mubr.bf16.gmra.mrb[124].mxu0 %v16583_v9  ;;  %5755 = vmatmul.mubr.bf16.gmra.mrb[124].mxu1 %v16583_v9 }
 0x471   :  { %v5220_v20 = vpop.f32.mrb[64].mxu0  ;;  %v5606_v60 = vpop.f32.mrb[64].mxu1 }
 0x472   :  { %v13361_v1 = vadd.f32 %v5220_v20, %v16655_v47  ;;  %v13425_v53 = vadd.f32 %v5606_v60, %v16658_v28  ;;  %v5222_v61 = vpop.f32.mrb[65].mxu0  ;;  %v5608_v49 = vpop.f32.mrb[65].mxu1 }
 0x473   :  { %v13362_v56 = vadd.f32 %v5222_v61, %v16661_v32  ;;  %v13426_v50 = vadd.f32 %v5608_v49, %v16664_v15  ;;  %v5224_v13 = vpop.f32.mrb[66].mxu0  ;;  %v5610_v31 = vpop.f32.mrb[66].mxu1 }
 0x474   :  { %v13363_v34 = vadd.f32 %v5224_v13, %v16655_v47  ;;  %v13427_v35 = vadd.f32 %v5610_v31, %v16658_v28  ;;  %v5226_v36 = vpop.f32.mrb[67].mxu0  ;;  %v5612_v37 = vpop.f32.mrb[67].mxu1  ;;  %v5765_v43 = vmax.f32 %v13361_v1, 0.0  ;;  %v5767_v54 = vmax.f32 %v13425_v53, 0.0 }
 0x475   :  { %v13364_v39 = vadd.f32 %v5226_v36, %v16661_v32  ;;  %v13428_v40 = vadd.f32 %v5612_v37, %v16664_v15  ;;  %v5766_v10 = vmax.f32 %v13362_v56, 0.0  ;;  %v5768_v11 = vmax.f32 %v13426_v50, 0.0  ;;  %v15289_v56 = vld [vmem:[#allocation10 + $0x120] ss:$8 sps:$4 sm:$0xff]   ;;  %v15294_v36 = vld [vmem:[#allocation10 + $0x134] ss:$8 sps:$4 sm:$0xff]  }
 0x476   :  { %v5769_v55 = vmax.f32 %v13363_v34, 0.0  ;;  %v5771_v9 = vmax.f32 %v13427_v35, 0.0 }
 0x477   :  { %v5770_v62 = vmax.f32 %v13364_v39, 0.0  ;;  %v5772_v12 = vmax.f32 %v13428_v40, 0.0 }
 0x478   :  { %v5893_v45 = vpack.c.bf16 %v5769_v55, %v5765_v43  ;;  %v16674_v46 = vpack.c.bf16 %v5771_v9, %v5767_v54 }
 0x479   :  { %v5894_v17 = vpack.c.bf16 %v5770_v62, %v5766_v10  ;;  %v5230_v52 = vpop.f32.mrb[68].mxu0  ;;  %v5616_v38 = vpop.f32.mrb[68].mxu1  ;;  %v16676_v25 = vpack.c.bf16 %v5772_v12, %v5768_v11  ;;  %v15292_v12 = vld [vmem:[#allocation10 + $0x130] ss:$8 sps:$4 sm:$0xff]  }
 0x47a   :  { %v13365_v18 = vadd.f32 %v5230_v52, %v16655_v47  ;;  %v13429_v19 = vadd.f32 %v5616_v38, %v16658_v28  ;;  %v5232_v63 = vpop.f32.mrb[69].mxu0  ;;  %v5618_v6 = vpop.f32.mrb[69].mxu1  ;;  %v15297_v52 = vld [vmem:[#allocation10 + $0x144] ss:$8 sps:$4 sm:$0xff]  }
 0x47b   :  { %v13366_v57 = vadd.f32 %v5232_v63, %v16661_v32  ;;  %v13430_v48 = vadd.f32 %v5618_v6, %v16664_v15  ;;  %v5234_v16 = vpop.f32.mrb[70].mxu0  ;;  %v5620_v22 = vpop.f32.mrb[70].mxu1  ;;  %6385 = vmatprep.mubr.bf16.mxu0 %v5894_v17 }
 0x47c   :  { %v13367_v41 = vadd.f32 %v5234_v16, %v16655_v47  ;;  %v13431_v33 = vadd.f32 %v5620_v22, %v16658_v28  ;;  %v5236_v23 = vpop.f32.mrb[71].mxu0  ;;  %v5622_v24 = vpop.f32.mrb[71].mxu1  ;;  %6386 = vmatmul.mubr.bf16.vlgmr.msra.gmra.mrb[128].mxu0 %v5893_v45  ;;  %v5773_v29 = vmax.f32 %v13365_v18, 0.0  ;;  %v5775_v30 = vmax.f32 %v13429_v19, 0.0 }
 0x47d   :  { %v13368_v27 = vadd.f32 %v5236_v23, %v16661_v32  ;;  %v13432_v21 = vadd.f32 %v5622_v24, %v16664_v15  ;;  %6547 = vmatpush1.bf16.msra.mxu0 %v15283_v44  ;;  %v5774_v51 = vmax.f32 %v13366_v57, 0.0  ;;  %v5776_v42 = vmax.f32 %v13430_v48, 0.0 }
 0x47e   :  { %v5777_v14 = vmax.f32 %v13367_v41, 0.0  ;;  %6548 = vmatprep.subr.bf16.mxu0 %v15288_v0  ;;  %v5779_v59 = vmax.f32 %v13431_v33, 0.0  ;;  %v15295_v41 = vld [vmem:[#allocation10 + $0x140] ss:$8 sps:$4 sm:$0xff]  }
 0x47f   :  { %v5778_v58 = vmax.f32 %v13368_v27, 0.0  ;;  %v5780_v20 = vmax.f32 %v13432_v21, 0.0 }
 0x480   :  { %v5897_v60 = vpack.c.bf16 %v5777_v14, %v5773_v29  ;;  %v16686_v1 = vpack.c.bf16 %v5779_v59, %v5775_v30 }
 0x481   :  { %v5898_v53 = vpack.c.bf16 %v5778_v58, %v5774_v51  ;;  %v5240_v61 = vpop.f32.mrb[72].mxu0  ;;  %v5626_v49 = vpop.f32.mrb[72].mxu1  ;;  %6549 = vmatpush1.bf16.msra.mxu0 %v15286_v26  ;;  %v16688_v50 = vpack.c.bf16 %v5780_v20, %v5776_v42  ;;  %v15300_v26 = vld [vmem:[#allocation10 + $0x154] ss:$8 sps:$4 sm:$0xff]  }
 0x482   :  { %v13369_v13 = vadd.f32 %v5240_v61, %v16655_v47  ;;  %v13433_v31 = vadd.f32 %v5626_v49, %v16658_v28  ;;  %v5242_v34 = vpop.f32.mrb[73].mxu0  ;;  %v5628_v35 = vpop.f32.mrb[73].mxu1  ;;  %6550 = vmatprep.subr.bf16.mxu0 %v15291_v2 }
 0x483   :  { %v13370_v37 = vadd.f32 %v5242_v34, %v16661_v32  ;;  %v13434_v39 = vadd.f32 %v5628_v35, %v16664_v15  ;;  %v5244_v40 = vpop.f32.mrb[74].mxu0  ;;  %v5630_v43 = vpop.f32.mrb[74].mxu1  ;;  %6395 = vmatprep.mubr.bf16.mxu0 %v5898_v53  ;;  %v15298_v53 = vld [vmem:[#allocation10 + $0x150] ss:$8 sps:$4 sm:$0xff]  }
 0x484   :  { %v13371_v54 = vadd.f32 %v5244_v40, %v16655_v47  ;;  %v13435_v55 = vadd.f32 %v5630_v43, %v16658_v28  ;;  %v5246_v9 = vpop.f32.mrb[75].mxu0  ;;  %v5632_v10 = vpop.f32.mrb[75].mxu1  ;;  %6396 = vmatmul.mubr.bf16.gmra.mrb[132].mxu0 %v5897_v60  ;;  %v5781_v45 = vmax.f32 %v13369_v13, 0.0  ;;  %v5783_v38 = vmax.f32 %v13433_v31, 0.0 }
 0x485   :  { %v13372_v62 = vadd.f32 %v5246_v9, %v16661_v32  ;;  %v13436_v11 = vadd.f32 %v5632_v10, %v16664_v15  ;;  %6551 = vmatpush1.bf16.msra.mxu0 %v15289_v56  ;;  %v5782_v18 = vmax.f32 %v13370_v37, 0.0  ;;  %v5784_v63 = vmax.f32 %v13434_v39, 0.0  ;;  %v15303_v56 = vld [vmem:[#allocation10 + $0x164] ss:$8 sps:$4 sm:$0xff]   ;;  %v15301_v9 = vld [vmem:[#allocation10 + $0x160] ss:$8 sps:$4 sm:$0xff]  }
 0x486   :  { %v5785_v17 = vmax.f32 %v13371_v54, 0.0  ;;  %6552 = vmatprep.subr.bf16.mxu0 %v15294_v36  ;;  %v5787_v44 = vmax.f32 %v13435_v55, 0.0 }
 0x487   :  { %v5786_v19 = vmax.f32 %v13372_v62, 0.0  ;;  %v5788_v6 = vmax.f32 %v13436_v11, 0.0 }
 0x488   :  { %v5901_v0 = vpack.c.bf16 %v5785_v17, %v5781_v45  ;;  %v16698_v57 = vpack.c.bf16 %v5787_v44, %v5783_v38  ;;  %v15306_v17 = vld [vmem:[#allocation10 + $0x174] ss:$8 sps:$4 sm:$0xff]  }
 0x489   :  { %v5902_v48 = vpack.c.bf16 %v5786_v19, %v5782_v18  ;;  %v5250_v16 = vpop.f32.mrb[76].mxu0  ;;  %v5636_v22 = vpop.f32.mrb[76].mxu1  ;;  %6553 = vmatpush1.bf16.msra.mxu0 %v15292_v12  ;;  %v16700_v33 = vpack.c.bf16 %v5788_v6, %v5784_v63 }
 0x48a   :  { %v13373_v23 = vadd.f32 %v5250_v16, %v16655_v47  ;;  %v13437_v24 = vadd.f32 %v5636_v22, %v16658_v28  ;;  %v5252_v27 = vpop.f32.mrb[77].mxu0  ;;  %v5638_v21 = vpop.f32.mrb[77].mxu1  ;;  %6554 = vmatprep.subr.bf16.mxu0 %v15297_v52  ;;  %v15304_v22 = vld [vmem:[#allocation10 + $0x170] ss:$8 sps:$4 sm:$0xff]  }
 0x48b   :  { %v13374_v29 = vadd.f32 %v5252_v27, %v16661_v32  ;;  %v13438_v14 = vadd.f32 %v5638_v21, %v16664_v15  ;;  %v5254_v2 = vpop.f32.mrb[78].mxu0  ;;  %v5640_v30 = vpop.f32.mrb[78].mxu1  ;;  %6405 = vmatprep.mubr.bf16.mxu0 %v5902_v48 }
 0x48c   :  { %v13375_v59 = vadd.f32 %v5254_v2, %v16655_v47  ;;  %v13439_v51 = vadd.f32 %v5640_v30, %v16658_v28  ;;  %v5256_v58 = vpop.f32.mrb[79].mxu0  ;;  %v5642_v42 = vpop.f32.mrb[79].mxu1  ;;  %6406 = vmatmul.mubr.bf16.gmra.mrb[136].mxu0 %v5901_v0  ;;  %v5789_v61 = vmax.f32 %v13373_v23, 0.0  ;;  %v5791_v13 = vmax.f32 %v13437_v24, 0.0  ;;  %v15309_v24 = vld [vmem:[#allocation10 + $0x184] ss:$8 sps:$4 sm:$0xff]  }
 0x48d   :  { %v13376_v20 = vadd.f32 %v5256_v58, %v16661_v32  ;;  %v13440_v60 = vadd.f32 %v5642_v42, %v16664_v15  ;;  %6555 = vmatpush1.bf16.msra.mxu0 %v15295_v41  ;;  %v5790_v34 = vmax.f32 %v13374_v29, 0.0  ;;  %v5792_v36 = vmax.f32 %v13438_v14, 0.0 }
 0x48e   :  { %v5793_v49 = vmax.f32 %v13375_v59, 0.0  ;;  %6556 = vmatprep.subr.bf16.mxu0 %v15300_v26  ;;  %v5795_v31 = vmax.f32 %v13439_v51, 0.0 }
 0x48f   :  { %v5794_v35 = vmax.f32 %v13376_v20, 0.0  ;;  %v5796_v37 = vmax.f32 %v13440_v60, 0.0  ;;  %v15307_v20 = vld [vmem:[#allocation10 + $0x180] ss:$8 sps:$4 sm:$0xff]  }
 0x490   :  { %v5905_v39 = vpack.c.bf16 %v5793_v49, %v5789_v61  ;;  %v16710_v40 = vpack.c.bf16 %v5795_v31, %v5791_v13  ;;  %v15312_v13 = vld [vmem:[#allocation10 + $0x194] ss:$8 sps:$4 sm:$0xff]  }
 0x491   :  { %v5906_v43 = vpack.c.bf16 %v5794_v35, %v5790_v34  ;;  %v5260_v54 = vpop.f32.mrb[80].mxu0  ;;  %v5646_v55 = vpop.f32.mrb[80].mxu1  ;;  %6557 = vmatpush1.bf16.msra.mxu0 %v15298_v53  ;;  %v16712_v10 = vpack.c.bf16 %v5796_v37, %v5792_v36 }
 0x492   :  { %v13377_v62 = vadd.f32 %v5260_v54, %v16655_v47  ;;  %v13441_v11 = vadd.f32 %v5646_v55, %v16658_v28  ;;  %v5262_v12 = vpop.f32.mrb[81].mxu0  ;;  %v5648_v45 = vpop.f32.mrb[81].mxu1  ;;  %6558 = vmatprep.subr.bf16.mxu0 %v15303_v56 }
 0x493   :  { %v13378_v52 = vadd.f32 %v5262_v12, %v16661_v32  ;;  %v13442_v38 = vadd.f32 %v5648_v45, %v16664_v15  ;;  %v5264_v44 = vpop.f32.mrb[82].mxu0  ;;  %v5650_v18 = vpop.f32.mrb[82].mxu1  ;;  %6415 = vmatprep.mubr.bf16.mxu0 %v5906_v43  ;;  %v15315_v45 = vld [vmem:[#allocation10 + $0x1a4] ss:$8 sps:$4 sm:$0xff]  }
 0x494   :  { %v13379_v19 = vadd.f32 %v5264_v44, %v16655_v47  ;;  %v13443_v63 = vadd.f32 %v5650_v18, %v16658_v28  ;;  %v5266_v6 = vpop.f32.mrb[83].mxu0  ;;  %v5652_v0 = vpop.f32.mrb[83].mxu1  ;;  %6416 = vmatmul.mubr.bf16.gmra.mrb[140].mxu0 %v5905_v39  ;;  %v5797_v41 = vmax.f32 %v13377_v62, 0.0  ;;  %v5799_v27 = vmax.f32 %v13441_v11, 0.0  ;;  %v15310_v62 = vld [vmem:[#allocation10 + $0x190] ss:$8 sps:$4 sm:$0xff]  }
 0x495   :  { %v13380_v48 = vadd.f32 %v5266_v6, %v16661_v32  ;;  %v13444_v16 = vadd.f32 %v5652_v0, %v16664_v15  ;;  %6559 = vmatpush1.bf16.msra.mxu0 %v15301_v9  ;;  %v5798_v26 = vmax.f32 %v13378_v52, 0.0  ;;  %v5800_v14 = vmax.f32 %v13442_v38, 0.0 }
 0x496   :  { %v5801_v23 = vmax.f32 %v13379_v19, 0.0  ;;  %6560 = vmatprep.subr.bf16.mxu0 %v15306_v17  ;;  %v5803_v21 = vmax.f32 %v13443_v63, 0.0 }
 0x497   :  { %v5802_v29 = vmax.f32 %v13380_v48, 0.0  ;;  %v5804_v2 = vmax.f32 %v13444_v16, 0.0 }
 0x498   :  { %v5909_v30 = vpack.c.bf16 %v5801_v23, %v5797_v41  ;;  %v16722_v59 = vpack.c.bf16 %v5803_v21, %v5799_v27 }
 0x499   :  { %v5910_v51 = vpack.c.bf16 %v5802_v29, %v5798_v26  ;;  %v5270_v58 = vpop.f32.mrb[84].mxu0  ;;  %v5656_v42 = vpop.f32.mrb[84].mxu1  ;;  %6561 = vmatpush1.bf16.msra.mxu0 %v15304_v22  ;;  %v16724_v60 = vpack.c.bf16 %v5804_v2, %v5800_v14  ;;  %v15313_v22 = vld [vmem:[#allocation10 + $0x1a0] ss:$8 sps:$4 sm:$0xff]   ;;  %v15318_v26 = vld [vmem:[#allocation10 + $0x1b4] ss:$8 sps:$4 sm:$0xff]  }
 0x49a   :  { %v13381_v53 = vadd.f32 %v5270_v58, %v16655_v47  ;;  %v13445_v61 = vadd.f32 %v5656_v42, %v16658_v28  ;;  %v5272_v49 = vpop.f32.mrb[85].mxu0  ;;  %v5658_v56 = vpop.f32.mrb[85].mxu1  ;;  %6562 = vmatprep.subr.bf16.mxu0 %v15309_v24 }
 0x49b   :  { %v13382_v31 = vadd.f32 %v5272_v49, %v16661_v32  ;;  %v13446_v34 = vadd.f32 %v5658_v56, %v16664_v15  ;;  %v5274_v35 = vpop.f32.mrb[86].mxu0  ;;  %v5660_v36 = vpop.f32.mrb[86].mxu1  ;;  %6425 = vmatprep.mubr.bf16.mxu0 %v5910_v51  ;;  %v15316_v49 = vld [vmem:[#allocation10 + $0x1b0] ss:$8 sps:$4 sm:$0xff]  }
 0x49c   :  { %v13383_v37 = vadd.f32 %v5274_v35, %v16655_v47  ;;  %v13447_v39 = vadd.f32 %v5660_v36, %v16658_v28  ;;  %v5276_v43 = vpop.f32.mrb[87].mxu0  ;;  %v5662_v54 = vpop.f32.mrb[87].mxu1  ;;  %6426 = vmatmul.mubr.bf16.gmra.mrb[144].mxu0 %v5909_v30  ;;  %v5805_v11 = vmax.f32 %v13381_v53, 0.0  ;;  %v5807_v17 = vmax.f32 %v13445_v61, 0.0 }
 0x49d   :  { %v13384_v55 = vadd.f32 %v5276_v43, %v16661_v32  ;;  %v13448_v9 = vadd.f32 %v5662_v54, %v16664_v15  ;;  %6563 = vmatpush1.bf16.msra.mxu0 %v15307_v20  ;;  %v5806_v38 = vmax.f32 %v13382_v31, 0.0  ;;  %v5808_v18 = vmax.f32 %v13446_v34, 0.0  ;;  %v15321_v31 = vld [vmem:[#allocation10 + $0x1c4] ss:$8 sps:$4 sm:$0xff]  }
 0x49e   :  { %v5809_v12 = vmax.f32 %v13383_v37, 0.0  ;;  %6564 = vmatprep.subr.bf16.mxu0 %v15312_v13  ;;  %v5811_v52 = vmax.f32 %v13447_v39, 0.0 }
 0x49f   :  { %v5810_v44 = vmax.f32 %v13384_v55, 0.0  ;;  %v5812_v19 = vmax.f32 %v13448_v9, 0.0 }
 0x4a0   :  { %v5913_v63 = vpack.c.bf16 %v5809_v12, %v5805_v11  ;;  %v16734_v6 = vpack.c.bf16 %v5811_v52, %v5807_v17  ;;  %v15319_v12 = vld [vmem:[#allocation10 + $0x1c0] ss:$8 sps:$4 sm:$0xff]  }
 0x4a1   :  { %v5914_v0 = vpack.c.bf16 %v5810_v44, %v5806_v38  ;;  %v5280_v48 = vpop.f32.mrb[88].mxu0  ;;  %v5666_v16 = vpop.f32.mrb[88].mxu1  ;;  %6565 = vmatpush1.bf16.msra.mxu0 %v15310_v62  ;;  %v16736_v41 = vpack.c.bf16 %v5812_v19, %v5808_v18  ;;  %v15324_v18 = vld [vmem:[#allocation10 + $0x1d4] ss:$8 sps:$4 sm:$0xff]  }
 0x4a2   :  { %v13385_v23 = vadd.f32 %v5280_v48, %v16655_v47  ;;  %v13449_v24 = vadd.f32 %v5666_v16, %v16658_v28  ;;  %v5282_v27 = vpop.f32.mrb[89].mxu0  ;;  %v5668_v21 = vpop.f32.mrb[89].mxu1  ;;  %6566 = vmatprep.subr.bf16.mxu0 %v15315_v45 }
 0x4a3   :  { %v13386_v29 = vadd.f32 %v5282_v27, %v16661_v32  ;;  %v13450_v14 = vadd.f32 %v5668_v21, %v16664_v15  ;;  %v5284_v2 = vpop.f32.mrb[90].mxu0  ;;  %v5670_v30 = vpop.f32.mrb[90].mxu1  ;;  %6435 = vmatprep.mubr.bf16.mxu0 %v5914_v0 }
 0x4a4   :  { %v13387_v51 = vadd.f32 %v5284_v2, %v16655_v47  ;;  %v13451_v58 = vadd.f32 %v5670_v30, %v16658_v28  ;;  %v5286_v42 = vpop.f32.mrb[91].mxu0  ;;  %v5672_v20 = vpop.f32.mrb[91].mxu1  ;;  %6436 = vmatmul.mubr.bf16.gmra.mrb[148].mxu0 %v5913_v63  ;;  %v5813_v56 = vmax.f32 %v13385_v23, 0.0  ;;  %v5815_v34 = vmax.f32 %v13449_v24, 0.0  ;;  %v15327_v2 = vld [vmem:[#allocation10 + $0x1e4] ss:$8 sps:$4 sm:$0xff]  }
 0x4a5   :  { %v13388_v53 = vadd.f32 %v5286_v42, %v16661_v32  ;;  %v13452_v61 = vadd.f32 %v5672_v20, %v16664_v15  ;;  %6567 = vmatpush1.bf16.msra.mxu0 %v15313_v22  ;;  %v5814_v36 = vmax.f32 %v13386_v29, 0.0  ;;  %v5816_v39 = vmax.f32 %v13450_v14, 0.0 }
 0x4a6   :  { %v5817_v13 = vmax.f32 %v13387_v51, 0.0  ;;  %6568 = vmatprep.subr.bf16.mxu0 %v15318_v26  ;;  %v5819_v35 = vmax.f32 %v13451_v58, 0.0  ;;  %v15322_v26 = vld [vmem:[#allocation10 + $0x1d0] ss:$8 sps:$4 sm:$0xff]  }
 0x4a7   :  { %v5818_v37 = vmax.f32 %v13388_v53, 0.0  ;;  %v5820_v43 = vmax.f32 %v13452_v61, 0.0 }
 0x4a8   :  { %v5917_v54 = vpack.c.bf16 %v5817_v13, %v5813_v56  ;;  %v16746_v55 = vpack.c.bf16 %v5819_v35, %v5815_v34  ;;  %v15325_v34 = vld [vmem:[#allocation10 + $0x1e0] ss:$8 sps:$4 sm:$0xff]  }
 0x4a9   :  { %v5918_v9 = vpack.c.bf16 %v5818_v37, %v5814_v36  ;;  %v5290_v62 = vpop.f32.mrb[92].mxu0  ;;  %v5676_v11 = vpop.f32.mrb[92].mxu1  ;;  %6569 = vmatpush1.bf16.msra.mxu0 %v15316_v49  ;;  %v16748_v45 = vpack.c.bf16 %v5820_v43, %v5816_v39 }
 0x4aa   :  { %v13389_v17 = vadd.f32 %v5290_v62, %v16655_v47  ;;  %v13453_v52 = vadd.f32 %v5676_v11, %v16658_v28  ;;  %v5292_v38 = vpop.f32.mrb[93].mxu0  ;;  %v5678_v44 = vpop.f32.mrb[93].mxu1  ;;  %6570 = vmatprep.subr.bf16.mxu0 %v15321_v31 }
 0x4ab   :  { %v13390_v19 = vadd.f32 %v5292_v38, %v16661_v32  ;;  %v13454_v63 = vadd.f32 %v5678_v44, %v16664_v15  ;;  %v5294_v0 = vpop.f32.mrb[94].mxu0  ;;  %v5680_v48 = vpop.f32.mrb[94].mxu1  ;;  %6445 = vmatprep.mubr.bf16.mxu0 %v5918_v9 }
 0x4ac   :  { %v13391_v16 = vadd.f32 %v5294_v0, %v16655_v47  ;;  %v13455_v22 = vadd.f32 %v5680_v48, %v16658_v28  ;;  %v5296_v23 = vpop.f32.mrb[95].mxu0  ;;  %v5682_v24 = vpop.f32.mrb[95].mxu1  ;;  %6446 = vmatmul.mubr.bf16.gmra.mrb[152].mxu0 %v5917_v54  ;;  %v5821_v29 = vmax.f32 %v13389_v17, 0.0  ;;  %v5823_v30 = vmax.f32 %v13453_v52, 0.0  ;;  %v15330_v54 = vld [vmem:[#allocation10 + $0x1f4] ss:$8 sps:$4 sm:$0xff]  }
 0x4ad   :  { %v13392_v27 = vadd.f32 %v5296_v23, %v16661_v32  ;;  %v13456_v21 = vadd.f32 %v5682_v24, %v16664_v15  ;;  %6571 = vmatpush1.bf16.msra.mxu0 %v15319_v12  ;;  %v5822_v58 = vmax.f32 %v13390_v19, 0.0  ;;  %v5824_v20 = vmax.f32 %v13454_v63, 0.0  ;;  %v15328_v63 = vld [vmem:[#allocation10 + $0x1f0] ss:$8 sps:$4 sm:$0xff]  }
 0x4ae   :  { %v5825_v14 = vmax.f32 %v13391_v16, 0.0  ;;  %6572 = vmatprep.subr.bf16.mxu0 %v15324_v18  ;;  %v5827_v51 = vmax.f32 %v13455_v22, 0.0 }
 0x4af   :  { %v5826_v42 = vmax.f32 %v13392_v27, 0.0  ;;  %v5828_v53 = vmax.f32 %v13456_v21, 0.0 }
 0x4b0   :  { %v5921_v61 = vpack.c.bf16 %v5825_v14, %v5821_v29  ;;  %v16758_v49 = vpack.c.bf16 %v5827_v51, %v5823_v30 }
 0x4b1   :  { %v5922_v56 = vpack.c.bf16 %v5826_v42, %v5822_v58  ;;  %v5300_v13 = vpop.f32.mrb[96].mxu0  ;;  %v5686_v31 = vpop.f32.mrb[96].mxu1  ;;  %6573 = vmatpush1.bf16.msra.mxu0 %v15322_v26  ;;  %v16760_v35 = vpack.c.bf16 %v5828_v53, %v5824_v20 }
 0x4b2   :  { %v13393_v36 = vadd.f32 %v5300_v13, %v16655_v47  ;;  %v13457_v37 = vadd.f32 %v5686_v31, %v16658_v28  ;;  %v5302_v39 = vpop.f32.mrb[97].mxu0  ;;  %v5688_v43 = vpop.f32.mrb[97].mxu1  ;;  %6574 = vmatprep.subr.bf16.mxu0 %v15327_v2 }
 0x4b3   :  { %v13394_v9 = vadd.f32 %v5302_v39, %v16661_v32  ;;  %v13458_v62 = vadd.f32 %v5688_v43, %v16664_v15  ;;  %v5304_v11 = vpop.f32.mrb[98].mxu0  ;;  %v5690_v12 = vpop.f32.mrb[98].mxu1  ;;  %6455 = vmatprep.mubr.bf16.mxu0 %v5922_v56 }
 0x4b4   :  { %v13395_v17 = vadd.f32 %v5304_v11, %v16655_v47  ;;  %v13459_v52 = vadd.f32 %v5690_v12, %v16658_v28  ;;  %v5306_v38 = vpop.f32.mrb[99].mxu0  ;;  %v5692_v44 = vpop.f32.mrb[99].mxu1  ;;  %6456 = vmatmul.mubr.bf16.gmra.mrb[156].mxu0 %v5921_v61  ;;  %v5829_v0 = vmax.f32 %v13393_v36, 0.0  ;;  %v5831_v16 = vmax.f32 %v13457_v37, 0.0 }
 0x4b5   :  { %v13396_v18 = vadd.f32 %v5306_v38, %v16661_v32  ;;  %v13460_v19 = vadd.f32 %v5692_v44, %v16664_v15  ;;  %6575 = vmatpush1.bf16.msra.mxu0 %v15325_v34  ;;  %v5830_v23 = vmax.f32 %v13394_v9, 0.0  ;;  %v5832_v27 = vmax.f32 %v13458_v62, 0.0 }
 0x4b6   :  { %v5833_v48 = vmax.f32 %v13395_v17, 0.0  ;;  %6576 = vmatprep.subr.bf16.mxu0 %v15330_v54  ;;  %v5835_v22 = vmax.f32 %v13459_v52, 0.0 }
 0x4b7   :  { %v5834_v24 = vmax.f32 %v13396_v18, 0.0  ;;  %v5836_v21 = vmax.f32 %v13460_v19, 0.0 }
 0x4b8   :  { %v5925_v26 = vpack.c.bf16 %v5833_v48, %v5829_v0  ;;  %v16770_v29 = vpack.c.bf16 %v5835_v22, %v5831_v16 }
 0x4b9   :  { %v5926_v14 = vpack.c.bf16 %v5834_v24, %v5830_v23  ;;  %v5310_v2 = vpop.f32.mrb[100].mxu0  ;;  %v5696_v30 = vpop.f32.mrb[100].mxu1  ;;  %6577 = vmatpush1.bf16.msra.mxu0 %v15328_v63  ;;  %v16772_v51 = vpack.c.bf16 %v5836_v21, %v5832_v27 }
 0x4ba   :  { %v13397_v58 = vadd.f32 %v5310_v2, %v16655_v47  ;;  %v13461_v42 = vadd.f32 %v5696_v30, %v16658_v28  ;;  %v5312_v20 = vpop.f32.mrb[101].mxu0  ;;  %v5698_v53 = vpop.f32.mrb[101].mxu1 }
 0x4bb   :  { %v13398_v61 = vadd.f32 %v5312_v20, %v16661_v32  ;;  %v13462_v56 = vadd.f32 %v5698_v53, %v16664_v15  ;;  %v5314_v13 = vpop.f32.mrb[102].mxu0  ;;  %v5700_v31 = vpop.f32.mrb[102].mxu1  ;;  %6465 = vmatprep.mubr.bf16.mxu0 %v5926_v14 }
 0x4bc   :  { %v13399_v34 = vadd.f32 %v5314_v13, %v16655_v47  ;;  %v13463_v36 = vadd.f32 %v5700_v31, %v16658_v28  ;;  %v5316_v37 = vpop.f32.mrb[103].mxu0  ;;  %v5702_v39 = vpop.f32.mrb[103].mxu1  ;;  %6466 = vmatmul.mubr.bf16.gmra.mrb[160].mxu0 %v5925_v26  ;;  %v5837_v9 = vmax.f32 %v13397_v58, 0.0  ;;  %v5839_v11 = vmax.f32 %v13461_v42, 0.0 }
 0x4bd   :  { %v13400_v43 = vadd.f32 %v5316_v37, %v16661_v32  ;;  %v13464_v54 = vadd.f32 %v5702_v39, %v16664_v15  ;;  %v5838_v17 = vmax.f32 %v13398_v61, 0.0  ;;  %v5840_v38 = vmax.f32 %v13462_v56, 0.0 }
 0x4be   :  { %v5841_v62 = vmax.f32 %v13399_v34, 0.0  ;;  %v5843_v12 = vmax.f32 %v13463_v36, 0.0 }
 0x4bf   :  { %v5842_v52 = vmax.f32 %v13400_v43, 0.0  ;;  %v5844_v44 = vmax.f32 %v13464_v54, 0.0 }
 0x4c0   :  { %v5929_v18 = vpack.c.bf16 %v5841_v62, %v5837_v9  ;;  %v16782_v19 = vpack.c.bf16 %v5843_v12, %v5839_v11 }
 0x4c1   :  { %v5930_v63 = vpack.c.bf16 %v5842_v52, %v5838_v17  ;;  %v5320_v0 = vpop.f32.mrb[104].mxu0  ;;  %v5706_v48 = vpop.f32.mrb[104].mxu1  ;;  %v16784_v16 = vpack.c.bf16 %v5844_v44, %v5840_v38 }
 0x4c2   :  { %v13401_v22 = vadd.f32 %v5320_v0, %v16655_v47  ;;  %v13465_v23 = vadd.f32 %v5706_v48, %v16658_v28  ;;  %v5322_v24 = vpop.f32.mrb[105].mxu0  ;;  %v5708_v27 = vpop.f32.mrb[105].mxu1 }
 0x4c3   :  { %v13402_v21 = vadd.f32 %v5322_v24, %v16661_v32  ;;  %v13466_v26 = vadd.f32 %v5708_v27, %v16664_v15  ;;  %v5324_v14 = vpop.f32.mrb[106].mxu0  ;;  %v5710_v2 = vpop.f32.mrb[106].mxu1  ;;  %6475 = vmatprep.mubr.bf16.mxu0 %v5930_v63 }
 0x4c4   :  { %v13403_v30 = vadd.f32 %v5324_v14, %v16655_v47  ;;  %v13467_v58 = vadd.f32 %v5710_v2, %v16658_v28  ;;  %v5326_v42 = vpop.f32.mrb[107].mxu0  ;;  %v5712_v20 = vpop.f32.mrb[107].mxu1  ;;  %6476 = vmatmul.mubr.bf16.gmra.mrb[164].mxu0 %v5929_v18  ;;  %v5845_v56 = vmax.f32 %v13401_v22, 0.0  ;;  %v5847_v31 = vmax.f32 %v13465_v23, 0.0 }
 0x4c5   :  { %v13404_v53 = vadd.f32 %v5326_v42, %v16661_v32  ;;  %v13468_v61 = vadd.f32 %v5712_v20, %v16664_v15  ;;  %v5846_v36 = vmax.f32 %v13402_v21, 0.0  ;;  %v5848_v39 = vmax.f32 %v13466_v26, 0.0 }
 0x4c6   :  { %v5849_v13 = vmax.f32 %v13403_v30, 0.0  ;;  %v5851_v34 = vmax.f32 %v13467_v58, 0.0 }
 0x4c7   :  { %v5850_v37 = vmax.f32 %v13404_v53, 0.0  ;;  %v5852_v43 = vmax.f32 %v13468_v61, 0.0 }
 0x4c8   :  { %v5933_v54 = vpack.c.bf16 %v5849_v13, %v5845_v56  ;;  %v16794_v9 = vpack.c.bf16 %v5851_v34, %v5847_v31 }
 0x4c9   :  { %v5934_v62 = vpack.c.bf16 %v5850_v37, %v5846_v36  ;;  %v5330_v11 = vpop.f32.mrb[108].mxu0  ;;  %v5716_v12 = vpop.f32.mrb[108].mxu1  ;;  %v16796_v17 = vpack.c.bf16 %v5852_v43, %v5848_v39 }
 0x4ca   :  { %v13405_v52 = vadd.f32 %v5330_v11, %v16655_v47  ;;  %v13469_v38 = vadd.f32 %v5716_v12, %v16658_v28  ;;  %v5332_v44 = vpop.f32.mrb[109].mxu0  ;;  %v5718_v18 = vpop.f32.mrb[109].mxu1 }
 0x4cb   :  { %v13406_v63 = vadd.f32 %v5332_v44, %v16661_v32  ;;  %v13470_v0 = vadd.f32 %v5718_v18, %v16664_v15  ;;  %v5334_v48 = vpop.f32.mrb[110].mxu0  ;;  %v5720_v22 = vpop.f32.mrb[110].mxu1  ;;  %6485 = vmatprep.mubr.bf16.mxu0 %v5934_v62 }
 0x4cc   :  { %v13407_v23 = vadd.f32 %v5334_v48, %v16655_v47  ;;  %v13471_v24 = vadd.f32 %v5720_v22, %v16658_v28  ;;  %v5336_v27 = vpop.f32.mrb[111].mxu0  ;;  %v5722_v21 = vpop.f32.mrb[111].mxu1  ;;  %6486 = vmatmul.mubr.bf16.gmra.mrb[168].mxu0 %v5933_v54  ;;  %v5853_v2 = vmax.f32 %v13405_v52, 0.0  ;;  %v5855_v58 = vmax.f32 %v13469_v38, 0.0 }
 0x4cd   :  { %v13408_v26 = vadd.f32 %v5336_v27, %v16661_v32  ;;  %v13472_v14 = vadd.f32 %v5722_v21, %v16664_v15  ;;  %v5854_v20 = vmax.f32 %v13406_v63, 0.0  ;;  %v5856_v61 = vmax.f32 %v13470_v0, 0.0 }
 0x4ce   :  { %v5857_v30 = vmax.f32 %v13407_v23, 0.0  ;;  %v5859_v42 = vmax.f32 %v13471_v24, 0.0 }
 0x4cf   :  { %v5858_v53 = vmax.f32 %v13408_v26, 0.0  ;;  %v5860_v56 = vmax.f32 %v13472_v14, 0.0 }
 0x4d0   :  { %v5937_v13 = vpack.c.bf16 %v5857_v30, %v5853_v2  ;;  %v16806_v31 = vpack.c.bf16 %v5859_v42, %v5855_v58 }
 0x4d1   :  { %v5938_v34 = vpack.c.bf16 %v5858_v53, %v5854_v20  ;;  %v5340_v36 = vpop.f32.mrb[112].mxu0  ;;  %v5726_v37 = vpop.f32.mrb[112].mxu1  ;;  %v16808_v39 = vpack.c.bf16 %v5860_v56, %v5856_v61 }
 0x4d2   :  { %v13409_v43 = vadd.f32 %v5340_v36, %v16655_v47  ;;  %v13473_v54 = vadd.f32 %v5726_v37, %v16658_v28  ;;  %v5342_v62 = vpop.f32.mrb[113].mxu0  ;;  %v5728_v11 = vpop.f32.mrb[113].mxu1 }
 0x4d3   :  { %v13410_v12 = vadd.f32 %v5342_v62, %v16661_v32  ;;  %v13474_v52 = vadd.f32 %v5728_v11, %v16664_v15  ;;  %v5344_v38 = vpop.f32.mrb[114].mxu0  ;;  %v5730_v44 = vpop.f32.mrb[114].mxu1  ;;  %6495 = vmatprep.mubr.bf16.mxu0 %v5938_v34 }
 0x4d4   :  { %v13411_v18 = vadd.f32 %v5344_v38, %v16655_v47  ;;  %v13475_v63 = vadd.f32 %v5730_v44, %v16658_v28  ;;  %v5346_v0 = vpop.f32.mrb[115].mxu0  ;;  %v5732_v48 = vpop.f32.mrb[115].mxu1  ;;  %6496 = vmatmul.mubr.bf16.gmra.mrb[172].mxu0 %v5937_v13  ;;  %v5861_v24 = vmax.f32 %v13409_v43, 0.0  ;;  %v5863_v21 = vmax.f32 %v13473_v54, 0.0 }
 0x4d5   :  { %v13412_v22 = vadd.f32 %v5346_v0, %v16661_v32  ;;  %v13476_v23 = vadd.f32 %v5732_v48, %v16664_v15  ;;  %v5862_v14 = vmax.f32 %v13410_v12, 0.0  ;;  %v5864_v30 = vmax.f32 %v13474_v52, 0.0 }
 0x4d6   :  { %v5865_v27 = vmax.f32 %v13411_v18, 0.0  ;;  %v5867_v26 = vmax.f32 %v13475_v63, 0.0 }
 0x4d7   :  { %v5866_v2 = vmax.f32 %v13412_v22, 0.0  ;;  %v5868_v58 = vmax.f32 %v13476_v23, 0.0 }
 0x4d8   :  { %v5941_v42 = vpack.c.bf16 %v5865_v27, %v5861_v24  ;;  %v16818_v20 = vpack.c.bf16 %v5867_v26, %v5863_v21 }
 0x4d9   :  { %v5942_v53 = vpack.c.bf16 %v5866_v2, %v5862_v14  ;;  %v5350_v61 = vpop.f32.mrb[116].mxu0  ;;  %v5736_v56 = vpop.f32.mrb[116].mxu1  ;;  %v16820_v34 = vpack.c.bf16 %v5868_v58, %v5864_v30 }
 0x4da   :  { %v13413_v13 = vadd.f32 %v5350_v61, %v16655_v47  ;;  %v13477_v36 = vadd.f32 %v5736_v56, %v16658_v28  ;;  %v5352_v37 = vpop.f32.mrb[117].mxu0  ;;  %v5738_v43 = vpop.f32.mrb[117].mxu1 }
 0x4db   :  { %v13414_v54 = vadd.f32 %v5352_v37, %v16661_v32  ;;  %v13478_v62 = vadd.f32 %v5738_v43, %v16664_v15  ;;  %v5354_v11 = vpop.f32.mrb[118].mxu0  ;;  %v5740_v12 = vpop.f32.mrb[118].mxu1  ;;  %6505 = vmatprep.mubr.bf16.mxu0 %v5942_v53 }
 0x4dc   :  { %v13415_v52 = vadd.f32 %v5354_v11, %v16655_v47  ;;  %v13479_v38 = vadd.f32 %v5740_v12, %v16658_v28  ;;  %v5356_v44 = vpop.f32.mrb[119].mxu0  ;;  %v5742_v18 = vpop.f32.mrb[119].mxu1  ;;  %6506 = vmatmul.mubr.bf16.gmra.mrb[176].mxu0 %v5941_v42  ;;  %v5869_v48 = vmax.f32 %v13413_v13, 0.0  ;;  %v5871_v23 = vmax.f32 %v13477_v36, 0.0 }
 0x4dd   :  { %v13416_v63 = vadd.f32 %v5356_v44, %v16661_v32  ;;  %v13480_v0 = vadd.f32 %v5742_v18, %v16664_v15  ;;  %v5870_v27 = vmax.f32 %v13414_v54, 0.0  ;;  %v5872_v26 = vmax.f32 %v13478_v62, 0.0 }
 0x4de   :  { %v5873_v22 = vmax.f32 %v13415_v52, 0.0  ;;  %v5875_v24 = vmax.f32 %v13479_v38, 0.0 }
 0x4df   :  { %v5874_v21 = vmax.f32 %v13416_v63, 0.0  ;;  %v5876_v14 = vmax.f32 %v13480_v0, 0.0  ;;  %v15331_v0 = vld [vmem:[#allocation11] ss:$16 sps:$4 sm:$0xff]  }
 0x4e0   :  { %v5945_v2 = vpack.c.bf16 %v5873_v22, %v5869_v48  ;;  %v16830_v30 = vpack.c.bf16 %v5875_v24, %v5871_v23  ;;  %v15333_v48 = vld [vmem:[#allocation11 + $0x4] ss:$16 sps:$4 sm:$0xff]  }
 0x4e1   :  { %v5946_v58 = vpack.c.bf16 %v5874_v21, %v5870_v27  ;;  %v5360_v53 = vpop.f32.mrb[120].mxu0  ;;  %v5746_v61 = vpop.f32.mrb[120].mxu1  ;;  %v16832_v56 = vpack.c.bf16 %v5876_v14, %v5872_v26  ;;  %7225 = vmatprep.subr.bf16.mxu1 %v15333_v48 }
 0x4e2   :  { %v13417_v42 = vadd.f32 %v5360_v53, %v16655_v47  ;;  %v13481_v37 = vadd.f32 %v5746_v61, %v16658_v28  ;;  %v5362_v13 = vpop.f32.mrb[121].mxu0  ;;  %v5748_v43 = vpop.f32.mrb[121].mxu1  ;;  %7226 = vmatpush1.bf16.msra.mxu1 %v15331_v0 }
 0x4e3   :  { %v13418_v36 = vadd.f32 %v5362_v13, %v16661_v32  ;;  %v13482_v54 = vadd.f32 %v5748_v43, %v16664_v15  ;;  %v5364_v62 = vpop.f32.mrb[122].mxu0  ;;  %v5750_v11 = vpop.f32.mrb[122].mxu1  ;;  %6515 = vmatprep.mubr.bf16.mxu0 %v5946_v58 }
 0x4e4   :  { %v13419_v12 = vadd.f32 %v5364_v62, %v16655_v47  ;;  %v13483_v52 = vadd.f32 %v5750_v11, %v16658_v28  ;;  %v5366_v38 = vpop.f32.mrb[123].mxu0  ;;  %v5752_v44 = vpop.f32.mrb[123].mxu1  ;;  %6516 = vmatmul.mubr.bf16.gmra.mrb[180].mxu0 %v5945_v2  ;;  %v5877_v22 = vmax.f32 %v13417_v42, 0.0  ;;  %v5879_v24 = vmax.f32 %v13481_v37, 0.0 }
 0x4e5   :  { %v13420_v18 = vadd.f32 %v5366_v38, %v16661_v32  ;;  %v13484_v63 = vadd.f32 %v5752_v44, %v16664_v15  ;;  %v5878_v21 = vmax.f32 %v13418_v36, 0.0  ;;  %v5880_v14 = vmax.f32 %v13482_v54, 0.0 }
 0x4e6   :  { %v5881_v23 = vmax.f32 %v13419_v12, 0.0  ;;  %v5883_v27 = vmax.f32 %v13483_v52, 0.0 }
 0x4e7   :  { %v5882_v26 = vmax.f32 %v13420_v18, 0.0  ;;  %v5884_v58 = vmax.f32 %v13484_v63, 0.0 }
 0x4e8   :  { %v5949_v53 = vpack.c.bf16 %v5881_v23, %v5877_v22  ;;  %v16842_v61 = vpack.c.bf16 %v5883_v27, %v5879_v24 }
 0x4e9   :  { %v5950_v2 = vpack.c.bf16 %v5882_v26, %v5878_v21  ;;  %v5370_v13 = vpop.f32.mrb[124].mxu0  ;;  %v5756_v43 = vpop.f32.mrb[124].mxu1  ;;  %v16844_v62 = vpack.c.bf16 %v5884_v58, %v5880_v14 }
 0x4ea   :  { %v13421_v11 = vadd.f32 %v5370_v13, %v16655_v47  ;;  %v13485_v42 = vadd.f32 %v5756_v43, %v16658_v28  ;;  %v5372_v37 = vpop.f32.mrb[125].mxu0  ;;  %v5758_v12 = vpop.f32.mrb[125].mxu1 }
 0x4eb   :  { %v13422_v36 = vadd.f32 %v5372_v37, %v16661_v32  ;;  %v13486_v54 = vadd.f32 %v5758_v12, %v16664_v15  ;;  %v5374_v52 = vpop.f32.mrb[126].mxu0  ;;  %v5760_v38 = vpop.f32.mrb[126].mxu1  ;;  %6525 = vmatprep.mubr.bf16.mxu0 %v5950_v2  ;;  %v15336_v37 = vld [vmem:[#allocation11 + $0x24] ss:$16 sps:$4 sm:$0xff]  }
 0x4ec   :  { %v13423_v44 = vadd.f32 %v5374_v52, %v16655_v47  ;;  %v13487_v18 = vadd.f32 %v5760_v38, %v16658_v28  ;;  %v5376_v63 = vpop.f32.mrb[127].mxu0  ;;  %v5762_v0 = vpop.f32.mrb[127].mxu1  ;;  %6526 = vmatmul.mubr.bf16.gmra.mrb[184].mxu0 %v5949_v53  ;;  %v5885_v23 = vmax.f32 %v13421_v11, 0.0  ;;  %v5887_v27 = vmax.f32 %v13485_v42, 0.0  ;;  %v15334_v53 = vld [vmem:[#allocation11 + $0x20] ss:$16 sps:$4 sm:$0xff]   ;;  %7227 = vmatprep.subr.bf16.mxu1 %v15336_v37 }
 0x4ed   :  { %v13424_v48 = vadd.f32 %v5376_v63, %v16661_v32  ;;  %v13488_v22 = vadd.f32 %v5762_v0, %v16664_v15  ;;  %v5886_v26 = vmax.f32 %v13422_v36, 0.0  ;;  %v5888_v58 = vmax.f32 %v13486_v54, 0.0  ;;  %v15339_v32 = vld [vmem:[#allocation11 + $0x44] ss:$16 sps:$4 sm:$0xff]   ;;  %7228 = vmatpush1.bf16.msra.mxu1 %v15334_v53  ;;  %v15337_v15 = vld [vmem:[#allocation11 + $0x40] ss:$16 sps:$4 sm:$0xff]  }
 0x4ee   :  { %v5889_v24 = vmax.f32 %v13423_v44, 0.0  ;;  %v5891_v21 = vmax.f32 %v13487_v18, 0.0  ;;  %7229 = vmatprep.subr.bf16.mxu1 %v15339_v32  ;;  %v15342_v11 = vld [vmem:[#allocation11 + $0x64] ss:$16 sps:$4 sm:$0xff]   ;;  %v15340_v42 = vld [vmem:[#allocation11 + $0x60] ss:$16 sps:$4 sm:$0xff]  }
 0x4ef   :  { %v5890_v14 = vmax.f32 %v13424_v48, 0.0  ;;  %v5892_v13 = vmax.f32 %v13488_v22, 0.0  ;;  %v15345_v12 = vld [vmem:[#allocation11 + $0x84] ss:$16 sps:$4 sm:$0xff]   ;;  %v15343_v36 = vld [vmem:[#allocation11 + $0x80] ss:$16 sps:$4 sm:$0xff]  }
 0x4f0   :  { %v5953_v2 = vpack.c.bf16 %v5889_v24, %v5885_v23  ;;  %v16854_v43 = vpack.c.bf16 %v5891_v21, %v5887_v27  ;;  %v15348_v54 = vld [vmem:[#allocation11 + $0xa4] ss:$16 sps:$4 sm:$0xff]   ;;  %v15349_v38 = vld [vmem:[#allocation11 + $0xc0] ss:$16 sps:$4 sm:$0xff]   ;;  %v6804_v44 = vld [vmem:[#allocation5 + $0x8] sm:$0xff] }
 0x4f1   :  { %v5954_v47 = vpack.c.bf16 %v5890_v14, %v5886_v26  ;;  %v5956_v28 = vpack.c.bf16 %v5892_v13, %v5888_v58  ;;  %7230 = vmatpush1.bf16.msra.mxu1 %v15337_v15  ;;  %v15351_v52 = vld [vmem:[#allocation11 + $0xc4] ss:$16 sps:$4 sm:$0xff]   ;;  %v15360_v37 = vld [vmem:[#allocation11 + $0x2c] ss:$16 sps:$4 sm:$0xff]  }
 0x4f2   :  { %7231 = vmatprep.subr.bf16.mxu1 %v15342_v11  ;;  %v6806_v11 = vld [vmem:[#allocation5 + $0x18] sm:$0xff] }
 0x4f3   :  { %6535 = vmatprep.mubr.bf16.mxu0 %v5954_v47  ;;  %v15355_v47 = vld [vmem:[#allocation11 + $0x8] ss:$16 sps:$4 sm:$0xff]  }
 0x4f4   :  { %6536 = vmatmul.mubr.bf16.gmra.mrb[188].mxu0 %v5953_v2 }
 0x4f5   :  { %6578 = vmatprep.mubr.bf16.mxu0 %v16676_v25  ;;  %7232 = vmatpush1.bf16.msra.mxu1 %v15340_v42  ;;  %v15346_v25 = vld [vmem:[#allocation11 + $0xa0] ss:$16 sps:$4 sm:$0xff]  }
 0x4f6   :  { %7233 = vmatprep.subr.bf16.mxu1 %v15345_v12 }
 0x4f9   :  { %7234 = vmatpush1.bf16.msra.mxu1 %v15343_v36 }
 0x4fa   :  { %7235 = vmatprep.subr.bf16.mxu1 %v15348_v54  ;;  %v7803_v54 = vld [vmem:[#allocation13] sm:$0xff] }
 0x4fc   :  { %6579 = vmatmul.mubr.bf16.vlgmr.msra.gmra.mrb[128].mxu0 %v16674_v46  ;;  %v15354_v46 = vld [vmem:[#allocation11 + $0xe4] ss:$16 sps:$4 sm:$0xff]  }
 0x4fd   :  { %6588 = vmatprep.mubr.bf16.mxu0 %v16688_v50  ;;  %7236 = vmatpush1.bf16.msra.mxu1 %v15346_v25  ;;  %v16179_v50 = vmov 0   ;;  %v7807_v25 = vld [vmem:[#allocation13 + $0x20] sm:$0xff] }
 0x4fe   :  { %7237 = vmatprep.subr.bf16.mxu1 %v15351_v52  ;;  %7257 = vmatprep.mubr.bf16.mxu1 %v16179_v50  ;;  %v16927_v52 = vld [vmem:[#allocation13 + $0x8] sm:$0xff] }
 0x501   :  { %7238 = vmatpush1.bf16.msra.mxu1 %v15349_v38 }
 0x502   :  { %7239 = vmatprep.subr.bf16.mxu1 %v15354_v46 }
 0x504   :  { %6589 = vmatmul.mubr.bf16.gmra.mrb[132].mxu0 %v16686_v1  ;;  %v15352_v1 = vld [vmem:[#allocation11 + $0xe0] ss:$16 sps:$4 sm:$0xff]  }
 0x505   :  { %6598 = vmatprep.mubr.bf16.mxu0 %v16700_v33  ;;  %7240 = vmatpush1.bf16.msra.mxu1 %v15352_v1  ;;  %v6021_v33 = vld [vmem:[%s18106_s7] sm:$0x3] }
 0x50c   :  { %6599 = vmatmul.mubr.bf16.gmra.mrb[136].mxu0 %v16698_v57  ;;  %v15357_v57 = vld [vmem:[#allocation11 + $0xc] ss:$16 sps:$4 sm:$0xff]  }
 0x50d   :  { %6608 = vmatprep.mubr.bf16.mxu0 %v16712_v10  ;;  %7418 = vmatprep.subr.bf16.mxu1 %v15357_v57  ;;  %v16895_v10 = vrot.slane %v6021_v33, %v16378_v7  ;;  %v15358_v57 = vld [vmem:[#allocation11 + $0x28] ss:$16 sps:$4 sm:$0xff]  }
 0x514   :  { %6609 = vmatmul.mubr.bf16.gmra.mrb[140].mxu0 %v16710_v40  ;;  %v16892_v40 = vrot.slane %v6021_v33, %v16369_v4  ;;  %v12721_v33 = vcombine.low %v7803_v54, %v7807_v25 }
 0x515   :  { %6618 = vmatprep.mubr.bf16.mxu0 %v16724_v60 }
 0x51c   :  { %6619 = vmatmul.mubr.bf16.gmra.mrb[144].mxu0 %v16722_v59 }
 0x51d   :  { %6628 = vmatprep.mubr.bf16.mxu0 %v16736_v41 }
 0x524   :  { %6629 = vmatmul.mubr.bf16.gmra.mrb[148].mxu0 %v16734_v6 }
 0x525   :  { %6638 = vmatprep.mubr.bf16.mxu0 %v16748_v45 }
 0x52c   :  { %6639 = vmatmul.mubr.bf16.gmra.mrb[152].mxu0 %v16746_v55 }
 0x52d   :  { %6648 = vmatprep.mubr.bf16.mxu0 %v16760_v35 }
 0x534   :  { %6649 = vmatmul.mubr.bf16.gmra.mrb[156].mxu0 %v16758_v49 }
 0x535   :  { %6658 = vmatprep.mubr.bf16.mxu0 %v16772_v51 }
 0x53c   :  { %6659 = vmatmul.mubr.bf16.gmra.mrb[160].mxu0 %v16770_v29 }
 0x53d   :  { %6668 = vmatprep.mubr.bf16.mxu0 %v16784_v16 }
 0x544   :  { %6669 = vmatmul.mubr.bf16.gmra.mrb[164].mxu0 %v16782_v19 }
 0x545   :  { %6678 = vmatprep.mubr.bf16.mxu0 %v16796_v17 }
 0x54c   :  { %6679 = vmatmul.mubr.bf16.gmra.mrb[168].mxu0 %v16794_v9 }
 0x54d   :  { %6688 = vmatprep.mubr.bf16.mxu0 %v16808_v39 }
 0x554   :  { %6689 = vmatmul.mubr.bf16.gmra.mrb[172].mxu0 %v16806_v31 }
 0x555   :  { %6698 = vmatprep.mubr.bf16.mxu0 %v16820_v34 }
 0x55c   :  { %6699 = vmatmul.mubr.bf16.gmra.mrb[176].mxu0 %v16818_v20 }
 0x55d   :  { %6708 = vmatprep.mubr.bf16.mxu0 %v16832_v56  ;;  %v6803_v56 = vld [vmem:[#allocation5] sm:$0xff] }
 0x564   :  { %6709 = vmatmul.mubr.bf16.gmra.mrb[180].mxu0 %v16830_v30 }
 0x565   :  { %6718 = vmatprep.mubr.bf16.mxu0 %v16844_v62 }
 0x56c   :  { %6719 = vmatmul.mubr.bf16.gmra.mrb[184].mxu0 %v16842_v61 }
 0x56d   :  { %6728 = vmatprep.mubr.bf16.mxu0 %v5956_v28  ;;  %v6805_v28 = vld [vmem:[#allocation5 + $0x10] sm:$0xff] }
 0x574   :  { %6729 = vmatmul.mubr.bf16.gmra.mrb[188].mxu0 %v16854_v43 }
 0x5cf   :  { %v6580_v59 = vpop.f32.mrb[128].mxu0 }
 0x5d0   :  { %v13489_v60 = vadd.f32 %v6580_v59, %v16892_v40  ;;  %v6582_v6 = vpop.f32.mrb[129].mxu0  ;;  %v12722_v59 = vcombine.high %v7803_v54, %v7807_v25  ;;  %v6810_v54 = vld [vmem:[#allocation5 + $0x38] sm:$0xff] }
 0x5d1   :  { %v13490_v41 = vadd.f32 %v6582_v6, %v16895_v10  ;;  %v6584_v55 = vpop.f32.mrb[130].mxu0 }
 0x5d2   :  { %6899 = vst [vmem:[#allocation14] sm:$0xff] %v13489_v60  ;;  %v13491_v45 = vadd.f32 %v6584_v55, %v16892_v40  ;;  %v6586_v49 = vpop.f32.mrb[131].mxu0  ;;  %9381 = vmatprep.subr.bf16.mxu0 %v12722_v59 }
 0x5d3   :  { %v6739_v35 = vmul.f32 1.442695, %v13490_v41  ;;  %v13492_v29 = vadd.f32 %v6586_v49, %v16895_v10  ;;  %v15363_v49 = vld [vmem:[#allocation11 + $0x4c] ss:$16 sps:$4 sm:$0xff]   ;;  %9382 = vmatpush1.bf16.msra.mxu0 %v12721_v33 }
 0x5d4   :  { %6900 = vst [vmem:[#allocation14 + $0x18] sm:$0xff] %v13491_v45 }
 0x5d5   :  { %15379 = vpow2.f32 %v6739_v35  ;;  %v6741_v51 = vmul.f32 1.442695, %v13492_v29 }
 0x5d7   :  { %15381 = vpow2.f32 %v6741_v51  ;;  %v6590_v19 = vpop.f32.mrb[132].mxu0 }
 0x5d8   :  { %v16902_v16 = vadd.f32 %v6590_v19, %v16892_v40  ;;  %v6592_v9 = vpop.f32.mrb[133].mxu0 }
 0x5d9   :  { %v13494_v17 = vadd.f32 %v6592_v9, %v16895_v10  ;;  %v6594_v31 = vpop.f32.mrb[134].mxu0 }
 0x5da   :  { %6901 = vst [vmem:[#allocation14 + $0x30] sm:$0xff] %v16902_v16  ;;  %v16907_v39 = vadd.f32 %v6594_v31, %v16892_v40  ;;  %v6596_v20 = vpop.f32.mrb[135].mxu0 }
 0x5db   :  { %v6743_v34 = vmul.f32 1.442695, %v13494_v17  ;;  %v13496_v30 = vadd.f32 %v6596_v20, %v16895_v10  ;;  %v6807_v17 = vld [vmem:[#allocation5 + $0x20] sm:$0xff]  ;;  %v15366_v20 = vld [vmem:[#allocation11 + $0x6c] ss:$16 sps:$4 sm:$0xff]  }
 0x5dc   :  { %6902 = vst [vmem:[#allocation14 + $0x48] sm:$0xff] %v16907_v39 }
 0x5dd   :  { %15383 = vpow2.f32 %v6743_v34  ;;  %v6745_v61 = vmul.f32 1.442695, %v13496_v30 }
 0x5df   :  { %v15380_v62 = vpop.eup %15379  ;;  %15385 = vpow2.f32 %v6745_v61  ;;  %v6600_v18 = vpop.f32.mrb[136].mxu0 }
 0x5e0   :  { %v6835_v63 = vmul.f32 %v15380_v62, %v6803_v56  ;;  %6931 = vst [vmem:[#allocation14 + $0x8] sm:$0xff] %v15380_v62  ;;  %v16912_v0 = vadd.f32 %v6600_v18, %v16892_v40  ;;  %v6602_v48 = vpop.f32.mrb[137].mxu0  ;;  %v6808_v56 = vld [vmem:[#allocation5 + $0x28] sm:$0xff]  ;;  %v7815_v18 = vld [vmem:[#allocation13 + $0x60] sm:$0xff] }
 0x5e1   :  { %v15382_v22 = vpop.eup %15381  ;;  %v13498_v23 = vadd.f32 %v6602_v48, %v16895_v10  ;;  %v6604_v24 = vpop.f32.mrb[138].mxu0 }
 0x5e2   :  { %v6836_v27 = vmul.f32 %v15382_v22, %v6804_v44  ;;  %6932 = vst [vmem:[#allocation14 + $0x20] sm:$0xff] %v15382_v22  ;;  %6903 = vst [vmem:[#allocation14 + $0x60] sm:$0xff] %v16912_v0  ;;  %v16917_v21 = vadd.f32 %v6604_v24, %v16892_v40  ;;  %v6606_v26 = vpop.f32.mrb[139].mxu0  ;;  %v6867_v14 = vadd.f32 %v13489_v60, %v6835_v63  ;;  %v16931_v60 = vld [vmem:[#allocation13 + $0x28] sm:$0xff]  ;;  %v7811_v44 = vld [vmem:[#allocation13 + $0x40] sm:$0xff] }
 0x5e3   :  { %v6747_v58 = vmul.f32 1.442695, %v13498_v23  ;;  %v13500_v13 = vadd.f32 %v6606_v26, %v16895_v10  ;;  %v12723_v35 = vcombine.low %v16927_v52, %v16931_v60  ;;  %v15364_v23 = vld [vmem:[#allocation11 + $0x68] ss:$16 sps:$4 sm:$0xff]   ;;  %v12729_v24 = vcombine.low %v7811_v44, %v7815_v18 }
 0x5e4   :  { %6904 = vst [vmem:[#allocation14 + $0x78] sm:$0xff] %v16917_v21  ;;  %v6868_v2 = vadd.f32 %v13491_v45, %v6836_v27  ;;  %6963 = vst [vmem:[#allocation14 + $0x10] sm:$0xff] %v6867_v14  ;;  %v12730_v27 = vcombine.high %v7811_v44, %v7815_v18  ;;  %v6812_v18 = vld [vmem:[#allocation5 + $0x48] sm:$0xff] }
 0x5e5   :  { %15387 = vpow2.f32 %v6747_v58  ;;  %v6749_v43 = vmul.f32 1.442695, %v13500_v13 }
 0x5e6   :  { %6964 = vst [vmem:[#allocation14 + $0x28] sm:$0xff] %v6868_v2  ;;  %v16921_v53 = vpack.c.bf16 %v6868_v2, %v6867_v14  ;;  %v15369_v2 = vld [vmem:[#allocation11 + $0x8c] ss:$16 sps:$4 sm:$0xff]   ;;  %9383 = vmatprep.subr.bf16.mxu0 %v12730_v27 }
 0x5e7   :  { %v15384_v32 = vpop.eup %15383  ;;  %15389 = vpow2.f32 %v6749_v43  ;;  %v6610_v15 = vpop.f32.mrb[140].mxu0  ;;  %9384 = vmatpush1.bf16.msra.mxu0 %v12729_v24 }
 0x5e8   :  { %6933 = vst [vmem:[#allocation14 + $0x38] sm:$0xff] %v15384_v32  ;;  %v16924_v42 = vadd.f32 %v6610_v15, %v16892_v40  ;;  %v6612_v12 = vpop.f32.mrb[141].mxu0  ;;  %7258 = vmatmul.mubr.bf16.vlgmr.msra.gmra.mrb[128].mxu1 %v16921_v53  ;;  %v6837_v36 = vmul.f32 %v15384_v32, %v6805_v28  ;;  %v6809_v32 = vld [vmem:[#allocation5 + $0x30] sm:$0xff]  ;;  %v15367_v15 = vld [vmem:[#allocation11 + $0x88] ss:$16 sps:$4 sm:$0xff]  }
 0x5e9   :  { %v15386_v38 = vpop.eup %15385  ;;  %v13502_v46 = vadd.f32 %v6612_v12, %v16895_v10  ;;  %v6614_v1 = vpop.f32.mrb[142].mxu0  ;;  %7419 = vmatpush1.bf16.msra.mxu1 %v15355_v47  ;;  %7267 = vmatprep.mubr.bf16.mxu1 %v16179_v50 }
 0x5ea   :  { %6934 = vst [vmem:[#allocation14 + $0x50] sm:$0xff] %v15386_v38  ;;  %6905 = vst [vmem:[#allocation14 + $0x90] sm:$0xff] %v16924_v42  ;;  %v16935_v6 = vadd.f32 %v6614_v1, %v16892_v40  ;;  %v6616_v41 = vpop.f32.mrb[143].mxu0  ;;  %v6838_v55 = vmul.f32 %v15386_v38, %v6806_v11  ;;  %v6869_v45 = vadd.f32 %v16902_v16, %v6837_v36  ;;  %7420 = vmatprep.subr.bf16.mxu1 %v15360_v37  ;;  %v15361_v16 = vld [vmem:[#allocation11 + $0x48] ss:$16 sps:$4 sm:$0xff]   ;;  %v7823_v1 = vld [vmem:[#allocation13 + $0xa0] sm:$0xff] }
 0x5eb   :  { %v6751_v29 = vmul.f32 1.442695, %v13502_v46  ;;  %v13504_v51 = vadd.f32 %v6616_v41, %v16895_v10  ;;  %v7819_v46 = vld [vmem:[#allocation13 + $0x80] sm:$0xff]  ;;  %v15370_v41 = vld [vmem:[#allocation11 + $0xa8] ss:$16 sps:$4 sm:$0xff]  }
 0x5ec   :  { %6906 = vst [vmem:[#allocation14 + $0xa8] sm:$0xff] %v16935_v6  ;;  %v6870_v19 = vadd.f32 %v16907_v39, %v6838_v55  ;;  %6965 = vst [vmem:[#allocation14 + $0x40] sm:$0xff] %v6869_v45  ;;  %v12737_v55 = vcombine.low %v7819_v46, %v7823_v1 }
 0x5ed   :  { %15391 = vpow2.f32 %v6751_v29  ;;  %v6753_v9 = vmul.f32 1.442695, %v13504_v51  ;;  %7421 = vmatpush1.bf16.msra.mxu1 %v15358_v57 }
 0x5ee   :  { %6966 = vst [vmem:[#allocation14 + $0x58] sm:$0xff] %v6870_v19  ;;  %v16943_v31 = vpack.c.bf16 %v6870_v19, %v6869_v45  ;;  %7422 = vmatprep.subr.bf16.mxu1 %v15363_v49  ;;  %v12738_v45 = vcombine.high %v7819_v46, %v7823_v1  ;;  %v6814_v46 = vld [vmem:[#allocation5 + $0x58] sm:$0xff] }
 0x5ef   :  { %v15388_v34 = vpop.eup %15387  ;;  %15393 = vpow2.f32 %v6753_v9  ;;  %v6620_v30 = vpop.f32.mrb[144].mxu0  ;;  %v15375_v9 = vld [vmem:[#allocation11 + $0xcc] ss:$16 sps:$4 sm:$0xff]  }
 0x5f0   :  { %6935 = vst [vmem:[#allocation14 + $0x68] sm:$0xff] %v15388_v34  ;;  %v16946_v61 = vadd.f32 %v6620_v30, %v16892_v40  ;;  %v6622_v39 = vpop.f32.mrb[145].mxu0  ;;  %7268 = vmatmul.mubr.bf16.gmra.mrb[132].mxu1 %v16943_v31  ;;  %v6839_v62 = vmul.f32 %v15388_v34, %v6807_v17  ;;  %9385 = vmatprep.subr.bf16.mxu0 %v12738_v45  ;;  %v6811_v30 = vld [vmem:[#allocation5 + $0x40] sm:$0xff] }
 0x5f1   :  { %v15390_v63 = vpop.eup %15389  ;;  %v13506_v48 = vadd.f32 %v6622_v39, %v16895_v10  ;;  %v6624_v22 = vpop.f32.mrb[146].mxu0  ;;  %7277 = vmatprep.mubr.bf16.mxu1 %v16179_v50  ;;  %7423 = vmatpush1.bf16.msra.mxu1 %v15361_v16 }
 0x5f2   :  { %6936 = vst [vmem:[#allocation14 + $0x80] sm:$0xff] %v15390_v63  ;;  %6907 = vst [vmem:[#allocation14 + $0xc0] sm:$0xff] %v16946_v61  ;;  %v16953_v26 = vadd.f32 %v6624_v22, %v16892_v40  ;;  %v6626_v14 = vpop.f32.mrb[147].mxu0  ;;  %v6840_v58 = vmul.f32 %v15390_v63, %v6808_v56  ;;  %v6871_v13 = vadd.f32 %v16912_v0, %v6839_v62  ;;  %7424 = vmatprep.subr.bf16.mxu1 %v15366_v20  ;;  %v15372_v0 = vld [vmem:[#allocation11 + $0xac] ss:$16 sps:$4 sm:$0xff]   ;;  %v7827_v22 = vld [vmem:[#allocation13 + $0xc0] sm:$0xff] }
 0x5f3   :  { %v6755_v43 = vmul.f32 1.442695, %v13506_v48  ;;  %v13508_v47 = vadd.f32 %v6626_v14, %v16895_v10  ;;  %9386 = vmatpush1.bf16.msra.mxu0 %v12737_v55  ;;  %v15373_v56 = vld [vmem:[#allocation11 + $0xc8] ss:$16 sps:$4 sm:$0xff]  }
 0x5f4   :  { %6908 = vst [vmem:[#allocation14 + $0xd8] sm:$0xff] %v16953_v26  ;;  %v6872_v28 = vadd.f32 %v16917_v21, %v6840_v58  ;;  %6967 = vst [vmem:[#allocation14 + $0x70] sm:$0xff] %v6871_v13  ;;  %v15376_v58 = vld [vmem:[#allocation11 + $0xe8] ss:$16 sps:$4 sm:$0xff]  }
 0x5f5   :  { %15395 = vpow2.f32 %v6755_v43  ;;  %v6757_v37 = vmul.f32 1.442695, %v13508_v47  ;;  %7425 = vmatpush1.bf16.msra.mxu1 %v15364_v23  ;;  %v7831_v23 = vld [vmem:[#allocation13 + $0xe0] sm:$0xff] }
 0x5f6   :  { %6968 = vst [vmem:[#allocation14 + $0x88] sm:$0xff] %v6872_v28  ;;  %v16959_v11 = vpack.c.bf16 %v6872_v28, %v6871_v13  ;;  %7426 = vmatprep.subr.bf16.mxu1 %v15369_v2  ;;  %v12745_v13 = vcombine.low %v7827_v22, %v7831_v23  ;;  %v12746_v2 = vcombine.high %v7827_v22, %v7831_v23  ;;  %v7843_v22 = vld [vmem:[#allocation13 + $0x140] sm:$0xff] }
 0x5f7   :  { %v15392_v12 = vpop.eup %15391  ;;  %15397 = vpow2.f32 %v6757_v37  ;;  %v6630_v36 = vpop.f32.mrb[148].mxu0  ;;  %v7847_v23 = vld [vmem:[#allocation13 + $0x160] sm:$0xff] }
 0x5f8   :  { %6937 = vst [vmem:[#allocation14 + $0x98] sm:$0xff] %v15392_v12  ;;  %v16962_v25 = vadd.f32 %v6630_v36, %v16892_v40  ;;  %v6632_v21 = vpop.f32.mrb[149].mxu0  ;;  %7278 = vmatmul.mubr.bf16.gmra.mrb[136].mxu1 %v16959_v11  ;;  %v6841_v38 = vmul.f32 %v15392_v12, %v6809_v32  ;;  %v12724_v32 = vcombine.high %v16927_v52, %v16931_v60  ;;  %v17156_v60 = vld [vmem:[#allocation13 + $0x428] sm:$0xff] }
 0x5f9   :  { %v15394_v57 = vpop.eup %15393  ;;  %v13510_v33 = vadd.f32 %v6632_v21, %v16895_v10  ;;  %v6634_v59 = vpop.f32.mrb[150].mxu0  ;;  %7287 = vmatprep.mubr.bf16.mxu1 %v16179_v50  ;;  %7427 = vmatpush1.bf16.msra.mxu1 %v15367_v15 }
 0x5fa   :  { %6938 = vst [vmem:[#allocation14 + $0xb0] sm:$0xff] %v15394_v57  ;;  %6909 = vst [vmem:[#allocation14 + $0xf0] sm:$0xff] %v16962_v25  ;;  %v16969_v49 = vadd.f32 %v6634_v59, %v16892_v40  ;;  %v6636_v29 = vpop.f32.mrb[151].mxu0  ;;  %v6842_v51 = vmul.f32 %v15394_v57, %v6810_v54  ;;  %v6873_v19 = vadd.f32 %v16924_v42, %v6841_v38  ;;  %7428 = vmatprep.subr.bf16.mxu1 %v15372_v0  ;;  %v15378_v42 = vld [vmem:[#allocation11 + $0xec] ss:$16 sps:$4 sm:$0xff]   ;;  %v6813_v54 = vld [vmem:[#allocation5 + $0x50] sm:$0xff] }
 0x5fb   :  { %v6759_v17 = vmul.f32 1.442695, %v13510_v33  ;;  %v13512_v16 = vadd.f32 %v6636_v29, %v16895_v10  ;;  %9387 = vmatprep.subr.bf16.mxu0 %v12746_v2  ;;  %v7835_v33 = vld [vmem:[#allocation13 + $0x100] sm:$0xff] }
 0x5fc   :  { %6910 = vst [vmem:[#allocation14 + $0x108] sm:$0xff] %v16969_v49  ;;  %v6874_v20 = vadd.f32 %v16935_v6, %v6842_v51  ;;  %6969 = vst [vmem:[#allocation14 + $0xa0] sm:$0xff] %v6873_v19  ;;  %9388 = vmatpush1.bf16.msra.mxu0 %v12745_v13  ;;  %v7839_v59 = vld [vmem:[#allocation13 + $0x120] sm:$0xff]  ;;  %v12762_v13 = vcombine.high %v7843_v22, %v7847_v23 }
 0x5fd   :  { %15399 = vpow2.f32 %v6759_v17  ;;  %v6761_v34 = vmul.f32 1.442695, %v13512_v16  ;;  %7429 = vmatpush1.bf16.msra.mxu1 %v15370_v41  ;;  %v12753_v29 = vcombine.low %v7835_v33, %v7839_v59  ;;  %v12754_v51 = vcombine.high %v7835_v33, %v7839_v59  ;;  %v7855_v33 = vld [vmem:[#allocation13 + $0x1a0] sm:$0xff] }
 0x5fe   :  { %6970 = vst [vmem:[#allocation14 + $0xb8] sm:$0xff] %v6874_v20  ;;  %v16975_v39 = vpack.c.bf16 %v6874_v20, %v6873_v19  ;;  %7430 = vmatprep.subr.bf16.mxu1 %v15375_v9 }
 0x5ff   :  { %v15396_v62 = vpop.eup %15395  ;;  %15401 = vpow2.f32 %v6761_v34  ;;  %v6640_v44 = vpop.f32.mrb[152].mxu0  ;;  %9389 = vmatprep.subr.bf16.mxu0 %v12754_v51 }
 0x600   :  { %6939 = vst [vmem:[#allocation14 + $0xc8] sm:$0xff] %v15396_v62  ;;  %v16978_v63 = vadd.f32 %v6640_v44, %v16892_v40  ;;  %v6642_v6 = vpop.f32.mrb[153].mxu0  ;;  %7288 = vmatmul.mubr.bf16.gmra.mrb[140].mxu1 %v16975_v39  ;;  %v6843_v48 = vmul.f32 %v15396_v62, %v6811_v30  ;;  %9390 = vmatpush1.bf16.msra.mxu0 %v12753_v29 }
 0x601   :  { %v15398_v24 = vpop.eup %15397  ;;  %v13514_v27 = vadd.f32 %v6642_v6, %v16895_v10  ;;  %v6644_v14 = vpop.f32.mrb[154].mxu0  ;;  %7297 = vmatprep.mubr.bf16.mxu1 %v16179_v50  ;;  %7431 = vmatpush1.bf16.msra.mxu1 %v15373_v56 }
 0x602   :  { %6940 = vst [vmem:[#allocation14 + $0xe0] sm:$0xff] %v15398_v24  ;;  %6911 = vst [vmem:[#allocation14 + $0x120] sm:$0xff] %v16978_v63  ;;  %v16985_v43 = vadd.f32 %v6644_v14, %v16892_v40  ;;  %v6646_v47 = vpop.f32.mrb[155].mxu0  ;;  %v6844_v28 = vmul.f32 %v15398_v24, %v6812_v18  ;;  %v6875_v37 = vadd.f32 %v16946_v61, %v6843_v48  ;;  %7432 = vmatprep.subr.bf16.mxu1 %v15378_v42  ;;  %v6815_v42 = vld [vmem:[#allocation5 + $0x60] sm:$0xff] }
 0x603   :  { %v6763_v15 = vmul.f32 1.442695, %v13514_v27  ;;  %v13516_v0 = vadd.f32 %v6646_v47, %v16895_v10  ;;  %9391 = vmatprep.subr.bf16.mxu0 %v12762_v13 }
 0x604   :  { %6912 = vst [vmem:[#allocation14 + $0x138] sm:$0xff] %v16985_v43  ;;  %v6876_v12 = vadd.f32 %v16953_v26, %v6844_v28  ;;  %6971 = vst [vmem:[#allocation14 + $0xd0] sm:$0xff] %v6875_v37 }
 0x605   :  { %15403 = vpow2.f32 %v6763_v15  ;;  %v6765_v36 = vmul.f32 1.442695, %v13516_v0  ;;  %7433 = vmatpush1.bf16.msra.mxu1 %v15376_v58  ;;  %v12761_v58 = vcombine.low %v7843_v22, %v7847_v23 }
 0x606   :  { %6972 = vst [vmem:[#allocation14 + $0xe8] sm:$0xff] %v6876_v12  ;;  %v16993_v61 = vpack.c.bf16 %v6876_v12, %v6875_v37  ;;  %9767 = vmatprep.subr.bf16.mxu1 %v12724_v32 }
 0x607   :  { %v15400_v21 = vpop.eup %15399  ;;  %15405 = vpow2.f32 %v6765_v36  ;;  %v6650_v38 = vpop.f32.mrb[156].mxu0  ;;  %9392 = vmatpush1.bf16.msra.mxu0 %v12761_v58  ;;  %v6817_v36 = vld [vmem:[#allocation5 + $0x70] sm:$0xff] }
 0x608   :  { %6941 = vst [vmem:[#allocation14 + $0xf8] sm:$0xff] %v15400_v21  ;;  %v16996_v1 = vadd.f32 %v6650_v38, %v16892_v40  ;;  %v6652_v57 = vpop.f32.mrb[157].mxu0  ;;  %7298 = vmatmul.mubr.bf16.gmra.mrb[144].mxu1 %v16993_v61  ;;  %v6845_v26 = vmul.f32 %v15400_v21, %v6813_v54 }
 0x609   :  { %v15402_v41 = vpop.eup %15401  ;;  %v13518_v55 = vadd.f32 %v6652_v57, %v16895_v10  ;;  %v6654_v45 = vpop.f32.mrb[158].mxu0  ;;  %7307 = vmatprep.mubr.bf16.mxu1 %v16179_v50 }
 0x60a   :  { %6942 = vst [vmem:[#allocation14 + $0x110] sm:$0xff] %v15402_v41  ;;  %6913 = vst [vmem:[#allocation14 + $0x150] sm:$0xff] %v16996_v1  ;;  %v17003_v19 = vadd.f32 %v6654_v45, %v16892_v40  ;;  %v6656_v9 = vpop.f32.mrb[159].mxu0  ;;  %v6846_v17 = vmul.f32 %v15402_v41, %v6814_v46  ;;  %v6877_v16 = vadd.f32 %v16962_v25, %v6845_v26  ;;  %v6816_v25 = vld [vmem:[#allocation5 + $0x68] sm:$0xff]  ;;  %v7851_v26 = vld [vmem:[#allocation13 + $0x180] sm:$0xff] }
 0x60b   :  { %v6767_v20 = vmul.f32 1.442695, %v13518_v55  ;;  %v13520_v34 = vadd.f32 %v6656_v9, %v16895_v10  ;;  %v12769_v45 = vcombine.low %v7851_v26, %v7855_v33  ;;  %v12770_v29 = vcombine.high %v7851_v26, %v7855_v33 }
 0x60c   :  { %6914 = vst [vmem:[#allocation14 + $0x168] sm:$0xff] %v17003_v19  ;;  %v6878_v30 = vadd.f32 %v16969_v49, %v6846_v17  ;;  %6973 = vst [vmem:[#allocation14 + $0x100] sm:$0xff] %v6877_v16 }
 0x60d   :  { %15407 = vpow2.f32 %v6767_v20  ;;  %v6769_v56 = vmul.f32 1.442695, %v13520_v34  ;;  %9393 = vmatprep.subr.bf16.mxu0 %v12770_v29 }
 0x60e   :  { %6974 = vst [vmem:[#allocation14 + $0x118] sm:$0xff] %v6878_v30  ;;  %v17009_v62 = vpack.c.bf16 %v6878_v30, %v6877_v16  ;;  %9394 = vmatpush1.bf16.msra.mxu0 %v12769_v45 }
 0x60f   :  { %v15404_v44 = vpop.eup %15403  ;;  %15409 = vpow2.f32 %v6769_v56  ;;  %v6660_v18 = vpop.f32.mrb[160].mxu0 }
 0x610   :  { %6943 = vst [vmem:[#allocation14 + $0x128] sm:$0xff] %v15404_v44  ;;  %v17012_v6 = vadd.f32 %v6660_v18, %v16892_v40  ;;  %v6662_v48 = vpop.f32.mrb[161].mxu0  ;;  %7308 = vmatmul.mubr.bf16.gmra.mrb[148].mxu1 %v17009_v62  ;;  %v6847_v49 = vmul.f32 %v15404_v44, %v6815_v42  ;;  %v6819_v42 = vld [vmem:[#allocation5 + $0x80] sm:$0xff] }
 0x611   :  { %v15406_v24 = vpop.eup %15405  ;;  %v13522_v27 = vadd.f32 %v6662_v48, %v16895_v10  ;;  %v6664_v14 = vpop.f32.mrb[162].mxu0  ;;  %7317 = vmatprep.mubr.bf16.mxu1 %v16179_v50  ;;  %v7859_v48 = vld [vmem:[#allocation13 + $0x1c0] sm:$0xff] }
 0x612   :  { %6944 = vst [vmem:[#allocation14 + $0x140] sm:$0xff] %v15406_v24  ;;  %6915 = vst [vmem:[#allocation14 + $0x180] sm:$0xff] %v17012_v6  ;;  %v17019_v2 = vadd.f32 %v6664_v14, %v16892_v40  ;;  %v6666_v47 = vpop.f32.mrb[163].mxu0  ;;  %v6848_v28 = vmul.f32 %v15406_v24, %v6816_v25  ;;  %v6879_v37 = vadd.f32 %v16978_v63, %v6847_v49  ;;  %v6818_v63 = vld [vmem:[#allocation5 + $0x78] sm:$0xff]  ;;  %v7863_v49 = vld [vmem:[#allocation13 + $0x1e0] sm:$0xff] }
 0x613   :  { %v6771_v32 = vmul.f32 1.442695, %v13522_v27  ;;  %v13524_v15 = vadd.f32 %v6666_v47, %v16895_v10  ;;  %v12777_v24 = vcombine.low %v7859_v48, %v7863_v49  ;;  %v12778_v27 = vcombine.high %v7859_v48, %v7863_v49  ;;  %v7867_v14 = vld [vmem:[#allocation13 + $0x200] sm:$0xff] }
 0x614   :  { %6916 = vst [vmem:[#allocation14 + $0x198] sm:$0xff] %v17019_v2  ;;  %v6880_v0 = vadd.f32 %v16985_v43, %v6848_v28  ;;  %6975 = vst [vmem:[#allocation14 + $0x130] sm:$0xff] %v6879_v37  ;;  %v7871_v28 = vld [vmem:[#allocation13 + $0x220] sm:$0xff] }
 0x615   :  { %15411 = vpow2.f32 %v6771_v32  ;;  %v6773_v12 = vmul.f32 1.442695, %v13524_v15  ;;  %9395 = vmatprep.subr.bf16.mxu0 %v12778_v27 }
 0x616   :  { %6976 = vst [vmem:[#allocation14 + $0x148] sm:$0xff] %v6880_v0  ;;  %v17025_v54 = vpack.c.bf16 %v6880_v0, %v6879_v37  ;;  %9396 = vmatpush1.bf16.msra.mxu0 %v12777_v24 }
 0x617   :  { %v15408_v21 = vpop.eup %15407  ;;  %15413 = vpow2.f32 %v6773_v12  ;;  %v6670_v38 = vpop.f32.mrb[164].mxu0 }
 0x618   :  { %6945 = vst [vmem:[#allocation14 + $0x158] sm:$0xff] %v15408_v21  ;;  %v17028_v46 = vadd.f32 %v6670_v38, %v16892_v40  ;;  %v6672_v57 = vpop.f32.mrb[165].mxu0  ;;  %7318 = vmatmul.mubr.bf16.gmra.mrb[152].mxu1 %v17025_v54  ;;  %v6849_v43 = vmul.f32 %v15408_v21, %v6817_v36  ;;  %v12785_v21 = vcombine.low %v7867_v14, %v7871_v28 }
 0x619   :  { %v15410_v59 = vpop.eup %15409  ;;  %v13526_v41 = vadd.f32 %v6672_v57, %v16895_v10  ;;  %v6674_v55 = vpop.f32.mrb[166].mxu0  ;;  %7327 = vmatprep.mubr.bf16.mxu1 %v16179_v50  ;;  %v12786_v38 = vcombine.high %v7867_v14, %v7871_v28  ;;  %v6823_v14 = vld [vmem:[#allocation5 + $0xa0] sm:$0xff] }
 0x61a   :  { %6946 = vst [vmem:[#allocation14 + $0x170] sm:$0xff] %v15410_v59  ;;  %6917 = vst [vmem:[#allocation14 + $0x1b0] sm:$0xff] %v17028_v46  ;;  %v17035_v51 = vadd.f32 %v6674_v55, %v16892_v40  ;;  %v6676_v9 = vpop.f32.mrb[167].mxu0  ;;  %v6850_v17 = vmul.f32 %v15410_v59, %v6818_v63  ;;  %v6881_v16 = vadd.f32 %v16996_v1, %v6849_v43  ;;  %v6820_v1 = vld [vmem:[#allocation5 + $0x88] sm:$0xff]  ;;  %v6821_v43 = vld [vmem:[#allocation5 + $0x90] sm:$0xff] }
 0x61b   :  { %v6775_v20 = vmul.f32 1.442695, %v13526_v41  ;;  %v13528_v34 = vadd.f32 %v6676_v9, %v16895_v10  ;;  %9397 = vmatprep.subr.bf16.mxu0 %v12786_v38  ;;  %v6822_v59 = vld [vmem:[#allocation5 + $0x98] sm:$0xff]  ;;  %v7875_v41 = vld [vmem:[#allocation13 + $0x240] sm:$0xff] }
 0x61c   :  { %6918 = vst [vmem:[#allocation14 + $0x1c8] sm:$0xff] %v17035_v51  ;;  %v6882_v30 = vadd.f32 %v17003_v19, %v6850_v17  ;;  %6977 = vst [vmem:[#allocation14 + $0x160] sm:$0xff] %v6881_v16  ;;  %9398 = vmatpush1.bf16.msra.mxu0 %v12785_v21  ;;  %v7879_v55 = vld [vmem:[#allocation13 + $0x260] sm:$0xff] }
 0x61d   :  { %15415 = vpow2.f32 %v6775_v20  ;;  %v6777_v56 = vmul.f32 1.442695, %v13528_v34  ;;  %v12793_v9 = vcombine.low %v7875_v41, %v7879_v55  ;;  %v12794_v17 = vcombine.high %v7875_v41, %v7879_v55  ;;  %v7891_v28 = vld [vmem:[#allocation13 + $0x2c0] sm:$0xff] }
 0x61e   :  { %6978 = vst [vmem:[#allocation14 + $0x178] sm:$0xff] %v6882_v30  ;;  %v17041_v44 = vpack.c.bf16 %v6882_v30, %v6881_v16  ;;  %v7883_v16 = vld [vmem:[#allocation13 + $0x280] sm:$0xff] }
 0x61f   :  { %v15412_v18 = vpop.eup %15411  ;;  %15417 = vpow2.f32 %v6777_v56  ;;  %v6680_v25 = vpop.f32.mrb[168].mxu0  ;;  %v7887_v56 = vld [vmem:[#allocation13 + $0x2a0] sm:$0xff]  ;;  %9399 = vmatprep.subr.bf16.mxu0 %v12794_v17 }
 0x620   :  { %6947 = vst [vmem:[#allocation14 + $0x188] sm:$0xff] %v15412_v18  ;;  %v17044_v22 = vadd.f32 %v6680_v25, %v16892_v40  ;;  %v6682_v23 = vpop.f32.mrb[169].mxu0  ;;  %7328 = vmatmul.mubr.bf16.gmra.mrb[156].mxu1 %v17041_v44  ;;  %v6851_v19 = vmul.f32 %v15412_v18, %v6819_v42  ;;  %9400 = vmatpush1.bf16.msra.mxu0 %v12793_v9  ;;  %v7899_v21 = vld [vmem:[#allocation13 + $0x300] sm:$0xff] }
 0x621   :  { %v15414_v58 = vpop.eup %15413  ;;  %v13530_v13 = vadd.f32 %v6682_v23, %v16895_v10  ;;  %v6684_v47 = vpop.f32.mrb[170].mxu0  ;;  %7337 = vmatprep.mubr.bf16.mxu1 %v16179_v50  ;;  %v12801_v23 = vcombine.low %v7883_v16, %v7887_v56 }
 0x622   :  { %6948 = vst [vmem:[#allocation14 + $0x1a0] sm:$0xff] %v15414_v58  ;;  %6919 = vst [vmem:[#allocation14 + $0x1e0] sm:$0xff] %v17044_v22  ;;  %v17051_v37 = vadd.f32 %v6684_v47, %v16892_v40  ;;  %v6686_v32 = vpop.f32.mrb[171].mxu0  ;;  %v6852_v15 = vmul.f32 %v15414_v58, %v6820_v1  ;;  %v6883_v0 = vadd.f32 %v17012_v6, %v6851_v19  ;;  %v6824_v47 = vld [vmem:[#allocation5 + $0xa8] sm:$0xff] }
 0x623   :  { %v6779_v12 = vmul.f32 1.442695, %v13530_v13  ;;  %v13532_v36 = vadd.f32 %v6686_v32, %v16895_v10  ;;  %v12802_v19 = vcombine.high %v7883_v16, %v7887_v56  ;;  %v7895_v32 = vld [vmem:[#allocation13 + $0x2e0] sm:$0xff]  ;;  %v6826_v56 = vld [vmem:[#allocation5 + $0xb8] sm:$0xff] }
 0x624   :  { %6920 = vst [vmem:[#allocation14 + $0x1f8] sm:$0xff] %v17051_v37  ;;  %v6884_v63 = vadd.f32 %v17019_v2, %v6852_v15  ;;  %6979 = vst [vmem:[#allocation14 + $0x190] sm:$0xff] %v6883_v0 }
 0x625   :  { %15419 = vpow2.f32 %v6779_v12  ;;  %v6781_v57 = vmul.f32 1.442695, %v13532_v36  ;;  %9401 = vmatprep.subr.bf16.mxu0 %v12802_v19  ;;  %v12809_v12 = vcombine.low %v7891_v28, %v7895_v32  ;;  %v12810_v36 = vcombine.high %v7891_v28, %v7895_v32 }
 0x626   :  { %6980 = vst [vmem:[#allocation14 + $0x1a8] sm:$0xff] %v6884_v63  ;;  %v17057_v26 = vpack.c.bf16 %v6884_v63, %v6883_v0  ;;  %9402 = vmatpush1.bf16.msra.mxu0 %v12801_v23 }
 0x627   :  { %v15416_v6 = vpop.eup %15415  ;;  %15421 = vpow2.f32 %v6781_v57  ;;  %v6690_v33 = vpop.f32.mrb[172].mxu0  ;;  %9403 = vmatprep.subr.bf16.mxu0 %v12810_v36 }
 0x628   :  { %6949 = vst [vmem:[#allocation14 + $0x1b8] sm:$0xff] %v15416_v6  ;;  %v17060_v45 = vadd.f32 %v6690_v33, %v16892_v40  ;;  %v6692_v2 = vpop.f32.mrb[173].mxu0  ;;  %7338 = vmatmul.mubr.bf16.gmra.mrb[160].mxu1 %v17057_v26  ;;  %v6853_v29 = vmul.f32 %v15416_v6, %v6821_v43  ;;  %v7903_v43 = vld [vmem:[#allocation13 + $0x320] sm:$0xff] }
 0x629   :  { %v15418_v20 = vpop.eup %15417  ;;  %v13534_v34 = vadd.f32 %v6692_v2, %v16895_v10  ;;  %v6694_v30 = vpop.f32.mrb[174].mxu0  ;;  %7347 = vmatprep.mubr.bf16.mxu1 %v16179_v50  ;;  %v12818_v9 = vcombine.high %v7899_v21, %v7903_v43 }
 0x62a   :  { %6950 = vst [vmem:[#allocation14 + $0x1d0] sm:$0xff] %v15418_v20  ;;  %6921 = vst [vmem:[#allocation14 + $0x210] sm:$0xff] %v17060_v45  ;;  %v17067_v42 = vadd.f32 %v6694_v30, %v16892_v40  ;;  %v6696_v18 = vpop.f32.mrb[175].mxu0  ;;  %v6854_v25 = vmul.f32 %v15418_v20, %v6822_v59  ;;  %v6885_v1 = vadd.f32 %v17028_v46, %v6853_v29  ;;  %9404 = vmatpush1.bf16.msra.mxu0 %v12809_v12  ;;  %v6825_v20 = vld [vmem:[#allocation5 + $0xb0] sm:$0xff] }
 0x62b   :  { %v6783_v48 = vmul.f32 1.442695, %v13534_v34  ;;  %v13536_v49 = vadd.f32 %v6696_v18, %v16895_v10  ;;  %v12817_v29 = vcombine.low %v7899_v21, %v7903_v43  ;;  %9405 = vmatprep.subr.bf16.mxu0 %v12818_v9  ;;  %v7907_v18 = vld [vmem:[#allocation13 + $0x340] sm:$0xff] }
 0x62c   :  { %6922 = vst [vmem:[#allocation14 + $0x228] sm:$0xff] %v17067_v42  ;;  %v6886_v24 = vadd.f32 %v17035_v51, %v6854_v25  ;;  %6981 = vst [vmem:[#allocation14 + $0x1c0] sm:$0xff] %v6885_v1  ;;  %v7911_v25 = vld [vmem:[#allocation13 + $0x360] sm:$0xff] }
 0x62d   :  { %15423 = vpow2.f32 %v6783_v48  ;;  %v6785_v27 = vmul.f32 1.442695, %v13536_v49  ;;  %v12825_v49 = vcombine.low %v7907_v18, %v7911_v25  ;;  %v12826_v23 = vcombine.high %v7907_v18, %v7911_v25 }
 0x62e   :  { %6982 = vst [vmem:[#allocation14 + $0x1d8] sm:$0xff] %v6886_v24  ;;  %v17073_v58 = vpack.c.bf16 %v6886_v24, %v6885_v1  ;;  %9406 = vmatpush1.bf16.msra.mxu0 %v12817_v29 }
 0x62f   :  { %v15420_v46 = vpop.eup %15419  ;;  %15425 = vpow2.f32 %v6785_v27  ;;  %v6700_v13 = vpop.f32.mrb[176].mxu0  ;;  %9407 = vmatprep.subr.bf16.mxu0 %v12826_v23  ;;  %v6829_v23 = vld [vmem:[#allocation5 + $0xd0] sm:$0xff] }
 0x630   :  { %6951 = vst [vmem:[#allocation14 + $0x1e8] sm:$0xff] %v15420_v46  ;;  %v17076_v15 = vadd.f32 %v6700_v13, %v16892_v40  ;;  %v6702_v51 = vpop.f32.mrb[177].mxu0  ;;  %7348 = vmatmul.mubr.bf16.gmra.mrb[164].mxu1 %v17073_v58  ;;  %v6855_v0 = vmul.f32 %v15420_v46, %v6823_v14 }
 0x631   :  { %v15422_v38 = vpop.eup %15421  ;;  %v13538_v63 = vadd.f32 %v6702_v51, %v16895_v10  ;;  %v6704_v57 = vpop.f32.mrb[178].mxu0  ;;  %7357 = vmatprep.mubr.bf16.mxu1 %v16179_v50  ;;  %v7915_v51 = vld [vmem:[#allocation13 + $0x380] sm:$0xff] }
 0x632   :  { %6952 = vst [vmem:[#allocation14 + $0x200] sm:$0xff] %v15422_v38  ;;  %6923 = vst [vmem:[#allocation14 + $0x240] sm:$0xff] %v17076_v15  ;;  %v17083_v6 = vadd.f32 %v6704_v57, %v16892_v40  ;;  %v6706_v33 = vpop.f32.mrb[179].mxu0  ;;  %v6856_v59 = vmul.f32 %v15422_v38, %v6824_v47  ;;  %v6887_v41 = vadd.f32 %v17044_v22, %v6855_v0  ;;  %9408 = vmatpush1.bf16.msra.mxu0 %v12825_v49  ;;  %v7919_v0 = vld [vmem:[#allocation13 + $0x3a0] sm:$0xff] }
 0x633   :  { %v6787_v55 = vmul.f32 1.442695, %v13538_v63  ;;  %v13540_v2 = vadd.f32 %v6706_v33, %v16895_v10  ;;  %v12834_v36 = vcombine.high %v7915_v51, %v7919_v0  ;;  %v6827_v38 = vld [vmem:[#allocation5 + $0xc0] sm:$0xff]  ;;  %v12833_v63 = vcombine.low %v7915_v51, %v7919_v0  ;;  %v6828_v33 = vld [vmem:[#allocation5 + $0xc8] sm:$0xff] }
 0x634   :  { %6924 = vst [vmem:[#allocation14 + $0x258] sm:$0xff] %v17083_v6  ;;  %v6888_v17 = vadd.f32 %v17051_v37, %v6856_v59  ;;  %6983 = vst [vmem:[#allocation14 + $0x1f0] sm:$0xff] %v6887_v41  ;;  %v7923_v59 = vld [vmem:[#allocation13 + $0x3c0] sm:$0xff] }
 0x635   :  { %15427 = vpow2.f32 %v6787_v55  ;;  %v6789_v16 = vmul.f32 1.442695, %v13540_v2  ;;  %9409 = vmatprep.subr.bf16.mxu0 %v12834_v36 }
 0x636   :  { %6984 = vst [vmem:[#allocation14 + $0x208] sm:$0xff] %v6888_v17  ;;  %v17089_v34 = vpack.c.bf16 %v6888_v17, %v6887_v41  ;;  %9410 = vmatpush1.bf16.msra.mxu0 %v12833_v63  ;;  %v7927_v41 = vld [vmem:[#allocation13 + $0x3e0] sm:$0xff] }
 0x637   :  { %v15424_v22 = vpop.eup %15423  ;;  %15429 = vpow2.f32 %v6789_v16  ;;  %v6710_v30 = vpop.f32.mrb[180].mxu0  ;;  %v12842_v29 = vcombine.high %v7923_v59, %v7927_v41 }
 0x638   :  { %6953 = vst [vmem:[#allocation14 + $0x218] sm:$0xff] %v15424_v22  ;;  %v17092_v1 = vadd.f32 %v6710_v30, %v16892_v40  ;;  %v6712_v37 = vpop.f32.mrb[181].mxu0  ;;  %7358 = vmatmul.mubr.bf16.gmra.mrb[168].mxu1 %v17089_v34  ;;  %v6857_v48 = vmul.f32 %v15424_v22, %v6825_v20  ;;  %v12841_v20 = vcombine.low %v7923_v59, %v7927_v41 }
 0x639   :  { %v15426_v19 = vpop.eup %15425  ;;  %v13542_v24 = vadd.f32 %v6712_v37, %v16895_v10  ;;  %v6714_v27 = vpop.f32.mrb[182].mxu0  ;;  %7367 = vmatprep.mubr.bf16.mxu1 %v16179_v50  ;;  %9411 = vmatprep.subr.bf16.mxu0 %v12842_v29 }
 0x63a   :  { %6954 = vst [vmem:[#allocation14 + $0x230] sm:$0xff] %v15426_v19  ;;  %6925 = vst [vmem:[#allocation14 + $0x270] sm:$0xff] %v17092_v1  ;;  %v17099_v14 = vadd.f32 %v6714_v27, %v16892_v40  ;;  %v6716_v46 = vpop.f32.mrb[183].mxu0  ;;  %v6858_v13 = vmul.f32 %v15426_v19, %v6826_v56  ;;  %v6889_v47 = vadd.f32 %v17060_v45, %v6857_v48  ;;  %9412 = vmatpush1.bf16.msra.mxu0 %v12841_v20 }
 0x63b   :  { %v6791_v28 = vmul.f32 1.442695, %v13542_v24  ;;  %v13544_v32 = vadd.f32 %v6716_v46, %v16895_v10  ;;  %v6830_v46 = vld [vmem:[#allocation5 + $0xd8] sm:$0xff] }
 0x63c   :  { %6926 = vst [vmem:[#allocation14 + $0x288] sm:$0xff] %v17099_v14  ;;  %v6890_v12 = vadd.f32 %v17067_v42, %v6858_v13  ;;  %6985 = vst [vmem:[#allocation14 + $0x220] sm:$0xff] %v6889_v47 }
 0x63d   :  { %15431 = vpow2.f32 %v6791_v28  ;;  %v6793_v21 = vmul.f32 1.442695, %v13544_v32 }
 0x63e   :  { %6986 = vst [vmem:[#allocation14 + $0x238] sm:$0xff] %v6890_v12  ;;  %v17105_v57 = vpack.c.bf16 %v6890_v12, %v6889_v47 }
 0x63f   :  { %v15428_v45 = vpop.eup %15427  ;;  %15433 = vpow2.f32 %v6793_v21  ;;  %v6720_v43 = vpop.f32.mrb[184].mxu0 }
 0x640   :  { %6955 = vst [vmem:[#allocation14 + $0x248] sm:$0xff] %v15428_v45  ;;  %v17108_v42 = vadd.f32 %v6720_v43, %v16892_v40  ;;  %v6722_v55 = vpop.f32.mrb[185].mxu0  ;;  %7368 = vmatmul.mubr.bf16.gmra.mrb[172].mxu1 %v17105_v57  ;;  %v6859_v2 = vmul.f32 %v15428_v45, %v6827_v38  ;;  %v6831_v43 = vld [vmem:[#allocation5 + $0xe0] sm:$0xff] }
 0x641   :  { %v15430_v9 = vpop.eup %15429  ;;  %v13546_v17 = vadd.f32 %v6722_v55, %v16895_v10  ;;  %v6724_v16 = vpop.f32.mrb[186].mxu0  ;;  %7377 = vmatprep.mubr.bf16.mxu1 %v16179_v50 }
 0x642   :  { %6956 = vst [vmem:[#allocation14 + $0x260] sm:$0xff] %v15430_v9  ;;  %6927 = vst [vmem:[#allocation14 + $0x2a0] sm:$0xff] %v17108_v42  ;;  %v13547_v22 = vadd.f32 %v6724_v16, %v16892_v40  ;;  %v6726_v30 = vpop.f32.mrb[187].mxu0  ;;  %v6860_v56 = vmul.f32 %v15430_v9, %v6828_v33  ;;  %v6891_v18 = vadd.f32 %v17076_v15, %v6859_v2  ;;  %v6833_v2 = vld [vmem:[#allocation5 + $0xf0] sm:$0xff] }
 0x643   :  { %v6795_v25 = vmul.f32 1.442695, %v13546_v17  ;;  %v13548_v37 = vadd.f32 %v6726_v30, %v16895_v10  ;;  %v6834_v17 = vld [vmem:[#allocation5 + $0xf8] sm:$0xff] }
 0x644   :  { %6928 = vst [vmem:[#allocation14 + $0x2b8] sm:$0xff] %v13547_v22  ;;  %v6892_v48 = vadd.f32 %v17083_v6, %v6860_v56  ;;  %6987 = vst [vmem:[#allocation14 + $0x250] sm:$0xff] %v6891_v18 }
 0x645   :  { %15435 = vpow2.f32 %v6795_v25  ;;  %v6797_v49 = vmul.f32 1.442695, %v13548_v37  ;;  %v7816_v25 = vld [vmem:[#allocation13 + $0x68] sm:$0xff] }
 0x646   :  { %6988 = vst [vmem:[#allocation14 + $0x268] sm:$0xff] %v6892_v48  ;;  %v17118_v19 = vpack.c.bf16 %v6892_v48, %v6891_v18  ;;  %v7820_v48 = vld [vmem:[#allocation13 + $0x88] sm:$0xff] }
 0x647   :  { %v15432_v24 = vpop.eup %15431  ;;  %15437 = vpow2.f32 %v6797_v49  ;;  %v6730_v27 = vpop.f32.mrb[188].mxu0  ;;  %v7824_v49 = vld [vmem:[#allocation13 + $0xa8] sm:$0xff] }
 0x648   :  { %6957 = vst [vmem:[#allocation14 + $0x278] sm:$0xff] %v15432_v24  ;;  %v13549_v15 = vadd.f32 %v6730_v27, %v16892_v40  ;;  %v6732_v13 = vpop.f32.mrb[189].mxu0  ;;  %7378 = vmatmul.mubr.bf16.gmra.mrb[176].mxu1 %v17118_v19  ;;  %v6861_v47 = vmul.f32 %v15432_v24, %v6829_v23  ;;  %v12740_v24 = vcombine.high %v7820_v48, %v7824_v49  ;;  %v7828_v27 = vld [vmem:[#allocation13 + $0xc8] sm:$0xff] }
 0x649   :  { %v15434_v28 = vpop.eup %15433  ;;  %v13550_v6 = vadd.f32 %v6732_v13, %v16895_v10  ;;  %v6734_v32 = vpop.f32.mrb[190].mxu0  ;;  %7387 = vmatprep.mubr.bf16.mxu1 %v16179_v50  ;;  %v17148_v13 = vld [vmem:[#allocation13 + $0x420] sm:$0xff] }
 0x64a   :  { %6958 = vst [vmem:[#allocation14 + $0x290] sm:$0xff] %v15434_v28  ;;  %6929 = vst [vmem:[#allocation14 + $0x2d0] sm:$0xff] %v13549_v15  ;;  %v13551_v51 = vadd.f32 %v6734_v32, %v16892_v40  ;;  %v6736_v0 = vpop.f32.mrb[191].mxu0  ;;  %v6862_v12 = vmul.f32 %v15434_v28, %v6830_v46  ;;  %v6893_v36 = vadd.f32 %v17092_v1, %v6861_v47  ;;  %v6832_v40 = vld [vmem:[#allocation5 + $0xe8] sm:$0xff] }
 0x64b   :  { %v6799_v21 = vmul.f32 1.442695, %v13550_v6  ;;  %v13552_v38 = vadd.f32 %v6736_v0, %v16895_v10  ;;  %v7832_v46 = vld [vmem:[#allocation13 + $0xe8] sm:$0xff] }
 0x64c   :  { %6930 = vst [vmem:[#allocation14 + $0x2e8] sm:$0xff] %v13551_v51  ;;  %v6894_v63 = vadd.f32 %v17099_v14, %v6862_v12  ;;  %6989 = vst [vmem:[#allocation14 + $0x280] sm:$0xff] %v6893_v36  ;;  %v17150_v47 = vld [vmem:[#allocation13 + $0x408] sm:$0xff]  ;;  %v12748_v6 = vcombine.high %v7828_v27, %v7832_v46  ;;  %v12747_v0 = vcombine.low %v7828_v27, %v7832_v46 }
 0x64d   :  { %15439 = vpow2.f32 %v6799_v21  ;;  %v6801_v45 = vmul.f32 1.442695, %v13552_v38  ;;  %v12851_v28 = vcombine.low %v17150_v47, %v17156_v60  ;;  %v7836_v32 = vld [vmem:[#allocation13 + $0x108] sm:$0xff] }
 0x64e   :  { %6990 = vst [vmem:[#allocation14 + $0x298] sm:$0xff] %v6894_v63  ;;  %v17128_v33 = vpack.c.bf16 %v6894_v63, %v6893_v36  ;;  %v7844_v36 = vld [vmem:[#allocation13 + $0x148] sm:$0xff] }
 0x64f   :  { %v15436_v59 = vpop.eup %15435  ;;  %15441 = vpow2.f32 %v6801_v45  ;;  %v7848_v21 = vld [vmem:[#allocation13 + $0x168] sm:$0xff] }
 0x650   :  { %6959 = vst [vmem:[#allocation14 + $0x2a8] sm:$0xff] %v15436_v59  ;;  %7388 = vmatmul.mubr.bf16.gmra.mrb[180].mxu1 %v17128_v33  ;;  %v6863_v1 = vmul.f32 %v15436_v59, %v6831_v43  ;;  %v12764_v63 = vcombine.high %v7844_v36, %v7848_v21  ;;  %v7852_v45 = vld [vmem:[#allocation13 + $0x188] sm:$0xff] }
 0x651   :  { %v15438_v41 = vpop.eup %15437  ;;  %7397 = vmatprep.mubr.bf16.mxu1 %v16179_v50  ;;  %v7856_v43 = vld [vmem:[#allocation13 + $0x1a8] sm:$0xff] }
 0x652   :  { %6960 = vst [vmem:[#allocation14 + $0x2c0] sm:$0xff] %v15438_v41  ;;  %v6864_v10 = vmul.f32 %v15438_v41, %v6832_v40  ;;  %v6895_v14 = vadd.f32 %v17108_v42, %v6863_v1  ;;  %v12772_v59 = vcombine.high %v7852_v45, %v7856_v43  ;;  %v7860_v40 = vld [vmem:[#allocation13 + $0x1c8] sm:$0xff]  ;;  %v12771_v41 = vcombine.low %v7852_v45, %v7856_v43 }
 0x653   :  { %v7864_v1 = vld [vmem:[#allocation13 + $0x1e8] sm:$0xff] }
 0x654   :  { %v6896_v55 = vadd.f32 %v13547_v22, %v6864_v10  ;;  %6991 = vst [vmem:[#allocation14 + $0x2b0] sm:$0xff] %v6895_v14  ;;  %v7812_v22 = vld [vmem:[#allocation13 + $0x48] sm:$0xff]  ;;  %v12780_v10 = vcombine.high %v7860_v40, %v7864_v1 }
 0x655   :  { %v12732_v37 = vcombine.high %v7812_v22, %v7816_v25  ;;  %v12731_v23 = vcombine.low %v7812_v22, %v7816_v25  ;;  %v7892_v22 = vld [vmem:[#allocation13 + $0x2c8] sm:$0xff] }
 0x656   :  { %6992 = vst [vmem:[#allocation14 + $0x2c8] sm:$0xff] %v6896_v55  ;;  %v17133_v29 = vpack.c.bf16 %v6896_v55, %v6895_v14  ;;  %v7868_v14 = vld [vmem:[#allocation13 + $0x208] sm:$0xff] }
 0x657   :  { %v15440_v9 = vpop.eup %15439  ;;  %v7872_v55 = vld [vmem:[#allocation13 + $0x228] sm:$0xff] }
 0x658   :  { %6961 = vst [vmem:[#allocation14 + $0x2d8] sm:$0xff] %v15440_v9  ;;  %7398 = vmatmul.mubr.bf16.gmra.mrb[184].mxu1 %v17133_v29  ;;  %v6865_v16 = vmul.f32 %v15440_v9, %v6833_v2  ;;  %v12788_v2 = vcombine.high %v7868_v14, %v7872_v55  ;;  %v7876_v9 = vld [vmem:[#allocation13 + $0x248] sm:$0xff] }
 0x659   :  { %v15442_v20 = vpop.eup %15441  ;;  %7407 = vmatprep.mubr.bf16.mxu1 %v16179_v50  ;;  %v7896_v25 = vld [vmem:[#allocation13 + $0x2e8] sm:$0xff] }
 0x65a   :  { %6962 = vst [vmem:[#allocation14 + $0x2f0] sm:$0xff] %v15442_v20  ;;  %v6866_v30 = vmul.f32 %v15442_v20, %v6834_v17  ;;  %v6897_v56 = vadd.f32 %v13549_v15, %v6865_v16  ;;  %v17146_v15 = vld [vmem:[#allocation13 + $0x400] sm:$0xff]  ;;  %v7880_v17 = vld [vmem:[#allocation13 + $0x268] sm:$0xff]  ;;  %v12787_v16 = vcombine.low %v7868_v14, %v7872_v55 }
 0x65b   :  { %v12850_v52 = vcombine.high %v17146_v15, %v17148_v13  ;;  %v12796_v20 = vcombine.high %v7876_v9, %v7880_v17  ;;  %v7908_v27 = vld [vmem:[#allocation13 + $0x348] sm:$0xff] }
 0x65c   :  { %v6898_v18 = vadd.f32 %v13551_v51, %v6866_v30  ;;  %6993 = vst [vmem:[#allocation14 + $0x2e0] sm:$0xff] %v6897_v56  ;;  %v7840_v51 = vld [vmem:[#allocation13 + $0x128] sm:$0xff] }
 0x65d   :  { %9574 = vmatprep.subr.bf16.mxu0 %v12850_v52  ;;  %v12756_v12 = vcombine.high %v7836_v32, %v7840_v51  ;;  %v12755_v38 = vcombine.low %v7836_v32, %v7840_v51  ;;  %v7884_v30 = vld [vmem:[#allocation13 + $0x288] sm:$0xff] }
 0x65e   :  { %6994 = vst [vmem:[#allocation14 + $0x2f8] sm:$0xff] %v6898_v18  ;;  %v17137_v42 = vpack.c.bf16 %v6898_v18, %v6897_v56  ;;  %v7888_v56 = vld [vmem:[#allocation13 + $0x2a8] sm:$0xff] }
 0x65f   :  { %v12804_v18 = vcombine.high %v7884_v30, %v7888_v56  ;;  %v7912_v46 = vld [vmem:[#allocation13 + $0x368] sm:$0xff] }
 0x660   :  { %7408 = vmatmul.mubr.bf16.gmra.mrb[188].mxu1 %v17137_v42  ;;  %v7920_v32 = vld [vmem:[#allocation13 + $0x3a8] sm:$0xff] }
 0x661   :  { %7450 = vmatprep.mubr.bf16.mxu1 %v16179_v50 }
 0x668   :  { %7451 = vmatmul.mubr.bf16.vlgmr.msra.gmra.mrb[192].mxu1 %v16921_v53  ;;  %v12849_v53 = vcombine.low %v17146_v15, %v17148_v13 }
 0x669   :  { %9768 = vmatpush1.bf16.msra.mxu1 %v12723_v35  ;;  %7460 = vmatprep.mubr.bf16.mxu1 %v16179_v50  ;;  %v12739_v35 = vcombine.low %v7820_v48, %v7824_v49  ;;  %v12812_v48 = vcombine.high %v7892_v22, %v7896_v25  ;;  %v7900_v49 = vld [vmem:[#allocation13 + $0x308] sm:$0xff] }
 0x66a   :  { %9769 = vmatprep.subr.bf16.mxu1 %v12732_v37  ;;  %v12803_v37 = vcombine.low %v7884_v30, %v7888_v56 }
 0x66d   :  { %9770 = vmatpush1.bf16.msra.mxu1 %v12731_v23  ;;  %v7904_v23 = vld [vmem:[#allocation13 + $0x328] sm:$0xff] }
 0x66e   :  { %9771 = vmatprep.subr.bf16.mxu1 %v12740_v24  ;;  %v12820_v24 = vcombine.high %v7900_v49, %v7904_v23  ;;  %v12819_v52 = vcombine.low %v7900_v49, %v7904_v23 }
 0x670   :  { %7461 = vmatmul.mubr.bf16.gmra.mrb[196].mxu1 %v16943_v31  ;;  %v12763_v31 = vcombine.low %v7844_v36, %v7848_v21 }
 0x671   :  { %7470 = vmatprep.mubr.bf16.mxu1 %v16179_v50  ;;  %9772 = vmatpush1.bf16.msra.mxu1 %v12739_v35  ;;  %v12828_v35 = vcombine.high %v7908_v27, %v7912_v46 }
 0x672   :  { %9773 = vmatprep.subr.bf16.mxu1 %v12748_v6  ;;  %v7916_v6 = vld [vmem:[#allocation13 + $0x388] sm:$0xff] }
 0x673   :  { %v12836_v51 = vcombine.high %v7916_v6, %v7920_v32  ;;  %v12835_v36 = vcombine.low %v7916_v6, %v7920_v32 }
 0x675   :  { %9774 = vmatpush1.bf16.msra.mxu1 %v12747_v0  ;;  %v7924_v0 = vld [vmem:[#allocation13 + $0x3c8] sm:$0xff] }
 0x676   :  { %9775 = vmatprep.subr.bf16.mxu1 %v12756_v12  ;;  %v7928_v12 = vld [vmem:[#allocation13 + $0x3e8] sm:$0xff] }
 0x677   :  { %v12844_v21 = vcombine.high %v7924_v0, %v7928_v12 }
 0x678   :  { %7471 = vmatmul.mubr.bf16.gmra.mrb[200].mxu1 %v16959_v11  ;;  %v12779_v11 = vcombine.low %v7860_v40, %v7864_v1 }
 0x679   :  { %7480 = vmatprep.mubr.bf16.mxu1 %v16179_v50  ;;  %9776 = vmatpush1.bf16.msra.mxu1 %v12755_v38  ;;  %v12843_v38 = vcombine.low %v7924_v0, %v7928_v12  ;;  %v7963_v12 = vld [vmem:[#allocation13 + $0x500] sm:$0xff] }
 0x67a   :  { %9777 = vmatprep.subr.bf16.mxu1 %v12764_v63 }
 0x67d   :  { %9778 = vmatpush1.bf16.msra.mxu1 %v12763_v31 }
 0x67e   :  { %9779 = vmatprep.subr.bf16.mxu1 %v12772_v59 }
 0x680   :  { %7481 = vmatmul.mubr.bf16.gmra.mrb[204].mxu1 %v16975_v39  ;;  %v12795_v39 = vcombine.low %v7876_v9, %v7880_v17 }
 0x681   :  { %7490 = vmatprep.mubr.bf16.mxu1 %v16179_v50  ;;  %9780 = vmatpush1.bf16.msra.mxu1 %v12771_v41 }
 0x682   :  { %9781 = vmatprep.subr.bf16.mxu1 %v12780_v10 }
 0x685   :  { %9782 = vmatpush1.bf16.msra.mxu1 %v12779_v11  ;;  %v7939_v11 = vld [vmem:[#allocation13 + $0x440] sm:$0xff] }
 0x686   :  { %9783 = vmatprep.subr.bf16.mxu1 %v12788_v2  ;;  %v7943_v2 = vld [vmem:[#allocation13 + $0x460] sm:$0xff] }
 0x687   :  { %v12858_v56 = vcombine.high %v7939_v11, %v7943_v2  ;;  %v12857_v49 = vcombine.low %v7939_v11, %v7943_v2 }
 0x688   :  { %7491 = vmatmul.mubr.bf16.gmra.mrb[208].mxu1 %v16993_v61  ;;  %v12811_v61 = vcombine.low %v7892_v22, %v7896_v25  ;;  %v7951_v22 = vld [vmem:[#allocation13 + $0x4a0] sm:$0xff] }
 0x689   :  { %7500 = vmatprep.mubr.bf16.mxu1 %v16179_v50  ;;  %9784 = vmatpush1.bf16.msra.mxu1 %v12787_v16 }
 0x68a   :  { %9785 = vmatprep.subr.bf16.mxu1 %v12796_v20 }
 0x68d   :  { %9786 = vmatpush1.bf16.msra.mxu1 %v12795_v39 }
 0x68e   :  { %9787 = vmatprep.subr.bf16.mxu1 %v12804_v18 }
 0x690   :  { %7501 = vmatmul.mubr.bf16.gmra.mrb[212].mxu1 %v17009_v62  ;;  %v12827_v62 = vcombine.low %v7908_v27, %v7912_v46 }
 0x691   :  { %7510 = vmatprep.mubr.bf16.mxu1 %v16179_v50  ;;  %9788 = vmatpush1.bf16.msra.mxu1 %v12803_v37 }
 0x692   :  { %9789 = vmatprep.subr.bf16.mxu1 %v12812_v48 }
 0x695   :  { %9790 = vmatpush1.bf16.msra.mxu1 %v12811_v61 }
 0x696   :  { %9791 = vmatprep.subr.bf16.mxu1 %v12820_v24 }
 0x698   :  { %7511 = vmatmul.mubr.bf16.gmra.mrb[216].mxu1 %v17025_v54  ;;  %v12852_v54 = vcombine.high %v17150_v47, %v17156_v60  ;;  %v17275_v47 = vld [vmem:[#allocation13 + $0x18] sm:$0xff] }
 0x699   :  { %7520 = vmatprep.mubr.bf16.mxu1 %v16179_v50  ;;  %9792 = vmatpush1.bf16.msra.mxu1 %v12819_v52  ;;  %v7955_v52 = vld [vmem:[#allocation13 + $0x4c0] sm:$0xff] }
 0x69a   :  { %9793 = vmatprep.subr.bf16.mxu1 %v12828_v35  ;;  %v7959_v35 = vld [vmem:[#allocation13 + $0x4e0] sm:$0xff] }
 0x69d   :  { %9794 = vmatpush1.bf16.msra.mxu1 %v12827_v62 }
 0x69e   :  { %9795 = vmatprep.subr.bf16.mxu1 %v12836_v51 }
 0x6a0   :  { %7521 = vmatmul.mubr.bf16.gmra.mrb[220].mxu1 %v17041_v44  ;;  %v17183_v44 = vld [vmem:[%s18108_s9] sm:$0xf] }
 0x6a1   :  { %7530 = vmatprep.mubr.bf16.mxu1 %v16179_v50  ;;  %9796 = vmatpush1.bf16.msra.mxu1 %v12835_v36  ;;  %v17188_v63 = vrot.slane %v17183_v44, %v16369_v4  ;;  %v7967_v36 = vld [vmem:[#allocation13 + $0x520] sm:$0xff] }
 0x6a2   :  { %9797 = vmatprep.subr.bf16.mxu1 %v12844_v21 }
 0x6a5   :  { %9798 = vmatpush1.bf16.msra.mxu1 %v12843_v38 }
 0x6a6   :  { %9960 = vmatprep.subr.bf16.mxu1 %v12852_v54 }
 0x6a8   :  { %7531 = vmatmul.mubr.bf16.gmra.mrb[224].mxu1 %v17057_v26  ;;  %v17192_v26 = vrot.slane %v17183_v44, %v16378_v7  ;;  %v7834_v7 = vld [vmem:[#allocation13 + $0xf8] sm:$0xff] }
 0x6a9   :  { %7540 = vmatprep.mubr.bf16.mxu1 %v16179_v50 }
 0x6b0   :  { %7541 = vmatmul.mubr.bf16.gmra.mrb[228].mxu1 %v17073_v58 }
 0x6b1   :  { %7550 = vmatprep.mubr.bf16.mxu1 %v16179_v50 }
 0x6b8   :  { %7551 = vmatmul.mubr.bf16.gmra.mrb[232].mxu1 %v17089_v34 }
 0x6b9   :  { %7560 = vmatprep.mubr.bf16.mxu1 %v16179_v50 }
 0x6bb   :  { %v7259_v58 = vpop.f32.mrb[128].mxu1 }
 0x6bc   :  { %v7260_v45 = vadd.f32 %v7259_v58, %v17188_v63  ;;  %v7261_v43 = vpop.f32.mrb[129].mxu1  ;;  %v12873_v58 = vcombine.low %v7955_v52, %v7959_v35 }
 0x6bd   :  { %v7262_v31 = vadd.f32 %v7261_v43, %v17192_v26  ;;  %v7263_v59 = vpop.f32.mrb[130].mxu1 }
 0x6be   :  { %v7264_v40 = vadd.f32 %v7263_v59, %v17188_v63  ;;  %v7265_v34 = vpop.f32.mrb[131].mxu1  ;;  %v7611_v41 = vmax.f32 %v7260_v45, 0.0 }
 0x6bf   :  { %v7266_v1 = vadd.f32 %v7265_v34, %v17192_v26  ;;  %v7612_v14 = vmax.f32 %v7262_v31, 0.0  ;;  %v12882_v31 = vcombine.high %v7963_v12, %v7967_v36  ;;  %v7971_v34 = vld [vmem:[#allocation13 + $0x540] sm:$0xff] }
 0x6c0   :  { %v7615_v10 = vmax.f32 %v7264_v40, 0.0  ;;  %7561 = vmatmul.mubr.bf16.gmra.mrb[236].mxu1 %v17105_v57  ;;  %v7947_v57 = vld [vmem:[#allocation13 + $0x480] sm:$0xff] }
 0x6c1   :  { %v7616_v55 = vmax.f32 %v7266_v1, 0.0  ;;  %7570 = vmatprep.mubr.bf16.mxu1 %v16179_v50  ;;  %v12866_v24 = vcombine.high %v7947_v57, %v7951_v22  ;;  %v12865_v15 = vcombine.low %v7947_v57, %v7951_v22  ;;  %v7975_v1 = vld [vmem:[#allocation13 + $0x560] sm:$0xff] }
 0x6c2   :  { %v17201_v9 = vpack.c.bf16 %v7615_v10, %v7611_v41  ;;  %v12889_v22 = vcombine.low %v7971_v34, %v7975_v1 }
 0x6c3   :  { %v17203_v17 = vpack.c.bf16 %v7616_v55, %v7612_v14  ;;  %v7269_v16 = vpop.f32.mrb[132].mxu1  ;;  %v12881_v55 = vcombine.low %v7963_v12, %v7967_v36 }
 0x6c4   :  { %v7270_v20 = vadd.f32 %v7269_v16, %v17188_v63  ;;  %v7271_v30 = vpop.f32.mrb[133].mxu1 }
 0x6c5   :  { %v7272_v39 = vadd.f32 %v7271_v30, %v17192_v26  ;;  %v7273_v18 = vpop.f32.mrb[134].mxu1  ;;  %9413 = vmatprep.mubr.bf16.mxu0 %v17203_v17  ;;  %v7979_v30 = vld [vmem:[#allocation13 + $0x580] sm:$0xff] }
 0x6c6   :  { %v7274_v25 = vadd.f32 %v7273_v18, %v17188_v63  ;;  %v7275_v37 = vpop.f32.mrb[135].mxu1  ;;  %9414 = vmatmul.mubr.bf16.vlgmr.msra.gmra.mrb[192].mxu0 %v17201_v9  ;;  %v7619_v23 = vmax.f32 %v7270_v20, 0.0 }
 0x6c7   :  { %v7276_v48 = vadd.f32 %v7275_v37, %v17192_v26  ;;  %9575 = vmatpush1.bf16.msra.mxu0 %v12849_v53  ;;  %v7620_v27 = vmax.f32 %v7272_v39, 0.0 }
 0x6c8   :  { %v7623_v61 = vmax.f32 %v7274_v25, 0.0  ;;  %7571 = vmatmul.mubr.bf16.gmra.mrb[240].mxu1 %v17118_v19  ;;  %9576 = vmatprep.subr.bf16.mxu0 %v12858_v56  ;;  %v12874_v19 = vcombine.high %v7955_v52, %v7959_v35  ;;  %v7983_v56 = vld [vmem:[#allocation13 + $0x5a0] sm:$0xff] }
 0x6c9   :  { %v7624_v46 = vmax.f32 %v7276_v48, 0.0  ;;  %7580 = vmatprep.mubr.bf16.mxu1 %v16179_v50  ;;  %v12898_v48 = vcombine.high %v7979_v30, %v7983_v56  ;;  %v12897_v35 = vcombine.low %v7979_v30, %v7983_v56  ;;  %v8015_v30 = vld [vmem:[#allocation13 + $0x6a0] sm:$0xff] }
 0x6ca   :  { %v17216_v6 = vpack.c.bf16 %v7623_v61, %v7619_v23  ;;  %v7987_v61 = vld [vmem:[#allocation13 + $0x5c0] sm:$0xff] }
 0x6cb   :  { %v17218_v32 = vpack.c.bf16 %v7624_v46, %v7620_v27  ;;  %v7279_v62 = vpop.f32.mrb[136].mxu1  ;;  %9577 = vmatpush1.bf16.msra.mxu0 %v12857_v49 }
 0x6cc   :  { %v7280_v13 = vadd.f32 %v7279_v62, %v17188_v63  ;;  %v7281_v53 = vpop.f32.mrb[137].mxu1  ;;  %9578 = vmatprep.subr.bf16.mxu0 %v12866_v24  ;;  %v7991_v24 = vld [vmem:[#allocation13 + $0x5e0] sm:$0xff] }
 0x6cd   :  { %v7282_v51 = vadd.f32 %v7281_v53, %v17192_v26  ;;  %v7283_v0 = vpop.f32.mrb[138].mxu1  ;;  %9423 = vmatprep.mubr.bf16.mxu0 %v17218_v32  ;;  %v12905_v36 = vcombine.low %v7987_v61, %v7991_v24 }
 0x6ce   :  { %v7284_v21 = vadd.f32 %v7283_v0, %v17188_v63  ;;  %v7285_v38 = vpop.f32.mrb[139].mxu1  ;;  %9424 = vmatmul.mubr.bf16.gmra.mrb[196].mxu0 %v17216_v6  ;;  %v7627_v45 = vmax.f32 %v7280_v13, 0.0 }
 0x6cf   :  { %v7286_v54 = vadd.f32 %v7285_v38, %v17192_v26  ;;  %9579 = vmatpush1.bf16.msra.mxu0 %v12865_v15  ;;  %v7628_v59 = vmax.f32 %v7282_v51, 0.0 }
 0x6d0   :  { %v7631_v43 = vmax.f32 %v7284_v21, 0.0  ;;  %7581 = vmatmul.mubr.bf16.gmra.mrb[244].mxu1 %v17128_v33  ;;  %9580 = vmatprep.subr.bf16.mxu0 %v12874_v19  ;;  %v12890_v33 = vcombine.high %v7971_v34, %v7975_v1  ;;  %v7999_v19 = vld [vmem:[#allocation13 + $0x620] sm:$0xff]  ;;  %v7940_v1 = vld [vmem:[#allocation13 + $0x448] sm:$0xff] }
 0x6d1   :  { %v7632_v40 = vmax.f32 %v7286_v54, 0.0  ;;  %7590 = vmatprep.mubr.bf16.mxu1 %v16179_v50 }
 0x6d2   :  { %v17228_v41 = vpack.c.bf16 %v7631_v43, %v7627_v45  ;;  %v8003_v43 = vld [vmem:[#allocation13 + $0x640] sm:$0xff] }
 0x6d3   :  { %v17230_v10 = vpack.c.bf16 %v7632_v40, %v7628_v59  ;;  %v7289_v14 = vpop.f32.mrb[140].mxu1  ;;  %9581 = vmatpush1.bf16.msra.mxu0 %v12873_v58 }
 0x6d4   :  { %v7290_v11 = vadd.f32 %v7289_v14, %v17188_v63  ;;  %v7291_v2 = vpop.f32.mrb[141].mxu1  ;;  %9582 = vmatprep.subr.bf16.mxu0 %v12882_v31  ;;  %v8007_v31 = vld [vmem:[#allocation13 + $0x660] sm:$0xff]  ;;  %v7944_v14 = vld [vmem:[#allocation13 + $0x468] sm:$0xff] }
 0x6d5   :  { %v7292_v16 = vadd.f32 %v7291_v2, %v17192_v26  ;;  %v7293_v20 = vpop.f32.mrb[142].mxu1  ;;  %9433 = vmatprep.mubr.bf16.mxu0 %v17230_v10  ;;  %v12922_v2 = vcombine.high %v8003_v43, %v8007_v31 }
 0x6d6   :  { %v7294_v39 = vadd.f32 %v7293_v20, %v17188_v63  ;;  %v7295_v18 = vpop.f32.mrb[143].mxu1  ;;  %9434 = vmatmul.mubr.bf16.gmra.mrb[200].mxu0 %v17228_v41  ;;  %v7635_v25 = vmax.f32 %v7290_v11, 0.0  ;;  %v8011_v20 = vld [vmem:[#allocation13 + $0x680] sm:$0xff] }
 0x6d7   :  { %v7296_v57 = vadd.f32 %v7295_v18, %v17192_v26  ;;  %9583 = vmatpush1.bf16.msra.mxu0 %v12881_v55  ;;  %v7636_v49 = vmax.f32 %v7292_v16, 0.0  ;;  %v12860_v18 = vcombine.high %v7940_v1, %v7944_v14 }
 0x6d8   :  { %v7639_v37 = vmax.f32 %v7294_v39, 0.0  ;;  %7591 = vmatmul.mubr.bf16.gmra.mrb[248].mxu1 %v17133_v29  ;;  %9584 = vmatprep.subr.bf16.mxu0 %v12890_v33  ;;  %v12906_v29 = vcombine.high %v7987_v61, %v7991_v24 }
 0x6d9   :  { %v7640_v23 = vmax.f32 %v7296_v57, 0.0  ;;  %7600 = vmatprep.mubr.bf16.mxu1 %v16179_v50  ;;  %v7995_v50 = vld [vmem:[#allocation13 + $0x600] sm:$0xff] }
 0x6da   :  { %v17240_v27 = vpack.c.bf16 %v7639_v37, %v7635_v25  ;;  %v12914_v54 = vcombine.high %v7995_v50, %v7999_v19  ;;  %v12913_v55 = vcombine.low %v7995_v50, %v7999_v19  ;;  %v7952_v25 = vld [vmem:[#allocation13 + $0x4a8] sm:$0xff]  ;;  %v12921_v37 = vcombine.low %v8003_v43, %v8007_v31  ;;  %v8027_v43 = vld [vmem:[#allocation13 + $0x700] sm:$0xff] }
 0x6db   :  { %v17242_v46 = vpack.c.bf16 %v7640_v23, %v7636_v49  ;;  %v7299_v52 = vpop.f32.mrb[144].mxu1  ;;  %9585 = vmatpush1.bf16.msra.mxu0 %v12889_v22  ;;  %v7948_v22 = vld [vmem:[#allocation13 + $0x488] sm:$0xff]  ;;  %v12930_v23 = vcombine.high %v8011_v20, %v8015_v30  ;;  %v8031_v31 = vld [vmem:[#allocation13 + $0x720] sm:$0xff] }
 0x6dc   :  { %v7300_v62 = vadd.f32 %v7299_v52, %v17188_v63  ;;  %v7301_v15 = vpop.f32.mrb[145].mxu1  ;;  %9586 = vmatprep.subr.bf16.mxu0 %v12898_v48  ;;  %v12859_v52 = vcombine.low %v7940_v1, %v7944_v14 }
 0x6dd   :  { %v7302_v13 = vadd.f32 %v7301_v15, %v17192_v26  ;;  %v7303_v53 = vpop.f32.mrb[146].mxu1  ;;  %9443 = vmatprep.mubr.bf16.mxu0 %v17242_v46 }
 0x6de   :  { %v7304_v51 = vadd.f32 %v7303_v53, %v17188_v63  ;;  %v7305_v0 = vpop.f32.mrb[147].mxu1  ;;  %9444 = vmatmul.mubr.bf16.gmra.mrb[204].mxu0 %v17240_v27  ;;  %v7643_v21 = vmax.f32 %v7300_v62, 0.0  ;;  %v8023_v62 = vld [vmem:[#allocation13 + $0x6e0] sm:$0xff]  ;;  %v7960_v53 = vld [vmem:[#allocation13 + $0x4e8] sm:$0xff] }
 0x6df   :  { %v7306_v12 = vadd.f32 %v7305_v0, %v17192_v26  ;;  %9587 = vmatpush1.bf16.msra.mxu0 %v12897_v35  ;;  %v7644_v58 = vmax.f32 %v7302_v13, 0.0  ;;  %v8019_v35 = vld [vmem:[#allocation13 + $0x6c0] sm:$0xff]  ;;  %v7956_v13 = vld [vmem:[#allocation13 + $0x4c8] sm:$0xff]  ;;  %v17271_v0 = vld [vmem:[#allocation13 + $0x10] sm:$0xff] }
 0x6e0   :  { %v7647_v38 = vmax.f32 %v7304_v51, 0.0  ;;  %7601 = vmatmul.mubr.bf16.gmra.mrb[252].mxu1 %v17137_v42  ;;  %9588 = vmatprep.subr.bf16.mxu0 %v12906_v29  ;;  %v12868_v29 = vcombine.high %v7948_v22, %v7952_v25  ;;  %v12929_v51 = vcombine.low %v8011_v20, %v8015_v30  ;;  %v12946_v30 = vcombine.high %v8027_v43, %v8031_v31 }
 0x6e1   :  { %v7648_v45 = vmax.f32 %v7306_v12, 0.0  ;;  %9799 = vmatprep.mubr.bf16.mxu1 %v17203_v17  ;;  %v17273_v12 = vld [vmem:[#allocation13 + $0x30] sm:$0xff] }
 0x6e2   :  { %v17252_v59 = vpack.c.bf16 %v7647_v38, %v7643_v21  ;;  %v12725_v21 = vcombine.low %v17271_v0, %v17273_v12  ;;  %v17280_v38 = vld [vmem:[#allocation13 + $0x38] sm:$0xff] }
 0x6e3   :  { %v17254_v40 = vpack.c.bf16 %v7648_v45, %v7644_v58  ;;  %v7309_v34 = vpop.f32.mrb[148].mxu1  ;;  %9589 = vmatpush1.bf16.msra.mxu0 %v12905_v36  ;;  %v12938_v36 = vcombine.high %v8019_v35, %v8023_v62  ;;  %v12867_v45 = vcombine.low %v7948_v22, %v7952_v25  ;;  %v8039_v22 = vld [vmem:[#allocation13 + $0x760] sm:$0xff] }
 0x6e4   :  { %v7310_v11 = vadd.f32 %v7309_v34, %v17188_v63  ;;  %v7311_v42 = vpop.f32.mrb[149].mxu1  ;;  %9590 = vmatprep.subr.bf16.mxu0 %v12914_v54  ;;  %v7833_v34 = vld [vmem:[#allocation13 + $0xf0] sm:$0xff] }
 0x6e5   :  { %v7312_v33 = vadd.f32 %v7311_v42, %v17192_v26  ;;  %v7313_v16 = vpop.f32.mrb[150].mxu1  ;;  %9453 = vmatprep.mubr.bf16.mxu0 %v17254_v40  ;;  %v7964_v42 = vld [vmem:[#allocation13 + $0x508] sm:$0xff] }
 0x6e6   :  { %v7314_v56 = vadd.f32 %v7313_v16, %v17188_v63  ;;  %v7315_v39 = vpop.f32.mrb[151].mxu1  ;;  %9454 = vmatmul.mubr.bf16.gmra.mrb[208].mxu0 %v17252_v59  ;;  %v7651_v48 = vmax.f32 %v7310_v11, 0.0 }
 0x6e7   :  { %v7316_v57 = vadd.f32 %v7315_v39, %v17192_v26  ;;  %9591 = vmatpush1.bf16.msra.mxu0 %v12913_v55  ;;  %v7652_v61 = vmax.f32 %v7312_v33, 0.0  ;;  %v12876_v55 = vcombine.high %v7956_v13, %v7960_v53  ;;  %v12937_v33 = vcombine.low %v8019_v35, %v8023_v62 }
 0x6e8   :  { %v7655_v49 = vmax.f32 %v7314_v56, 0.0  ;;  %9800 = vmatmul.mubr.bf16.vlgmr.msra.gmra.mrb[0].mxu1 %v17201_v9  ;;  %9592 = vmatprep.subr.bf16.mxu0 %v12922_v2  ;;  %v7968_v2 = vld [vmem:[#allocation13 + $0x528] sm:$0xff] }
 0x6e9   :  { %v7656_v24 = vmax.f32 %v7316_v57, 0.0  ;;  %9809 = vmatprep.mubr.bf16.mxu1 %v17218_v32  ;;  %9961 = vmatpush1.bf16.msra.mxu1 %v12851_v28  ;;  %v8035_v57 = vld [vmem:[#allocation13 + $0x740] sm:$0xff] }
 0x6ea   :  { %v17267_v15 = vpack.c.bf16 %v7655_v49, %v7651_v48  ;;  %9962 = vmatprep.subr.bf16.mxu1 %v12860_v18  ;;  %v12875_v18 = vcombine.low %v7956_v13, %v7960_v53  ;;  %v12954_v62 = vcombine.high %v8035_v57, %v8039_v22  ;;  %v12883_v53 = vcombine.low %v7964_v42, %v7968_v2 }
 0x6eb   :  { %v17269_v50 = vpack.c.bf16 %v7656_v24, %v7652_v61  ;;  %v7319_v19 = vpop.f32.mrb[152].mxu1  ;;  %9593 = vmatpush1.bf16.msra.mxu0 %v12921_v37  ;;  %v12884_v37 = vcombine.high %v7964_v42, %v7968_v2  ;;  %v7976_v61 = vld [vmem:[#allocation13 + $0x568] sm:$0xff]  ;;  %v12945_v24 = vcombine.low %v8027_v43, %v8031_v31  ;;  %v12953_v43 = vcombine.low %v8035_v57, %v8039_v22  ;;  %v8051_v2 = vld [vmem:[#allocation13 + $0x7c0] sm:$0xff] }
 0x6ec   :  { %v7320_v60 = vadd.f32 %v7319_v19, %v17188_v63  ;;  %v7321_v28 = vpop.f32.mrb[153].mxu1  ;;  %9594 = vmatprep.subr.bf16.mxu0 %v12930_v23  ;;  %v7972_v23 = vld [vmem:[#allocation13 + $0x548] sm:$0xff]  ;;  %v8043_v19 = vld [vmem:[#allocation13 + $0x780] sm:$0xff] }
 0x6ed   :  { %v7322_v54 = vadd.f32 %v7321_v28, %v17192_v26  ;;  %v7323_v58 = vpop.f32.mrb[154].mxu1  ;;  %9463 = vmatprep.mubr.bf16.mxu0 %v17269_v50  ;;  %9963 = vmatpush1.bf16.msra.mxu1 %v12859_v52  ;;  %v12891_v42 = vcombine.low %v7972_v23, %v7976_v61 }
 0x6ee   :  { %v7324_v1 = vadd.f32 %v7323_v58, %v17188_v63  ;;  %v7325_v14 = vpop.f32.mrb[155].mxu1  ;;  %9464 = vmatmul.mubr.bf16.gmra.mrb[212].mxu0 %v17267_v15  ;;  %9964 = vmatprep.subr.bf16.mxu1 %v12868_v29  ;;  %v7659_v16 = vmax.f32 %v7320_v60, 0.0  ;;  %v7980_v58 = vld [vmem:[#allocation13 + $0x588] sm:$0xff] }
 0x6ef   :  { %v7326_v11 = vadd.f32 %v7325_v14, %v17192_v26  ;;  %9595 = vmatpush1.bf16.msra.mxu0 %v12929_v51  ;;  %v7660_v56 = vmax.f32 %v7322_v54, 0.0  ;;  %v8047_v51 = vld [vmem:[#allocation13 + $0x7a0] sm:$0xff] }
 0x6f0   :  { %v7663_v20 = vmax.f32 %v7324_v1, 0.0  ;;  %9810 = vmatmul.mubr.bf16.gmra.mrb[4].mxu1 %v17216_v6  ;;  %9596 = vmatprep.subr.bf16.mxu0 %v12938_v36  ;;  %v12892_v36 = vcombine.high %v7972_v23, %v7976_v61  ;;  %v12962_v14 = vcombine.high %v8043_v19, %v8047_v51  ;;  %v12961_v57 = vcombine.low %v8043_v19, %v8047_v51 }
 0x6f1   :  { %v7664_v39 = vmax.f32 %v7326_v11, 0.0  ;;  %9819 = vmatprep.mubr.bf16.mxu1 %v17230_v10  ;;  %9965 = vmatpush1.bf16.msra.mxu1 %v12867_v45  ;;  %v7984_v45 = vld [vmem:[#allocation13 + $0x5a8] sm:$0xff] }
 0x6f2   :  { %v17291_v25 = vpack.c.bf16 %v7663_v20, %v7659_v16  ;;  %9966 = vmatprep.subr.bf16.mxu1 %v12876_v55  ;;  %v12900_v20 = vcombine.high %v7980_v58, %v7984_v45 }
 0x6f3   :  { %v17293_v48 = vpack.c.bf16 %v7664_v39, %v7660_v56  ;;  %v7329_v49 = vpop.f32.mrb[156].mxu1  ;;  %9597 = vmatpush1.bf16.msra.mxu0 %v12937_v33  ;;  %v8055_v33 = vld [vmem:[#allocation13 + $0x7e0] sm:$0xff]  ;;  %v7988_v39 = vld [vmem:[#allocation13 + $0x5c8] sm:$0xff] }
 0x6f4   :  { %v7330_v52 = vadd.f32 %v7329_v49, %v17188_v63  ;;  %v7331_v35 = vpop.f32.mrb[157].mxu1  ;;  %9598 = vmatprep.subr.bf16.mxu0 %v12946_v30  ;;  %v12970_v49 = vcombine.high %v8051_v2, %v8055_v33  ;;  %v12969_v19 = vcombine.low %v8051_v2, %v8055_v33 }
 0x6f5   :  { %v7332_v29 = vadd.f32 %v7331_v35, %v17192_v26  ;;  %v7333_v13 = vpop.f32.mrb[158].mxu1  ;;  %9473 = vmatprep.mubr.bf16.mxu0 %v17293_v48  ;;  %9967 = vmatpush1.bf16.msra.mxu1 %v12875_v18  ;;  %v7992_v18 = vld [vmem:[#allocation13 + $0x5e8] sm:$0xff] }
 0x6f6   :  { %v7334_v60 = vadd.f32 %v7333_v13, %v17188_v63  ;;  %v7335_v28 = vpop.f32.mrb[159].mxu1  ;;  %9474 = vmatmul.mubr.bf16.gmra.mrb[216].mxu0 %v17291_v25  ;;  %9968 = vmatprep.subr.bf16.mxu1 %v12884_v37  ;;  %v7667_v31 = vmax.f32 %v7330_v52, 0.0  ;;  %v7996_v13 = vld [vmem:[#allocation13 + $0x608] sm:$0xff] }
 0x6f7   :  { %v7336_v54 = vadd.f32 %v7335_v28, %v17192_v26  ;;  %9599 = vmatpush1.bf16.msra.mxu0 %v12945_v24  ;;  %v7668_v55 = vmax.f32 %v7332_v29, 0.0  ;;  %v12899_v24 = vcombine.low %v7980_v58, %v7984_v45  ;;  %v12726_v28 = vcombine.high %v17271_v0, %v17273_v12 }
 0x6f8   :  { %v7671_v1 = vmax.f32 %v7334_v60, 0.0  ;;  %9820 = vmatmul.mubr.bf16.gmra.mrb[8].mxu1 %v17228_v41  ;;  %9600 = vmatprep.subr.bf16.mxu0 %v12954_v62  ;;  %v12908_v62 = vcombine.high %v7988_v39, %v7992_v18  ;;  %v12907_v58 = vcombine.low %v7988_v39, %v7992_v18 }
 0x6f9   :  { %v7672_v11 = vmax.f32 %v7336_v54, 0.0  ;;  %9829 = vmatprep.mubr.bf16.mxu1 %v17242_v46  ;;  %9969 = vmatpush1.bf16.msra.mxu1 %v12883_v53  ;;  %v8000_v53 = vld [vmem:[#allocation13 + $0x628] sm:$0xff] }
 0x6fa   :  { %v17303_v16 = vpack.c.bf16 %v7671_v1, %v7667_v31  ;;  %9970 = vmatprep.subr.bf16.mxu1 %v12892_v36 }
 0x6fb   :  { %v17305_v30 = vpack.c.bf16 %v7672_v11, %v7668_v55  ;;  %v7339_v56 = vpop.f32.mrb[160].mxu1  ;;  %9601 = vmatpush1.bf16.msra.mxu0 %v12953_v43  ;;  %v12916_v43 = vcombine.high %v7996_v13, %v8000_v53  ;;  %v8008_v55 = vld [vmem:[#allocation13 + $0x668] sm:$0xff] }
 0x6fc   :  { %v7340_v22 = vadd.f32 %v7339_v56, %v17188_v63  ;;  %v7341_v37 = vpop.f32.mrb[161].mxu1  ;;  %9602 = vmatprep.subr.bf16.mxu0 %v12962_v14  ;;  %v8004_v14 = vld [vmem:[#allocation13 + $0x648] sm:$0xff] }
 0x6fd   :  { %v7342_v23 = vadd.f32 %v7341_v37, %v17192_v26  ;;  %v7343_v61 = vpop.f32.mrb[162].mxu1  ;;  %9483 = vmatprep.mubr.bf16.mxu0 %v17305_v30  ;;  %9971 = vmatpush1.bf16.msra.mxu1 %v12891_v42  ;;  %v12924_v18 = vcombine.high %v8004_v14, %v8008_v55  ;;  %v8016_v37 = vld [vmem:[#allocation13 + $0x6a8] sm:$0xff] }
 0x6fe   :  { %v7344_v52 = vadd.f32 %v7343_v61, %v17188_v63  ;;  %v7345_v35 = vpop.f32.mrb[163].mxu1  ;;  %9484 = vmatmul.mubr.bf16.gmra.mrb[220].mxu0 %v17303_v16  ;;  %9972 = vmatprep.subr.bf16.mxu1 %v12900_v20  ;;  %v7675_v51 = vmax.f32 %v7340_v22, 0.0  ;;  %v12915_v20 = vcombine.low %v7996_v13, %v8000_v53  ;;  %v8012_v22 = vld [vmem:[#allocation13 + $0x688] sm:$0xff] }
 0x6ff   :  { %v7346_v29 = vadd.f32 %v7345_v35, %v17192_v26  ;;  %9603 = vmatpush1.bf16.msra.mxu0 %v12961_v57  ;;  %v7676_v36 = vmax.f32 %v7342_v23, 0.0  ;;  %v8020_v53 = vld [vmem:[#allocation13 + $0x6c8] sm:$0xff] }
 0x700   :  { %v7679_v60 = vmax.f32 %v7344_v52, 0.0  ;;  %9830 = vmatmul.mubr.bf16.gmra.mrb[12].mxu1 %v17240_v27  ;;  %9604 = vmatprep.subr.bf16.mxu0 %v12970_v49  ;;  %v12923_v52 = vcombine.low %v8004_v14, %v8008_v55  ;;  %v8028_v55 = vld [vmem:[#allocation13 + $0x708] sm:$0xff] }
 0x701   :  { %v7680_v54 = vmax.f32 %v7346_v29, 0.0  ;;  %9839 = vmatprep.mubr.bf16.mxu1 %v17254_v40  ;;  %9973 = vmatpush1.bf16.msra.mxu1 %v12899_v24 }
 0x702   :  { %v17317_v45 = vpack.c.bf16 %v7679_v60, %v7675_v51  ;;  %9974 = vmatprep.subr.bf16.mxu1 %v12908_v62  ;;  %v12932_v62 = vcombine.high %v8012_v22, %v8016_v37 }
 0x703   :  { %v17319_v31 = vpack.c.bf16 %v7680_v54, %v7676_v36  ;;  %v7349_v1 = vpop.f32.mrb[164].mxu1  ;;  %9605 = vmatpush1.bf16.msra.mxu0 %v12969_v19  ;;  %v8024_v19 = vld [vmem:[#allocation13 + $0x6e8] sm:$0xff]  ;;  %v12931_v54 = vcombine.low %v8012_v22, %v8016_v37 }
 0x704   :  { %v7350_v11 = vadd.f32 %v7349_v1, %v17188_v63  ;;  %v7351_v42 = vpop.f32.mrb[165].mxu1  ;;  %10153 = vmatprep.subr.bf16.mxu0 %v12726_v28  ;;  %v12940_v1 = vcombine.high %v8020_v53, %v8024_v19  ;;  %v8036_v37 = vld [vmem:[#allocation13 + $0x748] sm:$0xff] }
 0x705   :  { %v7352_v2 = vadd.f32 %v7351_v42, %v17192_v26  ;;  %v7353_v33 = vpop.f32.mrb[166].mxu1  ;;  %9493 = vmatprep.mubr.bf16.mxu0 %v17319_v31  ;;  %9975 = vmatpush1.bf16.msra.mxu1 %v12907_v58 }
 0x706   :  { %v7354_v56 = vadd.f32 %v7353_v33, %v17188_v63  ;;  %v7355_v39 = vpop.f32.mrb[167].mxu1  ;;  %9494 = vmatmul.mubr.bf16.gmra.mrb[224].mxu0 %v17317_v45  ;;  %9976 = vmatprep.subr.bf16.mxu1 %v12916_v43  ;;  %v7683_v49 = vmax.f32 %v7350_v11, 0.0  ;;  %v8032_v11 = vld [vmem:[#allocation13 + $0x728] sm:$0xff] }
 0x707   :  { %v7356_v57 = vadd.f32 %v7355_v39, %v17192_v26  ;;  %v7684_v61 = vmax.f32 %v7352_v2, 0.0 }
 0x708   :  { %v7687_v23 = vmax.f32 %v7354_v56, 0.0  ;;  %9840 = vmatmul.mubr.bf16.gmra.mrb[16].mxu1 %v17252_v59  ;;  %v12939_v56 = vcombine.low %v8020_v53, %v8024_v19 }
 0x709   :  { %v7688_v24 = vmax.f32 %v7356_v57, 0.0  ;;  %9849 = vmatprep.mubr.bf16.mxu1 %v17269_v50  ;;  %9977 = vmatpush1.bf16.msra.mxu1 %v12915_v20 }
 0x70a   :  { %v17329_v35 = vpack.c.bf16 %v7687_v23, %v7683_v49  ;;  %9978 = vmatprep.subr.bf16.mxu1 %v12924_v18  ;;  %v12948_v18 = vcombine.high %v8028_v55, %v8032_v11  ;;  %v8040_v49 = vld [vmem:[#allocation13 + $0x768] sm:$0xff] }
 0x70b   :  { %v17331_v29 = vpack.c.bf16 %v7688_v24, %v7684_v61  ;;  %v7359_v13 = vpop.f32.mrb[168].mxu1  ;;  %v12956_v19 = vcombine.high %v8036_v37, %v8040_v49 }
 0x70c   :  { %v7360_v51 = vadd.f32 %v7359_v13, %v17188_v63  ;;  %v7361_v60 = vpop.f32.mrb[169].mxu1 }
 0x70d   :  { %v7362_v28 = vadd.f32 %v7361_v60, %v17192_v26  ;;  %v7363_v36 = vpop.f32.mrb[170].mxu1  ;;  %9503 = vmatprep.mubr.bf16.mxu0 %v17331_v29  ;;  %9979 = vmatpush1.bf16.msra.mxu1 %v12923_v52  ;;  %v8044_v60 = vld [vmem:[#allocation13 + $0x788] sm:$0xff] }
 0x70e   :  { %v7364_v58 = vadd.f32 %v7363_v36, %v17188_v63  ;;  %v7365_v43 = vpop.f32.mrb[171].mxu1  ;;  %9504 = vmatmul.mubr.bf16.gmra.mrb[228].mxu0 %v17329_v35  ;;  %9980 = vmatprep.subr.bf16.mxu1 %v12932_v62  ;;  %v7691_v42 = vmax.f32 %v7360_v51, 0.0  ;;  %v12947_v62 = vcombine.low %v8028_v55, %v8032_v11 }
 0x70f   :  { %v7366_v14 = vadd.f32 %v7365_v43, %v17192_v26  ;;  %v7692_v33 = vmax.f32 %v7362_v28, 0.0  ;;  %v8048_v28 = vld [vmem:[#allocation13 + $0x7a8] sm:$0xff] }
 0x710   :  { %v7695_v2 = vmax.f32 %v7364_v58, 0.0  ;;  %9850 = vmatmul.mubr.bf16.gmra.mrb[20].mxu1 %v17267_v15  ;;  %v12964_v55 = vcombine.high %v8044_v60, %v8048_v28 }
 0x711   :  { %v7696_v20 = vmax.f32 %v7366_v14, 0.0  ;;  %9859 = vmatprep.mubr.bf16.mxu1 %v17293_v48  ;;  %9981 = vmatpush1.bf16.msra.mxu1 %v12931_v54 }
 0x712   :  { %v17341_v39 = vpack.c.bf16 %v7695_v2, %v7691_v42  ;;  %9982 = vmatprep.subr.bf16.mxu1 %v12940_v1  ;;  %v12955_v1 = vcombine.low %v8036_v37, %v8040_v49  ;;  %v8052_v2 = vld [vmem:[#allocation13 + $0x7c8] sm:$0xff] }
 0x713   :  { %v17343_v57 = vpack.c.bf16 %v7696_v20, %v7692_v33  ;;  %v7369_v22 = vpop.f32.mrb[172].mxu1  ;;  %v8056_v33 = vld [vmem:[#allocation13 + $0x7e8] sm:$0xff] }
 0x714   :  { %v7370_v23 = vadd.f32 %v7369_v22, %v17188_v63  ;;  %v7371_v61 = vpop.f32.mrb[173].mxu1 }
 0x715   :  { %v7372_v24 = vadd.f32 %v7371_v61, %v17192_v26  ;;  %v7373_v52 = vpop.f32.mrb[174].mxu1  ;;  %9513 = vmatprep.mubr.bf16.mxu0 %v17343_v57  ;;  %9983 = vmatpush1.bf16.msra.mxu1 %v12939_v56  ;;  %v12972_v61 = vcombine.high %v8052_v2, %v8056_v33 }
 0x716   :  { %v7374_v13 = vadd.f32 %v7373_v52, %v17188_v63  ;;  %v7375_v53 = vpop.f32.mrb[175].mxu1  ;;  %9514 = vmatmul.mubr.bf16.gmra.mrb[232].mxu0 %v17341_v39  ;;  %9984 = vmatprep.subr.bf16.mxu1 %v12948_v18  ;;  %v7699_v36 = vmax.f32 %v7370_v23, 0.0  ;;  %v12963_v23 = vcombine.low %v8044_v60, %v8048_v28  ;;  %v12728_v60 = vcombine.high %v17275_v47, %v17280_v38 }
 0x717   :  { %v7376_v51 = vadd.f32 %v7375_v53, %v17192_v26  ;;  %v7700_v58 = vmax.f32 %v7372_v24, 0.0 }
 0x718   :  { %v7703_v54 = vmax.f32 %v7374_v13, 0.0  ;;  %9860 = vmatmul.mubr.bf16.gmra.mrb[24].mxu1 %v17291_v25 }
 0x719   :  { %v7704_v43 = vmax.f32 %v7376_v51, 0.0  ;;  %9869 = vmatprep.mubr.bf16.mxu1 %v17305_v30  ;;  %9985 = vmatpush1.bf16.msra.mxu1 %v12947_v62 }
 0x71a   :  { %v17353_v14 = vpack.c.bf16 %v7703_v54, %v7699_v36  ;;  %9986 = vmatprep.subr.bf16.mxu1 %v12956_v19  ;;  %v12971_v19 = vcombine.low %v8052_v2, %v8056_v33 }
 0x71b   :  { %v17355_v11 = vpack.c.bf16 %v7704_v43, %v7700_v58  ;;  %v7379_v42 = vpop.f32.mrb[176].mxu1 }
 0x71c   :  { %18166 = vst [vmem:[#allocation28_spill] sm:$0xff] %v17353_v14  ;;  %v7380_v20 = vadd.f32 %v7379_v42, %v17188_v63  ;;  %v7381_v56 = vpop.f32.mrb[177].mxu1 }
 0x71d   :  { %18167 = vst [vmem:[#allocation29_spill] sm:$0xff] %v17355_v11  ;;  %v7382_v18 = vadd.f32 %v7381_v56, %v17192_v26  ;;  %v7383_v22 = vpop.f32.mrb[178].mxu1  ;;  %9523 = vmatprep.mubr.bf16.mxu0 %v17355_v11  ;;  %9987 = vmatpush1.bf16.msra.mxu1 %v12955_v1 }
 0x71e   :  { %v7384_v37 = vadd.f32 %v7383_v22, %v17188_v63  ;;  %v7385_v49 = vpop.f32.mrb[179].mxu1  ;;  %9524 = vmatmul.mubr.bf16.gmra.mrb[236].mxu0 %v17353_v14  ;;  %9988 = vmatprep.subr.bf16.mxu1 %v12964_v55  ;;  %v7707_v52 = vmax.f32 %v7380_v20, 0.0 }
 0x71f   :  { %v7386_v24 = vadd.f32 %v7385_v49, %v17192_v26  ;;  %v7708_v13 = vmax.f32 %v7382_v18, 0.0 }
 0x720   :  { %v7711_v62 = vmax.f32 %v7384_v37, 0.0  ;;  %9870 = vmatmul.mubr.bf16.gmra.mrb[28].mxu1 %v17303_v16 }
 0x721   :  { %v7712_v53 = vmax.f32 %v7386_v24, 0.0  ;;  %9879 = vmatprep.mubr.bf16.mxu1 %v17319_v31  ;;  %9989 = vmatpush1.bf16.msra.mxu1 %v12963_v23 }
 0x722   :  { %v17365_v51 = vpack.c.bf16 %v7711_v62, %v7707_v52  ;;  %9990 = vmatprep.subr.bf16.mxu1 %v12972_v61 }
 0x723   :  { %v17369_v28 = vpack.c.bf16 %v7712_v53, %v7708_v13  ;;  %v7389_v36 = vpop.f32.mrb[180].mxu1 }
 0x724   :  { %18168 = vst [vmem:[#allocation30_spill] sm:$0xff] %v17365_v51  ;;  %v7390_v54 = vadd.f32 %v7389_v36, %v17188_v63  ;;  %v7391_v58 = vpop.f32.mrb[181].mxu1 }
 0x725   :  { %18169 = vst [vmem:[#allocation31_spill] sm:$0xff] %v17369_v28  ;;  %v7392_v43 = vadd.f32 %v7391_v58, %v17192_v26  ;;  %v7393_v1 = vpop.f32.mrb[182].mxu1  ;;  %9533 = vmatprep.mubr.bf16.mxu0 %v17369_v28  ;;  %9991 = vmatpush1.bf16.msra.mxu1 %v12971_v19 }
 0x726   :  { %v7394_v55 = vadd.f32 %v7393_v1, %v17188_v63  ;;  %v7395_v42 = vpop.f32.mrb[183].mxu1  ;;  %9534 = vmatmul.mubr.bf16.gmra.mrb[240].mxu0 %v17365_v51  ;;  %10539 = vmatprep.subr.bf16.mxu1 %v12728_v60  ;;  %v7715_v33 = vmax.f32 %v7390_v54, 0.0 }
 0x727   :  { %v7396_v2 = vadd.f32 %v7395_v42, %v17192_v26  ;;  %v7716_v56 = vmax.f32 %v7392_v43, 0.0 }
 0x728   :  { %v7719_v20 = vmax.f32 %v7394_v55, 0.0  ;;  %9880 = vmatmul.mubr.bf16.gmra.mrb[32].mxu1 %v17317_v45 }
 0x729   :  { %v7720_v18 = vmax.f32 %v7396_v2, 0.0  ;;  %9889 = vmatprep.mubr.bf16.mxu1 %v17331_v29 }
 0x72a   :  { %v17379_v22 = vpack.c.bf16 %v7719_v20, %v7715_v33 }
 0x72b   :  { %v17381_v23 = vpack.c.bf16 %v7720_v18, %v7716_v56  ;;  %v7399_v37 = vpop.f32.mrb[184].mxu1 }
 0x72c   :  { %18170 = vst [vmem:[#allocation32_spill] sm:$0xff] %v17379_v22  ;;  %v7400_v49 = vadd.f32 %v7399_v37, %v17188_v63  ;;  %v7401_v61 = vpop.f32.mrb[185].mxu1 }
 0x72d   :  { %18171 = vst [vmem:[#allocation33_spill] sm:$0xff] %v17381_v23  ;;  %v7402_v24 = vadd.f32 %v7401_v61, %v17192_v26  ;;  %v7403_v52 = vpop.f32.mrb[186].mxu1  ;;  %9543 = vmatprep.mubr.bf16.mxu0 %v17381_v23  ;;  %v17404_v61 = vrot.slane %v17183_v44, %v16372_v5 }
 0x72e   :  { %v7404_v62 = vadd.f32 %v7403_v52, %v17188_v63  ;;  %v7405_v13 = vpop.f32.mrb[187].mxu1  ;;  %9544 = vmatmul.mubr.bf16.gmra.mrb[244].mxu0 %v17379_v22  ;;  %v7723_v19 = vmax.f32 %v7400_v49, 0.0 }
 0x72f   :  { %v7406_v53 = vadd.f32 %v7405_v13, %v17192_v26  ;;  %v7724_v36 = vmax.f32 %v7402_v24, 0.0 }
 0x730   :  { %v7727_v60 = vmax.f32 %v7404_v62, 0.0  ;;  %9890 = vmatmul.mubr.bf16.gmra.mrb[36].mxu1 %v17329_v35 }
 0x731   :  { %v7728_v54 = vmax.f32 %v7406_v53, 0.0  ;;  %9899 = vmatprep.mubr.bf16.mxu1 %v17343_v57 }
 0x732   :  { %v17391_v58 = vpack.c.bf16 %v7727_v60, %v7723_v19 }
 0x733   :  { %v17393_v43 = vpack.c.bf16 %v7728_v54, %v7724_v36  ;;  %v7409_v1 = vpop.f32.mrb[188].mxu1 }
 0x734   :  { %18172 = vst [vmem:[#allocation34_spill] sm:$0xff] %v17391_v58  ;;  %v7410_v55 = vadd.f32 %v7409_v1, %v17188_v63  ;;  %v7411_v42 = vpop.f32.mrb[189].mxu1 }
 0x735   :  { %18173 = vst [vmem:[#allocation35_spill] sm:$0xff] %v17393_v43  ;;  %v7412_v2 = vadd.f32 %v7411_v42, %v17192_v26  ;;  %v7413_v33 = vpop.f32.mrb[190].mxu1  ;;  %9553 = vmatprep.mubr.bf16.mxu0 %v17393_v43 }
 0x736   :  { %v7414_v20 = vadd.f32 %v7413_v33, %v17188_v63  ;;  %v7415_v56 = vpop.f32.mrb[191].mxu1  ;;  %9554 = vmatmul.mubr.bf16.gmra.mrb[248].mxu0 %v17391_v58  ;;  %v7731_v37 = vmax.f32 %v7410_v55, 0.0  ;;  %v17409_v63 = vrot.slane %v17183_v44, %v16381_v8 }
 0x737   :  { %v7416_v18 = vadd.f32 %v7415_v56, %v17192_v26  ;;  %v7732_v24 = vmax.f32 %v7412_v2, 0.0  ;;  %v7817_v56 = vld [vmem:[#allocation13 + $0x70] sm:$0xff] }
 0x738   :  { %v7735_v49 = vmax.f32 %v7414_v20, 0.0  ;;  %9900 = vmatmul.mubr.bf16.gmra.mrb[40].mxu1 %v17341_v39  ;;  %v7813_v20 = vld [vmem:[#allocation13 + $0x50] sm:$0xff] }
 0x739   :  { %v7736_v52 = vmax.f32 %v7416_v18, 0.0  ;;  %9909 = vmatprep.mubr.bf16.mxu1 %v17355_v11  ;;  %v7913_v11 = vld [vmem:[#allocation13 + $0x370] sm:$0xff] }
 0x73a   :  { %v17411_v62 = vpack.c.bf16 %v7735_v49, %v7731_v37 }
 0x73b   :  { %v17413_v13 = vpack.c.bf16 %v7736_v52, %v7732_v24  ;;  %v7452_v26 = vpop.f32.mrb[192].mxu1 }
 0x73c   :  { %18174 = vst [vmem:[#allocation36_spill] sm:$0xff] %v17411_v62  ;;  %v7453_v53 = vadd.f32 %v7452_v26, %v17404_v61  ;;  %v7454_v19 = vpop.f32.mrb[193].mxu1  ;;  %v12734_v26 = vcombine.high %v7813_v20, %v7817_v56 }
 0x73d   :  { %18175 = vst [vmem:[#allocation37_spill] sm:$0xff] %v17413_v13  ;;  %v7455_v60 = vadd.f32 %v7454_v19, %v17409_v63  ;;  %v7456_v36 = vpop.f32.mrb[194].mxu1  ;;  %9563 = vmatprep.mubr.bf16.mxu0 %v17413_v13 }
 0x73e   :  { %v7457_v54 = vadd.f32 %v7456_v36, %v17404_v61  ;;  %v7458_v1 = vpop.f32.mrb[195].mxu1  ;;  %9564 = vmatmul.mubr.bf16.gmra.mrb[252].mxu0 %v17411_v62  ;;  %v7613_v55 = vmax.f32 %v7453_v53, 0.0  ;;  %v7825_v36 = vld [vmem:[#allocation13 + $0xb0] sm:$0xff] }
 0x73f   :  { %v7459_v44 = vadd.f32 %v7458_v1, %v17409_v63  ;;  %v7614_v2 = vmax.f32 %v7455_v60, 0.0  ;;  %v7821_v60 = vld [vmem:[#allocation13 + $0x90] sm:$0xff] }
 0x740   :  { %v7617_v42 = vmax.f32 %v7457_v54, 0.0  ;;  %9910 = vmatmul.mubr.bf16.gmra.mrb[44].mxu1 %v17353_v14  ;;  %v12741_v0 = vcombine.low %v7821_v60, %v7825_v36 }
 0x741   :  { %v7618_v33 = vmax.f32 %v7459_v44, 0.0  ;;  %9919 = vmatprep.mubr.bf16.mxu1 %v17369_v28  ;;  %v17493_v28 = vld [vmem:[#allocation13 + $0x438] sm:$0xff] }
 0x742   :  { %v17423_v18 = vpack.c.bf16 %v7617_v42, %v7613_v55  ;;  %v12733_v55 = vcombine.low %v7813_v20, %v7817_v56 }
 0x743   :  { %v17425_v37 = vpack.c.bf16 %v7618_v33, %v7614_v2  ;;  %v7462_v49 = vpop.f32.mrb[196].mxu1  ;;  %v12742_v33 = vcombine.high %v7821_v60, %v7825_v36 }
 0x744   :  { %18176 = vst [vmem:[#allocation38_spill] sm:$0xff] %v17423_v18  ;;  %v7463_v24 = vadd.f32 %v7462_v49, %v17404_v61  ;;  %v7464_v52 = vpop.f32.mrb[197].mxu1 }
 0x745   :  { %18177 = vst [vmem:[#allocation39_spill] sm:$0xff] %v17425_v37  ;;  %v7465_v53 = vadd.f32 %v7464_v52, %v17409_v63  ;;  %v7466_v19 = vpop.f32.mrb[198].mxu1  ;;  %9606 = vmatprep.mubr.bf16.mxu0 %v17425_v37 }
 0x746   :  { %v7467_v54 = vadd.f32 %v7466_v19, %v17404_v61  ;;  %v7468_v1 = vpop.f32.mrb[199].mxu1  ;;  %9607 = vmatmul.mubr.bf16.vlgmr.msra.gmra.mrb[192].mxu0 %v17423_v18  ;;  %v7621_v42 = vmax.f32 %v7463_v24, 0.0  ;;  %v7829_v19 = vld [vmem:[#allocation13 + $0xd0] sm:$0xff] }
 0x747   :  { %v7469_v44 = vadd.f32 %v7468_v1, %v17409_v63  ;;  %10154 = vmatpush1.bf16.msra.mxu0 %v12725_v21  ;;  %v7622_v49 = vmax.f32 %v7465_v53, 0.0  ;;  %v12750_v20 = vcombine.high %v7829_v19, %v7833_v34  ;;  %v7841_v53 = vld [vmem:[#allocation13 + $0x130] sm:$0xff]  ;;  %v12749_v60 = vcombine.low %v7829_v19, %v7833_v34 }
 0x748   :  { %v7625_v2 = vmax.f32 %v7467_v54, 0.0  ;;  %9920 = vmatmul.mubr.bf16.gmra.mrb[48].mxu1 %v17365_v51  ;;  %10155 = vmatprep.subr.bf16.mxu0 %v12734_v26  ;;  %v7837_v26 = vld [vmem:[#allocation13 + $0x110] sm:$0xff]  ;;  %v17491_v51 = vld [vmem:[#allocation13 + $0x418] sm:$0xff] }
 0x749   :  { %v7626_v52 = vmax.f32 %v7469_v44, 0.0  ;;  %9929 = vmatprep.mubr.bf16.mxu1 %v17381_v23 }
 0x74a   :  { %v17438_v3 = vpack.c.bf16 %v7625_v2, %v7621_v42  ;;  %v12758_v42 = vcombine.high %v7837_v26, %v7841_v53 }
 0x74b   :  { %v17440_v1 = vpack.c.bf16 %v7626_v52, %v7622_v49  ;;  %v7472_v8 = vpop.f32.mrb[200].mxu1  ;;  %10156 = vmatpush1.bf16.msra.mxu0 %v12733_v55  ;;  %v7845_v49 = vld [vmem:[#allocation13 + $0x150] sm:$0xff] }
 0x74c   :  { %18178 = vst [vmem:[#allocation40_spill] sm:$0xff] %v17438_v3  ;;  %v7473_v12 = vadd.f32 %v7472_v8, %v17404_v61  ;;  %v7474_v21 = vpop.f32.mrb[201].mxu1  ;;  %10157 = vmatprep.subr.bf16.mxu0 %v12742_v33  ;;  %v7849_v52 = vld [vmem:[#allocation13 + $0x170] sm:$0xff] }
 0x74d   :  { %18179 = vst [vmem:[#allocation41_spill] sm:$0xff] %v17440_v1  ;;  %v7475_v56 = vadd.f32 %v7474_v21, %v17409_v63  ;;  %v7476_v24 = vpop.f32.mrb[202].mxu1  ;;  %9616 = vmatprep.mubr.bf16.mxu0 %v17440_v1 }
 0x74e   :  { %v7477_v54 = vadd.f32 %v7476_v24, %v17404_v61  ;;  %v7478_v44 = vpop.f32.mrb[203].mxu1  ;;  %9617 = vmatmul.mubr.bf16.gmra.mrb[196].mxu0 %v17438_v3  ;;  %v7629_v8 = vmax.f32 %v7473_v12, 0.0  ;;  %v12766_v12 = vcombine.high %v7845_v49, %v7849_v52 }
 0x74f   :  { %v7479_v55 = vadd.f32 %v7478_v44, %v17409_v63  ;;  %10158 = vmatpush1.bf16.msra.mxu0 %v12741_v0  ;;  %v7630_v2 = vmax.f32 %v7475_v56, 0.0  ;;  %v12757_v0 = vcombine.low %v7837_v26, %v7841_v53  ;;  %v7857_v44 = vld [vmem:[#allocation13 + $0x1b0] sm:$0xff]  ;;  %v12765_v26 = vcombine.low %v7845_v49, %v7849_v52 }
 0x750   :  { %v7633_v36 = vmax.f32 %v7477_v54, 0.0  ;;  %9930 = vmatmul.mubr.bf16.gmra.mrb[52].mxu1 %v17379_v22  ;;  %10159 = vmatprep.subr.bf16.mxu0 %v12750_v20  ;;  %v7853_v54 = vld [vmem:[#allocation13 + $0x190] sm:$0xff] }
 0x751   :  { %v7634_v33 = vmax.f32 %v7479_v55, 0.0  ;;  %9939 = vmatprep.mubr.bf16.mxu1 %v17393_v43 }
 0x752   :  { %v17450_v21 = vpack.c.bf16 %v7633_v36, %v7629_v8  ;;  %v12774_v36 = vcombine.high %v7853_v54, %v7857_v44 }
 0x753   :  { %v17452_v24 = vpack.c.bf16 %v7634_v33, %v7630_v2  ;;  %v7482_v5 = vpop.f32.mrb[204].mxu1  ;;  %10160 = vmatpush1.bf16.msra.mxu0 %v12749_v60  ;;  %v7861_v33 = vld [vmem:[#allocation13 + $0x1d0] sm:$0xff] }
 0x754   :  { %v7483_v34 = vadd.f32 %v7482_v5, %v17404_v61  ;;  %v7484_v19 = vpop.f32.mrb[205].mxu1  ;;  %10161 = vmatprep.subr.bf16.mxu0 %v12758_v42 }
 0x755   :  { %18180 = vst [vmem:[#allocation42_spill] sm:$0xff] %v17452_v24  ;;  %v7485_v20 = vadd.f32 %v7484_v19, %v17409_v63  ;;  %v7486_v56 = vpop.f32.mrb[206].mxu1  ;;  %9626 = vmatprep.mubr.bf16.mxu0 %v17452_v24  ;;  %v7865_v19 = vld [vmem:[#allocation13 + $0x1f0] sm:$0xff] }
 0x756   :  { %v7487_v55 = vadd.f32 %v7486_v56, %v17404_v61  ;;  %v7488_v8 = vpop.f32.mrb[207].mxu1  ;;  %9627 = vmatmul.mubr.bf16.gmra.mrb[200].mxu0 %v17450_v21  ;;  %v7637_v5 = vmax.f32 %v7483_v34, 0.0  ;;  %v12782_v34 = vcombine.high %v7861_v33, %v7865_v19 }
 0x757   :  { %v7489_v60 = vadd.f32 %v7488_v8, %v17409_v63  ;;  %10162 = vmatpush1.bf16.msra.mxu0 %v12757_v0  ;;  %v7638_v42 = vmax.f32 %v7485_v20, 0.0  ;;  %v12773_v0 = vcombine.low %v7853_v54, %v7857_v44  ;;  %v7873_v8 = vld [vmem:[#allocation13 + $0x230] sm:$0xff]  ;;  %v12781_v54 = vcombine.low %v7861_v33, %v7865_v19 }
 0x758   :  { %v7641_v53 = vmax.f32 %v7487_v55, 0.0  ;;  %9940 = vmatmul.mubr.bf16.gmra.mrb[56].mxu1 %v17391_v58  ;;  %10163 = vmatprep.subr.bf16.mxu0 %v12766_v12  ;;  %v7869_v55 = vld [vmem:[#allocation13 + $0x210] sm:$0xff] }
 0x759   :  { %v7642_v2 = vmax.f32 %v7489_v60, 0.0  ;;  %9949 = vmatprep.mubr.bf16.mxu1 %v17413_v13  ;;  %v12789_v33 = vcombine.low %v7869_v55, %v7873_v8 }
 0x75a   :  { %v17462_v56 = vpack.c.bf16 %v7641_v53, %v7637_v5  ;;  %v12790_v53 = vcombine.high %v7869_v55, %v7873_v8 }
 0x75b   :  { %v17464_v43 = vpack.c.bf16 %v7642_v2, %v7638_v42  ;;  %v7492_v22 = vpop.f32.mrb[208].mxu1  ;;  %10164 = vmatpush1.bf16.msra.mxu0 %v12765_v26  ;;  %v7877_v2 = vld [vmem:[#allocation13 + $0x250] sm:$0xff] }
 0x75c   :  { %v7493_v49 = vadd.f32 %v7492_v22, %v17404_v61  ;;  %v7494_v52 = vpop.f32.mrb[209].mxu1  ;;  %10165 = vmatprep.subr.bf16.mxu0 %v12774_v36 }
 0x75d   :  { %v7495_v12 = vadd.f32 %v7494_v52, %v17409_v63  ;;  %v7496_v20 = vpop.f32.mrb[210].mxu1  ;;  %9636 = vmatprep.mubr.bf16.mxu0 %v17464_v43  ;;  %v7881_v52 = vld [vmem:[#allocation13 + $0x270] sm:$0xff] }
 0x75e   :  { %v7497_v60 = vadd.f32 %v7496_v20, %v17404_v61  ;;  %v7498_v5 = vpop.f32.mrb[211].mxu1  ;;  %9637 = vmatmul.mubr.bf16.gmra.mrb[204].mxu0 %v17462_v56  ;;  %v7645_v22 = vmax.f32 %v7493_v49, 0.0  ;;  %v12797_v8 = vcombine.low %v7877_v2, %v7881_v52 }
 0x75f   :  { %v7499_v26 = vadd.f32 %v7498_v5, %v17409_v63  ;;  %10166 = vmatpush1.bf16.msra.mxu0 %v12773_v0  ;;  %v7646_v36 = vmax.f32 %v7495_v12, 0.0  ;;  %v7814_v5 = vld [vmem:[#allocation13 + $0x58] sm:$0xff] }
 0x760   :  { %v7649_v44 = vmax.f32 %v7497_v60, 0.0  ;;  %9950 = vmatmul.mubr.bf16.gmra.mrb[60].mxu1 %v17411_v62  ;;  %10167 = vmatprep.subr.bf16.mxu0 %v12782_v34  ;;  %v7818_v0 = vld [vmem:[#allocation13 + $0x78] sm:$0xff]  ;;  %v12798_v34 = vcombine.high %v7877_v2, %v7881_v52  ;;  %v18181_v2 = vcombine.low %v17275_v47, %v17280_v38 }
 0x761   :  { %v7650_v42 = vmax.f32 %v7499_v26, 0.0  ;;  %9992 = vmatprep.mubr.bf16.mxu1 %v17425_v37  ;;  %v7885_v26 = vld [vmem:[#allocation13 + $0x290] sm:$0xff]  ;;  %v12735_v52 = vcombine.low %v7814_v5, %v7818_v0 }
 0x762   :  { %v17474_v20 = vpack.c.bf16 %v7649_v44, %v7645_v22  ;;  %v7889_v22 = vld [vmem:[#allocation13 + $0x2b0] sm:$0xff] }
 0x763   :  { %v17476_v13 = vpack.c.bf16 %v7650_v42, %v7646_v36  ;;  %v7502_v58 = vpop.f32.mrb[212].mxu1  ;;  %10168 = vmatpush1.bf16.msra.mxu0 %v12781_v54  ;;  %v12736_v42 = vcombine.high %v7814_v5, %v7818_v0  ;;  %v7822_v54 = vld [vmem:[#allocation13 + $0x98] sm:$0xff] }
 0x764   :  { %v7503_v19 = vadd.f32 %v7502_v58, %v17404_v61  ;;  %v7504_v49 = vpop.f32.mrb[213].mxu1  ;;  %10169 = vmatprep.subr.bf16.mxu0 %v12790_v53  ;;  %v7826_v58 = vld [vmem:[#allocation13 + $0xb8] sm:$0xff]  ;;  %v17484_v53 = vld [vmem:[#allocation13 + $0x410] sm:$0xff] }
 0x765   :  { %v7505_v12 = vadd.f32 %v7504_v49, %v17409_v63  ;;  %v7506_v60 = vpop.f32.mrb[214].mxu1  ;;  %9646 = vmatprep.mubr.bf16.mxu0 %v17476_v13  ;;  %v17486_v49 = vld [vmem:[#allocation13 + $0x430] sm:$0xff]  ;;  %v12744_v23 = vcombine.high %v7822_v54, %v7826_v58 }
 0x766   :  { %v7507_v44 = vadd.f32 %v7506_v60, %v17404_v61  ;;  %v7508_v36 = vpop.f32.mrb[215].mxu1  ;;  %9647 = vmatmul.mubr.bf16.gmra.mrb[208].mxu0 %v17474_v20  ;;  %v7653_v37 = vmax.f32 %v7503_v19, 0.0  ;;  %v12806_v60 = vcombine.high %v7885_v26, %v7889_v22  ;;  %v7893_v19 = vld [vmem:[#allocation13 + $0x2d0] sm:$0xff] }
 0x767   :  { %v7509_v55 = vadd.f32 %v7508_v36, %v17409_v63  ;;  %10170 = vmatpush1.bf16.msra.mxu0 %v12789_v33  ;;  %v7654_v36 = vmax.f32 %v7505_v12, 0.0 }
 0x768   :  { %v7657_v62 = vmax.f32 %v7507_v44, 0.0  ;;  %9993 = vmatmul.mubr.bf16.vlgmr.msra.gmra.mrb[0].mxu1 %v17423_v18  ;;  %10171 = vmatprep.subr.bf16.mxu0 %v12798_v34  ;;  %v7897_v44 = vld [vmem:[#allocation13 + $0x2f0] sm:$0xff] }
 0x769   :  { %v7658_v33 = vmax.f32 %v7509_v55, 0.0  ;;  %10002 = vmatprep.mubr.bf16.mxu1 %v17440_v1  ;;  %10540 = vmatpush1.bf16.msra.mxu1 %v18181_v2  ;;  %v7830_v55 = vld [vmem:[#allocation13 + $0xd8] sm:$0xff]  ;;  %v12805_v1 = vcombine.low %v7885_v26, %v7889_v22  ;;  %v12814_v5 = vcombine.high %v7893_v19, %v7897_v44 }
 0x76a   :  { %v17501_v18 = vpack.c.bf16 %v7657_v62, %v7653_v37  ;;  %10541 = vmatprep.subr.bf16.mxu1 %v12736_v42  ;;  %v12743_v62 = vcombine.low %v7822_v54, %v7826_v58  ;;  %v7901_v37 = vld [vmem:[#allocation13 + $0x310] sm:$0xff]  ;;  %v12752_v26 = vcombine.high %v7830_v55, %v7834_v7 }
 0x76b   :  { %v17503_v14 = vpack.c.bf16 %v7658_v33, %v7654_v36  ;;  %v7512_v12 = vpop.f32.mrb[216].mxu1  ;;  %10172 = vmatpush1.bf16.msra.mxu0 %v12797_v8  ;;  %v7905_v42 = vld [vmem:[#allocation13 + $0x330] sm:$0xff]  ;;  %v7838_v8 = vld [vmem:[#allocation13 + $0x118] sm:$0xff] }
 0x76c   :  { %18182 = vst [vmem:[#allocation43_spill] sm:$0xff] %v17501_v18  ;;  %v7513_v47 = vadd.f32 %v7512_v12, %v17404_v61  ;;  %v7514_v38 = vpop.f32.mrb[217].mxu1  ;;  %10173 = vmatprep.subr.bf16.mxu0 %v12806_v60  ;;  %v7842_v60 = vld [vmem:[#allocation13 + $0x138] sm:$0xff]  ;;  %v12813_v12 = vcombine.low %v7893_v19, %v7897_v44  ;;  %v12822_v54 = vcombine.high %v7901_v37, %v7905_v42 }
 0x76d   :  { %v7515_v0 = vadd.f32 %v7514_v38, %v17409_v63  ;;  %v7516_v2 = vpop.f32.mrb[218].mxu1  ;;  %9656 = vmatprep.mubr.bf16.mxu0 %v17503_v14  ;;  %10542 = vmatpush1.bf16.msra.mxu1 %v12735_v52  ;;  %v7846_v44 = vld [vmem:[#allocation13 + $0x158] sm:$0xff] }
 0x76e   :  { %v7517_v36 = vadd.f32 %v7516_v2, %v17404_v61  ;;  %v7518_v33 = vpop.f32.mrb[219].mxu1  ;;  %9657 = vmatmul.mubr.bf16.gmra.mrb[212].mxu0 %v17501_v18  ;;  %10543 = vmatprep.subr.bf16.mxu1 %v12744_v23  ;;  %v7661_v38 = vmax.f32 %v7513_v47, 0.0  ;;  %v12751_v2 = vcombine.low %v7830_v55, %v7834_v7  ;;  %v7909_v23 = vld [vmem:[#allocation13 + $0x350] sm:$0xff]  ;;  %v7850_v47 = vld [vmem:[#allocation13 + $0x178] sm:$0xff] }
 0x76f   :  { %v7519_v22 = vadd.f32 %v7518_v33, %v17409_v63  ;;  %10174 = vmatpush1.bf16.msra.mxu0 %v12805_v1  ;;  %v7662_v58 = vmax.f32 %v7515_v0, 0.0  ;;  %v12760_v33 = vcombine.high %v7838_v8, %v7842_v60 }
 0x770   :  { %v7665_v34 = vmax.f32 %v7517_v36, 0.0  ;;  %10003 = vmatmul.mubr.bf16.gmra.mrb[4].mxu1 %v17438_v3  ;;  %10175 = vmatprep.subr.bf16.mxu0 %v12814_v5  ;;  %v12821_v5 = vcombine.low %v7901_v37, %v7905_v42  ;;  %v12768_v37 = vcombine.high %v7846_v44, %v7850_v47 }
 0x771   :  { %v7666_v52 = vmax.f32 %v7519_v22, 0.0  ;;  %10012 = vmatprep.mubr.bf16.mxu1 %v17452_v24  ;;  %10544 = vmatpush1.bf16.msra.mxu1 %v12743_v62  ;;  %v12830_v22 = vcombine.high %v7909_v23, %v7913_v11  ;;  %v7917_v62 = vld [vmem:[#allocation13 + $0x390] sm:$0xff] }
 0x772   :  { %v17513_v4 = vpack.c.bf16 %v7665_v34, %v7661_v38  ;;  %10545 = vmatprep.subr.bf16.mxu1 %v12752_v26  ;;  %v12759_v34 = vcombine.low %v7838_v8, %v7842_v60  ;;  %v7921_v26 = vld [vmem:[#allocation13 + $0x3b0] sm:$0xff] }
 0x773   :  { %v17515_v1 = vpack.c.bf16 %v7666_v52, %v7662_v58  ;;  %v7522_v19 = vpop.f32.mrb[220].mxu1  ;;  %10176 = vmatpush1.bf16.msra.mxu0 %v12813_v12  ;;  %v7854_v12 = vld [vmem:[#allocation13 + $0x198] sm:$0xff]  ;;  %v12829_v52 = vcombine.low %v7909_v23, %v7913_v11  ;;  %v12838_v8 = vcombine.high %v7917_v62, %v7921_v26  ;;  %v7929_v24 = vld [vmem:[#allocation13 + $0x3f0] sm:$0xff] }
 0x774   :  { %18183 = vst [vmem:[#allocation44_spill] sm:$0xff] %v17513_v4  ;;  %v7523_v0 = vadd.f32 %v7522_v19, %v17404_v61  ;;  %v7524_v36 = vpop.f32.mrb[221].mxu1  ;;  %10177 = vmatprep.subr.bf16.mxu0 %v12822_v54  ;;  %v7858_v54 = vld [vmem:[#allocation13 + $0x1b8] sm:$0xff] }
 0x775   :  { %18184 = vst [vmem:[#allocation45_spill] sm:$0xff] %v17515_v1  ;;  %v7525_v7 = vadd.f32 %v7524_v36, %v17409_v63  ;;  %v7526_v55 = vpop.f32.mrb[222].mxu1  ;;  %9666 = vmatprep.mubr.bf16.mxu0 %v17515_v1  ;;  %10546 = vmatpush1.bf16.msra.mxu1 %v12751_v2  ;;  %v7862_v23 = vld [vmem:[#allocation13 + $0x1d8] sm:$0xff] }
 0x776   :  { %v7527_v38 = vadd.f32 %v7526_v55, %v17404_v61  ;;  %v7528_v58 = vpop.f32.mrb[223].mxu1  ;;  %9667 = vmatmul.mubr.bf16.gmra.mrb[216].mxu0 %v17513_v4  ;;  %10547 = vmatprep.subr.bf16.mxu1 %v12760_v33  ;;  %v7669_v19 = vmax.f32 %v7523_v0, 0.0  ;;  %v12767_v55 = vcombine.low %v7846_v44, %v7850_v47  ;;  %v7925_v33 = vld [vmem:[#allocation13 + $0x3d0] sm:$0xff]  ;;  %v7866_v0 = vld [vmem:[#allocation13 + $0x1f8] sm:$0xff] }
 0x777   :  { %v7529_v42 = vadd.f32 %v7528_v58, %v17409_v63  ;;  %10178 = vmatpush1.bf16.msra.mxu0 %v12821_v5  ;;  %v7670_v60 = vmax.f32 %v7525_v7, 0.0  ;;  %v12776_v58 = vcombine.high %v7854_v12, %v7858_v54 }
 0x778   :  { %v7673_v36 = vmax.f32 %v7527_v38, 0.0  ;;  %10013 = vmatmul.mubr.bf16.gmra.mrb[8].mxu1 %v17450_v21  ;;  %10179 = vmatprep.subr.bf16.mxu0 %v12830_v22  ;;  %v12837_v22 = vcombine.low %v7917_v62, %v7921_v26  ;;  %v7870_v26 = vld [vmem:[#allocation13 + $0x218] sm:$0xff] }
 0x779   :  { %v7674_v2 = vmax.f32 %v7529_v42, 0.0  ;;  %10022 = vmatprep.mubr.bf16.mxu1 %v17464_v43  ;;  %10548 = vmatpush1.bf16.msra.mxu1 %v12759_v34  ;;  %v12846_v42 = vcombine.high %v7925_v33, %v7929_v24  ;;  %v12775_v34 = vcombine.low %v7854_v12, %v7858_v54  ;;  %v12854_v12 = vcombine.high %v17484_v53, %v17486_v49 }
 0x77a   :  { %v17525_v3 = vpack.c.bf16 %v7673_v36, %v7669_v19  ;;  %10549 = vmatprep.subr.bf16.mxu1 %v12768_v37  ;;  %v7874_v36 = vld [vmem:[#allocation13 + $0x238] sm:$0xff] }
 0x77b   :  { %v17527_v5 = vpack.c.bf16 %v7674_v2, %v7670_v60  ;;  %v7532_v11 = vpop.f32.mrb[224].mxu1  ;;  %10180 = vmatpush1.bf16.msra.mxu0 %v12829_v52  ;;  %v12784_v52 = vcombine.high %v7862_v23, %v7866_v0 }
 0x77c   :  { %v7533_v7 = vadd.f32 %v7532_v11, %v17404_v61  ;;  %v7534_v38 = vpop.f32.mrb[225].mxu1  ;;  %10181 = vmatprep.subr.bf16.mxu0 %v12838_v8  ;;  %v12845_v8 = vcombine.low %v7925_v33, %v7929_v24  ;;  %v7878_v33 = vld [vmem:[#allocation13 + $0x258] sm:$0xff] }
 0x77d   :  { %v7535_v44 = vadd.f32 %v7534_v38, %v17409_v63  ;;  %v7536_v47 = vpop.f32.mrb[226].mxu1  ;;  %9676 = vmatprep.mubr.bf16.mxu0 %v17527_v5  ;;  %10550 = vmatpush1.bf16.msra.mxu1 %v12767_v55  ;;  %v12792_v38 = vcombine.high %v7870_v26, %v7874_v36 }
 0x77e   :  { %v7537_v37 = vadd.f32 %v7536_v47, %v17404_v61  ;;  %v7538_v19 = vpop.f32.mrb[227].mxu1  ;;  %9677 = vmatmul.mubr.bf16.gmra.mrb[220].mxu0 %v17525_v3  ;;  %10551 = vmatprep.subr.bf16.mxu1 %v12776_v58  ;;  %v7677_v60 = vmax.f32 %v7533_v7, 0.0  ;;  %v12783_v58 = vcombine.low %v7862_v23, %v7866_v0  ;;  %v7882_v7 = vld [vmem:[#allocation13 + $0x278] sm:$0xff]  ;;  %v12791_v23 = vcombine.low %v7870_v26, %v7874_v36 }
 0x77f   :  { %v7539_v62 = vadd.f32 %v7538_v19, %v17409_v63  ;;  %10182 = vmatpush1.bf16.msra.mxu0 %v12837_v22  ;;  %v7678_v54 = vmax.f32 %v7535_v44, 0.0  ;;  %v12800_v19 = vcombine.high %v7878_v33, %v7882_v7  ;;  %v12799_v26 = vcombine.low %v7878_v33, %v7882_v7 }
 0x780   :  { %v7681_v2 = vmax.f32 %v7537_v37, 0.0  ;;  %10023 = vmatmul.mubr.bf16.gmra.mrb[12].mxu1 %v17462_v56  ;;  %10183 = vmatprep.subr.bf16.mxu0 %v12846_v42 }
 0x781   :  { %v7682_v55 = vmax.f32 %v7539_v62, 0.0  ;;  %10032 = vmatprep.mubr.bf16.mxu1 %v17476_v13  ;;  %10552 = vmatpush1.bf16.msra.mxu1 %v12775_v34  ;;  %v7886_v62 = vld [vmem:[#allocation13 + $0x298] sm:$0xff] }
 0x782   :  { %v17539_v11 = vpack.c.bf16 %v7681_v2, %v7677_v60  ;;  %10553 = vmatprep.subr.bf16.mxu1 %v12784_v52 }
 0x783   :  { %v17541_v22 = vpack.c.bf16 %v7682_v55, %v7678_v54  ;;  %v7542_v24 = vpop.f32.mrb[228].mxu1  ;;  %10184 = vmatpush1.bf16.msra.mxu0 %v12845_v8  ;;  %v7890_v8 = vld [vmem:[#allocation13 + $0x2b8] sm:$0xff] }
 0x784   :  { %v7543_v42 = vadd.f32 %v7542_v24, %v17404_v61  ;;  %v7544_v47 = vpop.f32.mrb[229].mxu1  ;;  %10346 = vmatprep.subr.bf16.mxu0 %v12854_v12  ;;  %v12808_v55 = vcombine.high %v7886_v62, %v7890_v8  ;;  %v7894_v24 = vld [vmem:[#allocation13 + $0x2d8] sm:$0xff] }
 0x785   :  { %v7545_v44 = vadd.f32 %v7544_v47, %v17409_v63  ;;  %v7546_v37 = vpop.f32.mrb[230].mxu1  ;;  %9686 = vmatprep.mubr.bf16.mxu0 %v17541_v22  ;;  %10554 = vmatpush1.bf16.msra.mxu1 %v12783_v58  ;;  %v7898_v47 = vld [vmem:[#allocation13 + $0x2f8] sm:$0xff] }
 0x786   :  { %v7547_v0 = vadd.f32 %v7546_v37, %v17404_v61  ;;  %v7548_v34 = vpop.f32.mrb[231].mxu1  ;;  %9687 = vmatmul.mubr.bf16.gmra.mrb[224].mxu0 %v17539_v11  ;;  %10555 = vmatprep.subr.bf16.mxu1 %v12792_v38  ;;  %v7685_v60 = vmax.f32 %v7543_v42, 0.0 }
 0x787   :  { %v7549_v52 = vadd.f32 %v7548_v34, %v17409_v63  ;;  %v7686_v12 = vmax.f32 %v7545_v44, 0.0  ;;  %v12816_v34 = vcombine.high %v7894_v24, %v7898_v47 }
 0x788   :  { %v7689_v2 = vmax.f32 %v7547_v0, 0.0  ;;  %10033 = vmatmul.mubr.bf16.gmra.mrb[16].mxu1 %v17474_v20 }
 0x789   :  { %v7690_v54 = vmax.f32 %v7549_v52, 0.0  ;;  %10042 = vmatprep.mubr.bf16.mxu1 %v17503_v14  ;;  %10556 = vmatpush1.bf16.msra.mxu1 %v12791_v23  ;;  %v12807_v23 = vcombine.low %v7886_v62, %v7890_v8  ;;  %v7902_v52 = vld [vmem:[#allocation13 + $0x318] sm:$0xff]  ;;  %v12815_v62 = vcombine.low %v7894_v24, %v7898_v47 }
 0x78a   :  { %v17551_v36 = vpack.c.bf16 %v7689_v2, %v7685_v60  ;;  %10557 = vmatprep.subr.bf16.mxu1 %v12800_v19  ;;  %v7906_v60 = vld [vmem:[#allocation13 + $0x338] sm:$0xff] }
 0x78b   :  { %v17553_v58 = vpack.c.bf16 %v7690_v54, %v7686_v12  ;;  %v7552_v38 = vpop.f32.mrb[232].mxu1 }
 0x78c   :  { %v7553_v42 = vadd.f32 %v7552_v38, %v17404_v61  ;;  %v7554_v37 = vpop.f32.mrb[233].mxu1 }
 0x78d   :  { %v7555_v0 = vadd.f32 %v7554_v37, %v17409_v63  ;;  %v7556_v44 = vpop.f32.mrb[234].mxu1  ;;  %9696 = vmatprep.mubr.bf16.mxu0 %v17553_v58  ;;  %10558 = vmatpush1.bf16.msra.mxu1 %v12799_v26  ;;  %v12824_v26 = vcombine.high %v7902_v52, %v7906_v60 }
 0x78e   :  { %v7557_v33 = vadd.f32 %v7556_v44, %v17404_v61  ;;  %v7558_v7 = vpop.f32.mrb[235].mxu1  ;;  %9697 = vmatmul.mubr.bf16.gmra.mrb[228].mxu0 %v17551_v36  ;;  %10559 = vmatprep.subr.bf16.mxu1 %v12808_v55  ;;  %v7693_v2 = vmax.f32 %v7553_v42, 0.0  ;;  %v7910_v44 = vld [vmem:[#allocation13 + $0x358] sm:$0xff] }
 0x78f   :  { %v7559_v19 = vadd.f32 %v7558_v7, %v17409_v63  ;;  %v7694_v54 = vmax.f32 %v7555_v0, 0.0  ;;  %v7914_v7 = vld [vmem:[#allocation13 + $0x378] sm:$0xff] }
 0x790   :  { %v7697_v12 = vmax.f32 %v7557_v33, 0.0  ;;  %10043 = vmatmul.mubr.bf16.gmra.mrb[20].mxu1 %v17501_v18 }
 0x791   :  { %v7698_v38 = vmax.f32 %v7559_v19, 0.0  ;;  %10052 = vmatprep.mubr.bf16.mxu1 %v17515_v1  ;;  %10560 = vmatpush1.bf16.msra.mxu1 %v12807_v23  ;;  %v12823_v23 = vcombine.low %v7902_v52, %v7906_v60  ;;  %v12831_v52 = vcombine.low %v7910_v44, %v7914_v7  ;;  %v7930_v1 = vld [vmem:[#allocation13 + $0x3f8] sm:$0xff] }
 0x792   :  { %v17563_v8 = vpack.c.bf16 %v7697_v12, %v7693_v2  ;;  %10561 = vmatprep.subr.bf16.mxu1 %v12816_v34  ;;  %v12832_v34 = vcombine.high %v7910_v44, %v7914_v7  ;;  %v7918_v2 = vld [vmem:[#allocation13 + $0x398] sm:$0xff] }
 0x793   :  { %v17565_v55 = vpack.c.bf16 %v7698_v38, %v7694_v54  ;;  %v7562_v37 = vpop.f32.mrb[236].mxu1  ;;  %v7922_v12 = vld [vmem:[#allocation13 + $0x3b8] sm:$0xff] }
 0x794   :  { %v7563_v42 = vadd.f32 %v7562_v37, %v17404_v61  ;;  %v7564_v33 = vpop.f32.mrb[237].mxu1 }
 0x795   :  { %v7565_v18 = vadd.f32 %v7564_v33, %v17409_v63  ;;  %v7566_v0 = vpop.f32.mrb[238].mxu1  ;;  %9706 = vmatprep.mubr.bf16.mxu0 %v17565_v55  ;;  %10562 = vmatpush1.bf16.msra.mxu1 %v12815_v62  ;;  %v12840_v62 = vcombine.high %v7918_v2, %v7922_v12 }
 0x796   :  { %v7567_v24 = vadd.f32 %v7566_v0, %v17404_v61  ;;  %v7568_v47 = vpop.f32.mrb[239].mxu1  ;;  %9707 = vmatmul.mubr.bf16.gmra.mrb[232].mxu0 %v17563_v8  ;;  %10563 = vmatprep.subr.bf16.mxu1 %v12824_v26  ;;  %v7701_v54 = vmax.f32 %v7563_v42, 0.0 }
 0x797   :  { %v7569_v19 = vadd.f32 %v7568_v47, %v17409_v63  ;;  %v7702_v37 = vmax.f32 %v7565_v18, 0.0  ;;  %v7926_v47 = vld [vmem:[#allocation13 + $0x3d8] sm:$0xff] }
 0x798   :  { %v7705_v38 = vmax.f32 %v7567_v24, 0.0  ;;  %10053 = vmatmul.mubr.bf16.gmra.mrb[24].mxu1 %v17513_v4 }
 0x799   :  { %v7706_v33 = vmax.f32 %v7569_v19, 0.0  ;;  %10062 = vmatprep.mubr.bf16.mxu1 %v17527_v5  ;;  %10564 = vmatpush1.bf16.msra.mxu1 %v12823_v23  ;;  %v12839_v23 = vcombine.low %v7918_v2, %v7922_v12  ;;  %v12856_v12 = vcombine.high %v17491_v51, %v17493_v28 }
 0x79a   :  { %v17575_v60 = vpack.c.bf16 %v7705_v38, %v7701_v54  ;;  %10565 = vmatprep.subr.bf16.mxu1 %v12832_v34  ;;  %v12848_v34 = vcombine.high %v7926_v47, %v7930_v1 }
 0x79b   :  { %v17577_v26 = vpack.c.bf16 %v7706_v33, %v7702_v37  ;;  %v7572_v0 = vpop.f32.mrb[240].mxu1 }
 0x79c   :  { %v7573_v42 = vadd.f32 %v7572_v0, %v17404_v61  ;;  %v7574_v24 = vpop.f32.mrb[241].mxu1 }
 0x79d   :  { %v7575_v4 = vadd.f32 %v7574_v24, %v17409_v63  ;;  %v7576_v18 = vpop.f32.mrb[242].mxu1  ;;  %9716 = vmatprep.mubr.bf16.mxu0 %v17577_v26  ;;  %10566 = vmatpush1.bf16.msra.mxu1 %v12831_v52  ;;  %v12847_v52 = vcombine.low %v7926_v47, %v7930_v1 }
 0x79e   :  { %v7577_v44 = vadd.f32 %v7576_v18, %v17404_v61  ;;  %v7578_v7 = vpop.f32.mrb[243].mxu1  ;;  %9717 = vmatmul.mubr.bf16.gmra.mrb[236].mxu0 %v17575_v60  ;;  %10567 = vmatprep.subr.bf16.mxu1 %v12840_v62  ;;  %v7709_v54 = vmax.f32 %v7573_v42, 0.0 }
 0x79f   :  { %v7579_v19 = vadd.f32 %v7578_v7, %v17409_v63  ;;  %v7710_v37 = vmax.f32 %v7575_v4, 0.0 }
 0x7a0   :  { %v7713_v38 = vmax.f32 %v7577_v44, 0.0  ;;  %10063 = vmatmul.mubr.bf16.gmra.mrb[28].mxu1 %v17525_v3 }
 0x7a1   :  { %v7714_v33 = vmax.f32 %v7579_v19, 0.0  ;;  %10072 = vmatprep.mubr.bf16.mxu1 %v17541_v22  ;;  %10568 = vmatpush1.bf16.msra.mxu1 %v12839_v23 }
 0x7a2   :  { %v17587_v2 = vpack.c.bf16 %v7713_v38, %v7709_v54  ;;  %10569 = vmatprep.subr.bf16.mxu1 %v12848_v34 }
 0x7a3   :  { %v17591_v62 = vpack.c.bf16 %v7714_v33, %v7710_v37  ;;  %v7582_v0 = vpop.f32.mrb[244].mxu1 }
 0x7a4   :  { %v7583_v42 = vadd.f32 %v7582_v0, %v17404_v61  ;;  %v7584_v24 = vpop.f32.mrb[245].mxu1 }
 0x7a5   :  { %v7585_v18 = vadd.f32 %v7584_v24, %v17409_v63  ;;  %v7586_v4 = vpop.f32.mrb[246].mxu1  ;;  %9726 = vmatprep.mubr.bf16.mxu0 %v17591_v62  ;;  %10570 = vmatpush1.bf16.msra.mxu1 %v12847_v52 }
 0x7a6   :  { %v7587_v1 = vadd.f32 %v7586_v4, %v17404_v61  ;;  %v7588_v47 = vpop.f32.mrb[247].mxu1  ;;  %9727 = vmatmul.mubr.bf16.gmra.mrb[240].mxu0 %v17587_v2  ;;  %10732 = vmatprep.subr.bf16.mxu1 %v12856_v12  ;;  %v7717_v44 = vmax.f32 %v7583_v42, 0.0 }
 0x7a7   :  { %v7589_v23 = vadd.f32 %v7588_v47, %v17409_v63  ;;  %v7718_v34 = vmax.f32 %v7585_v18, 0.0 }
 0x7a8   :  { %v7721_v7 = vmax.f32 %v7587_v1, 0.0  ;;  %10073 = vmatmul.mubr.bf16.gmra.mrb[32].mxu1 %v17539_v11 }
 0x7a9   :  { %v7722_v19 = vmax.f32 %v7589_v23, 0.0  ;;  %10082 = vmatprep.mubr.bf16.mxu1 %v17553_v58 }
 0x7aa   :  { %v17601_v54 = vpack.c.bf16 %v7721_v7, %v7717_v44 }
 0x7ab   :  { %v17603_v38 = vpack.c.bf16 %v7722_v19, %v7718_v34  ;;  %v7592_v37 = vpop.f32.mrb[248].mxu1 }
 0x7ac   :  { %v7593_v33 = vadd.f32 %v7592_v37, %v17404_v61  ;;  %v7594_v52 = vpop.f32.mrb[249].mxu1 }
 0x7ad   :  { %v7595_v12 = vadd.f32 %v7594_v52, %v17409_v63  ;;  %v7596_v0 = vpop.f32.mrb[250].mxu1  ;;  %9736 = vmatprep.mubr.bf16.mxu0 %v17603_v38 }
 0x7ae   :  { %v7597_v42 = vadd.f32 %v7596_v0, %v17404_v61  ;;  %v7598_v24 = vpop.f32.mrb[251].mxu1  ;;  %9737 = vmatmul.mubr.bf16.gmra.mrb[244].mxu0 %v17601_v54  ;;  %v7725_v4 = vmax.f32 %v7593_v33, 0.0 }
 0x7af   :  { %v7599_v18 = vadd.f32 %v7598_v24, %v17409_v63  ;;  %v7726_v47 = vmax.f32 %v7595_v12, 0.0 }
 0x7b0   :  { %v7729_v1 = vmax.f32 %v7597_v42, 0.0  ;;  %10083 = vmatmul.mubr.bf16.gmra.mrb[36].mxu1 %v17551_v36 }
 0x7b1   :  { %v7730_v23 = vmax.f32 %v7599_v18, 0.0  ;;  %10092 = vmatprep.mubr.bf16.mxu1 %v17565_v55 }
 0x7b2   :  { %v17613_v44 = vpack.c.bf16 %v7729_v1, %v7725_v4 }
 0x7b3   :  { %v17615_v7 = vpack.c.bf16 %v7730_v23, %v7726_v47  ;;  %v7602_v34 = vpop.f32.mrb[252].mxu1 }
 0x7b4   :  { %18185 = vst [vmem:[#allocation46_spill] sm:$0xff] %v17613_v44  ;;  %v7603_v19 = vadd.f32 %v7602_v34, %v17404_v61  ;;  %v7604_v37 = vpop.f32.mrb[253].mxu1 }
 0x7b5   :  { %v7605_v52 = vadd.f32 %v7604_v37, %v17409_v63  ;;  %v7606_v0 = vpop.f32.mrb[254].mxu1  ;;  %9746 = vmatprep.mubr.bf16.mxu0 %v17615_v7  ;;  %v7953_v37 = vld [vmem:[#allocation13 + $0x4b0] sm:$0xff] }
 0x7b6   :  { %v7607_v33 = vadd.f32 %v7606_v0, %v17404_v61  ;;  %v7608_v42 = vpop.f32.mrb[255].mxu1  ;;  %9747 = vmatmul.mubr.bf16.gmra.mrb[248].mxu0 %v17613_v44  ;;  %v7733_v24 = vmax.f32 %v7603_v19, 0.0  ;;  %v7941_v61 = vld [vmem:[#allocation13 + $0x450] sm:$0xff] }
 0x7b7   :  { %v7609_v12 = vadd.f32 %v7608_v42, %v17409_v63  ;;  %v7734_v4 = vmax.f32 %v7605_v52, 0.0  ;;  %v7945_v63 = vld [vmem:[#allocation13 + $0x470] sm:$0xff]  ;;  %v18188_v52 = vcombine.low %v17484_v53, %v17486_v49 }
 0x7b8   :  { %v7737_v18 = vmax.f32 %v7607_v33, 0.0  ;;  %10093 = vmatmul.mubr.bf16.gmra.mrb[40].mxu1 %v17563_v8  ;;  %v12862_v34 = vcombine.high %v7941_v61, %v7945_v63  ;;  %v7949_v19 = vld [vmem:[#allocation13 + $0x490] sm:$0xff]  ;;  %v12861_v0 = vcombine.low %v7941_v61, %v7945_v63 }
 0x7b9   :  { %v7738_v1 = vmax.f32 %v7609_v12, 0.0  ;;  %10102 = vmatprep.mubr.bf16.mxu1 %v17577_v26  ;;  %v12870_v33 = vcombine.high %v7949_v19, %v7953_v37  ;;  %v7957_v42 = vld [vmem:[#allocation13 + $0x4d0] sm:$0xff] }
 0x7ba   :  { %v17625_v47 = vpack.c.bf16 %v7737_v18, %v7733_v24  ;;  %v7961_v12 = vld [vmem:[#allocation13 + $0x4f0] sm:$0xff]  ;;  %v12869_v24 = vcombine.low %v7949_v19, %v7953_v37 }
 0x7bb   :  { %v17627_v23 = vpack.c.bf16 %v7738_v1, %v7734_v4  ;;  %v12878_v18 = vcombine.high %v7957_v42, %v7961_v12  ;;  %v7965_v4 = vld [vmem:[#allocation13 + $0x510] sm:$0xff]  ;;  %v12877_v53 = vcombine.low %v7957_v42, %v7961_v12 }
 0x7bc   :  { %18186 = vst [vmem:[#allocation47_spill] sm:$0xff] %v17625_v47  ;;  %v7969_v1 = vld [vmem:[#allocation13 + $0x530] sm:$0xff] }
 0x7bd   :  { %18187 = vst [vmem:[#allocation48_spill] sm:$0xff] %v17627_v23  ;;  %9756 = vmatprep.mubr.bf16.mxu0 %v17627_v23  ;;  %v12886_v49 = vcombine.high %v7965_v4, %v7969_v1  ;;  %v7973_v61 = vld [vmem:[#allocation13 + $0x550] sm:$0xff] }
 0x7be   :  { %9757 = vmatmul.mubr.bf16.gmra.mrb[252].mxu0 %v17625_v47  ;;  %v7977_v63 = vld [vmem:[#allocation13 + $0x570] sm:$0xff] }
 0x7bf   :  { %10185 = vmatprep.mubr.bf16.mxu0 %v17203_v17  ;;  %v12894_v19 = vcombine.high %v7973_v61, %v7977_v63  ;;  %v7981_v37 = vld [vmem:[#allocation13 + $0x590] sm:$0xff] }
 0x7c0   :  { %10103 = vmatmul.mubr.bf16.gmra.mrb[44].mxu1 %v17575_v60  ;;  %v7989_v42 = vld [vmem:[#allocation13 + $0x5d0] sm:$0xff] }
 0x7c1   :  { %10112 = vmatprep.mubr.bf16.mxu1 %v17591_v62  ;;  %v7993_v12 = vld [vmem:[#allocation13 + $0x5f0] sm:$0xff] }
 0x7c6   :  { %10186 = vmatmul.mubr.bf16.vlgmr.msra.gmra.mrb[0].mxu0 %v17201_v9 }
 0x7c7   :  { %10195 = vmatprep.mubr.bf16.mxu0 %v17218_v32  ;;  %10347 = vmatpush1.bf16.msra.mxu0 %v18188_v52  ;;  %v7985_v52 = vld [vmem:[#allocation13 + $0x5b0] sm:$0xff] }
 0x7c8   :  { %10113 = vmatmul.mubr.bf16.gmra.mrb[48].mxu1 %v17587_v2  ;;  %10348 = vmatprep.subr.bf16.mxu0 %v12862_v34  ;;  %v12885_v34 = vcombine.low %v7965_v4, %v7969_v1  ;;  %v7997_v4 = vld [vmem:[#allocation13 + $0x610] sm:$0xff] }
 0x7c9   :  { %10122 = vmatprep.mubr.bf16.mxu1 %v17603_v38  ;;  %v8001_v1 = vld [vmem:[#allocation13 + $0x630] sm:$0xff] }
 0x7cb   :  { %10349 = vmatpush1.bf16.msra.mxu0 %v12861_v0  ;;  %v12893_v0 = vcombine.low %v7973_v61, %v7977_v63  ;;  %v8005_v61 = vld [vmem:[#allocation13 + $0x650] sm:$0xff] }
 0x7cc   :  { %10350 = vmatprep.subr.bf16.mxu0 %v12870_v33  ;;  %v12902_v33 = vcombine.high %v7981_v37, %v7985_v52  ;;  %v8009_v63 = vld [vmem:[#allocation13 + $0x670] sm:$0xff] }
 0x7ce   :  { %10196 = vmatmul.mubr.bf16.gmra.mrb[4].mxu0 %v17216_v6 }
 0x7cf   :  { %10205 = vmatprep.mubr.bf16.mxu0 %v17230_v10  ;;  %10351 = vmatpush1.bf16.msra.mxu0 %v12869_v24  ;;  %v12901_v24 = vcombine.low %v7981_v37, %v7985_v52  ;;  %v12917_v37 = vcombine.low %v7997_v4, %v8001_v1  ;;  %v12926_v52 = vcombine.high %v8005_v61, %v8009_v63 }
 0x7d0   :  { %10123 = vmatmul.mubr.bf16.gmra.mrb[52].mxu1 %v17601_v54  ;;  %10352 = vmatprep.subr.bf16.mxu0 %v12878_v18  ;;  %v12910_v18 = vcombine.high %v7989_v42, %v7993_v12 }
 0x7d1   :  { %10132 = vmatprep.mubr.bf16.mxu1 %v17615_v7 }
 0x7d3   :  { %10353 = vmatpush1.bf16.msra.mxu0 %v12877_v53  ;;  %v12909_v53 = vcombine.low %v7989_v42, %v7993_v12  ;;  %v7950_v42 = vld [vmem:[#allocation13 + $0x498] sm:$0xff] }
 0x7d4   :  { %10354 = vmatprep.subr.bf16.mxu0 %v12886_v49  ;;  %v12918_v49 = vcombine.high %v7997_v4, %v8001_v1  ;;  %v7954_v12 = vld [vmem:[#allocation13 + $0x4b8] sm:$0xff]  ;;  %v18189_v4 = vcombine.low %v17491_v51, %v17493_v28 }
 0x7d5   :  { %v7966_v51 = vld [vmem:[#allocation13 + $0x518] sm:$0xff] }
 0x7d6   :  { %10206 = vmatmul.mubr.bf16.gmra.mrb[8].mxu0 %v17228_v41  ;;  %v7970_v28 = vld [vmem:[#allocation13 + $0x538] sm:$0xff] }
 0x7d7   :  { %10215 = vmatprep.mubr.bf16.mxu0 %v17242_v46  ;;  %10355 = vmatpush1.bf16.msra.mxu0 %v12885_v34  ;;  %v7942_v34 = vld [vmem:[#allocation13 + $0x458] sm:$0xff] }
 0x7d8   :  { %10133 = vmatmul.mubr.bf16.gmra.mrb[56].mxu1 %v17613_v44  ;;  %10356 = vmatprep.subr.bf16.mxu0 %v12894_v19  ;;  %v7946_v19 = vld [vmem:[#allocation13 + $0x478] sm:$0xff] }
 0x7d9   :  { %10142 = vmatprep.mubr.bf16.mxu1 %v17627_v23  ;;  %v12863_v1 = vcombine.low %v7942_v34, %v7946_v19  ;;  %v7958_v23 = vld [vmem:[#allocation13 + $0x4d8] sm:$0xff] }
 0x7da   :  { %v7962_v44 = vld [vmem:[#allocation13 + $0x4f8] sm:$0xff] }
 0x7db   :  { %10357 = vmatpush1.bf16.msra.mxu0 %v12893_v0  ;;  %v8013_v0 = vld [vmem:[#allocation13 + $0x690] sm:$0xff] }
 0x7dc   :  { %10358 = vmatprep.subr.bf16.mxu0 %v12902_v33  ;;  %v8017_v33 = vld [vmem:[#allocation13 + $0x6b0] sm:$0xff] }
 0x7de   :  { %10216 = vmatmul.mubr.bf16.gmra.mrb[12].mxu0 %v17240_v27 }
 0x7df   :  { %10225 = vmatprep.mubr.bf16.mxu0 %v17254_v40  ;;  %10359 = vmatpush1.bf16.msra.mxu0 %v12901_v24  ;;  %v12864_v24 = vcombine.high %v7942_v34, %v7946_v19 }
 0x7e0   :  { %10143 = vmatmul.mubr.bf16.gmra.mrb[60].mxu1 %v17625_v47  ;;  %10360 = vmatprep.subr.bf16.mxu0 %v12910_v18  ;;  %v12925_v18 = vcombine.low %v8005_v61, %v8009_v63  ;;  %v12872_v47 = vcombine.high %v7950_v42, %v7954_v12  ;;  %v8029_v63 = vld [vmem:[#allocation13 + $0x710] sm:$0xff] }
 0x7e1   :  { %10571 = vmatprep.mubr.bf16.mxu1 %v17203_v17  ;;  %v12934_v17 = vcombine.high %v8013_v0, %v8017_v33 }
 0x7e3   :  { %10361 = vmatpush1.bf16.msra.mxu0 %v12909_v53  ;;  %v8021_v53 = vld [vmem:[#allocation13 + $0x6d0] sm:$0xff] }
 0x7e4   :  { %10362 = vmatprep.subr.bf16.mxu0 %v12918_v49  ;;  %v8025_v49 = vld [vmem:[#allocation13 + $0x6f0] sm:$0xff] }
 0x7e5   :  { %v12942_v61 = vcombine.high %v8021_v53, %v8025_v49  ;;  %v12941_v34 = vcombine.low %v8021_v53, %v8025_v49 }
 0x7e6   :  { %10226 = vmatmul.mubr.bf16.gmra.mrb[16].mxu0 %v17252_v59 }
 0x7e7   :  { %10235 = vmatprep.mubr.bf16.mxu0 %v17269_v50  ;;  %10363 = vmatpush1.bf16.msra.mxu0 %v12917_v37  ;;  %v12933_v37 = vcombine.low %v8013_v0, %v8017_v33  ;;  %v12879_v0 = vcombine.low %v7958_v23, %v7962_v44  ;;  %v8037_v33 = vld [vmem:[#allocation13 + $0x750] sm:$0xff] }
 0x7e8   :  { %10572 = vmatmul.mubr.bf16.vlgmr.msra.gmra.mrb[64].mxu1 %v17201_v9  ;;  %10364 = vmatprep.subr.bf16.mxu0 %v12926_v52  ;;  %v12871_v9 = vcombine.low %v7950_v42, %v7954_v12  ;;  %v8033_v52 = vld [vmem:[#allocation13 + $0x730] sm:$0xff]  ;;  %v12888_v42 = vcombine.high %v7966_v51, %v7970_v28  ;;  %v7978_v12 = vld [vmem:[#allocation13 + $0x578] sm:$0xff] }
 0x7e9   :  { %10581 = vmatprep.mubr.bf16.mxu1 %v17218_v32  ;;  %10733 = vmatpush1.bf16.msra.mxu1 %v18189_v4  ;;  %v12880_v32 = vcombine.high %v7958_v23, %v7962_v44  ;;  %v12950_v19 = vcombine.high %v8029_v63, %v8033_v52  ;;  %v12887_v4 = vcombine.low %v7966_v51, %v7970_v28  ;;  %v7982_v44 = vld [vmem:[#allocation13 + $0x598] sm:$0xff] }
 0x7ea   :  { %10734 = vmatprep.subr.bf16.mxu1 %v12864_v24  ;;  %v8041_v24 = vld [vmem:[#allocation13 + $0x770] sm:$0xff]  ;;  %v7986_v23 = vld [vmem:[#allocation13 + $0x5b8] sm:$0xff] }
 0x7eb   :  { %10365 = vmatpush1.bf16.msra.mxu0 %v12925_v18  ;;  %v12949_v18 = vcombine.low %v8029_v63, %v8033_v52  ;;  %v12957_v53 = vcombine.low %v8037_v33, %v8041_v24  ;;  %v12904_v63 = vcombine.high %v7982_v44, %v7986_v23  ;;  %v7990_v52 = vld [vmem:[#allocation13 + $0x5d8] sm:$0xff] }
 0x7ec   :  { %10366 = vmatprep.subr.bf16.mxu0 %v12934_v17  ;;  %v12958_v17 = vcombine.high %v8037_v33, %v8041_v24 }
 0x7ed   :  { %10735 = vmatpush1.bf16.msra.mxu1 %v12863_v1  ;;  %v8045_v1 = vld [vmem:[#allocation13 + $0x790] sm:$0xff] }
 0x7ee   :  { %10236 = vmatmul.mubr.bf16.gmra.mrb[20].mxu0 %v17267_v15  ;;  %10736 = vmatprep.subr.bf16.mxu1 %v12872_v47  ;;  %v7974_v47 = vld [vmem:[#allocation13 + $0x558] sm:$0xff] }
 0x7ef   :  { %10245 = vmatprep.mubr.bf16.mxu0 %v17293_v48  ;;  %10367 = vmatpush1.bf16.msra.mxu0 %v12933_v37  ;;  %v12895_v37 = vcombine.low %v7974_v47, %v7978_v12 }
 0x7f0   :  { %10582 = vmatmul.mubr.bf16.gmra.mrb[68].mxu1 %v17216_v6  ;;  %10368 = vmatprep.subr.bf16.mxu0 %v12942_v61  ;;  %v8049_v6 = vld [vmem:[#allocation13 + $0x7b0] sm:$0xff] }
 0x7f1   :  { %10591 = vmatprep.mubr.bf16.mxu1 %v17230_v10  ;;  %10737 = vmatpush1.bf16.msra.mxu1 %v12871_v9  ;;  %v12896_v10 = vcombine.high %v7974_v47, %v7978_v12  ;;  %v12966_v49 = vcombine.high %v8045_v1, %v8049_v6  ;;  %v8053_v61 = vld [vmem:[#allocation13 + $0x7d0] sm:$0xff]  ;;  %v12965_v51 = vcombine.low %v8045_v1, %v8049_v6  ;;  %v8010_v47 = vld [vmem:[#allocation13 + $0x678] sm:$0xff] }
 0x7f2   :  { %10738 = vmatprep.subr.bf16.mxu1 %v12880_v32  ;;  %v8057_v9 = vld [vmem:[#allocation13 + $0x7f0] sm:$0xff]  ;;  %v7994_v32 = vld [vmem:[#allocation13 + $0x5f8] sm:$0xff] }
 0x7f3   :  { %10369 = vmatpush1.bf16.msra.mxu0 %v12941_v34  ;;  %v12974_v28 = vcombine.high %v8053_v61, %v8057_v9  ;;  %v12903_v34 = vcombine.low %v7982_v44, %v7986_v23  ;;  %v12911_v33 = vcombine.low %v7990_v52, %v7994_v32  ;;  %v8022_v1 = vld [vmem:[#allocation13 + $0x6d8] sm:$0xff] }
 0x7f4   :  { %10370 = vmatprep.subr.bf16.mxu0 %v12950_v19  ;;  %v8002_v19 = vld [vmem:[#allocation13 + $0x638] sm:$0xff] }
 0x7f5   :  { %10739 = vmatpush1.bf16.msra.mxu1 %v12879_v0  ;;  %v12973_v0 = vcombine.low %v8053_v61, %v8057_v9  ;;  %v8026_v6 = vld [vmem:[#allocation13 + $0x6f8] sm:$0xff] }
 0x7f6   :  { %10246 = vmatmul.mubr.bf16.gmra.mrb[24].mxu0 %v17291_v25  ;;  %10740 = vmatprep.subr.bf16.mxu1 %v12888_v42  ;;  %v8006_v42 = vld [vmem:[#allocation13 + $0x658] sm:$0xff]  ;;  %v12944_v44 = vcombine.high %v8022_v1, %v8026_v6 }
 0x7f7   :  { %10255 = vmatprep.mubr.bf16.mxu0 %v17305_v30  ;;  %10371 = vmatpush1.bf16.msra.mxu0 %v12949_v18  ;;  %v12928_v18 = vcombine.high %v8006_v42, %v8010_v47  ;;  %v8030_v23 = vld [vmem:[#allocation13 + $0x718] sm:$0xff] }
 0x7f8   :  { %10592 = vmatmul.mubr.bf16.gmra.mrb[72].mxu1 %v17228_v41  ;;  %10372 = vmatprep.subr.bf16.mxu0 %v12958_v17  ;;  %v12912_v41 = vcombine.high %v7990_v52, %v7994_v32  ;;  %v8014_v17 = vld [vmem:[#allocation13 + $0x698] sm:$0xff]  ;;  %v18191_v52 = vld [vmem:[#allocation29_spill] sm:$0xff] }
 0x7f9   :  { %10601 = vmatprep.mubr.bf16.mxu1 %v17242_v46  ;;  %10741 = vmatpush1.bf16.msra.mxu1 %v12887_v4  ;;  %v7998_v46 = vld [vmem:[#allocation13 + $0x618] sm:$0xff] }
 0x7fa   :  { %10742 = vmatprep.subr.bf16.mxu1 %v12896_v10  ;;  %v12920_v24 = vcombine.high %v7998_v46, %v8002_v19  ;;  %v12919_v12 = vcombine.low %v7998_v46, %v8002_v19  ;;  %v8042_v61 = vld [vmem:[#allocation13 + $0x778] sm:$0xff] }
 0x7fb   :  { %10373 = vmatpush1.bf16.msra.mxu0 %v12957_v53  ;;  %v8034_v53 = vld [vmem:[#allocation13 + $0x738] sm:$0xff] }
 0x7fc   :  { %10374 = vmatprep.subr.bf16.mxu0 %v12966_v49  ;;  %v17683_v49 = vld [vmem:[%s18110_s11] sm:$0xff]  ;;  %v12951_v9 = vcombine.low %v8030_v23, %v8034_v53  ;;  %v18192_v32 = vld [vmem:[#allocation26_spill] sm:$0xff] }
 0x7fd   :  { %10743 = vmatpush1.bf16.msra.mxu1 %v12895_v37  ;;  %v8038_v37 = vld [vmem:[#allocation13 + $0x758] sm:$0xff] }
 0x7fe   :  { %10256 = vmatmul.mubr.bf16.gmra.mrb[28].mxu0 %v17303_v16  ;;  %10744 = vmatprep.subr.bf16.mxu1 %v12904_v63  ;;  %v18190_v63 = vld [vmem:[#allocation24_spill] sm:$0xff]  ;;  %v12959_v46 = vcombine.low %v8038_v37, %v8042_v61 }
 0x7ff   :  { %10265 = vmatprep.mubr.bf16.mxu0 %v17319_v31  ;;  %10375 = vmatpush1.bf16.msra.mxu0 %v12965_v51  ;;  %v17693_v51 = vrot.slane %v17683_v49, %v18192_v32 }
 0x800   :  { %10602 = vmatmul.mubr.bf16.gmra.mrb[76].mxu1 %v17240_v27  ;;  %10376 = vmatprep.subr.bf16.mxu0 %v12974_v28  ;;  %v8018_v27 = vld [vmem:[#allocation13 + $0x6b8] sm:$0xff] }
 0x801   :  { %10611 = vmatprep.mubr.bf16.mxu1 %v17254_v40  ;;  %10745 = vmatpush1.bf16.msra.mxu1 %v12903_v34  ;;  %v12927_v40 = vcombine.low %v8006_v42, %v8010_v47  ;;  %v12936_v4 = vcombine.high %v8014_v17, %v8018_v27  ;;  %v12935_v10 = vcombine.low %v8014_v17, %v8018_v27  ;;  %v8046_v28 = vld [vmem:[#allocation13 + $0x798] sm:$0xff]  ;;  %v18193_v27 = vld [vmem:[#allocation28_spill] sm:$0xff] }
 0x802   :  { %10746 = vmatprep.subr.bf16.mxu1 %v12912_v41  ;;  %v8050_v34 = vld [vmem:[#allocation13 + $0x7b8] sm:$0xff] }
 0x803   :  { %10377 = vmatpush1.bf16.msra.mxu0 %v12973_v0  ;;  %v8054_v47 = vld [vmem:[#allocation13 + $0x7d8] sm:$0xff] }
 0x805   :  { %10747 = vmatpush1.bf16.msra.mxu1 %v12911_v33  ;;  %v12968_v33 = vcombine.high %v8046_v28, %v8050_v34 }
 0x806   :  { %10266 = vmatmul.mubr.bf16.gmra.mrb[32].mxu0 %v17317_v45  ;;  %10748 = vmatprep.subr.bf16.mxu1 %v12920_v24 }
 0x807   :  { %10275 = vmatprep.mubr.bf16.mxu0 %v17331_v29 }
 0x808   :  { %10612 = vmatmul.mubr.bf16.gmra.mrb[80].mxu1 %v17252_v59  ;;  %v12943_v59 = vcombine.low %v8022_v1, %v8026_v6 }
 0x809   :  { %10621 = vmatprep.mubr.bf16.mxu1 %v17269_v50  ;;  %10749 = vmatpush1.bf16.msra.mxu1 %v12919_v12  ;;  %v12952_v50 = vcombine.high %v8030_v23, %v8034_v53  ;;  %v8058_v12 = vld [vmem:[#allocation13 + $0x7f8] sm:$0xff] }
 0x80a   :  { %10750 = vmatprep.subr.bf16.mxu1 %v12928_v18  ;;  %v12975_v6 = vcombine.low %v8054_v47, %v8058_v12 }
 0x80d   :  { %10751 = vmatpush1.bf16.msra.mxu1 %v12927_v40  ;;  %v12976_v40 = vcombine.high %v8054_v47, %v8058_v12  ;;  %v18197_v47 = vld [vmem:[#allocation32_spill] sm:$0xff]  ;;  %v18198_v12 = vld [vmem:[#allocation35_spill] sm:$0xff] }
 0x80e   :  { %10276 = vmatmul.mubr.bf16.gmra.mrb[36].mxu0 %v17329_v35  ;;  %10752 = vmatprep.subr.bf16.mxu1 %v12936_v4  ;;  %v18194_v4 = vld [vmem:[#allocation31_spill] sm:$0xff] }
 0x80f   :  { %10285 = vmatprep.mubr.bf16.mxu0 %v17343_v57 }
 0x810   :  { %10622 = vmatmul.mubr.bf16.gmra.mrb[84].mxu1 %v17267_v15  ;;  %v17688_v15 = vrot.slane %v17683_v49, %v18190_v63 }
 0x811   :  { %10631 = vmatprep.mubr.bf16.mxu1 %v17293_v48  ;;  %10753 = vmatpush1.bf16.msra.mxu1 %v12935_v10  ;;  %v12960_v48 = vcombine.high %v8038_v37, %v8042_v61 }
 0x812   :  { %10754 = vmatprep.subr.bf16.mxu1 %v12944_v44 }
 0x815   :  { %10755 = vmatpush1.bf16.msra.mxu1 %v12943_v59 }
 0x816   :  { %10286 = vmatmul.mubr.bf16.gmra.mrb[40].mxu0 %v17341_v39  ;;  %10756 = vmatprep.subr.bf16.mxu1 %v12952_v50 }
 0x817   :  { %10295 = vmatprep.mubr.bf16.mxu0 %v18191_v52 }
 0x818   :  { %10632 = vmatmul.mubr.bf16.gmra.mrb[88].mxu1 %v17291_v25 }
 0x819   :  { %v9608_v41 = vpop.f32.mrb[192].mxu0  ;;  %10641 = vmatprep.mubr.bf16.mxu1 %v17305_v30  ;;  %10757 = vmatpush1.bf16.msra.mxu1 %v12951_v9  ;;  %v12967_v30 = vcombine.low %v8046_v28, %v8050_v34  ;;  %v18196_v9 = vld [vmem:[#allocation33_spill] sm:$0xff] }
 0x81a   :  { %v13553_v19 = vadd.f32 %v9608_v41, %v17688_v15  ;;  %v9610_v0 = vpop.f32.mrb[193].mxu0  ;;  %10758 = vmatprep.subr.bf16.mxu1 %v12960_v48 }
 0x81b   :  { %v13554_v24 = vadd.f32 %v9610_v0, %v17693_v51  ;;  %v9612_v42 = vpop.f32.mrb[194].mxu0 }
 0x81c   :  { %15443 = vtanh.f32 %v13553_v19  ;;  %v13555_v18 = vadd.f32 %v9612_v42, %v17688_v15  ;;  %v9614_v17 = vpop.f32.mrb[195].mxu0 }
 0x81d   :  { %15445 = vtanh.f32 %v13554_v24  ;;  %v13556_v25 = vadd.f32 %v9614_v17, %v17693_v51  ;;  %10759 = vmatpush1.bf16.msra.mxu1 %v12959_v46 }
 0x81e   :  { %15447 = vtanh.f32 %v13555_v18  ;;  %10296 = vmatmul.mubr.bf16.gmra.mrb[44].mxu0 %v18193_v27  ;;  %10760 = vmatprep.subr.bf16.mxu1 %v12968_v33 }
 0x81f   :  { %15449 = vtanh.f32 %v13556_v25  ;;  %10305 = vmatprep.mubr.bf16.mxu0 %v18194_v4 }
 0x820   :  { %10642 = vmatmul.mubr.bf16.gmra.mrb[92].mxu1 %v17303_v16 }
 0x821   :  { %v9618_v1 = vpop.f32.mrb[196].mxu0  ;;  %10651 = vmatprep.mubr.bf16.mxu1 %v17319_v31  ;;  %10761 = vmatpush1.bf16.msra.mxu1 %v12967_v30  ;;  %v18195_v31 = vld [vmem:[#allocation30_spill] sm:$0xff] }
 0x822   :  { %v13557_v10 = vadd.f32 %v9618_v1, %v17688_v15  ;;  %v9620_v44 = vpop.f32.mrb[197].mxu0  ;;  %10762 = vmatprep.subr.bf16.mxu1 %v12976_v40 }
 0x823   :  { %v13558_v23 = vadd.f32 %v9620_v44, %v17693_v51  ;;  %v9622_v53 = vpop.f32.mrb[198].mxu0 }
 0x824   :  { %15451 = vtanh.f32 %v13557_v10  ;;  %v13559_v59 = vadd.f32 %v9622_v53, %v17688_v15  ;;  %v9624_v50 = vpop.f32.mrb[199].mxu0 }
 0x825   :  { %15453 = vtanh.f32 %v13558_v23  ;;  %v13560_v37 = vadd.f32 %v9624_v50, %v17693_v51  ;;  %10763 = vmatpush1.bf16.msra.mxu1 %v12975_v6  ;;  %v18199_v50 = vld [vmem:[#allocation34_spill] sm:$0xff] }
 0x826   :  { %v15444_v16 = vpop.eup %15443  ;;  %15455 = vtanh.f32 %v13559_v59  ;;  %10306 = vmatmul.mubr.bf16.gmra.mrb[48].mxu0 %v18195_v31 }
 0x827   :  { %v15446_v61 = vpop.eup %15445  ;;  %15457 = vtanh.f32 %v13560_v37  ;;  %10315 = vmatprep.mubr.bf16.mxu0 %v18196_v9  ;;  %v18200_v37 = vld [vmem:[#allocation37_spill] sm:$0xff] }
 0x828   :  { %v15448_v63 = vpop.eup %15447  ;;  %v13105_v48 = vpack.c.bf16 %v15446_v61, %v15444_v16  ;;  %10652 = vmatmul.mubr.bf16.gmra.mrb[96].mxu1 %v17317_v45 }
 0x829   :  { %v15450_v32 = vpop.eup %15449  ;;  %v9628_v28 = vpop.f32.mrb[200].mxu0  ;;  %10661 = vmatprep.mubr.bf16.mxu1 %v17331_v29 }
 0x82a   :  { %11949 = vst [vmem:[#allocation15] sm:$0xff] %v13105_v48  ;;  %v13109_v34 = vpack.c.bf16 %v15450_v32, %v15448_v63  ;;  %v13561_v41 = vadd.f32 %v9628_v28, %v17688_v15  ;;  %v9630_v46 = vpop.f32.mrb[201].mxu0  ;;  %v18201_v63 = vld [vmem:[#allocation25_spill] sm:$0xff] }
 0x82b   :  { %v13562_v19 = vadd.f32 %v9630_v46, %v17693_v51  ;;  %v9632_v0 = vpop.f32.mrb[202].mxu0  ;;  %v17730_v48 = vrot.slane %v17683_v49, %v18201_v63 }
 0x82c   :  { %11953 = vst [vmem:[#allocation15 + $0x20] sm:$0xff] %v13109_v34  ;;  %15459 = vtanh.f32 %v13561_v41  ;;  %v13563_v33 = vadd.f32 %v9632_v0, %v17688_v15  ;;  %v9634_v24 = vpop.f32.mrb[203].mxu0  ;;  %v18202_v34 = vld [vmem:[#allocation27_spill] sm:$0xff] }
 0x82d   :  { %15461 = vtanh.f32 %v13562_v19  ;;  %v13564_v45 = vadd.f32 %v9634_v24, %v17693_v51  ;;  %v17735_v41 = vrot.slane %v17683_v49, %v18202_v34 }
 0x82e   :  { %v15452_v42 = vpop.eup %15451  ;;  %15463 = vtanh.f32 %v13563_v33  ;;  %10316 = vmatmul.mubr.bf16.gmra.mrb[52].mxu0 %v18197_v47 }
 0x82f   :  { %v15454_v29 = vpop.eup %15453  ;;  %15465 = vtanh.f32 %v13564_v45  ;;  %10325 = vmatprep.mubr.bf16.mxu0 %v18198_v12 }
 0x830   :  { %v15456_v18 = vpop.eup %15455  ;;  %v13113_v17 = vpack.c.bf16 %v15454_v29, %v15452_v42  ;;  %10662 = vmatmul.mubr.bf16.gmra.mrb[100].mxu1 %v17329_v35 }
 0x831   :  { %v15458_v25 = vpop.eup %15457  ;;  %v9638_v30 = vpop.f32.mrb[204].mxu0  ;;  %10671 = vmatprep.mubr.bf16.mxu1 %v17343_v57 }
 0x832   :  { %11957 = vst [vmem:[#allocation15 + $0x40] sm:$0xff] %v13113_v17  ;;  %v13117_v40 = vpack.c.bf16 %v15458_v25, %v15456_v18  ;;  %v13565_v1 = vadd.f32 %v9638_v30, %v17688_v15  ;;  %v9640_v6 = vpop.f32.mrb[205].mxu0 }
 0x833   :  { %v13566_v10 = vadd.f32 %v9640_v6, %v17693_v51  ;;  %v9642_v44 = vpop.f32.mrb[206].mxu0 }
 0x834   :  { %11961 = vst [vmem:[#allocation15 + $0x60] sm:$0xff] %v13117_v40  ;;  %15467 = vtanh.f32 %v13565_v1  ;;  %v13567_v23 = vadd.f32 %v9642_v44, %v17688_v15  ;;  %v9644_v53 = vpop.f32.mrb[207].mxu0  ;;  %v18203_v1 = vld [vmem:[#allocation36_spill] sm:$0xff]  ;;  %v18204_v44 = vld [vmem:[#allocation39_spill] sm:$0xff] }
 0x835   :  { %15469 = vtanh.f32 %v13566_v10  ;;  %v13568_v35 = vadd.f32 %v9644_v53, %v17693_v51 }
 0x836   :  { %v15460_v59 = vpop.eup %15459  ;;  %15471 = vtanh.f32 %v13567_v23  ;;  %10326 = vmatmul.mubr.bf16.gmra.mrb[56].mxu0 %v18199_v50 }
 0x837   :  { %v15462_v57 = vpop.eup %15461  ;;  %15473 = vtanh.f32 %v13568_v35  ;;  %10335 = vmatprep.mubr.bf16.mxu0 %v18200_v37 }
 0x838   :  { %v15464_v16 = vpop.eup %15463  ;;  %v13121_v61 = vpack.c.bf16 %v15462_v57, %v15460_v59  ;;  %10672 = vmatmul.mubr.bf16.gmra.mrb[104].mxu1 %v17341_v39 }
 0x839   :  { %v15466_v32 = vpop.eup %15465  ;;  %v9648_v28 = vpop.f32.mrb[208].mxu0  ;;  %10681 = vmatprep.mubr.bf16.mxu1 %v18191_v52 }
 0x83a   :  { %11965 = vst [vmem:[#allocation15 + $0x80] sm:$0xff] %v13121_v61  ;;  %v13125_v46 = vpack.c.bf16 %v15466_v32, %v15464_v16  ;;  %v13569_v19 = vadd.f32 %v9648_v28, %v17688_v15  ;;  %v9650_v0 = vpop.f32.mrb[209].mxu0 }
 0x83b   :  { %v13570_v33 = vadd.f32 %v9650_v0, %v17693_v51  ;;  %v9652_v39 = vpop.f32.mrb[210].mxu0  ;;  %v9994_v24 = vpop.f32.mrb[0].mxu1 }
 0x83c   :  { %11969 = vst [vmem:[#allocation15 + $0xa0] sm:$0xff] %v13125_v46  ;;  %15475 = vtanh.f32 %v13569_v19  ;;  %v13571_v45 = vadd.f32 %v9652_v39, %v17688_v15  ;;  %v13617_v42 = vadd.f32 %v9994_v24, %v17730_v48  ;;  %v9654_v52 = vpop.f32.mrb[211].mxu0  ;;  %v9996_v29 = vpop.f32.mrb[1].mxu1 }
 0x83d   :  { %15477 = vtanh.f32 %v13570_v33  ;;  %v13572_v49 = vadd.f32 %v9654_v52, %v17693_v51  ;;  %v13618_v18 = vadd.f32 %v9996_v29, %v17735_v41  ;;  %v9998_v17 = vpop.f32.mrb[2].mxu1 }
 0x83e   :  { %v15468_v25 = vpop.eup %15467  ;;  %15479 = vtanh.f32 %v13571_v45  ;;  %v13619_v30 = vadd.f32 %v9998_v17, %v17730_v48  ;;  %v10000_v40 = vpop.f32.mrb[3].mxu1  ;;  %10336 = vmatmul.mubr.bf16.gmra.mrb[60].mxu0 %v18203_v1 }
 0x83f   :  { %v15470_v6 = vpop.eup %15469  ;;  %15481 = vtanh.f32 %v13617_v42  ;;  %v13620_v10 = vadd.f32 %v10000_v40, %v17735_v41  ;;  %10378 = vmatprep.mubr.bf16.mxu0 %v18204_v44  ;;  %v18205_v42 = vld [vmem:[#allocation38_spill] sm:$0xff] }
 0x840   :  { %v15472_v23 = vpop.eup %15471  ;;  %v13129_v53 = vpack.c.bf16 %v15470_v6, %v15468_v25  ;;  %15483 = vtanh.f32 %v13572_v49  ;;  %10682 = vmatmul.mubr.bf16.gmra.mrb[108].mxu1 %v18193_v27  ;;  %v18206_v49 = vld [vmem:[#allocation41_spill] sm:$0xff] }
 0x841   :  { %v15474_v35 = vpop.eup %15473  ;;  %15485 = vtanh.f32 %v13618_v18  ;;  %v9658_v59 = vpop.f32.mrb[212].mxu0  ;;  %10691 = vmatprep.mubr.bf16.mxu1 %v18194_v4 }
 0x842   :  { %11973 = vst [vmem:[#allocation15 + $0xc0] sm:$0xff] %v13129_v53  ;;  %v13133_v57 = vpack.c.bf16 %v15474_v35, %v15472_v23  ;;  %15487 = vtanh.f32 %v13619_v30  ;;  %v13573_v16 = vadd.f32 %v9658_v59, %v17688_v15  ;;  %v9660_v61 = vpop.f32.mrb[213].mxu0 }
 0x843   :  { %15489 = vtanh.f32 %v13620_v10  ;;  %v13574_v63 = vadd.f32 %v9660_v61, %v17693_v51  ;;  %v9662_v32 = vpop.f32.mrb[214].mxu0  ;;  %v10004_v28 = vpop.f32.mrb[4].mxu1 }
 0x844   :  { %11977 = vst [vmem:[#allocation15 + $0xe0] sm:$0xff] %v13133_v57  ;;  %15491 = vtanh.f32 %v13573_v16  ;;  %v13575_v27 = vadd.f32 %v9662_v32, %v17688_v15  ;;  %v13621_v34 = vadd.f32 %v10004_v28, %v17730_v48  ;;  %v9664_v46 = vpop.f32.mrb[215].mxu0  ;;  %v10006_v19 = vpop.f32.mrb[5].mxu1 }
 0x845   :  { %15493 = vtanh.f32 %v13574_v63  ;;  %v13576_v4 = vadd.f32 %v9664_v46, %v17693_v51  ;;  %v13622_v0 = vadd.f32 %v10006_v19, %v17735_v41  ;;  %v10008_v33 = vpop.f32.mrb[6].mxu1 }
 0x846   :  { %v15476_v39 = vpop.eup %15475  ;;  %15495 = vtanh.f32 %v13575_v27  ;;  %v13623_v24 = vadd.f32 %v10008_v33, %v17730_v48  ;;  %v10010_v45 = vpop.f32.mrb[7].mxu1  ;;  %10379 = vmatmul.mubr.bf16.vlgmr.msra.gmra.mrb[0].mxu0 %v18205_v42 }
 0x847   :  { %v15478_v52 = vpop.eup %15477  ;;  %15497 = vtanh.f32 %v13621_v34  ;;  %v13624_v29 = vadd.f32 %v10010_v45, %v17735_v41  ;;  %10388 = vmatprep.mubr.bf16.mxu0 %v18206_v49 }
 0x848   :  { %v15480_v18 = vpop.eup %15479  ;;  %v13137_v17 = vpack.c.bf16 %v15478_v52, %v15476_v39  ;;  %15499 = vtanh.f32 %v13576_v4  ;;  %10692 = vmatmul.mubr.bf16.gmra.mrb[112].mxu1 %v18195_v31  ;;  %v18207_v39 = vld [vmem:[#allocation40_spill] sm:$0xff]  ;;  %v18208_v52 = vld [vmem:[#allocation42_spill] sm:$0xff] }
 0x849   :  { %v15482_v25 = vpop.eup %15481  ;;  %15501 = vtanh.f32 %v13622_v0  ;;  %v9668_v30 = vpop.f32.mrb[216].mxu0  ;;  %10701 = vmatprep.mubr.bf16.mxu1 %v18196_v9 }
 0x84a   :  { %v15484_v40 = vpop.eup %15483  ;;  %11981 = vst [vmem:[#allocation15 + $0x100] sm:$0xff] %v13137_v17  ;;  %15503 = vtanh.f32 %v13623_v24  ;;  %v13577_v6 = vadd.f32 %v9668_v30, %v17688_v15  ;;  %v9670_v10 = vpop.f32.mrb[217].mxu0 }
 0x84b   :  { %v15486_v23 = vpop.eup %15485  ;;  %v13141_v53 = vpack.c.bf16 %v15484_v40, %v15480_v18  ;;  %15505 = vtanh.f32 %v13624_v29  ;;  %v13578_v35 = vadd.f32 %v9670_v10, %v17693_v51  ;;  %v9672_v59 = vpop.f32.mrb[218].mxu0 }
 0x84c   :  { %v10014_v57 = vpop.f32.mrb[8].mxu1  ;;  %v15488_v16 = vpop.eup %15487  ;;  %v13106_v31 = vpack.c.bf16 %v15486_v23, %v15482_v25  ;;  %15507 = vtanh.f32 %v13577_v6  ;;  %v13579_v61 = vadd.f32 %v9672_v59, %v17688_v15 }
 0x84d   :  { %v13625_v9 = vadd.f32 %v10014_v57, %v17730_v48  ;;  %v9674_v63 = vpop.f32.mrb[219].mxu0  ;;  %v10016_v32 = vpop.f32.mrb[9].mxu1  ;;  %11985 = vst [vmem:[#allocation15 + $0x120] sm:$0xff] %v13141_v53  ;;  %15509 = vtanh.f32 %v13578_v35 }
 0x84e   :  { %v15490_v28 = vpop.eup %15489  ;;  %v13580_v27 = vadd.f32 %v9674_v63, %v17693_v51  ;;  %v13626_v34 = vadd.f32 %v10016_v32, %v17735_v41  ;;  %v10018_v46 = vpop.f32.mrb[10].mxu1  ;;  %11950 = vst [vmem:[#allocation15 + $0x8] sm:$0xff] %v13106_v31  ;;  %15511 = vtanh.f32 %v13579_v61  ;;  %10389 = vmatmul.mubr.bf16.gmra.mrb[4].mxu0 %v18207_v39 }
 0x84f   :  { %v15492_v19 = vpop.eup %15491  ;;  %v13110_v4 = vpack.c.bf16 %v15490_v28, %v15488_v16  ;;  %v13627_v0 = vadd.f32 %v10018_v46, %v17730_v48  ;;  %v10020_v33 = vpop.f32.mrb[11].mxu1  ;;  %15513 = vtanh.f32 %v13625_v9  ;;  %10398 = vmatprep.mubr.bf16.mxu0 %v18208_v52 }
 0x850   :  { %v15494_v24 = vpop.eup %15493  ;;  %v13628_v45 = vadd.f32 %v10020_v33, %v17735_v41  ;;  %15515 = vtanh.f32 %v13580_v27  ;;  %10702 = vmatmul.mubr.bf16.gmra.mrb[116].mxu1 %v18197_v47 }
 0x851   :  { %v15496_v29 = vpop.eup %15495  ;;  %11954 = vst [vmem:[#allocation15 + $0x28] sm:$0xff] %v13110_v4  ;;  %v13145_v18 = vpack.c.bf16 %v15494_v24, %v15492_v19  ;;  %15517 = vtanh.f32 %v13626_v34  ;;  %v9678_v25 = vpop.f32.mrb[220].mxu0  ;;  %10711 = vmatprep.mubr.bf16.mxu1 %v18198_v12 }
 0x852   :  { %v15498_v17 = vpop.eup %15497  ;;  %15519 = vtanh.f32 %v13627_v0  ;;  %v13581_v40 = vadd.f32 %v9678_v25, %v17688_v15  ;;  %v9680_v6 = vpop.f32.mrb[221].mxu0 }
 0x853   :  { %v15500_v30 = vpop.eup %15499  ;;  %11989 = vst [vmem:[#allocation15 + $0x140] sm:$0xff] %v13145_v18  ;;  %15521 = vtanh.f32 %v13628_v45  ;;  %v13582_v53 = vadd.f32 %v9680_v6, %v17693_v51  ;;  %v9682_v35 = vpop.f32.mrb[222].mxu0 }
 0x854   :  { %v15502_v10 = vpop.eup %15501  ;;  %v13149_v23 = vpack.c.bf16 %v15500_v30, %v15496_v29  ;;  %v10024_v59 = vpop.f32.mrb[12].mxu1  ;;  %15523 = vtanh.f32 %v13581_v40  ;;  %v13583_v16 = vadd.f32 %v9682_v35, %v17688_v15 }
 0x855   :  { %v15504_v57 = vpop.eup %15503  ;;  %v13114_v47 = vpack.c.bf16 %v15502_v10, %v15498_v17  ;;  %v13629_v12 = vadd.f32 %v10024_v59, %v17730_v48  ;;  %v9684_v31 = vpop.f32.mrb[223].mxu0  ;;  %15525 = vtanh.f32 %v13582_v53 }
 0x856   :  { %v10026_v61 = vpop.f32.mrb[13].mxu1  ;;  %v15506_v9 = vpop.eup %15505  ;;  %11993 = vst [vmem:[#allocation15 + $0x160] sm:$0xff] %v13149_v23  ;;  %v13584_v63 = vadd.f32 %v9684_v31, %v17693_v51  ;;  %15527 = vtanh.f32 %v13583_v16  ;;  %10399 = vmatmul.mubr.bf16.gmra.mrb[8].mxu0 %v17450_v21 }
 0x857   :  { %v13630_v32 = vadd.f32 %v10026_v61, %v17735_v41  ;;  %v10028_v28 = vpop.f32.mrb[14].mxu1  ;;  %v15508_v27 = vpop.eup %15507  ;;  %11958 = vst [vmem:[#allocation15 + $0x48] sm:$0xff] %v13114_v47  ;;  %v13118_v34 = vpack.c.bf16 %v15506_v9, %v15504_v57  ;;  %15529 = vtanh.f32 %v13629_v12  ;;  %10408 = vmatprep.mubr.bf16.mxu0 %v17464_v43 }
 0x858   :  { %v13631_v46 = vadd.f32 %v10028_v28, %v17730_v48  ;;  %v10030_v19 = vpop.f32.mrb[15].mxu1  ;;  %v15510_v4 = vpop.eup %15509  ;;  %15531 = vtanh.f32 %v13584_v63  ;;  %10712 = vmatmul.mubr.bf16.gmra.mrb[120].mxu1 %v18199_v50 }
 0x859   :  { %v13632_v0 = vadd.f32 %v10030_v19, %v17735_v41  ;;  %v15512_v33 = vpop.eup %15511  ;;  %11962 = vst [vmem:[#allocation15 + $0x68] sm:$0xff] %v13118_v34  ;;  %v13153_v24 = vpack.c.bf16 %v15510_v4, %v15508_v27  ;;  %15533 = vtanh.f32 %v13630_v32  ;;  %v9688_v29 = vpop.f32.mrb[224].mxu0  ;;  %10721 = vmatprep.mubr.bf16.mxu1 %v18200_v37 }
 0x85a   :  { %v15514_v45 = vpop.eup %15513  ;;  %15535 = vtanh.f32 %v13631_v46  ;;  %v13585_v17 = vadd.f32 %v9688_v29, %v17688_v15  ;;  %v9690_v25 = vpop.f32.mrb[225].mxu0 }
 0x85b   :  { %v15516_v18 = vpop.eup %15515  ;;  %11997 = vst [vmem:[#allocation15 + $0x180] sm:$0xff] %v13153_v24  ;;  %15537 = vtanh.f32 %v13632_v0  ;;  %v13586_v6 = vadd.f32 %v9690_v25, %v17693_v51  ;;  %v9692_v10 = vpop.f32.mrb[226].mxu0 }
 0x85c   :  { %v15518_v30 = vpop.eup %15517  ;;  %v13157_v40 = vpack.c.bf16 %v15516_v18, %v15512_v33  ;;  %v10034_v23 = vpop.f32.mrb[16].mxu1  ;;  %15539 = vtanh.f32 %v13585_v17  ;;  %v13587_v35 = vadd.f32 %v9692_v10, %v17688_v15 }
 0x85d   :  { %v15520_v53 = vpop.eup %15519  ;;  %v13122_v50 = vpack.c.bf16 %v15518_v30, %v15514_v45  ;;  %v13633_v37 = vadd.f32 %v10034_v23, %v17730_v48  ;;  %v9694_v59 = vpop.f32.mrb[227].mxu0  ;;  %15541 = vtanh.f32 %v13586_v6 }
 0x85e   :  { %v10036_v57 = vpop.f32.mrb[17].mxu1  ;;  %v15522_v47 = vpop.eup %15521  ;;  %12001 = vst [vmem:[#allocation15 + $0x1a0] sm:$0xff] %v13157_v40  ;;  %v13588_v16 = vadd.f32 %v9694_v59, %v17693_v51  ;;  %15543 = vtanh.f32 %v13587_v35  ;;  %10409 = vmatmul.mubr.bf16.gmra.mrb[12].mxu0 %v17462_v56 }
 0x85f   :  { %v13634_v12 = vadd.f32 %v10036_v57, %v17735_v41  ;;  %v10038_v31 = vpop.f32.mrb[18].mxu1  ;;  %v15524_v61 = vpop.eup %15523  ;;  %11966 = vst [vmem:[#allocation15 + $0x88] sm:$0xff] %v13122_v50  ;;  %v13126_v9 = vpack.c.bf16 %v15522_v47, %v15520_v53  ;;  %15545 = vtanh.f32 %v13633_v37  ;;  %10418 = vmatprep.mubr.bf16.mxu0 %v17476_v13 }
 0x860   :  { %v13635_v63 = vadd.f32 %v10038_v31, %v17730_v48  ;;  %v10040_v32 = vpop.f32.mrb[19].mxu1  ;;  %v15526_v28 = vpop.eup %15525  ;;  %15547 = vtanh.f32 %v13588_v16  ;;  %10722 = vmatmul.mubr.bf16.gmra.mrb[124].mxu1 %v18203_v1 }
 0x861   :  { %v13636_v27 = vadd.f32 %v10040_v32, %v17735_v41  ;;  %v15528_v34 = vpop.eup %15527  ;;  %11970 = vst [vmem:[#allocation15 + $0xa8] sm:$0xff] %v13126_v9  ;;  %v13161_v46 = vpack.c.bf16 %v15526_v28, %v15524_v61  ;;  %15549 = vtanh.f32 %v13634_v12  ;;  %v9698_v4 = vpop.f32.mrb[228].mxu0  ;;  %10764 = vmatprep.mubr.bf16.mxu1 %v18204_v44 }
 0x862   :  { %v15530_v19 = vpop.eup %15529  ;;  %15551 = vtanh.f32 %v13635_v63  ;;  %v13589_v33 = vadd.f32 %v9698_v4, %v17688_v15  ;;  %v9700_v24 = vpop.f32.mrb[229].mxu0 }
 0x863   :  { %v15532_v0 = vpop.eup %15531  ;;  %12005 = vst [vmem:[#allocation15 + $0x1c0] sm:$0xff] %v13161_v46  ;;  %15553 = vtanh.f32 %v13636_v27  ;;  %v13590_v18 = vadd.f32 %v9700_v24, %v17693_v51  ;;  %v9702_v17 = vpop.f32.mrb[230].mxu0 }
 0x864   :  { %v15534_v45 = vpop.eup %15533  ;;  %v13165_v29 = vpack.c.bf16 %v15532_v0, %v15528_v34  ;;  %v10044_v25 = vpop.f32.mrb[20].mxu1  ;;  %15555 = vtanh.f32 %v13589_v33  ;;  %v13591_v40 = vadd.f32 %v9702_v17, %v17688_v15 }
 0x865   :  { %v15536_v30 = vpop.eup %15535  ;;  %v13130_v1 = vpack.c.bf16 %v15534_v45, %v15530_v19  ;;  %v13637_v44 = vadd.f32 %v10044_v25, %v17730_v48  ;;  %v9704_v6 = vpop.f32.mrb[231].mxu0  ;;  %15557 = vtanh.f32 %v13590_v18 }
 0x866   :  { %v10046_v10 = vpop.f32.mrb[21].mxu1  ;;  %v15538_v23 = vpop.eup %15537  ;;  %12009 = vst [vmem:[#allocation15 + $0x1e0] sm:$0xff] %v13165_v29  ;;  %v13592_v53 = vadd.f32 %v9704_v6, %v17693_v51  ;;  %15559 = vtanh.f32 %v13591_v40  ;;  %10419 = vmatmul.mubr.bf16.gmra.mrb[16].mxu0 %v17474_v20 }
 0x867   :  { %v13638_v50 = vadd.f32 %v10046_v10, %v17735_v41  ;;  %v10048_v35 = vpop.f32.mrb[22].mxu1  ;;  %v15540_v37 = vpop.eup %15539  ;;  %11974 = vst [vmem:[#allocation15 + $0xc8] sm:$0xff] %v13130_v1  ;;  %v13134_v59 = vpack.c.bf16 %v15538_v23, %v15536_v30  ;;  %15561 = vtanh.f32 %v13637_v44  ;;  %10428 = vmatprep.mubr.bf16.mxu0 %v17503_v14  ;;  %v18209_v10 = vld [vmem:[#allocation43_spill] sm:$0xff] }
 0x868   :  { %v13639_v57 = vadd.f32 %v10048_v35, %v17730_v48  ;;  %v10050_v47 = vpop.f32.mrb[23].mxu1  ;;  %v15542_v16 = vpop.eup %15541  ;;  %15563 = vtanh.f32 %v13592_v53  ;;  %10765 = vmatmul.mubr.bf16.vlgmr.msra.gmra.mrb[64].mxu1 %v18205_v42 }
 0x869   :  { %v13640_v12 = vadd.f32 %v10050_v47, %v17735_v41  ;;  %v15544_v31 = vpop.eup %15543  ;;  %11978 = vst [vmem:[#allocation15 + $0xe8] sm:$0xff] %v13134_v59  ;;  %v13169_v61 = vpack.c.bf16 %v15542_v16, %v15540_v37  ;;  %15565 = vtanh.f32 %v13638_v50  ;;  %v9708_v63 = vpop.f32.mrb[232].mxu0  ;;  %10774 = vmatprep.mubr.bf16.mxu1 %v18206_v49  ;;  %v18210_v50 = vld [vmem:[#allocation45_spill] sm:$0xff] }
 0x86a   :  { %v15546_v9 = vpop.eup %15545  ;;  %15567 = vtanh.f32 %v13639_v57  ;;  %v13593_v28 = vadd.f32 %v9708_v63, %v17688_v15  ;;  %v9710_v27 = vpop.f32.mrb[233].mxu0 }
 0x86b   :  { %v15548_v32 = vpop.eup %15547  ;;  %12013 = vst [vmem:[#allocation15 + $0x200] sm:$0xff] %v13169_v61  ;;  %15569 = vtanh.f32 %v13640_v12  ;;  %v13594_v19 = vadd.f32 %v9710_v27, %v17693_v51  ;;  %v9712_v4 = vpop.f32.mrb[234].mxu0 }
 0x86c   :  { %v15550_v34 = vpop.eup %15549  ;;  %v13173_v46 = vpack.c.bf16 %v15548_v32, %v15544_v31  ;;  %v10054_v0 = vpop.f32.mrb[24].mxu1  ;;  %15571 = vtanh.f32 %v13593_v28  ;;  %v13595_v24 = vadd.f32 %v9712_v4, %v17688_v15 }
 0x86d   :  { %v15552_v33 = vpop.eup %15551  ;;  %v13138_v42 = vpack.c.bf16 %v15550_v34, %v15546_v9  ;;  %v13641_v49 = vadd.f32 %v10054_v0, %v17730_v48  ;;  %v9714_v45 = vpop.f32.mrb[235].mxu0  ;;  %15573 = vtanh.f32 %v13594_v19 }
 0x86e   :  { %v10056_v29 = vpop.f32.mrb[25].mxu1  ;;  %v15554_v18 = vpop.eup %15553  ;;  %12017 = vst [vmem:[#allocation15 + $0x220] sm:$0xff] %v13173_v46  ;;  %v13596_v17 = vadd.f32 %v9714_v45, %v17693_v51  ;;  %15575 = vtanh.f32 %v13595_v24  ;;  %10429 = vmatmul.mubr.bf16.gmra.mrb[20].mxu0 %v18209_v10 }
 0x86f   :  { %v13642_v25 = vadd.f32 %v10056_v29, %v17735_v41  ;;  %v10058_v30 = vpop.f32.mrb[26].mxu1  ;;  %v15556_v1 = vpop.eup %15555  ;;  %11982 = vst [vmem:[#allocation15 + $0x108] sm:$0xff] %v13138_v42  ;;  %v13142_v40 = vpack.c.bf16 %v15554_v18, %v15552_v33  ;;  %15577 = vtanh.f32 %v13641_v49  ;;  %10438 = vmatprep.mubr.bf16.mxu0 %v18210_v50  ;;  %v18211_v29 = vld [vmem:[#allocation44_spill] sm:$0xff] }
 0x870   :  { %v13643_v44 = vadd.f32 %v10058_v30, %v17730_v48  ;;  %v10060_v6 = vpop.f32.mrb[27].mxu1  ;;  %v15558_v23 = vpop.eup %15557  ;;  %15579 = vtanh.f32 %v13596_v17  ;;  %10775 = vmatmul.mubr.bf16.gmra.mrb[68].mxu1 %v18207_v39 }
 0x871   :  { %v13644_v53 = vadd.f32 %v10060_v6, %v17735_v41  ;;  %v15560_v35 = vpop.eup %15559  ;;  %11986 = vst [vmem:[#allocation15 + $0x128] sm:$0xff] %v13142_v40  ;;  %v13177_v37 = vpack.c.bf16 %v15558_v23, %v15556_v1  ;;  %15581 = vtanh.f32 %v13642_v25  ;;  %v9718_v57 = vpop.f32.mrb[236].mxu0  ;;  %10784 = vmatprep.mubr.bf16.mxu1 %v18208_v52 }
 0x872   :  { %v15562_v59 = vpop.eup %15561  ;;  %15583 = vtanh.f32 %v13643_v44  ;;  %v13597_v16 = vadd.f32 %v9718_v57, %v17688_v15  ;;  %v9720_v12 = vpop.f32.mrb[237].mxu0 }
 0x873   :  { %v15564_v47 = vpop.eup %15563  ;;  %12021 = vst [vmem:[#allocation15 + $0x240] sm:$0xff] %v13177_v37  ;;  %15585 = vtanh.f32 %v13644_v53  ;;  %v13598_v9 = vadd.f32 %v9720_v12, %v17693_v51  ;;  %v9722_v63 = vpop.f32.mrb[238].mxu0 }
 0x874   :  { %v15566_v31 = vpop.eup %15565  ;;  %v13181_v61 = vpack.c.bf16 %v15564_v47, %v15560_v35  ;;  %v10064_v32 = vpop.f32.mrb[28].mxu1  ;;  %15587 = vtanh.f32 %v13597_v16  ;;  %v13599_v27 = vadd.f32 %v9722_v63, %v17688_v15 }
 0x875   :  { %v15568_v28 = vpop.eup %15567  ;;  %v13146_v39 = vpack.c.bf16 %v15566_v31, %v15562_v59  ;;  %v13645_v52 = vadd.f32 %v10064_v32, %v17730_v48  ;;  %v9724_v34 = vpop.f32.mrb[239].mxu0  ;;  %15589 = vtanh.f32 %v13598_v9 }
 0x876   :  { %v10066_v46 = vpop.f32.mrb[29].mxu1  ;;  %v15570_v19 = vpop.eup %15569  ;;  %12025 = vst [vmem:[#allocation15 + $0x260] sm:$0xff] %v13181_v61  ;;  %v13600_v4 = vadd.f32 %v9724_v34, %v17693_v51  ;;  %15591 = vtanh.f32 %v13599_v27  ;;  %10439 = vmatmul.mubr.bf16.gmra.mrb[24].mxu0 %v18211_v29 }
 0x877   :  { %v13646_v0 = vadd.f32 %v10066_v46, %v17735_v41  ;;  %v10068_v33 = vpop.f32.mrb[30].mxu1  ;;  %v15572_v42 = vpop.eup %15571  ;;  %11990 = vst [vmem:[#allocation15 + $0x148] sm:$0xff] %v13146_v39  ;;  %v13150_v24 = vpack.c.bf16 %v15570_v19, %v15568_v28  ;;  %15593 = vtanh.f32 %v13645_v52  ;;  %10448 = vmatprep.mubr.bf16.mxu0 %v17527_v5 }
 0x878   :  { %v13647_v49 = vadd.f32 %v10068_v33, %v17730_v48  ;;  %v10070_v45 = vpop.f32.mrb[31].mxu1  ;;  %v15574_v18 = vpop.eup %15573  ;;  %15595 = vtanh.f32 %v13600_v4  ;;  %10785 = vmatmul.mubr.bf16.gmra.mrb[72].mxu1 %v17450_v21 }
 0x879   :  { %v13648_v17 = vadd.f32 %v10070_v45, %v17735_v41  ;;  %v15576_v25 = vpop.eup %15575  ;;  %11994 = vst [vmem:[#allocation15 + $0x168] sm:$0xff] %v13150_v24  ;;  %v13185_v30 = vpack.c.bf16 %v15574_v18, %v15572_v42  ;;  %15597 = vtanh.f32 %v13646_v0  ;;  %v9728_v40 = vpop.f32.mrb[240].mxu0  ;;  %10794 = vmatprep.mubr.bf16.mxu1 %v17464_v43 }
 0x87a   :  { %v15578_v1 = vpop.eup %15577  ;;  %15599 = vtanh.f32 %v13647_v49  ;;  %v13601_v6 = vadd.f32 %v9728_v40, %v17688_v15  ;;  %v9730_v23 = vpop.f32.mrb[241].mxu0 }
 0x87b   :  { %v15580_v44 = vpop.eup %15579  ;;  %12029 = vst [vmem:[#allocation15 + $0x280] sm:$0xff] %v13185_v30  ;;  %15601 = vtanh.f32 %v13648_v17  ;;  %v13602_v37 = vadd.f32 %v9730_v23, %v17693_v51  ;;  %v9732_v59 = vpop.f32.mrb[242].mxu0 }
 0x87c   :  { %v15582_v53 = vpop.eup %15581  ;;  %v13189_v35 = vpack.c.bf16 %v15580_v44, %v15576_v25  ;;  %v10074_v57 = vpop.f32.mrb[32].mxu1  ;;  %15603 = vtanh.f32 %v13601_v6  ;;  %v13603_v16 = vadd.f32 %v9732_v59, %v17688_v15 }
 0x87d   :  { %v15584_v47 = vpop.eup %15583  ;;  %v13154_v21 = vpack.c.bf16 %v15582_v53, %v15578_v1  ;;  %v13649_v43 = vadd.f32 %v10074_v57, %v17730_v48  ;;  %v9734_v12 = vpop.f32.mrb[243].mxu0  ;;  %15605 = vtanh.f32 %v13602_v37 }
 0x87e   :  { %v10076_v31 = vpop.f32.mrb[33].mxu1  ;;  %v15586_v61 = vpop.eup %15585  ;;  %12033 = vst [vmem:[#allocation15 + $0x2a0] sm:$0xff] %v13189_v35  ;;  %v13604_v9 = vadd.f32 %v9734_v12, %v17693_v51  ;;  %15607 = vtanh.f32 %v13603_v16  ;;  %10449 = vmatmul.mubr.bf16.gmra.mrb[28].mxu0 %v17525_v3 }
 0x87f   :  { %v13650_v63 = vadd.f32 %v10076_v31, %v17735_v41  ;;  %v10078_v32 = vpop.f32.mrb[34].mxu1  ;;  %v15588_v28 = vpop.eup %15587  ;;  %11998 = vst [vmem:[#allocation15 + $0x188] sm:$0xff] %v13154_v21  ;;  %v13158_v39 = vpack.c.bf16 %v15586_v61, %v15584_v47  ;;  %15609 = vtanh.f32 %v13649_v43  ;;  %10458 = vmatprep.mubr.bf16.mxu0 %v17541_v22 }
 0x880   :  { %v13651_v27 = vadd.f32 %v10078_v32, %v17730_v48  ;;  %v10080_v52 = vpop.f32.mrb[35].mxu1  ;;  %v15590_v34 = vpop.eup %15589  ;;  %15611 = vtanh.f32 %v13604_v9  ;;  %10795 = vmatmul.mubr.bf16.gmra.mrb[76].mxu1 %v17462_v56 }
 0x881   :  { %v13652_v46 = vadd.f32 %v10080_v52, %v17735_v41  ;;  %v15592_v19 = vpop.eup %15591  ;;  %12002 = vst [vmem:[#allocation15 + $0x1a8] sm:$0xff] %v13158_v39  ;;  %v13193_v4 = vpack.c.bf16 %v15590_v34, %v15588_v28  ;;  %15613 = vtanh.f32 %v13650_v63  ;;  %v9738_v33 = vpop.f32.mrb[244].mxu0  ;;  %10804 = vmatprep.mubr.bf16.mxu1 %v17476_v13 }
 0x882   :  { %v15594_v0 = vpop.eup %15593  ;;  %15615 = vtanh.f32 %v13651_v27  ;;  %v13605_v24 = vadd.f32 %v9738_v33, %v17688_v15  ;;  %v9740_v49 = vpop.f32.mrb[245].mxu0 }
 0x883   :  { %v15596_v42 = vpop.eup %15595  ;;  %12037 = vst [vmem:[#allocation15 + $0x2c0] sm:$0xff] %v13193_v4  ;;  %15617 = vtanh.f32 %v13652_v46  ;;  %v13606_v17 = vadd.f32 %v9740_v49, %v17693_v51  ;;  %v9742_v25 = vpop.f32.mrb[246].mxu0 }
 0x884   :  { %v15598_v45 = vpop.eup %15597  ;;  %v13197_v18 = vpack.c.bf16 %v15596_v42, %v15592_v19  ;;  %v10084_v30 = vpop.f32.mrb[36].mxu1  ;;  %15619 = vtanh.f32 %v13605_v24  ;;  %v13607_v40 = vadd.f32 %v9742_v25, %v17688_v15 }
 0x885   :  { %v15600_v1 = vpop.eup %15599  ;;  %v13162_v56 = vpack.c.bf16 %v15598_v45, %v15594_v0  ;;  %v13653_v13 = vadd.f32 %v10084_v30, %v17730_v48  ;;  %v9744_v44 = vpop.f32.mrb[247].mxu0  ;;  %15621 = vtanh.f32 %v13606_v17 }
 0x886   :  { %v10086_v6 = vpop.f32.mrb[37].mxu1  ;;  %v15602_v23 = vpop.eup %15601  ;;  %12041 = vst [vmem:[#allocation15 + $0x2e0] sm:$0xff] %v13197_v18  ;;  %v13608_v53 = vadd.f32 %v9744_v44, %v17693_v51  ;;  %15623 = vtanh.f32 %v13607_v40  ;;  %10459 = vmatmul.mubr.bf16.gmra.mrb[32].mxu0 %v17539_v11 }
 0x887   :  { %v13654_v35 = vadd.f32 %v10086_v6, %v17735_v41  ;;  %v10088_v37 = vpop.f32.mrb[38].mxu1  ;;  %v15604_v59 = vpop.eup %15603  ;;  %12006 = vst [vmem:[#allocation15 + $0x1c8] sm:$0xff] %v13162_v56  ;;  %v13166_v57 = vpack.c.bf16 %v15602_v23, %v15600_v1  ;;  %15625 = vtanh.f32 %v13653_v13  ;;  %10468 = vmatprep.mubr.bf16.mxu0 %v17553_v58 }
 0x888   :  { %v13655_v47 = vadd.f32 %v10088_v37, %v17730_v48  ;;  %v10090_v21 = vpop.f32.mrb[39].mxu1  ;;  %v15606_v16 = vpop.eup %15605  ;;  %15627 = vtanh.f32 %v13608_v53  ;;  %10805 = vmatmul.mubr.bf16.gmra.mrb[80].mxu1 %v17474_v20 }
 0x889   :  { %v13656_v43 = vadd.f32 %v10090_v21, %v17735_v41  ;;  %v15608_v12 = vpop.eup %15607  ;;  %12010 = vst [vmem:[#allocation15 + $0x1e8] sm:$0xff] %v13166_v57  ;;  %v13201_v31 = vpack.c.bf16 %v15606_v16, %v15604_v59  ;;  %15629 = vtanh.f32 %v13654_v35  ;;  %v9748_v9 = vpop.f32.mrb[248].mxu0  ;;  %10814 = vmatprep.mubr.bf16.mxu1 %v17503_v14 }
 0x88a   :  { %v15610_v61 = vpop.eup %15609  ;;  %15631 = vtanh.f32 %v13655_v47  ;;  %v13609_v32 = vadd.f32 %v9748_v9, %v17688_v15  ;;  %v9750_v28 = vpop.f32.mrb[249].mxu0 }
 0x88b   :  { %v15612_v63 = vpop.eup %15611  ;;  %12045 = vst [vmem:[#allocation15 + $0x300] sm:$0xff] %v13201_v31  ;;  %15633 = vtanh.f32 %v13656_v43  ;;  %v13610_v52 = vadd.f32 %v9750_v28, %v17693_v51  ;;  %v9752_v34 = vpop.f32.mrb[250].mxu0 }
 0x88c   :  { %v15614_v39 = vpop.eup %15613  ;;  %v13205_v27 = vpack.c.bf16 %v15612_v63, %v15608_v12  ;;  %v10094_v46 = vpop.f32.mrb[40].mxu1  ;;  %15635 = vtanh.f32 %v13609_v32  ;;  %v13611_v4 = vadd.f32 %v9752_v34, %v17688_v15 }
 0x88d   :  { %v15616_v19 = vpop.eup %15615  ;;  %v13170_v20 = vpack.c.bf16 %v15614_v39, %v15610_v61  ;;  %v13657_v14 = vadd.f32 %v10094_v46, %v17730_v48  ;;  %v9754_v0 = vpop.f32.mrb[251].mxu0  ;;  %15637 = vtanh.f32 %v13610_v52 }
 0x88e   :  { %v10096_v33 = vpop.f32.mrb[41].mxu1  ;;  %v15618_v42 = vpop.eup %15617  ;;  %12049 = vst [vmem:[#allocation15 + $0x320] sm:$0xff] %v13205_v27  ;;  %v13612_v24 = vadd.f32 %v9754_v0, %v17693_v51  ;;  %15639 = vtanh.f32 %v13611_v4  ;;  %10469 = vmatmul.mubr.bf16.gmra.mrb[36].mxu0 %v17551_v36 }
 0x88f   :  { %v13658_v49 = vadd.f32 %v10096_v33, %v17735_v41  ;;  %v10098_v45 = vpop.f32.mrb[42].mxu1  ;;  %v15620_v18 = vpop.eup %15619  ;;  %12014 = vst [vmem:[#allocation15 + $0x208] sm:$0xff] %v13170_v20  ;;  %v13174_v17 = vpack.c.bf16 %v15618_v42, %v15616_v19  ;;  %15641 = vtanh.f32 %v13657_v14  ;;  %10478 = vmatprep.mubr.bf16.mxu0 %v17565_v55 }
 0x890   :  { %v13659_v25 = vadd.f32 %v10098_v45, %v17730_v48  ;;  %v10100_v30 = vpop.f32.mrb[43].mxu1  ;;  %v15622_v1 = vpop.eup %15621  ;;  %15643 = vtanh.f32 %v13612_v24  ;;  %10815 = vmatmul.mubr.bf16.gmra.mrb[84].mxu1 %v18209_v10 }
 0x891   :  { %v13660_v56 = vadd.f32 %v10100_v30, %v17735_v41  ;;  %v15624_v40 = vpop.eup %15623  ;;  %12018 = vst [vmem:[#allocation15 + $0x228] sm:$0xff] %v13174_v17  ;;  %v13209_v13 = vpack.c.bf16 %v15622_v1, %v15620_v18  ;;  %15645 = vtanh.f32 %v13658_v49  ;;  %v9758_v6 = vpop.f32.mrb[252].mxu0  ;;  %10824 = vmatprep.mubr.bf16.mxu1 %v18210_v50 }
 0x892   :  { %v15626_v44 = vpop.eup %15625  ;;  %15647 = vtanh.f32 %v13659_v25  ;;  %v13613_v53 = vadd.f32 %v9758_v6, %v17688_v15  ;;  %v9760_v35 = vpop.f32.mrb[253].mxu0 }
 0x893   :  { %v15628_v23 = vpop.eup %15627  ;;  %12053 = vst [vmem:[#allocation15 + $0x340] sm:$0xff] %v13209_v13  ;;  %15649 = vtanh.f32 %v13660_v56  ;;  %v13614_v57 = vadd.f32 %v9760_v35, %v17693_v51  ;;  %v9762_v47 = vpop.f32.mrb[254].mxu0 }
 0x894   :  { %v15630_v37 = vpop.eup %15629  ;;  %v13213_v59 = vpack.c.bf16 %v15628_v23, %v15624_v40  ;;  %v10104_v21 = vpop.f32.mrb[44].mxu1  ;;  %15651 = vtanh.f32 %v13613_v53  ;;  %v13615_v43 = vadd.f32 %v9762_v47, %v17688_v15 }
 0x895   :  { %v15632_v16 = vpop.eup %15631  ;;  %v13178_v10 = vpack.c.bf16 %v15630_v37, %v15626_v44  ;;  %v13661_v50 = vadd.f32 %v10104_v21, %v17730_v48  ;;  %v9764_v12 = vpop.f32.mrb[255].mxu0  ;;  %15653 = vtanh.f32 %v13614_v57 }
 0x896   :  { %v10106_v31 = vpop.f32.mrb[45].mxu1  ;;  %v15634_v61 = vpop.eup %15633  ;;  %12057 = vst [vmem:[#allocation15 + $0x360] sm:$0xff] %v13213_v59  ;;  %v13616_v9 = vadd.f32 %v9764_v12, %v17693_v51  ;;  %15655 = vtanh.f32 %v13615_v43  ;;  %10479 = vmatmul.mubr.bf16.gmra.mrb[40].mxu0 %v17563_v8 }
 0x897   :  { %v13662_v63 = vadd.f32 %v10106_v31, %v17735_v41  ;;  %v10108_v32 = vpop.f32.mrb[46].mxu1  ;;  %v15636_v28 = vpop.eup %15635  ;;  %12022 = vst [vmem:[#allocation15 + $0x248] sm:$0xff] %v13178_v10  ;;  %v13182_v39 = vpack.c.bf16 %v15634_v61, %v15632_v16  ;;  %15657 = vtanh.f32 %v13661_v50  ;;  %10488 = vmatprep.mubr.bf16.mxu0 %v17577_v26 }
 0x898   :  { %v13663_v27 = vadd.f32 %v10108_v32, %v17730_v48  ;;  %v10110_v52 = vpop.f32.mrb[47].mxu1  ;;  %v15638_v15 = vpop.eup %15637  ;;  %15659 = vtanh.f32 %v13616_v9  ;;  %10825 = vmatmul.mubr.bf16.gmra.mrb[88].mxu1 %v18211_v29 }
 0x899   :  { %v13664_v34 = vadd.f32 %v10110_v52, %v17735_v41  ;;  %v15640_v46 = vpop.eup %15639  ;;  %12026 = vst [vmem:[#allocation15 + $0x268] sm:$0xff] %v13182_v39  ;;  %v13217_v51 = vpack.c.bf16 %v15638_v15, %v15636_v28  ;;  %15661 = vtanh.f32 %v13662_v63  ;;  %10834 = vmatprep.mubr.bf16.mxu1 %v17527_v5 }
 0x89a   :  { %v15642_v19 = vpop.eup %15641  ;;  %15663 = vtanh.f32 %v13663_v27 }
 0x89b   :  { %v15644_v20 = vpop.eup %15643  ;;  %12061 = vst [vmem:[#allocation15 + $0x380] sm:$0xff] %v13217_v51  ;;  %15665 = vtanh.f32 %v13664_v34  ;;  %v10114_v0 = vpop.f32.mrb[48].mxu1 }
 0x89c   :  { %v15646_v4 = vpop.eup %15645  ;;  %v13221_v14 = vpack.c.bf16 %v15644_v20, %v15640_v46  ;;  %v13665_v24 = vadd.f32 %v10114_v0, %v17730_v48  ;;  %v10116_v49 = vpop.f32.mrb[49].mxu1 }
 0x89d   :  { %v15648_v33 = vpop.eup %15647  ;;  %v13186_v42 = vpack.c.bf16 %v15646_v4, %v15642_v19  ;;  %v13666_v29 = vadd.f32 %v10116_v49, %v17735_v41  ;;  %v10118_v18 = vpop.f32.mrb[50].mxu1 }
 0x89e   :  { %v15650_v45 = vpop.eup %15649  ;;  %12065 = vst [vmem:[#allocation15 + $0x3a0] sm:$0xff] %v13221_v14  ;;  %15667 = vtanh.f32 %v13665_v24  ;;  %v13667_v25 = vadd.f32 %v10118_v18, %v17730_v48  ;;  %v10120_v30 = vpop.f32.mrb[51].mxu1  ;;  %10489 = vmatmul.mubr.bf16.gmra.mrb[44].mxu0 %v17575_v60  ;;  %v18213_v18 = vld [vmem:[#allocation48_spill] sm:$0xff] }
 0x89f   :  { %v15652_v17 = vpop.eup %15651  ;;  %12030 = vst [vmem:[#allocation15 + $0x288] sm:$0xff] %v13186_v42  ;;  %v13190_v5 = vpack.c.bf16 %v15650_v45, %v15648_v33  ;;  %15669 = vtanh.f32 %v13666_v29  ;;  %v13668_v56 = vadd.f32 %v10120_v30, %v17735_v41  ;;  %10498 = vmatprep.mubr.bf16.mxu0 %v17591_v62  ;;  %v18212_v29 = vld [vmem:[#allocation46_spill] sm:$0xff] }
 0x8a0   :  { %v15654_v1 = vpop.eup %15653  ;;  %15671 = vtanh.f32 %v13667_v25  ;;  %10835 = vmatmul.mubr.bf16.gmra.mrb[92].mxu1 %v17525_v3 }
 0x8a1   :  { %v15656_v40 = vpop.eup %15655  ;;  %12034 = vst [vmem:[#allocation15 + $0x2a8] sm:$0xff] %v13190_v5  ;;  %v13225_v13 = vpack.c.bf16 %v15654_v1, %v15652_v17  ;;  %15673 = vtanh.f32 %v13668_v56  ;;  %10844 = vmatprep.mubr.bf16.mxu1 %v17541_v22  ;;  %v18214_v56 = vld [vmem:[#allocation47_spill] sm:$0xff] }
 0x8a2   :  { %v15658_v44 = vpop.eup %15657 }
 0x8a3   :  { %v15660_v6 = vpop.eup %15659  ;;  %12069 = vst [vmem:[#allocation15 + $0x3c0] sm:$0xff] %v13225_v13  ;;  %v10124_v35 = vpop.f32.mrb[52].mxu1 }
 0x8a4   :  { %v15662_v23 = vpop.eup %15661  ;;  %v13229_v53 = vpack.c.bf16 %v15660_v6, %v15656_v40  ;;  %v13669_v57 = vadd.f32 %v10124_v35, %v17730_v48  ;;  %v10126_v47 = vpop.f32.mrb[53].mxu1 }
 0x8a5   :  { %v15664_v37 = vpop.eup %15663  ;;  %v13194_v59 = vpack.c.bf16 %v15662_v23, %v15658_v44  ;;  %v13670_v16 = vadd.f32 %v10126_v47, %v17735_v41  ;;  %v10128_v10 = vpop.f32.mrb[54].mxu1 }
 0x8a6   :  { %v15666_v21 = vpop.eup %15665  ;;  %12073 = vst [vmem:[#allocation15 + $0x3e0] sm:$0xff] %v13229_v53  ;;  %15675 = vtanh.f32 %v13669_v57  ;;  %v13671_v22 = vadd.f32 %v10128_v10, %v17730_v48  ;;  %v10130_v43 = vpop.f32.mrb[55].mxu1  ;;  %10499 = vmatmul.mubr.bf16.gmra.mrb[48].mxu0 %v17587_v2 }
 0x8a7   :  { %12038 = vst [vmem:[#allocation15 + $0x2c8] sm:$0xff] %v13194_v59  ;;  %v13198_v3 = vpack.c.bf16 %v15666_v21, %v15664_v37  ;;  %15677 = vtanh.f32 %v13670_v16  ;;  %v13672_v50 = vadd.f32 %v10130_v43, %v17735_v41  ;;  %10508 = vmatprep.mubr.bf16.mxu0 %v17603_v38 }
 0x8a8   :  { %v15668_v12 = vpop.eup %15667  ;;  %15679 = vtanh.f32 %v13671_v22  ;;  %10845 = vmatmul.mubr.bf16.gmra.mrb[96].mxu1 %v17539_v11 }
 0x8a9   :  { %12042 = vst [vmem:[#allocation15 + $0x2e8] sm:$0xff] %v13198_v3  ;;  %v15670_v31 = vpop.eup %15669  ;;  %15681 = vtanh.f32 %v13672_v50  ;;  %10854 = vmatprep.mubr.bf16.mxu1 %v17553_v58 }
 0x8aa   :  { %v15672_v61 = vpop.eup %15671  ;;  %v13202_v9 = vpack.c.bf16 %v15670_v31, %v15668_v12 }
 0x8ab   :  { %v15674_v63 = vpop.eup %15673  ;;  %v10134_v32 = vpop.f32.mrb[56].mxu1 }
 0x8ac   :  { %12046 = vst [vmem:[#allocation15 + $0x308] sm:$0xff] %v13202_v9  ;;  %v13206_v28 = vpack.c.bf16 %v15674_v63, %v15672_v61  ;;  %v13673_v39 = vadd.f32 %v10134_v32, %v17730_v48  ;;  %v10136_v27 = vpop.f32.mrb[57].mxu1 }
 0x8ad   :  { %v13674_v52 = vadd.f32 %v10136_v27, %v17735_v41  ;;  %v10138_v15 = vpop.f32.mrb[58].mxu1 }
 0x8ae   :  { %12050 = vst [vmem:[#allocation15 + $0x328] sm:$0xff] %v13206_v28  ;;  %15683 = vtanh.f32 %v13673_v39  ;;  %v13675_v11 = vadd.f32 %v10138_v15, %v17730_v48  ;;  %v10140_v34 = vpop.f32.mrb[59].mxu1  ;;  %10509 = vmatmul.mubr.bf16.gmra.mrb[52].mxu0 %v17601_v54 }
 0x8af   :  { %15685 = vtanh.f32 %v13674_v52  ;;  %v13676_v58 = vadd.f32 %v10140_v34, %v17735_v41  ;;  %10518 = vmatprep.mubr.bf16.mxu0 %v17615_v7 }
 0x8b0   :  { %v15676_v46 = vpop.eup %15675  ;;  %15687 = vtanh.f32 %v13675_v11  ;;  %10855 = vmatmul.mubr.bf16.gmra.mrb[100].mxu1 %v17551_v36 }
 0x8b1   :  { %v15678_v51 = vpop.eup %15677  ;;  %15689 = vtanh.f32 %v13676_v58  ;;  %10864 = vmatprep.mubr.bf16.mxu1 %v17565_v55 }
 0x8b2   :  { %v15680_v19 = vpop.eup %15679  ;;  %v13210_v20 = vpack.c.bf16 %v15678_v51, %v15676_v46 }
 0x8b3   :  { %v15682_v4 = vpop.eup %15681  ;;  %v10144_v14 = vpop.f32.mrb[60].mxu1 }
 0x8b4   :  { %12054 = vst [vmem:[#allocation15 + $0x348] sm:$0xff] %v13210_v20  ;;  %v13214_v0 = vpack.c.bf16 %v15682_v4, %v15680_v19  ;;  %v13677_v33 = vadd.f32 %v10144_v14, %v17730_v48  ;;  %v10146_v42 = vpop.f32.mrb[61].mxu1 }
 0x8b5   :  { %v13678_v24 = vadd.f32 %v10146_v42, %v17735_v41  ;;  %v10148_v49 = vpop.f32.mrb[62].mxu1 }
 0x8b6   :  { %12058 = vst [vmem:[#allocation15 + $0x368] sm:$0xff] %v13214_v0  ;;  %15691 = vtanh.f32 %v13677_v33  ;;  %v13679_v36 = vadd.f32 %v10148_v49, %v17730_v48  ;;  %v10150_v45 = vpop.f32.mrb[63].mxu1  ;;  %10519 = vmatmul.mubr.bf16.gmra.mrb[56].mxu0 %v18212_v29 }
 0x8b7   :  { %15693 = vtanh.f32 %v13678_v24  ;;  %v13680_v55 = vadd.f32 %v10150_v45, %v17735_v41  ;;  %10528 = vmatprep.mubr.bf16.mxu0 %v18213_v18 }
 0x8b8   :  { %v15684_v17 = vpop.eup %15683  ;;  %15695 = vtanh.f32 %v13679_v36  ;;  %10865 = vmatmul.mubr.bf16.gmra.mrb[104].mxu1 %v17563_v8 }
 0x8b9   :  { %v15686_v5 = vpop.eup %15685  ;;  %15697 = vtanh.f32 %v13680_v55  ;;  %10874 = vmatprep.mubr.bf16.mxu1 %v17577_v26 }
 0x8ba   :  { %v15688_v25 = vpop.eup %15687  ;;  %v13218_v30 = vpack.c.bf16 %v15686_v5, %v15684_v17 }
 0x8bb   :  { %v15690_v1 = vpop.eup %15689 }
 0x8bc   :  { %12062 = vst [vmem:[#allocation15 + $0x388] sm:$0xff] %v13218_v30  ;;  %v13222_v48 = vpack.c.bf16 %v15690_v1, %v15688_v25 }
 0x8be   :  { %12066 = vst [vmem:[#allocation15 + $0x3a8] sm:$0xff] %v13222_v48  ;;  %10529 = vmatmul.mubr.bf16.gmra.mrb[60].mxu0 %v18214_v56 }
 0x8c0   :  { %v15692_v40 = vpop.eup %15691  ;;  %10875 = vmatmul.mubr.bf16.gmra.mrb[108].mxu1 %v17575_v60  ;;  %v18215_v60 = vld [vmem:[#allocation23_spill] sm:$0xff] }
 0x8c1   :  { %v15694_v41 = vpop.eup %15693  ;;  %10884 = vmatprep.mubr.bf16.mxu1 %v17591_v62  ;;  %v8079_v26 = vsub.s32 4, %v18215_v60  ;;  %v8083_v62 = vsub.s32 5, %v18215_v60  ;;  %v8087_v45 = vsub.s32 6, %v18215_v60 }
 0x8c2   :  { %v15696_v13 = vpop.eup %15695  ;;  %v13226_v8 = vpack.c.bf16 %v15694_v41, %v15692_v40 }
 0x8c3   :  { %v15698_v44 = vpop.eup %15697 }
 0x8c4   :  { %12070 = vst [vmem:[#allocation15 + $0x3c8] sm:$0xff] %v13226_v8  ;;  %v13230_v6 = vpack.c.bf16 %v15698_v44, %v15696_v13 }
 0x8c6   :  { %12074 = vst [vmem:[#allocation15 + $0x3e8] sm:$0xff] %v13230_v6 }
 0x8c8   :  { %10885 = vmatmul.mubr.bf16.gmra.mrb[112].mxu1 %v17587_v2  ;;  %v17928_v2 = vld [vmem:[%s18110_s11] sm:$0xff]  ;;  %s16180_s11 = smov [#allocation14]  }
 0x8c9   :  { %10894 = vmatprep.mubr.bf16.mxu1 %v17603_v38  ;;  %v17931_v38 = vrot.slane %v17928_v2, %v8079_v26  ;;  %v17955_v48 = vrot.slane %v17928_v2, %v8087_v45  ;;  %s12082_s2 = sshll.u32 %s16180_s11, 4  ;;  %s12083_s2 = int_to_ptr.vmem [resolvable:$true] %s12082_s2 }
 0x8ca   :  { %s16110_s26 = scalar_lea.vmem %s12083_s2, 12288  ;;  %p16115_p1 = scmp.lt.s32.totalorder %s12083_s2, %s12083_s2 }
 0x8cb   :  { %p16111_p0 = scmp.ne.s32.totalorder %s12083_s2, %s16110_s26  ;;  %p16116_p2 = scmp.lt.s32.totalorder %s16110_s26, %s16110_s26 }
 0x8cd   :  { %p16117_p3 = por %p16116_p2, %p16115_p1 }
 0x8cf   :  { %p16118_p4 = pnand %p16117_p3, %p16111_p0 }
 0x8d0   :  { %10895 = vmatmul.mubr.bf16.gmra.mrb[116].mxu1 %v17601_v54  ;;  %v17934_v54 = vrot.slane %v17928_v2, %v8083_v62 }
 0x8d1   :  { %10904 = vmatprep.mubr.bf16.mxu1 %v17615_v7 }
 0x8d8   :  { %10905 = vmatmul.mubr.bf16.gmra.mrb[120].mxu1 %v18212_v29 }
 0x8d9   :  { %10914 = vmatprep.mubr.bf16.mxu1 %v18213_v18  ;;  %v8091_v18 = vsub.s32 7, %v18215_v60 }
 0x8db   :  { %v17958_v41 = vrot.slane %v17928_v2, %v8091_v18 }
 0x8e0   :  { %10915 = vmatmul.mubr.bf16.gmra.mrb[124].mxu1 %v18214_v56 }
 0x919   :  { %v10380_v7 = vpop.f32.mrb[0].mxu0 }
 0x91a   :  { %v13681_v23 = vadd.f32 %v10380_v7, %v17931_v38  ;;  %v10382_v53 = vpop.f32.mrb[1].mxu0 }
 0x91b   :  { %v13682_v35 = vadd.f32 %v10382_v53, %v17934_v54  ;;  %v10384_v37 = vpop.f32.mrb[2].mxu0 }
 0x91c   :  { %15699 = vtanh.f32 %v13681_v23  ;;  %v13683_v59 = vadd.f32 %v10384_v37, %v17931_v38  ;;  %v10386_v57 = vpop.f32.mrb[3].mxu0 }
 0x91d   :  { %15701 = vtanh.f32 %v13682_v35  ;;  %v13684_v47 = vadd.f32 %v10386_v57, %v17934_v54 }
 0x91e   :  { %15703 = vtanh.f32 %v13683_v59 }
 0x91f   :  { %15705 = vtanh.f32 %v13684_v47 }
 0x921   :  { %v10390_v21 = vpop.f32.mrb[4].mxu0 }
 0x922   :  { %v13685_v16 = vadd.f32 %v10390_v21, %v17931_v38  ;;  %v10392_v10 = vpop.f32.mrb[5].mxu0 }
 0x923   :  { %v13686_v3 = vadd.f32 %v10392_v10, %v17934_v54  ;;  %v10394_v22 = vpop.f32.mrb[6].mxu0 }
 0x924   :  { %15707 = vtanh.f32 %v13685_v16  ;;  %v13687_v43 = vadd.f32 %v10394_v22, %v17931_v38  ;;  %v10396_v50 = vpop.f32.mrb[7].mxu0 }
 0x925   :  { %15709 = vtanh.f32 %v13686_v3  ;;  %v13688_v12 = vadd.f32 %v10396_v50, %v17934_v54 }
 0x926   :  { %v15700_v31 = vpop.eup %15699  ;;  %15711 = vtanh.f32 %v13687_v43 }
 0x927   :  { %v15702_v61 = vpop.eup %15701  ;;  %15713 = vtanh.f32 %v13688_v12 }
 0x928   :  { %v15704_v9 = vpop.eup %15703  ;;  %v13107_v63 = vpack.c.bf16 %v15702_v61, %v15700_v31 }
 0x929   :  { %v15706_v32 = vpop.eup %15705  ;;  %v10400_v28 = vpop.f32.mrb[8].mxu0 }
 0x92a   :  { %11951 = vst [vmem:[#allocation15 + $0x10] sm:$0xff] %v13107_v63  ;;  %v13111_v39 = vpack.c.bf16 %v15706_v32, %v15704_v9  ;;  %v13689_v27 = vadd.f32 %v10400_v28, %v17931_v38  ;;  %v10402_v52 = vpop.f32.mrb[9].mxu0 }
 0x92b   :  { %v13690_v15 = vadd.f32 %v10402_v52, %v17934_v54  ;;  %v10404_v11 = vpop.f32.mrb[10].mxu0 }
 0x92c   :  { %11955 = vst [vmem:[#allocation15 + $0x30] sm:$0xff] %v13111_v39  ;;  %15715 = vtanh.f32 %v13689_v27  ;;  %v13691_v34 = vadd.f32 %v10404_v11, %v17931_v38  ;;  %v10406_v58 = vpop.f32.mrb[11].mxu0 }
 0x92d   :  { %15717 = vtanh.f32 %v13690_v15  ;;  %v13692_v46 = vadd.f32 %v10406_v58, %v17934_v54 }
 0x92e   :  { %v15708_v51 = vpop.eup %15707  ;;  %15719 = vtanh.f32 %v13691_v34 }
 0x92f   :  { %v15710_v19 = vpop.eup %15709  ;;  %15721 = vtanh.f32 %v13692_v46 }
 0x930   :  { %v15712_v20 = vpop.eup %15711  ;;  %v13115_v4 = vpack.c.bf16 %v15710_v19, %v15708_v51 }
 0x931   :  { %v15714_v14 = vpop.eup %15713  ;;  %v10410_v0 = vpop.f32.mrb[12].mxu0 }
 0x932   :  { %11959 = vst [vmem:[#allocation15 + $0x50] sm:$0xff] %v13115_v4  ;;  %v13119_v33 = vpack.c.bf16 %v15714_v14, %v15712_v20  ;;  %v13693_v42 = vadd.f32 %v10410_v0, %v17931_v38  ;;  %v10412_v24 = vpop.f32.mrb[13].mxu0 }
 0x933   :  { %v13694_v49 = vadd.f32 %v10412_v24, %v17934_v54  ;;  %v10414_v36 = vpop.f32.mrb[14].mxu0 }
 0x934   :  { %11963 = vst [vmem:[#allocation15 + $0x70] sm:$0xff] %v13119_v33  ;;  %15723 = vtanh.f32 %v13693_v42  ;;  %v13695_v29 = vadd.f32 %v10414_v36, %v17931_v38  ;;  %v10416_v55 = vpop.f32.mrb[15].mxu0 }
 0x935   :  { %15725 = vtanh.f32 %v13694_v49  ;;  %v13696_v17 = vadd.f32 %v10416_v55, %v17934_v54 }
 0x936   :  { %v15716_v5 = vpop.eup %15715  ;;  %15727 = vtanh.f32 %v13695_v29 }
 0x937   :  { %v15718_v25 = vpop.eup %15717  ;;  %15729 = vtanh.f32 %v13696_v17 }
 0x938   :  { %v15720_v30 = vpop.eup %15719  ;;  %v13123_v1 = vpack.c.bf16 %v15718_v25, %v15716_v5 }
 0x939   :  { %v15722_v56 = vpop.eup %15721  ;;  %v10420_v40 = vpop.f32.mrb[16].mxu0 }
 0x93a   :  { %11967 = vst [vmem:[#allocation15 + $0x90] sm:$0xff] %v13123_v1  ;;  %v13127_v13 = vpack.c.bf16 %v15722_v56, %v15720_v30  ;;  %v13697_v8 = vadd.f32 %v10420_v40, %v17931_v38  ;;  %v10422_v44 = vpop.f32.mrb[17].mxu0 }
 0x93b   :  { %v13698_v6 = vadd.f32 %v10422_v44, %v17934_v54  ;;  %v10424_v60 = vpop.f32.mrb[18].mxu0  ;;  %v10766_v26 = vpop.f32.mrb[64].mxu1 }
 0x93c   :  { %11971 = vst [vmem:[#allocation15 + $0xb0] sm:$0xff] %v13127_v13  ;;  %15731 = vtanh.f32 %v13697_v8  ;;  %v13699_v62 = vadd.f32 %v10424_v60, %v17931_v38  ;;  %v13745_v7 = vadd.f32 %v10766_v26, %v17955_v48  ;;  %v10426_v23 = vpop.f32.mrb[19].mxu0  ;;  %v10768_v53 = vpop.f32.mrb[65].mxu1 }
 0x93d   :  { %15733 = vtanh.f32 %v13698_v6  ;;  %v13700_v2 = vadd.f32 %v10426_v23, %v17934_v54  ;;  %v13746_v35 = vadd.f32 %v10768_v53, %v17958_v41  ;;  %v10770_v37 = vpop.f32.mrb[66].mxu1 }
 0x93e   :  { %v15724_v59 = vpop.eup %15723  ;;  %15735 = vtanh.f32 %v13699_v62  ;;  %v13747_v57 = vadd.f32 %v10770_v37, %v17955_v48  ;;  %v10772_v47 = vpop.f32.mrb[67].mxu1 }
 0x93f   :  { %v15726_v21 = vpop.eup %15725  ;;  %15737 = vtanh.f32 %v13745_v7  ;;  %v13748_v16 = vadd.f32 %v10772_v47, %v17958_v41 }
 0x940   :  { %v15728_v10 = vpop.eup %15727  ;;  %v13131_v3 = vpack.c.bf16 %v15726_v21, %v15724_v59  ;;  %15739 = vtanh.f32 %v13700_v2 }
 0x941   :  { %v15730_v22 = vpop.eup %15729  ;;  %15741 = vtanh.f32 %v13746_v35  ;;  %v10430_v43 = vpop.f32.mrb[20].mxu0 }
 0x942   :  { %11975 = vst [vmem:[#allocation15 + $0xd0] sm:$0xff] %v13131_v3  ;;  %v13135_v50 = vpack.c.bf16 %v15730_v22, %v15728_v10  ;;  %15743 = vtanh.f32 %v13747_v57  ;;  %v13701_v12 = vadd.f32 %v10430_v43, %v17931_v38  ;;  %v10432_v31 = vpop.f32.mrb[21].mxu0 }
 0x943   :  { %15745 = vtanh.f32 %v13748_v16  ;;  %v13702_v61 = vadd.f32 %v10432_v31, %v17934_v54  ;;  %v10434_v9 = vpop.f32.mrb[22].mxu0  ;;  %v10776_v63 = vpop.f32.mrb[68].mxu1 }
 0x944   :  { %11979 = vst [vmem:[#allocation15 + $0xf0] sm:$0xff] %v13135_v50  ;;  %15747 = vtanh.f32 %v13701_v12  ;;  %v13703_v32 = vadd.f32 %v10434_v9, %v17931_v38  ;;  %v13749_v28 = vadd.f32 %v10776_v63, %v17955_v48  ;;  %v10436_v39 = vpop.f32.mrb[23].mxu0  ;;  %v10778_v27 = vpop.f32.mrb[69].mxu1 }
 0x945   :  { %15749 = vtanh.f32 %v13702_v61  ;;  %v13704_v52 = vadd.f32 %v10436_v39, %v17934_v54  ;;  %v13750_v15 = vadd.f32 %v10778_v27, %v17958_v41  ;;  %v10780_v11 = vpop.f32.mrb[70].mxu1 }
 0x946   :  { %v15732_v34 = vpop.eup %15731  ;;  %15751 = vtanh.f32 %v13703_v32  ;;  %v13751_v58 = vadd.f32 %v10780_v11, %v17955_v48  ;;  %v10782_v46 = vpop.f32.mrb[71].mxu1 }
 0x947   :  { %v15734_v51 = vpop.eup %15733  ;;  %15753 = vtanh.f32 %v13749_v28  ;;  %v13752_v19 = vadd.f32 %v10782_v46, %v17958_v41 }
 0x948   :  { %v15736_v20 = vpop.eup %15735  ;;  %v13139_v4 = vpack.c.bf16 %v15734_v51, %v15732_v34  ;;  %15755 = vtanh.f32 %v13704_v52 }
 0x949   :  { %v15738_v14 = vpop.eup %15737  ;;  %15757 = vtanh.f32 %v13750_v15  ;;  %v10440_v0 = vpop.f32.mrb[24].mxu0 }
 0x94a   :  { %16121 = shalt.err (!%p16118_p4)
}
 0x94b   :  { %s16122_s29 = scalar_lea.hbm %s18111_s12, 12288 }
 0x94c   :  { %p16123_p5 = scmp.ne.s32.totalorder %s18111_s12, %s16122_s29  ;;  %p16126_p6 = scmp.lt.u32.totalorder %s16122_s29, %s18111_s12 }
 0x94e   :  { %p16128_p7 = pnand %p16126_p6, %p16123_p5 }
 0x950   :  { %16131 = shalt.err (!%p16128_p7)
}
 0x951   :  { %s16181_s15 = smov 384   ;;  %s16182_s4 = smov 24   ;;  %v15740_v33 = vpop.eup %15739  ;;  %11983 = vst [vmem:[#allocation15 + $0x110] sm:$0xff] %v13139_v4  ;;  %15759 = vtanh.f32 %v13751_v58  ;;  %v13705_v42 = vadd.f32 %v10440_v0, %v17931_v38  ;;  %v10442_v24 = vpop.f32.mrb[25].mxu0 }
 0x952   :  { %12088 = dma.vmem_to_hbm [thread:$0]  %s12083_s2, 12288, %s18111_s12, [#allocation4], %s16181_s15, %s16181_s15, %s16182_s4   ;;  %v15742_v49 = vpop.eup %15741  ;;  %v13143_v36 = vpack.c.bf16 %v15740_v33, %v15736_v20  ;;  %15761 = vtanh.f32 %v13752_v19  ;;  %v13706_v45 = vadd.f32 %v10442_v24, %v17934_v54  ;;  %v10444_v29 = vpop.f32.mrb[26].mxu0 }
 0x953   :  { %v10786_v55 = vpop.f32.mrb[72].mxu1  ;;  %v15744_v18 = vpop.eup %15743  ;;  %v13108_v17 = vpack.c.bf16 %v15742_v49, %v15738_v14  ;;  %15763 = vtanh.f32 %v13705_v42  ;;  %v13707_v5 = vadd.f32 %v10444_v29, %v17931_v38  ;;  %s16183_s12 = smov [#allocation15]  }
 0x954   :  { %v13753_v25 = vadd.f32 %v10786_v55, %v17955_v48  ;;  %v10446_v30 = vpop.f32.mrb[27].mxu0  ;;  %v10788_v1 = vpop.f32.mrb[73].mxu1  ;;  %11987 = vst [vmem:[#allocation15 + $0x130] sm:$0xff] %v13143_v36  ;;  %15765 = vtanh.f32 %v13706_v45  ;;  %s12094_s18 = sshll.u32 %s16183_s12, 4  ;;  %s12095_s18 = int_to_ptr.vmem [resolvable:$true] %s12094_s18 }
 0x955   :  { %v15746_v56 = vpop.eup %15745  ;;  %v13708_v40 = vadd.f32 %v10446_v30, %v17934_v54  ;;  %v13754_v13 = vadd.f32 %v10788_v1, %v17958_v41  ;;  %v10790_v8 = vpop.f32.mrb[74].mxu1  ;;  %11952 = vst [vmem:[#allocation15 + $0x18] sm:$0xff] %v13108_v17  ;;  %15767 = vtanh.f32 %v13707_v5  ;;  %s16132_s10 = scalar_lea.vmem %s12095_s18, 16384  ;;  %p16137_p9 = scmp.lt.s32.totalorder %s12095_s18, %s12095_s18 }
 0x956   :  { %v15748_v44 = vpop.eup %15747  ;;  %v13112_v6 = vpack.c.bf16 %v15746_v56, %v15744_v18  ;;  %v13755_v60 = vadd.f32 %v10790_v8, %v17955_v48  ;;  %v10792_v26 = vpop.f32.mrb[75].mxu1  ;;  %15769 = vtanh.f32 %v13753_v25  ;;  %p16133_p8 = scmp.ne.s32.totalorder %s12095_s18, %s16132_s10  ;;  %p16138_p10 = scmp.lt.s32.totalorder %s16132_s10, %s16132_s10 }
 0x957   :  { %v15750_v62 = vpop.eup %15749  ;;  %v13756_v7 = vadd.f32 %v10792_v26, %v17958_v41  ;;  %15771 = vtanh.f32 %v13708_v40  ;;  %v10450_v35 = vpop.f32.mrb[28].mxu0 }
 0x958   :  { %v15752_v23 = vpop.eup %15751  ;;  %11956 = vst [vmem:[#allocation15 + $0x38] sm:$0xff] %v13112_v6  ;;  %v13147_v53 = vpack.c.bf16 %v15750_v62, %v15748_v44  ;;  %15773 = vtanh.f32 %v13754_v13  ;;  %v13709_v59 = vadd.f32 %v10450_v35, %v17931_v38  ;;  %v10452_v57 = vpop.f32.mrb[29].mxu0  ;;  %p16139_p11 = por %p16138_p10, %p16137_p9 }
 0x959   :  { %v15754_v2 = vpop.eup %15753  ;;  %15775 = vtanh.f32 %v13755_v60  ;;  %v13710_v16 = vadd.f32 %v10452_v57, %v17934_v54  ;;  %v10454_v10 = vpop.f32.mrb[30].mxu0 }
 0x95a   :  { %v15756_v37 = vpop.eup %15755  ;;  %11991 = vst [vmem:[#allocation15 + $0x150] sm:$0xff] %v13147_v53  ;;  %15777 = vtanh.f32 %v13756_v7  ;;  %v10796_v3 = vpop.f32.mrb[76].mxu1  ;;  %v13711_v50 = vadd.f32 %v10454_v10, %v17931_v38  ;;  %p16140_p12 = pnand %p16139_p11, %p16133_p8 }
 0x95b   :  { %v15758_v47 = vpop.eup %15757  ;;  %v13151_v21 = vpack.c.bf16 %v15756_v37, %v15752_v23  ;;  %15779 = vtanh.f32 %v13709_v59  ;;  %v13757_v12 = vadd.f32 %v10796_v3, %v17955_v48  ;;  %v10456_v31 = vpop.f32.mrb[31].mxu0 }
 0x95c   :  { %v15760_v22 = vpop.eup %15759  ;;  %v13116_v43 = vpack.c.bf16 %v15758_v47, %v15754_v2  ;;  %v10798_v61 = vpop.f32.mrb[77].mxu1  ;;  %15781 = vtanh.f32 %v13710_v16  ;;  %v13712_v63 = vadd.f32 %v10456_v31, %v17934_v54 }
 0x95d   :  { %v15762_v9 = vpop.eup %15761  ;;  %11995 = vst [vmem:[#allocation15 + $0x170] sm:$0xff] %v13151_v21  ;;  %v13758_v32 = vadd.f32 %v10798_v61, %v17958_v41  ;;  %v10800_v28 = vpop.f32.mrb[78].mxu1  ;;  %15783 = vtanh.f32 %v13711_v50 }
 0x95e   :  { %v15764_v39 = vpop.eup %15763  ;;  %11960 = vst [vmem:[#allocation15 + $0x58] sm:$0xff] %v13116_v43  ;;  %v13120_v27 = vpack.c.bf16 %v15762_v9, %v15760_v22  ;;  %v13759_v52 = vadd.f32 %v10800_v28, %v17955_v48  ;;  %v10802_v15 = vpop.f32.mrb[79].mxu1  ;;  %15785 = vtanh.f32 %v13757_v12 }
 0x95f   :  { %v15766_v11 = vpop.eup %15765  ;;  %v13760_v34 = vadd.f32 %v10802_v15, %v17958_v41  ;;  %15787 = vtanh.f32 %v13712_v63  ;;  %v10460_v19 = vpop.f32.mrb[32].mxu0 }
 0x960   :  { %v15768_v58 = vpop.eup %15767  ;;  %11964 = vst [vmem:[#allocation15 + $0x78] sm:$0xff] %v13120_v27  ;;  %v13155_v46 = vpack.c.bf16 %v15766_v11, %v15764_v39  ;;  %15789 = vtanh.f32 %v13758_v32  ;;  %v13713_v4 = vadd.f32 %v10460_v19, %v17931_v38  ;;  %v10462_v14 = vpop.f32.mrb[33].mxu0 }
 0x961   :  { %v15770_v51 = vpop.eup %15769  ;;  %15791 = vtanh.f32 %v13759_v52  ;;  %v13714_v42 = vadd.f32 %v10462_v14, %v17934_v54  ;;  %v10464_v24 = vpop.f32.mrb[34].mxu0 }
 0x962   :  { %v15772_v20 = vpop.eup %15771  ;;  %11999 = vst [vmem:[#allocation15 + $0x190] sm:$0xff] %v13155_v46  ;;  %15793 = vtanh.f32 %v13760_v34  ;;  %v10806_v49 = vpop.f32.mrb[80].mxu1  ;;  %v13715_v29 = vadd.f32 %v10464_v24, %v17931_v38 }
 0x963   :  { %v15774_v0 = vpop.eup %15773  ;;  %v13159_v33 = vpack.c.bf16 %v15772_v20, %v15768_v58  ;;  %15795 = vtanh.f32 %v13713_v4  ;;  %v13761_v55 = vadd.f32 %v10806_v49, %v17955_v48  ;;  %v10466_v18 = vpop.f32.mrb[35].mxu0 }
 0x964   :  { %v15776_v36 = vpop.eup %15775  ;;  %v13124_v45 = vpack.c.bf16 %v15774_v0, %v15770_v51  ;;  %v10808_v17 = vpop.f32.mrb[81].mxu1  ;;  %15797 = vtanh.f32 %v13714_v42  ;;  %v13716_v25 = vadd.f32 %v10466_v18, %v17934_v54 }
 0x965   :  { %v15778_v5 = vpop.eup %15777  ;;  %12003 = vst [vmem:[#allocation15 + $0x1b0] sm:$0xff] %v13159_v33  ;;  %v13762_v30 = vadd.f32 %v10808_v17, %v17958_v41  ;;  %v10810_v1 = vpop.f32.mrb[82].mxu1  ;;  %15799 = vtanh.f32 %v13715_v29 }
 0x966   :  { %v15780_v56 = vpop.eup %15779  ;;  %11968 = vst [vmem:[#allocation15 + $0x98] sm:$0xff] %v13124_v45  ;;  %v13128_v40 = vpack.c.bf16 %v15778_v5, %v15776_v36  ;;  %v13763_v13 = vadd.f32 %v10810_v1, %v17955_v48  ;;  %v10812_v8 = vpop.f32.mrb[83].mxu1  ;;  %15801 = vtanh.f32 %v13761_v55 }
 0x967   :  { %v15782_v44 = vpop.eup %15781  ;;  %v13764_v6 = vadd.f32 %v10812_v8, %v17958_v41  ;;  %15803 = vtanh.f32 %v13716_v25  ;;  %v10470_v7 = vpop.f32.mrb[36].mxu0 }
 0x968   :  { %v15784_v60 = vpop.eup %15783  ;;  %11972 = vst [vmem:[#allocation15 + $0xb8] sm:$0xff] %v13128_v40  ;;  %v13163_v26 = vpack.c.bf16 %v15782_v44, %v15780_v56  ;;  %15805 = vtanh.f32 %v13762_v30  ;;  %v13717_v53 = vadd.f32 %v10470_v7, %v17931_v38  ;;  %v10472_v2 = vpop.f32.mrb[37].mxu0 }
 0x969   :  { %v15786_v62 = vpop.eup %15785  ;;  %15807 = vtanh.f32 %v13763_v13  ;;  %v13718_v59 = vadd.f32 %v10472_v2, %v17934_v54  ;;  %v10474_v57 = vpop.f32.mrb[38].mxu0 }
 0x96a   :  { %v15788_v23 = vpop.eup %15787  ;;  %12007 = vst [vmem:[#allocation15 + $0x1d0] sm:$0xff] %v13163_v26  ;;  %15809 = vtanh.f32 %v13764_v6  ;;  %v10816_v47 = vpop.f32.mrb[84].mxu1  ;;  %v13719_v10 = vadd.f32 %v10474_v57, %v17931_v38 }
 0x96b   :  { %v15790_v35 = vpop.eup %15789  ;;  %v13167_v37 = vpack.c.bf16 %v15788_v23, %v15784_v60  ;;  %15811 = vtanh.f32 %v13717_v53  ;;  %v13765_v3 = vadd.f32 %v10816_v47, %v17955_v48  ;;  %v10476_v22 = vpop.f32.mrb[39].mxu0 }
 0x96c   :  { %v15792_v21 = vpop.eup %15791  ;;  %v13132_v16 = vpack.c.bf16 %v15790_v35, %v15786_v62  ;;  %v10818_v43 = vpop.f32.mrb[85].mxu1  ;;  %15813 = vtanh.f32 %v13718_v59  ;;  %v13720_v12 = vadd.f32 %v10476_v22, %v17934_v54 }
 0x96d   :  { %v15794_v50 = vpop.eup %15793  ;;  %12011 = vst [vmem:[#allocation15 + $0x1f0] sm:$0xff] %v13167_v37  ;;  %v13766_v31 = vadd.f32 %v10818_v43, %v17958_v41  ;;  %v10820_v61 = vpop.f32.mrb[86].mxu1  ;;  %15815 = vtanh.f32 %v13719_v10 }
 0x96e   :  { %v15796_v9 = vpop.eup %15795  ;;  %11976 = vst [vmem:[#allocation15 + $0xd8] sm:$0xff] %v13132_v16  ;;  %v13136_v63 = vpack.c.bf16 %v15794_v50, %v15792_v21  ;;  %v13767_v32 = vadd.f32 %v10820_v61, %v17955_v48  ;;  %v10822_v28 = vpop.f32.mrb[87].mxu1  ;;  %15817 = vtanh.f32 %v13765_v3 }
 0x96f   :  { %v15798_v39 = vpop.eup %15797  ;;  %v13768_v27 = vadd.f32 %v10822_v28, %v17958_v41  ;;  %15819 = vtanh.f32 %v13720_v12  ;;  %v10480_v34 = vpop.f32.mrb[40].mxu0 }
 0x970   :  { %v15800_v52 = vpop.eup %15799  ;;  %11980 = vst [vmem:[#allocation15 + $0xf8] sm:$0xff] %v13136_v63  ;;  %v13171_v15 = vpack.c.bf16 %v15798_v39, %v15796_v9  ;;  %15821 = vtanh.f32 %v13766_v31  ;;  %v13721_v46 = vadd.f32 %v10480_v34, %v17931_v38  ;;  %v10482_v51 = vpop.f32.mrb[41].mxu0 }
 0x971   :  { %v15802_v11 = vpop.eup %15801  ;;  %15823 = vtanh.f32 %v13767_v32  ;;  %v13722_v4 = vadd.f32 %v10482_v51, %v17934_v54  ;;  %v10484_v14 = vpop.f32.mrb[42].mxu0 }
 0x972   :  { %v15804_v58 = vpop.eup %15803  ;;  %12015 = vst [vmem:[#allocation15 + $0x210] sm:$0xff] %v13171_v15  ;;  %15825 = vtanh.f32 %v13768_v27  ;;  %v10826_v0 = vpop.f32.mrb[88].mxu1  ;;  %v13723_v24 = vadd.f32 %v10484_v14, %v17931_v38 }
 0x973   :  { %v15806_v19 = vpop.eup %15805  ;;  %v13175_v20 = vpack.c.bf16 %v15804_v58, %v15800_v52  ;;  %15827 = vtanh.f32 %v13721_v46  ;;  %v13769_v49 = vadd.f32 %v10826_v0, %v17955_v48  ;;  %v10486_v36 = vpop.f32.mrb[43].mxu0 }
 0x974   :  { %v15808_v33 = vpop.eup %15807  ;;  %v13140_v42 = vpack.c.bf16 %v15806_v19, %v15802_v11  ;;  %v10828_v45 = vpop.f32.mrb[89].mxu1  ;;  %15829 = vtanh.f32 %v13722_v4  ;;  %v13724_v55 = vadd.f32 %v10486_v36, %v17934_v54 }
 0x975   :  { %v15810_v29 = vpop.eup %15809  ;;  %12019 = vst [vmem:[#allocation15 + $0x230] sm:$0xff] %v13175_v20  ;;  %v13770_v18 = vadd.f32 %v10828_v45, %v17958_v41  ;;  %v10830_v17 = vpop.f32.mrb[90].mxu1  ;;  %15831 = vtanh.f32 %v13723_v24 }
 0x976   :  { %v15812_v5 = vpop.eup %15811  ;;  %11984 = vst [vmem:[#allocation15 + $0x118] sm:$0xff] %v13140_v42  ;;  %v13144_v25 = vpack.c.bf16 %v15810_v29, %v15808_v33  ;;  %v13771_v30 = vadd.f32 %v10830_v17, %v17955_v48  ;;  %v10832_v1 = vpop.f32.mrb[91].mxu1  ;;  %15833 = vtanh.f32 %v13769_v49 }
 0x977   :  { %v15814_v56 = vpop.eup %15813  ;;  %v13772_v40 = vadd.f32 %v10832_v1, %v17958_v41  ;;  %15835 = vtanh.f32 %v13724_v55  ;;  %v10490_v6 = vpop.f32.mrb[44].mxu0 }
 0x978   :  { %v15816_v13 = vpop.eup %15815  ;;  %11988 = vst [vmem:[#allocation15 + $0x138] sm:$0xff] %v13144_v25  ;;  %v13179_v8 = vpack.c.bf16 %v15814_v56, %v15812_v5  ;;  %15837 = vtanh.f32 %v13770_v18  ;;  %v13725_v26 = vadd.f32 %v10490_v6, %v17931_v38  ;;  %v10492_v62 = vpop.f32.mrb[45].mxu0 }
 0x979   :  { %v15818_v44 = vpop.eup %15817  ;;  %15839 = vtanh.f32 %v13771_v30  ;;  %v13726_v53 = vadd.f32 %v10492_v62, %v17934_v54  ;;  %v10494_v2 = vpop.f32.mrb[46].mxu0 }
 0x97a   :  { %v15820_v60 = vpop.eup %15819  ;;  %12023 = vst [vmem:[#allocation15 + $0x250] sm:$0xff] %v13179_v8  ;;  %15841 = vtanh.f32 %v13772_v40  ;;  %v10836_v35 = vpop.f32.mrb[92].mxu1  ;;  %v13727_v57 = vadd.f32 %v10494_v2, %v17931_v38 }
 0x97b   :  { %v15822_v7 = vpop.eup %15821  ;;  %v13183_v23 = vpack.c.bf16 %v15820_v60, %v15816_v13  ;;  %15843 = vtanh.f32 %v13725_v26  ;;  %v13773_v47 = vadd.f32 %v10836_v35, %v17955_v48  ;;  %v10496_v21 = vpop.f32.mrb[47].mxu0 }
 0x97c   :  { %v15824_v37 = vpop.eup %15823  ;;  %v13148_v59 = vpack.c.bf16 %v15822_v7, %v15818_v44  ;;  %v10838_v16 = vpop.f32.mrb[93].mxu1  ;;  %15845 = vtanh.f32 %v13726_v53  ;;  %v13728_v3 = vadd.f32 %v10496_v21, %v17934_v54 }
 0x97d   :  { %v15826_v10 = vpop.eup %15825  ;;  %12027 = vst [vmem:[#allocation15 + $0x270] sm:$0xff] %v13183_v23  ;;  %v13774_v22 = vadd.f32 %v10838_v16, %v17958_v41  ;;  %v10840_v43 = vpop.f32.mrb[94].mxu1  ;;  %15847 = vtanh.f32 %v13727_v57 }
 0x97e   :  { %v15828_v50 = vpop.eup %15827  ;;  %11992 = vst [vmem:[#allocation15 + $0x158] sm:$0xff] %v13148_v59  ;;  %v13152_v12 = vpack.c.bf16 %v15826_v10, %v15824_v37  ;;  %v13775_v31 = vadd.f32 %v10840_v43, %v17955_v48  ;;  %v10842_v61 = vpop.f32.mrb[95].mxu1  ;;  %15849 = vtanh.f32 %v13773_v47 }
 0x97f   :  { %v15830_v9 = vpop.eup %15829  ;;  %v13776_v63 = vadd.f32 %v10842_v61, %v17958_v41  ;;  %15851 = vtanh.f32 %v13728_v3  ;;  %v10500_v27 = vpop.f32.mrb[48].mxu0 }
 0x980   :  { %v15832_v32 = vpop.eup %15831  ;;  %11996 = vst [vmem:[#allocation15 + $0x178] sm:$0xff] %v13152_v12  ;;  %v13187_v28 = vpack.c.bf16 %v15830_v9, %v15828_v50  ;;  %15853 = vtanh.f32 %v13774_v22  ;;  %v13729_v15 = vadd.f32 %v10500_v27, %v17931_v38  ;;  %v10502_v11 = vpop.f32.mrb[49].mxu0 }
 0x981   :  { %v15834_v39 = vpop.eup %15833  ;;  %15855 = vtanh.f32 %v13775_v31  ;;  %v13730_v46 = vadd.f32 %v10502_v11, %v17934_v54  ;;  %v10504_v51 = vpop.f32.mrb[50].mxu0 }
 0x982   :  { %v15836_v52 = vpop.eup %15835  ;;  %12031 = vst [vmem:[#allocation15 + $0x290] sm:$0xff] %v13187_v28  ;;  %15857 = vtanh.f32 %v13776_v63  ;;  %v10846_v19 = vpop.f32.mrb[96].mxu1  ;;  %v13731_v14 = vadd.f32 %v10504_v51, %v17931_v38 }
 0x983   :  { %v15838_v34 = vpop.eup %15837  ;;  %v13191_v58 = vpack.c.bf16 %v15836_v52, %v15832_v32  ;;  %15859 = vtanh.f32 %v13729_v15  ;;  %v13777_v0 = vadd.f32 %v10846_v19, %v17955_v48  ;;  %v10506_v33 = vpop.f32.mrb[51].mxu0 }
 0x984   :  { %v15840_v20 = vpop.eup %15839  ;;  %v13156_v4 = vpack.c.bf16 %v15838_v34, %v15834_v39  ;;  %v10848_v42 = vpop.f32.mrb[97].mxu1  ;;  %15861 = vtanh.f32 %v13730_v46  ;;  %v13732_v49 = vadd.f32 %v10506_v33, %v17934_v54 }
 0x985   :  { %v15842_v24 = vpop.eup %15841  ;;  %12035 = vst [vmem:[#allocation15 + $0x2b0] sm:$0xff] %v13191_v58  ;;  %v13778_v36 = vadd.f32 %v10848_v42, %v17958_v41  ;;  %v10850_v45 = vpop.f32.mrb[98].mxu1  ;;  %15863 = vtanh.f32 %v13731_v14 }
 0x986   :  { %v15844_v29 = vpop.eup %15843  ;;  %12000 = vst [vmem:[#allocation15 + $0x198] sm:$0xff] %v13156_v4  ;;  %v13160_v55 = vpack.c.bf16 %v15842_v24, %v15840_v20  ;;  %v13779_v18 = vadd.f32 %v10850_v45, %v17955_v48  ;;  %v10852_v17 = vpop.f32.mrb[99].mxu1  ;;  %15865 = vtanh.f32 %v13777_v0 }
 0x987   :  { %v15846_v5 = vpop.eup %15845  ;;  %v13780_v25 = vadd.f32 %v10852_v17, %v17958_v41  ;;  %15867 = vtanh.f32 %v13732_v49  ;;  %v10510_v40 = vpop.f32.mrb[52].mxu0 }
 0x988   :  { %v15848_v30 = vpop.eup %15847  ;;  %12004 = vst [vmem:[#allocation15 + $0x1b8] sm:$0xff] %v13160_v55  ;;  %v13195_v1 = vpack.c.bf16 %v15846_v5, %v15844_v29  ;;  %15869 = vtanh.f32 %v13778_v36  ;;  %v13733_v8 = vadd.f32 %v10510_v40, %v17931_v38  ;;  %v10512_v44 = vpop.f32.mrb[53].mxu0 }
 0x989   :  { %v15850_v56 = vpop.eup %15849  ;;  %15871 = vtanh.f32 %v13779_v18  ;;  %v13734_v26 = vadd.f32 %v10512_v44, %v17934_v54  ;;  %v10514_v62 = vpop.f32.mrb[54].mxu0 }
 0x98a   :  { %v15852_v13 = vpop.eup %15851  ;;  %12039 = vst [vmem:[#allocation15 + $0x2d0] sm:$0xff] %v13195_v1  ;;  %15873 = vtanh.f32 %v13780_v25  ;;  %v10856_v7 = vpop.f32.mrb[100].mxu1  ;;  %v13735_v2 = vadd.f32 %v10514_v62, %v17931_v38 }
 0x98b   :  { %v15854_v6 = vpop.eup %15853  ;;  %v13199_v60 = vpack.c.bf16 %v15852_v13, %v15848_v30  ;;  %15875 = vtanh.f32 %v13733_v8  ;;  %v13781_v35 = vadd.f32 %v10856_v7, %v17955_v48  ;;  %v10516_v37 = vpop.f32.mrb[55].mxu0 }
 0x98c   :  { %v15856_v23 = vpop.eup %15855  ;;  %v13164_v53 = vpack.c.bf16 %v15854_v6, %v15850_v56  ;;  %v10858_v59 = vpop.f32.mrb[101].mxu1  ;;  %15877 = vtanh.f32 %v13734_v26  ;;  %v13736_v47 = vadd.f32 %v10516_v37, %v17934_v54 }
 0x98d   :  { %v15858_v57 = vpop.eup %15857  ;;  %12043 = vst [vmem:[#allocation15 + $0x2f0] sm:$0xff] %v13199_v60  ;;  %v13782_v21 = vadd.f32 %v10858_v59, %v17958_v41  ;;  %v10860_v16 = vpop.f32.mrb[102].mxu1  ;;  %15879 = vtanh.f32 %v13735_v2 }
 0x98e   :  { %v15860_v10 = vpop.eup %15859  ;;  %12008 = vst [vmem:[#allocation15 + $0x1d8] sm:$0xff] %v13164_v53  ;;  %v13168_v3 = vpack.c.bf16 %v15858_v57, %v15856_v23  ;;  %v13783_v22 = vadd.f32 %v10860_v16, %v17955_v48  ;;  %v10862_v43 = vpop.f32.mrb[103].mxu1  ;;  %15881 = vtanh.f32 %v13781_v35 }
 0x98f   :  { %v15862_v50 = vpop.eup %15861  ;;  %v13784_v12 = vadd.f32 %v10862_v43, %v17958_v41  ;;  %15883 = vtanh.f32 %v13736_v47  ;;  %v10520_v63 = vpop.f32.mrb[56].mxu0 }
 0x990   :  { %v15864_v31 = vpop.eup %15863  ;;  %12012 = vst [vmem:[#allocation15 + $0x1f8] sm:$0xff] %v13168_v3  ;;  %v13203_v61 = vpack.c.bf16 %v15862_v50, %v15860_v10  ;;  %15885 = vtanh.f32 %v13782_v21  ;;  %v13737_v28 = vadd.f32 %v10520_v63, %v17931_v38  ;;  %v10522_v39 = vpop.f32.mrb[57].mxu0 }
 0x991   :  { %v15866_v9 = vpop.eup %15865  ;;  %15887 = vtanh.f32 %v13783_v22  ;;  %v13738_v15 = vadd.f32 %v10522_v39, %v17934_v54  ;;  %v10524_v11 = vpop.f32.mrb[58].mxu0 }
 0x992   :  { %v15868_v32 = vpop.eup %15867  ;;  %12047 = vst [vmem:[#allocation15 + $0x310] sm:$0xff] %v13203_v61  ;;  %15889 = vtanh.f32 %v13784_v12  ;;  %v10866_v34 = vpop.f32.mrb[104].mxu1  ;;  %v13739_v51 = vadd.f32 %v10524_v11, %v17931_v38 }
 0x993   :  { %v15870_v27 = vpop.eup %15869  ;;  %v13207_v52 = vpack.c.bf16 %v15868_v32, %v15864_v31  ;;  %15891 = vtanh.f32 %v13737_v28  ;;  %v13785_v19 = vadd.f32 %v10866_v34, %v17955_v48  ;;  %v10526_v20 = vpop.f32.mrb[59].mxu0 }
 0x994   :  { %v15872_v58 = vpop.eup %15871  ;;  %v13172_v46 = vpack.c.bf16 %v15870_v27, %v15866_v9  ;;  %v10868_v4 = vpop.f32.mrb[105].mxu1  ;;  %15893 = vtanh.f32 %v13738_v15  ;;  %v13740_v0 = vadd.f32 %v10526_v20, %v17934_v54 }
 0x995   :  { %v15874_v14 = vpop.eup %15873  ;;  %12051 = vst [vmem:[#allocation15 + $0x330] sm:$0xff] %v13207_v52  ;;  %v13786_v33 = vadd.f32 %v10868_v4, %v17958_v41  ;;  %v10870_v42 = vpop.f32.mrb[106].mxu1  ;;  %15895 = vtanh.f32 %v13739_v51 }
 0x996   :  { %v15876_v24 = vpop.eup %15875  ;;  %12016 = vst [vmem:[#allocation15 + $0x218] sm:$0xff] %v13172_v46  ;;  %v13176_v49 = vpack.c.bf16 %v15874_v14, %v15872_v58  ;;  %v13787_v36 = vadd.f32 %v10870_v42, %v17955_v48  ;;  %v10872_v45 = vpop.f32.mrb[107].mxu1  ;;  %15897 = vtanh.f32 %v13785_v19 }
 0x997   :  { %v15878_v29 = vpop.eup %15877  ;;  %v13788_v55 = vadd.f32 %v10872_v45, %v17958_v41  ;;  %15899 = vtanh.f32 %v13740_v0  ;;  %v10530_v25 = vpop.f32.mrb[60].mxu0 }
 0x998   :  { %v15880_v18 = vpop.eup %15879  ;;  %12020 = vst [vmem:[#allocation15 + $0x238] sm:$0xff] %v13176_v49  ;;  %v13211_v17 = vpack.c.bf16 %v15878_v29, %v15876_v24  ;;  %15901 = vtanh.f32 %v13786_v33  ;;  %v13741_v1 = vadd.f32 %v10530_v25, %v17931_v38  ;;  %v10532_v56 = vpop.f32.mrb[61].mxu0 }
 0x999   :  { %v15882_v5 = vpop.eup %15881  ;;  %15903 = vtanh.f32 %v13787_v36  ;;  %v13742_v8 = vadd.f32 %v10532_v56, %v17934_v54  ;;  %v10534_v44 = vpop.f32.mrb[62].mxu0 }
 0x99a   :  { %v15884_v30 = vpop.eup %15883  ;;  %12055 = vst [vmem:[#allocation15 + $0x350] sm:$0xff] %v13211_v17  ;;  %15905 = vtanh.f32 %v13788_v55  ;;  %v10876_v6 = vpop.f32.mrb[108].mxu1  ;;  %v13743_v62 = vadd.f32 %v10534_v44, %v17931_v38 }
 0x99b   :  { %v15886_v40 = vpop.eup %15885  ;;  %v13215_v13 = vpack.c.bf16 %v15884_v30, %v15880_v18  ;;  %15907 = vtanh.f32 %v13741_v1  ;;  %v13789_v7 = vadd.f32 %v10876_v6, %v17955_v48  ;;  %v10536_v23 = vpop.f32.mrb[63].mxu0 }
 0x99c   :  { %v15888_v60 = vpop.eup %15887  ;;  %v13180_v26 = vpack.c.bf16 %v15886_v40, %v15882_v5  ;;  %v10878_v53 = vpop.f32.mrb[109].mxu1  ;;  %15909 = vtanh.f32 %v13742_v8  ;;  %v13744_v35 = vadd.f32 %v10536_v23, %v17934_v54 }
 0x99d   :  { %v15890_v2 = vpop.eup %15889  ;;  %12059 = vst [vmem:[#allocation15 + $0x370] sm:$0xff] %v13215_v13  ;;  %v13790_v37 = vadd.f32 %v10878_v53, %v17958_v41  ;;  %v10880_v59 = vpop.f32.mrb[110].mxu1  ;;  %15911 = vtanh.f32 %v13743_v62 }
 0x99e   :  { %v15892_v57 = vpop.eup %15891  ;;  %12024 = vst [vmem:[#allocation15 + $0x258] sm:$0xff] %v13180_v26  ;;  %v13184_v47 = vpack.c.bf16 %v15890_v2, %v15888_v60  ;;  %v13791_v21 = vadd.f32 %v10880_v59, %v17955_v48  ;;  %v10882_v16 = vpop.f32.mrb[111].mxu1  ;;  %15913 = vtanh.f32 %v13789_v7 }
 0x99f   :  { %v15894_v38 = vpop.eup %15893  ;;  %v13792_v10 = vadd.f32 %v10882_v16, %v17958_v41  ;;  %15915 = vtanh.f32 %v13744_v35  ;;  %v10886_v31 = vpop.f32.mrb[112].mxu1 }
 0x9a0   :  { %v15896_v3 = vpop.eup %15895  ;;  %12028 = vst [vmem:[#allocation15 + $0x278] sm:$0xff] %v13184_v47  ;;  %v13219_v22 = vpack.c.bf16 %v15894_v38, %v15892_v57  ;;  %15917 = vtanh.f32 %v13790_v37  ;;  %v13793_v63 = vadd.f32 %v10886_v31, %v17955_v48  ;;  %v10888_v32 = vpop.f32.mrb[113].mxu1 }
 0x9a1   :  { %v15898_v43 = vpop.eup %15897  ;;  %15919 = vtanh.f32 %v13791_v21  ;;  %v13794_v39 = vadd.f32 %v10888_v32, %v17958_v41  ;;  %v10890_v27 = vpop.f32.mrb[114].mxu1 }
 0x9a2   :  { %v15900_v54 = vpop.eup %15899  ;;  %12063 = vst [vmem:[#allocation15 + $0x390] sm:$0xff] %v13219_v22  ;;  %15921 = vtanh.f32 %v13792_v10  ;;  %v13795_v11 = vadd.f32 %v10890_v27, %v17955_v48  ;;  %v10892_v34 = vpop.f32.mrb[115].mxu1 }
 0x9a3   :  { %v15902_v50 = vpop.eup %15901  ;;  %v13223_v12 = vpack.c.bf16 %v15900_v54, %v15896_v3  ;;  %15923 = vtanh.f32 %v13793_v63  ;;  %v13796_v46 = vadd.f32 %v10892_v34, %v17958_v41  ;;  %v10896_v33 = vpop.f32.mrb[116].mxu1 }
 0x9a4   :  { %v15904_v61 = vpop.eup %15903  ;;  %v13188_v9 = vpack.c.bf16 %v15902_v50, %v15898_v43  ;;  %15925 = vtanh.f32 %v13794_v39  ;;  %v13797_v49 = vadd.f32 %v10896_v33, %v17955_v48  ;;  %v10898_v36 = vpop.f32.mrb[117].mxu1 }
 0x9a5   :  { %v15906_v28 = vpop.eup %15905  ;;  %12067 = vst [vmem:[#allocation15 + $0x3b0] sm:$0xff] %v13223_v12  ;;  %15927 = vtanh.f32 %v13795_v11  ;;  %v13798_v29 = vadd.f32 %v10898_v36, %v17958_v41  ;;  %v10900_v55 = vpop.f32.mrb[118].mxu1 }
 0x9a6   :  { %v15908_v52 = vpop.eup %15907  ;;  %12032 = vst [vmem:[#allocation15 + $0x298] sm:$0xff] %v13188_v9  ;;  %v13192_v15 = vpack.c.bf16 %v15906_v28, %v15904_v61  ;;  %15929 = vtanh.f32 %v13796_v46  ;;  %v13799_v17 = vadd.f32 %v10900_v55, %v17955_v48  ;;  %v10902_v5 = vpop.f32.mrb[119].mxu1 }
 0x9a7   :  { %v15910_v58 = vpop.eup %15909  ;;  %15931 = vtanh.f32 %v13797_v49  ;;  %v13800_v25 = vadd.f32 %v10902_v5, %v17958_v41 }
 0x9a8   :  { %v15912_v51 = vpop.eup %15911  ;;  %12036 = vst [vmem:[#allocation15 + $0x2b8] sm:$0xff] %v13192_v15  ;;  %v13227_v19 = vpack.c.bf16 %v15910_v58, %v15908_v52  ;;  %15933 = vtanh.f32 %v13798_v29 }
 0x9a9   :  { %v15914_v20 = vpop.eup %15913  ;;  %15935 = vtanh.f32 %v13799_v17 }
 0x9aa   :  { %v15916_v4 = vpop.eup %15915  ;;  %12071 = vst [vmem:[#allocation15 + $0x3d0] sm:$0xff] %v13227_v19  ;;  %15937 = vtanh.f32 %v13800_v25 }
 0x9ab   :  { %v15918_v14 = vpop.eup %15917  ;;  %v13231_v0 = vpack.c.bf16 %v15916_v4, %v15912_v51  ;;  %v10906_v8 = vpop.f32.mrb[120].mxu1 }
 0x9ac   :  { %v15920_v42 = vpop.eup %15919  ;;  %v13196_v24 = vpack.c.bf16 %v15918_v14, %v15914_v20  ;;  %v13801_v6 = vadd.f32 %v10906_v8, %v17955_v48  ;;  %v10908_v60 = vpop.f32.mrb[121].mxu1 }
 0x9ad   :  { %v15922_v45 = vpop.eup %15921  ;;  %12075 = vst [vmem:[#allocation15 + $0x3f0] sm:$0xff] %v13231_v0  ;;  %v13802_v26 = vadd.f32 %v10908_v60, %v17958_v41  ;;  %v10910_v62 = vpop.f32.mrb[122].mxu1 }
 0x9ae   :  { %12040 = vst [vmem:[#allocation15 + $0x2d8] sm:$0xff] %v13196_v24  ;;  %v13200_v18 = vpack.c.bf16 %v15922_v45, %v15920_v42  ;;  %v15924_v30 = vpop.eup %15923  ;;  %15939 = vtanh.f32 %v13801_v6  ;;  %v13803_v7 = vadd.f32 %v10910_v62, %v17955_v48  ;;  %v10912_v23 = vpop.f32.mrb[123].mxu1 }
 0x9af   :  { %v15926_v1 = vpop.eup %15925  ;;  %15941 = vtanh.f32 %v13802_v26  ;;  %v13804_v53 = vadd.f32 %v10912_v23, %v17958_v41 }
 0x9b0   :  { %12044 = vst [vmem:[#allocation15 + $0x2f8] sm:$0xff] %v13200_v18  ;;  %v15928_v56 = vpop.eup %15927  ;;  %v13204_v40 = vpack.c.bf16 %v15926_v1, %v15924_v30  ;;  %15943 = vtanh.f32 %v13803_v7 }
 0x9b1   :  { %v15930_v13 = vpop.eup %15929  ;;  %15945 = vtanh.f32 %v13804_v53 }
 0x9b2   :  { %12048 = vst [vmem:[#allocation15 + $0x318] sm:$0xff] %v13204_v40  ;;  %v13208_v44 = vpack.c.bf16 %v15930_v13, %v15928_v56  ;;  %v15932_v2 = vpop.eup %15931 }
 0x9b3   :  { %v15934_v35 = vpop.eup %15933  ;;  %v10916_v47 = vpop.f32.mrb[124].mxu1 }
 0x9b4   :  { %12052 = vst [vmem:[#allocation15 + $0x338] sm:$0xff] %v13208_v44  ;;  %v15936_v37 = vpop.eup %15935  ;;  %v13212_v59 = vpack.c.bf16 %v15934_v35, %v15932_v2  ;;  %v13805_v16 = vadd.f32 %v10916_v47, %v17955_v48  ;;  %v10918_v38 = vpop.f32.mrb[125].mxu1 }
 0x9b5   :  { %v15938_v57 = vpop.eup %15937  ;;  %v13806_v10 = vadd.f32 %v10918_v38, %v17958_v41  ;;  %v10920_v3 = vpop.f32.mrb[126].mxu1 }
 0x9b6   :  { %12056 = vst [vmem:[#allocation15 + $0x358] sm:$0xff] %v13212_v59  ;;  %v13216_v21 = vpack.c.bf16 %v15938_v57, %v15936_v37  ;;  %15947 = vtanh.f32 %v13805_v16  ;;  %v13807_v22 = vadd.f32 %v10920_v3, %v17955_v48  ;;  %v10922_v43 = vpop.f32.mrb[127].mxu1 }
 0x9b7   :  { %15949 = vtanh.f32 %v13806_v10  ;;  %v13808_v54 = vadd.f32 %v10922_v43, %v17958_v41 }
 0x9b8   :  { %12060 = vst [vmem:[#allocation15 + $0x378] sm:$0xff] %v13216_v21  ;;  %v15940_v50 = vpop.eup %15939  ;;  %15951 = vtanh.f32 %v13807_v22 }
 0x9b9   :  { %v15942_v12 = vpop.eup %15941  ;;  %15953 = vtanh.f32 %v13808_v54 }
 0x9ba   :  { %v15944_v31 = vpop.eup %15943  ;;  %v13220_v61 = vpack.c.bf16 %v15942_v12, %v15940_v50 }
 0x9bb   :  { %v15946_v9 = vpop.eup %15945 }
 0x9bc   :  { %12064 = vst [vmem:[#allocation15 + $0x398] sm:$0xff] %v13220_v61  ;;  %v13224_v63 = vpack.c.bf16 %v15946_v9, %v15944_v31 }
 0x9be   :  { %12068 = vst [vmem:[#allocation15 + $0x3b8] sm:$0xff] %v13224_v63 }
 0x9c0   :  { %v15948_v32 = vpop.eup %15947 }
 0x9c1   :  { %v15950_v28 = vpop.eup %15949 }
 0x9c2   :  { %v15952_v39 = vpop.eup %15951  ;;  %v13228_v48 = vpack.c.bf16 %v15950_v28, %v15948_v32 }
 0x9c3   :  { %v15954_v27 = vpop.eup %15953 }
 0x9c4   :  { %12072 = vst [vmem:[#allocation15 + $0x3d8] sm:$0xff] %v13228_v48  ;;  %v13232_v52 = vpack.c.bf16 %v15954_v27, %v15952_v39 }
 0x9c6   :  { %12076 = vst [vmem:[#allocation15 + $0x3f8] sm:$0xff] %v13232_v52 }
 0x9c7   :  { %16143 = shalt.err (!%p16140_p12)
}
 0x9c8   :  { %s16144_s20 = scalar_lea.hbm %s18112_s13, 16384 }
 0x9c9   :  { %p16145_p13 = scmp.ne.s32.totalorder %s18112_s13, %s16144_s20  ;;  %p16148_p0 = scmp.lt.u32.totalorder %s16144_s20, %s18112_s13 }
 0x9cb   :  { %p16150_p1 = pnand %p16148_p0, %p16145_p13 }
 0x9cd   :  { %16153 = shalt.err (!%p16150_p1)
}
 0x9ce   :  { %12100 = dma.vmem_to_hbm [thread:$0]  %s12095_s18, 16384, %s18112_s13, [#allocation16], %s16174_s8, %s16174_s8, %s16175_s25  }
 0x9cf   :  { %16162 = dma.done.wait [#allocation4], 12288  }
 0x9d0   :  { %16163 = vsyncadd [#allocation4], 4294955008 }
 0x9d1   :  { %16164 = dma.done.wait [#allocation16], 16384  }
 0x9d2   :  { %16165 = vsyncadd [#allocation16], 4294950912 }
 0x9d3   :  { %12107 = vsyncpa [#allocation3], 1 }
 0x9d4   :  { %12108 = vsyncpa [#allocation6], 1 }
 0x9d5   :  { %12109 = vsyncpa [#allocation9], 1 }
 0x9d6   :  { %12110 = vsyncpa [#allocation12], 1 }
 0x9d7   :  { %12111 = vsyncpa [#allocation4], 1 }
 0x9d8   :  { %12112 = vsyncpa [#allocation16], 1 }

</bundles_post_ra>
